<compile_context>
chip_gen: v7x
topology: tpu7x:2x2x1
jax: 0.10.0
libtpu: 0.0.40
codegen_flags: <defaults>
</compile_context>

<pallas_src>
import functools

import jax
import jax.numpy as jnp
from jax import lax
from jax.experimental import pallas as pl
from jax.experimental.pallas import tpu as pltpu

FILTER_SIZES = (5, 10, 15, 20)
NF = len(FILTER_SIZES)                 # 4 filters
MAX_S = max(FILTER_SIZES)              # 20 taps
D = 768                                # embedding width (conv spans all of it)
L = 256                                # sequence length -> 325 Linear in-features
POOL_K = 3
OUT_FEATURES = 100

L_OUTS = tuple(L - s + 1 for s in FILTER_SIZES)        # (252, 247, 242, 237)
POOL_LENS = tuple(lo // POOL_K for lo in L_OUTS)       # (84, 82, 80, 79)
assert sum(POOL_LENS) == 325, POOL_LENS

LANE_PAD = 128       # zeroed lane padding on scratches (>= MAX_S, 128-aligned)

# --- static invariants keeping the in-block shifted reads batch-safe --------
# The tap shift-sum and the 3-wide pool maxes read past l_out inside a block;
# that is only safe because (a) every position G keeps stays inside the same
# batch element's columns and (b) overruns past the block land in zeroed
# padding.  Lock those facts in so a future change to L / FILTER_SIZES fails
# loudly instead of silently contaminating across batch elements.
for _s, _lo, _p in zip(FILTER_SIZES, L_OUTS, POOL_LENS):
    assert _lo == L - _s + 1, (_s, _lo, L)
    assert POOL_K * _p <= _lo, (_p, _lo)          # pool windows inside l_out
    assert (_lo - 1) + (_s - 1) <= L - 1, (_lo, _s, L)  # deepest tap in-row
assert MAX_S - 1 <= LANE_PAD and POOL_K - 1 <= LANE_PAD


def _textcnn_kernel(x_ref, w_ref, cb_ref, g_ref, bl_ref, o_ref,
                    z_ref, conv_ref, mm_ref, *, bt):
    ct = bt * L                                          # lanes per block

    # ---- fused conv matmul: one bf16 MXU issue for all 4 filters x 20 taps --
    # x block is the natural (bt*L, D) slab; contract on D with the rhs
    # "transposed" (NT dim numbers) so no transpose of x is ever materialized.
    # bf16 x bf16 -> f32 accumulate keeps the MXU single-pass on every
    # generation (the old implicit-f32 dot was 3-6 MXU passes and the critical
    # unit on v7x / v5e).
    xb = x_ref[...].astype(jnp.bfloat16)
    z = lax.dot_general(
        w_ref[...], xb,
        dimension_numbers=(((1,), (1,)), ((), ())),
        preferred_element_type=jnp.float32,
    )                                                    # (NF*MAX_S, bt*L) f32
    z_ref[:, :ct] = z
    # Keep the per-step pad zeroing (it is ~14 vregs of stores).  Hoisting it
    # behind program_id == 0 would break under v7x megacore sharding: the core
    # that never executes step 0 would read uninitialized padding below.
    z_ref[:, ct:] = jnp.zeros((NF * MAX_S, LANE_PAD), jnp.float32)

    # ---- diagonal shift-sum: conv[f, b*L+t] = sum_i z[NF*i+f, b*L+t+i] -------
    # Rows are tap-grouped, so each tap needs a single 4-row shifted add; the
    # shifted reads that run past column ct land in the zeroed padding and only
    # feed positions t >= l_out, which G later multiplies by zero.
    acc = z_ref[0:NF, 0:ct]                              # tap 0: no shift
    for i in range(1, MAX_S):
        zi = z_ref[NF * i:NF * (i + 1), :]               # (NF, ct + LANE_PAD)
        acc = acc + zi[:, i:i + ct]
    conv_ref[:, :ct] = jnp.maximum(acc + cb_ref[...], 0.0)   # bias + ReLU
    conv_ref[:, ct:] = jnp.zeros((NF, LANE_PAD), jnp.float32)

    # ---- max_pool1d(kernel_size=3, stride=3) ---------------------------------
    # Window max via two shifted copies; the stride-3 selection is folded into
    # the constant G matrix of the Linear layer (built host-side).
    cfull = conv_ref[...]
    m = jnp.maximum(cfull[:, 0:ct],
                    jnp.maximum(cfull[:, 1:1 + ct], cfull[:, 2:2 + ct]))

    # Regroup to (batch on sublanes, filter-major lanes) for one Linear matmul.
    # NOTE(perf review): could be NF block stores via a (1, bt*L)->(bt, L)
    # relayout, but this path is hidden under DMA slack and the per-row stores
    # are the known-good lowering, so they are kept.
    for f in range(NF):
        for b in range(bt):
            mm_ref[b:b + 1, f * L:(f + 1) * L] = m[f:f + 1, b * L:(b + 1) * L]

    # ---- Linear(325, 100): one (bt, NF*L) @ (NF*L, 100) bf16 MXU matmul ------
    out = jnp.dot(mm_ref[...].astype(jnp.bfloat16), g_ref[...],
                  preferred_element_type=jnp.float32)
    o_ref[...] = (out + bl_ref[...]).astype(o_ref.dtype)


def _pack_params(params):
    """Fuse/reshape the PyTorch-style parameters into 4 kernel operands."""
    conv_ws, conv_bs, wl, bl = params

    # Fused conv weight, tap-major: row NF*i + f holds filter f's tap i (else 0).
    w_all = jnp.zeros((NF * MAX_S, D), jnp.float32)
    for f, w in enumerate(conv_ws):
        s = FILTER_SIZES[f]
        w_all = w_all.at[NF * jnp.arange(s) + f, :].set(w.astype(jnp.float32))

    cb4 = jnp.stack(conv_bs).astype(jnp.float32).reshape(NF, 1)

    # G folds (a) the stride-3 max-pool selection and (b) the per-filter split
    # of the Linear weight: G[f*L + u, :] = wl[:, seg_f + u//3] when u % 3 == 0
    # and u//3 < p_f, else 0.  Then out = Mmat @ G + bl.
    g_blocks = []
    off = 0
    for f in range(NF):
        p = POOL_LENS[f]
        seg = wl[:, off:off + p].T.astype(jnp.float32)             # (p, 100)
        gf = jnp.zeros((L, OUT_FEATURES), jnp.float32)
        gf = gf.at[POOL_K * jnp.arange(p), :].set(seg)
        g_blocks.append(gf)
        off += p
    g2 = jnp.concatenate(g_blocks, axis=0)                         # (NF*L, 100)

    bl_row = bl.astype(jnp.float32).reshape(1, OUT_FEATURES)
    # Matmul operands go down as bf16 (single-pass MXU); biases stay f32 since
    # they are added post-accumulation.
    return (w_all.astype(jnp.bfloat16), cb4,
            g2.astype(jnp.bfloat16), bl_row)


def _pick_block_batch(batch):
    # bt=16 amortizes the ~0.35us fixed per-step overhead; fall back to bt=8
    # for small batches so the grid keeps >=2 steps (v7x megacore sharding)
    # and the padding waste stays low.  (bt=32 would also fit v5e/v6e's
    # 128 MiB VMEM but not reliably v7x's 64 MiB, so it is not used here.)
    return 16 if batch >= 32 else 8


def textcnn_forward(x, params, *, block_batch=None):
    """x: (B, 256, 768) float32 -> (B, 100) float32 (matches TextCNN.forward)."""
    B = x.shape[0]
    assert x.shape[1:] == (L, D), x.shape
    bt = _pick_block_batch(B) if block_batch is None else block_batch
    w_all, cb4, g2, bl_row = _pack_params(params)

    b_pad = ((B + bt - 1) // bt) * bt
    if b_pad != B:
        x = jnp.concatenate([x, jnp.zeros((b_pad - B, L, D), x.dtype)], axis=0)
    # Row-major collapse is free (no data movement): the kernel reads natural
    # layout slabs, so there is no extra HBM transpose pass anywhere.  x stays
    # f32 in HBM (casting here would add a full extra HBM pass).
    x2 = x.reshape(b_pad * L, D).astype(jnp.float32)

    ct = bt * L
    grid = (b_pad // bt,)
    kernel = functools.partial(_textcnn_kernel, bt=bt)

    flops = int(b_pad) * (2 * NF * MAX_S * D * L + 2 * NF * L * OUT_FEATURES)
    bytes_accessed = int(x2.size * 4 + w_all.size * 2 + g2.size * 2
                         + b_pad * OUT_FEATURES * 4)

    # VMEM budget: x block (f32) double-buffered + in-kernel bf16 cast temp +
    # z/conv/mm scratch + bf16 constants.  bt=16 needs ~40 MiB; bt=8 ~20 MiB.
    vmem_limit = (48 if bt >= 16 else 32) * 1024 * 1024

    out = pl.pallas_call(
        kernel,
        out_shape=jax.ShapeDtypeStruct((b_pad, OUT_FEATURES), jnp.float32),
        grid=grid,
        in_specs=[
            pl.BlockSpec((ct, D), lambda i: (i, 0)),                  # x slab
            pl.BlockSpec((NF * MAX_S, D), lambda i: (0, 0)),          # fused W
            pl.BlockSpec((NF, 1), lambda i: (0, 0)),                  # conv bias
            pl.BlockSpec((NF * L, OUT_FEATURES), lambda i: (0, 0)),   # G
            pl.BlockSpec((1, OUT_FEATURES), lambda i: (0, 0)),        # lin bias
        ],
        out_specs=pl.BlockSpec((bt, OUT_FEATURES), lambda i: (i, 0)),
        scratch_shapes=[
            pltpu.VMEM((NF * MAX_S, ct + LANE_PAD), jnp.float32),     # z
            pltpu.VMEM((NF, ct + LANE_PAD), jnp.float32),             # conv
            pltpu.VMEM((bt, NF * L), jnp.float32),                    # pooled
        ],
        compiler_params=pltpu.CompilerParams(
            dimension_semantics=("parallel",),
            vmem_limit_bytes=vmem_limit,
        ),
        cost_estimate=pl.CostEstimate(
            flops=flops, transcendentals=0, bytes_accessed=bytes_accessed),
    )(x2, w_all, cb4, g2, bl_row)
    # Padded batch rows carry bias-only values; sliced off here, do not reuse.
    return out[:B]


def init_params(key):
    """Deterministic synthetic parameters with TextCNN.__init__ shapes."""
    keys = jax.random.split(key, 2 * NF + 2)
    conv_ws, conv_bs = [], []
    for i, s in enumerate(FILTER_SIZES):
        conv_ws.append(0.02 * jax.random.normal(keys[2 * i], (s, D), jnp.float32))
        conv_bs.append(0.02 * jax.random.normal(keys[2 * i + 1], (), jnp.float32))
    wl = 0.02 * jax.random.normal(keys[-2], (OUT_FEATURES, 325), jnp.float32)
    bl = 0.02 * jax.random.normal(keys[-1], (OUT_FEATURES,), jnp.float32)
    return conv_ws, conv_bs, wl, bl


def reference_forward(x, params):
    """Pure-JAX reference mirroring the PyTorch forward exactly."""
    conv_ws, conv_bs, wl, bl = params
    B = x.shape[0]
    xi = x[:, None, :, :].astype(jnp.float32)                   # NCHW (B,1,L,D)
    pooled_all = []
    for s, w, b in zip(FILTER_SIZES, conv_ws, conv_bs):
        k = w.reshape(1, 1, s, D).astype(jnp.float32)           # OIHW
        h = lax.conv_general_dilated(
            xi, k, window_strides=(1, 1), padding="VALID",
            dimension_numbers=("NCHW", "OIHW", "NCHW"))         # (B,1,l_out,1)
        h = jnp.maximum(h[:, 0, :, 0] + b, 0.0)                 # (B, l_out)
        p = (L - s + 1) // POOL_K
        pooled = jnp.max(h[:, :p * POOL_K].reshape(B, p, POOL_K), axis=2)
        pooled_all.append(pooled)
    hp = jnp.concatenate(pooled_all, axis=1)                    # (B, 325)
    return hp @ wl.T + bl


if __name__ == "__main__":
    key = jax.random.PRNGKey(0)
    pkey, xkey = jax.random.split(key)
    params = init_params(pkey)

    B = 12                                        # small batch -> bt=8, 2 steps
    x = jax.random.normal(xkey, (B, L, D), jnp.float32)

    out = jax.block_until_ready(textcnn_forward(x, params))
    ref = jax.block_until_ready(reference_forward(x, params))

    assert out.shape == (B, OUT_FEATURES), out.shape
    assert bool(jnp.all(jnp.isfinite(out)))
    err = float(jnp.max(jnp.abs(out - ref)))
    tol = 1e-2 * (float(jnp.max(jnp.abs(ref))) + 1.0)
    assert err < tol, f"max abs err {err} (tol {tol})"
    print("KERNEL_OK")
</pallas_src>

<mosaic_0001>
module attributes {stable_mosaic.version = 11 : i64} {
  func.func @_textcnn_kernel(%arg0: i32, %arg1: memref<2048x768xf32, #tpu.memory_space<vmem>>, %arg2: memref<80x768xbf16, #tpu.memory_space<vmem>>, %arg3: memref<4x1xf32, #tpu.memory_space<vmem>>, %arg4: memref<1024x100xbf16, #tpu.memory_space<vmem>>, %arg5: memref<1x100xf32, #tpu.memory_space<vmem>>, %arg6: memref<8x100xf32, #tpu.memory_space<vmem>>, %arg7: memref<80x2176xf32, #tpu.memory_space<vmem>>, %arg8: memref<4x2176xf32, #tpu.memory_space<vmem>>, %arg9: memref<8x1024xf32, #tpu.memory_space<vmem>>) attributes {dimension_semantics = [#tpu.dimension_semantics<parallel>], iteration_bounds = array<i64: 2>, scalar_prefetch = 0 : i64, scratch_operands = 3 : i64, tpu.core_type = #tpu.core_type<tc>, window_params = [{transform_indices = @transform_0, window_bounds = array<i64: 2048, 768>}, {pipeline_mode = #tpu.pipeline_mode<synchronous>, transform_indices = @transform_1, window_bounds = array<i64: 80, 768>}, {pipeline_mode = #tpu.pipeline_mode<synchronous>, transform_indices = @transform_2, window_bounds = array<i64: 4, 1>}, {pipeline_mode = #tpu.pipeline_mode<synchronous>, transform_indices = @transform_3, window_bounds = array<i64: 1024, 100>}, {pipeline_mode = #tpu.pipeline_mode<synchronous>, transform_indices = @transform_4, window_bounds = array<i64: 1, 100>}, {transform_indices = @transform_5, window_bounds = array<i64: 8, 100>}]} {
    %c0 = arith.constant 0 : index
    %c0_0 = arith.constant 0 : index
    %0 = vector.load %arg1[%c0, %c0_0] : memref<2048x768xf32, #tpu.memory_space<vmem>>, vector<2048x768xf32>
    %1 = arith.truncf %0 : vector<2048x768xf32> to vector<2048x768xbf16>
    %c0_1 = arith.constant 0 : index
    %c0_2 = arith.constant 0 : index
    %2 = vector.load %arg2[%c0_1, %c0_2] : memref<80x768xbf16, #tpu.memory_space<vmem>>, vector<80x768xbf16>
    %cst = arith.constant dense<0.000000e+00> : vector<80x2048xf32>
    %3 = tpu.matmul %2, %1, %cst {dimension_numbers = #tpu.dot_dimension_numbers<[1], [1], [0], [0], [0, 0, 1, 0], [], []>} : vector<80x768xbf16>, vector<2048x768xbf16>, vector<80x2048xf32> -> vector<80x2048xf32>
    %c0_3 = arith.constant 0 : index
    %c0_4 = arith.constant 0 : index
    %4 = vector.load %arg7[%c0_3, %c0_4] : memref<80x2176xf32, #tpu.memory_space<vmem>>, vector<80x2048xf32>
    tpu.vector_store %arg7[%c0_3, %c0_4], %3 {strides = array<i32>} : memref<80x2176xf32, #tpu.memory_space<vmem>>, vector<80x2048xf32>,
    %cst_5 = arith.constant 0.000000e+00 : f32
    %5 = vector.broadcast %cst_5 : f32 to vector<80x128xf32>
    %c0_6 = arith.constant 0 : index
    %c2048 = arith.constant 2048 : index
    %6 = vector.load %arg7[%c0_6, %c2048] : memref<80x2176xf32, #tpu.memory_space<vmem>>, vector<80x128xf32>
    tpu.vector_store %arg7[%c0_6, %c2048], %5 {strides = array<i32>} : memref<80x2176xf32, #tpu.memory_space<vmem>>, vector<80x128xf32>,
    %c0_7 = arith.constant 0 : index
    %c0_8 = arith.constant 0 : index
    %7 = vector.load %arg7[%c0_7, %c0_8] : memref<80x2176xf32, #tpu.memory_space<vmem>>, vector<4x2048xf32>
    %c4 = arith.constant 4 : index
    %c0_9 = arith.constant 0 : index
    %8 = vector.load %arg7[%c4, %c0_9] : memref<80x2176xf32, #tpu.memory_space<vmem>>, vector<4x2176xf32>
    %9 = vector.extract_strided_slice %8 {offsets = [0, 1], sizes = [4, 2048], strides = [1, 1]} : vector<4x2176xf32> to vector<4x2048xf32>
    %10 = arith.addf %7, %9 : vector<4x2048xf32>
    %c8 = arith.constant 8 : index
    %c0_10 = arith.constant 0 : index
    %11 = vector.load %arg7[%c8, %c0_10] : memref<80x2176xf32, #tpu.memory_space<vmem>>, vector<4x2176xf32>
    %12 = vector.extract_strided_slice %11 {offsets = [0, 2], sizes = [4, 2048], strides = [1, 1]} : vector<4x2176xf32> to vector<4x2048xf32>
    %13 = arith.addf %10, %12 : vector<4x2048xf32>
    %c12 = arith.constant 12 : index
    %c0_11 = arith.constant 0 : index
    %14 = vector.load %arg7[%c12, %c0_11] : memref<80x2176xf32, #tpu.memory_space<vmem>>, vector<4x2176xf32>
    %15 = vector.extract_strided_slice %14 {offsets = [0, 3], sizes = [4, 2048], strides = [1, 1]} : vector<4x2176xf32> to vector<4x2048xf32>
    %16 = arith.addf %13, %15 : vector<4x2048xf32>
    %c16 = arith.constant 16 : index
    %c0_12 = arith.constant 0 : index
    %17 = vector.load %arg7[%c16, %c0_12] : memref<80x2176xf32, #tpu.memory_space<vmem>>, vector<4x2176xf32>
    %18 = vector.extract_strided_slice %17 {offsets = [0, 4], sizes = [4, 2048], strides = [1, 1]} : vector<4x2176xf32> to vector<4x2048xf32>
    %19 = arith.addf %16, %18 : vector<4x2048xf32>
    %c20 = arith.constant 20 : index
    %c0_13 = arith.constant 0 : index
    %20 = vector.load %arg7[%c20, %c0_13] : memref<80x2176xf32, #tpu.memory_space<vmem>>, vector<4x2176xf32>
    %21 = vector.extract_strided_slice %20 {offsets = [0, 5], sizes = [4, 2048], strides = [1, 1]} : vector<4x2176xf32> to vector<4x2048xf32>
    %22 = arith.addf %19, %21 : vector<4x2048xf32>
    %c24 = arith.constant 24 : index
    %c0_14 = arith.constant 0 : index
    %23 = vector.load %arg7[%c24, %c0_14] : memref<80x2176xf32, #tpu.memory_space<vmem>>, vector<4x2176xf32>
    %24 = vector.extract_strided_slice %23 {offsets = [0, 6], sizes = [4, 2048], strides = [1, 1]} : vector<4x2176xf32> to vector<4x2048xf32>
    %25 = arith.addf %22, %24 : vector<4x2048xf32>
    %c28 = arith.constant 28 : index
    %c0_15 = arith.constant 0 : index
    %26 = vector.load %arg7[%c28, %c0_15] : memref<80x2176xf32, #tpu.memory_space<vmem>>, vector<4x2176xf32>
    %27 = vector.extract_strided_slice %26 {offsets = [0, 7], sizes = [4, 2048], strides = [1, 1]} : vector<4x2176xf32> to vector<4x2048xf32>
    %28 = arith.addf %25, %27 : vector<4x2048xf32>
    %c32 = arith.constant 32 : index
    %c0_16 = arith.constant 0 : index
    %29 = vector.load %arg7[%c32, %c0_16] : memref<80x2176xf32, #tpu.memory_space<vmem>>, vector<4x2176xf32>
    %30 = vector.extract_strided_slice %29 {offsets = [0, 8], sizes = [4, 2048], strides = [1, 1]} : vector<4x2176xf32> to vector<4x2048xf32>
    %31 = arith.addf %28, %30 : vector<4x2048xf32>
    %c36 = arith.constant 36 : index
    %c0_17 = arith.constant 0 : index
    %32 = vector.load %arg7[%c36, %c0_17] : memref<80x2176xf32, #tpu.memory_space<vmem>>, vector<4x2176xf32>
    %33 = vector.extract_strided_slice %32 {offsets = [0, 9], sizes = [4, 2048], strides = [1, 1]} : vector<4x2176xf32> to vector<4x2048xf32>
    %34 = arith.addf %31, %33 : vector<4x2048xf32>
    %c40 = arith.constant 40 : index
    %c0_18 = arith.constant 0 : index
    %35 = vector.load %arg7[%c40, %c0_18] : memref<80x2176xf32, #tpu.memory_space<vmem>>, vector<4x2176xf32>
    %36 = vector.extract_strided_slice %35 {offsets = [0, 10], sizes = [4, 2048], strides = [1, 1]} : vector<4x2176xf32> to vector<4x2048xf32>
    %37 = arith.addf %34, %36 : vector<4x2048xf32>
    %c44 = arith.constant 44 : index
    %c0_19 = arith.constant 0 : index
    %38 = vector.load %arg7[%c44, %c0_19] : memref<80x2176xf32, #tpu.memory_space<vmem>>, vector<4x2176xf32>
    %39 = vector.extract_strided_slice %38 {offsets = [0, 11], sizes = [4, 2048], strides = [1, 1]} : vector<4x2176xf32> to vector<4x2048xf32>
    %40 = arith.addf %37, %39 : vector<4x2048xf32>
    %c48 = arith.constant 48 : index
    %c0_20 = arith.constant 0 : index
    %41 = vector.load %arg7[%c48, %c0_20] : memref<80x2176xf32, #tpu.memory_space<vmem>>, vector<4x2176xf32>
    %42 = vector.extract_strided_slice %41 {offsets = [0, 12], sizes = [4, 2048], strides = [1, 1]} : vector<4x2176xf32> to vector<4x2048xf32>
    %43 = arith.addf %40, %42 : vector<4x2048xf32>
    %c52 = arith.constant 52 : index
    %c0_21 = arith.constant 0 : index
    %44 = vector.load %arg7[%c52, %c0_21] : memref<80x2176xf32, #tpu.memory_space<vmem>>, vector<4x2176xf32>
    %45 = vector.extract_strided_slice %44 {offsets = [0, 13], sizes = [4, 2048], strides = [1, 1]} : vector<4x2176xf32> to vector<4x2048xf32>
    %46 = arith.addf %43, %45 : vector<4x2048xf32>
    %c56 = arith.constant 56 : index
    %c0_22 = arith.constant 0 : index
    %47 = vector.load %arg7[%c56, %c0_22] : memref<80x2176xf32, #tpu.memory_space<vmem>>, vector<4x2176xf32>
    %48 = vector.extract_strided_slice %47 {offsets = [0, 14], sizes = [4, 2048], strides = [1, 1]} : vector<4x2176xf32> to vector<4x2048xf32>
    %49 = arith.addf %46, %48 : vector<4x2048xf32>
    %c60 = arith.constant 60 : index
    %c0_23 = arith.constant 0 : index
    %50 = vector.load %arg7[%c60, %c0_23] : memref<80x2176xf32, #tpu.memory_space<vmem>>, vector<4x2176xf32>
    %51 = vector.extract_strided_slice %50 {offsets = [0, 15], sizes = [4, 2048], strides = [1, 1]} : vector<4x2176xf32> to vector<4x2048xf32>
    %52 = arith.addf %49, %51 : vector<4x2048xf32>
    %c64 = arith.constant 64 : index
    %c0_24 = arith.constant 0 : index
    %53 = vector.load %arg7[%c64, %c0_24] : memref<80x2176xf32, #tpu.memory_space<vmem>>, vector<4x2176xf32>
    %54 = vector.extract_strided_slice %53 {offsets = [0, 16], sizes = [4, 2048], strides = [1, 1]} : vector<4x2176xf32> to vector<4x2048xf32>
    %55 = arith.addf %52, %54 : vector<4x2048xf32>
    %c68 = arith.constant 68 : index
    %c0_25 = arith.constant 0 : index
    %56 = vector.load %arg7[%c68, %c0_25] : memref<80x2176xf32, #tpu.memory_space<vmem>>, vector<4x2176xf32>
    %57 = vector.extract_strided_slice %56 {offsets = [0, 17], sizes = [4, 2048], strides = [1, 1]} : vector<4x2176xf32> to vector<4x2048xf32>
    %58 = arith.addf %55, %57 : vector<4x2048xf32>
    %c72 = arith.constant 72 : index
    %c0_26 = arith.constant 0 : index
    %59 = vector.load %arg7[%c72, %c0_26] : memref<80x2176xf32, #tpu.memory_space<vmem>>, vector<4x2176xf32>
    %60 = vector.extract_strided_slice %59 {offsets = [0, 18], sizes = [4, 2048], strides = [1, 1]} : vector<4x2176xf32> to vector<4x2048xf32>
    %61 = arith.addf %58, %60 : vector<4x2048xf32>
    %c76 = arith.constant 76 : index
    %c0_27 = arith.constant 0 : index
    %62 = vector.load %arg7[%c76, %c0_27] : memref<80x2176xf32, #tpu.memory_space<vmem>>, vector<4x2176xf32>
    %63 = vector.extract_strided_slice %62 {offsets = [0, 19], sizes = [4, 2048], strides = [1, 1]} : vector<4x2176xf32> to vector<4x2048xf32>
    %64 = arith.addf %61, %63 : vector<4x2048xf32>
    %c0_28 = arith.constant 0 : index
    %c0_29 = arith.constant 0 : index
    %65 = vector.load %arg3[%c0_28, %c0_29] : memref<4x1xf32, #tpu.memory_space<vmem>>, vector<4x1xf32>
    %66 = vector.broadcast %65 : vector<4x1xf32> to vector<4x2048xf32>
    %67 = arith.addf %64, %66 : vector<4x2048xf32>
    %cst_30 = arith.constant 0.000000e+00 : f32
    %68 = vector.broadcast %cst_30 : f32 to vector<4x2048xf32>
    %69 = arith.maximumf %67, %68 : vector<4x2048xf32>
    %c0_31 = arith.constant 0 : index
    %c0_32 = arith.constant 0 : index
    %70 = vector.load %arg8[%c0_31, %c0_32] : memref<4x2176xf32, #tpu.memory_space<vmem>>, vector<4x2048xf32>
    tpu.vector_store %arg8[%c0_31, %c0_32], %69 {strides = array<i32>} : memref<4x2176xf32, #tpu.memory_space<vmem>>, vector<4x2048xf32>,
    %cst_33 = arith.constant 0.000000e+00 : f32
    %71 = vector.broadcast %cst_33 : f32 to vector<4x128xf32>
    %c0_34 = arith.constant 0 : index
    %c2048_35 = arith.constant 2048 : index
    %72 = vector.load %arg8[%c0_34, %c2048_35] : memref<4x2176xf32, #tpu.memory_space<vmem>>, vector<4x128xf32>
    tpu.vector_store %arg8[%c0_34, %c2048_35], %71 {strides = array<i32>} : memref<4x2176xf32, #tpu.memory_space<vmem>>, vector<4x128xf32>,
    %c0_36 = arith.constant 0 : index
    %c0_37 = arith.constant 0 : index
    %73 = vector.load %arg8[%c0_36, %c0_37] : memref<4x2176xf32, #tpu.memory_space<vmem>>, vector<4x2176xf32>
    %74 = vector.extract_strided_slice %73 {offsets = [0, 0], sizes = [4, 2048], strides = [1, 1]} : vector<4x2176xf32> to vector<4x2048xf32>
    %75 = vector.extract_strided_slice %73 {offsets = [0, 1], sizes = [4, 2048], strides = [1, 1]} : vector<4x2176xf32> to vector<4x2048xf32>
    %76 = vector.extract_strided_slice %73 {offsets = [0, 2], sizes = [4, 2048], strides = [1, 1]} : vector<4x2176xf32> to vector<4x2048xf32>
    %77 = arith.maximumf %75, %76 : vector<4x2048xf32>
    %78 = arith.maximumf %74, %77 : vector<4x2048xf32>
    %79 = vector.extract_strided_slice %78 {offsets = [0, 0], sizes = [1, 256], strides = [1, 1]} : vector<4x2048xf32> to vector<1x256xf32>
    %c0_38 = arith.constant 0 : index
    %c0_39 = arith.constant 0 : index
    %80 = vector.load %arg9[%c0_38, %c0_39] : memref<8x1024xf32, #tpu.memory_space<vmem>>, vector<1x256xf32>
    tpu.vector_store %arg9[%c0_38, %c0_39], %79 {strides = array<i32>} : memref<8x1024xf32, #tpu.memory_space<vmem>>, vector<1x256xf32>,
    %81 = vector.extract_strided_slice %78 {offsets = [0, 256], sizes = [1, 256], strides = [1, 1]} : vector<4x2048xf32> to vector<1x256xf32>
    %c1 = arith.constant 1 : index
    %c0_40 = arith.constant 0 : index
    %82 = vector.load %arg9[%c1, %c0_40] : memref<8x1024xf32, #tpu.memory_space<vmem>>, vector<1x256xf32>
    tpu.vector_store %arg9[%c1, %c0_40], %81 {strides = array<i32>} : memref<8x1024xf32, #tpu.memory_space<vmem>>, vector<1x256xf32>,
    %83 = vector.extract_strided_slice %78 {offsets = [0, 512], sizes = [1, 256], strides = [1, 1]} : vector<4x2048xf32> to vector<1x256xf32>
    %c2 = arith.constant 2 : index
    %c0_41 = arith.constant 0 : index
    %84 = vector.load %arg9[%c2, %c0_41] : memref<8x1024xf32, #tpu.memory_space<vmem>>, vector<1x256xf32>
    tpu.vector_store %arg9[%c2, %c0_41], %83 {strides = array<i32>} : memref<8x1024xf32, #tpu.memory_space<vmem>>, vector<1x256xf32>,
    %85 = vector.extract_strided_slice %78 {offsets = [0, 768], sizes = [1, 256], strides = [1, 1]} : vector<4x2048xf32> to vector<1x256xf32>
    %c3 = arith.constant 3 : index
    %c0_42 = arith.constant 0 : index
    %86 = vector.load %arg9[%c3, %c0_42] : memref<8x1024xf32, #tpu.memory_space<vmem>>, vector<1x256xf32>
    tpu.vector_store %arg9[%c3, %c0_42], %85 {strides = array<i32>} : memref<8x1024xf32, #tpu.memory_space<vmem>>, vector<1x256xf32>,
    %87 = vector.extract_strided_slice %78 {offsets = [0, 1024], sizes = [1, 256], strides = [1, 1]} : vector<4x2048xf32> to vector<1x256xf32>
    %c4_43 = arith.constant 4 : index
    %c0_44 = arith.constant 0 : index
    %88 = vector.load %arg9[%c4_43, %c0_44] : memref<8x1024xf32, #tpu.memory_space<vmem>>, vector<1x256xf32>
    tpu.vector_store %arg9[%c4_43, %c0_44], %87 {strides = array<i32>} : memref<8x1024xf32, #tpu.memory_space<vmem>>, vector<1x256xf32>,
    %89 = vector.extract_strided_slice %78 {offsets = [0, 1280], sizes = [1, 256], strides = [1, 1]} : vector<4x2048xf32> to vector<1x256xf32>
    %c5 = arith.constant 5 : index
    %c0_45 = arith.constant 0 : index
    %90 = vector.load %arg9[%c5, %c0_45] : memref<8x1024xf32, #tpu.memory_space<vmem>>, vector<1x256xf32>
    tpu.vector_store %arg9[%c5, %c0_45], %89 {strides = array<i32>} : memref<8x1024xf32, #tpu.memory_space<vmem>>, vector<1x256xf32>,
    %91 = vector.extract_strided_slice %78 {offsets = [0, 1536], sizes = [1, 256], strides = [1, 1]} : vector<4x2048xf32> to vector<1x256xf32>
    %c6 = arith.constant 6 : index
    %c0_46 = arith.constant 0 : index
    %92 = vector.load %arg9[%c6, %c0_46] : memref<8x1024xf32, #tpu.memory_space<vmem>>, vector<1x256xf32>
    tpu.vector_store %arg9[%c6, %c0_46], %91 {strides = array<i32>} : memref<8x1024xf32, #tpu.memory_space<vmem>>, vector<1x256xf32>,
    %93 = vector.extract_strided_slice %78 {offsets = [0, 1792], sizes = [1, 256], strides = [1, 1]} : vector<4x2048xf32> to vector<1x256xf32>
    %c7 = arith.constant 7 : index
    %c0_47 = arith.constant 0 : index
    %94 = vector.load %arg9[%c7, %c0_47] : memref<8x1024xf32, #tpu.memory_space<vmem>>, vector<1x256xf32>
    tpu.vector_store %arg9[%c7, %c0_47], %93 {strides = array<i32>} : memref<8x1024xf32, #tpu.memory_space<vmem>>, vector<1x256xf32>,
    %95 = vector.extract_strided_slice %78 {offsets = [1, 0], sizes = [1, 256], strides = [1, 1]} : vector<4x2048xf32> to vector<1x256xf32>
    %c0_48 = arith.constant 0 : index
    %c256 = arith.constant 256 : index
    %96 = vector.load %arg9[%c0_48, %c256] : memref<8x1024xf32, #tpu.memory_space<vmem>>, vector<1x256xf32>
    tpu.vector_store %arg9[%c0_48, %c256], %95 {strides = array<i32>} : memref<8x1024xf32, #tpu.memory_space<vmem>>, vector<1x256xf32>,
    %97 = vector.extract_strided_slice %78 {offsets = [1, 256], sizes = [1, 256], strides = [1, 1]} : vector<4x2048xf32> to vector<1x256xf32>
    %c1_49 = arith.constant 1 : index
    %c256_50 = arith.constant 256 : index
    %98 = vector.load %arg9[%c1_49, %c256_50] : memref<8x1024xf32, #tpu.memory_space<vmem>>, vector<1x256xf32>
    tpu.vector_store %arg9[%c1_49, %c256_50], %97 {strides = array<i32>} : memref<8x1024xf32, #tpu.memory_space<vmem>>, vector<1x256xf32>,
    %99 = vector.extract_strided_slice %78 {offsets = [1, 512], sizes = [1, 256], strides = [1, 1]} : vector<4x2048xf32> to vector<1x256xf32>
    %c2_51 = arith.constant 2 : index
    %c256_52 = arith.constant 256 : index
    %100 = vector.load %arg9[%c2_51, %c256_52] : memref<8x1024xf32, #tpu.memory_space<vmem>>, vector<1x256xf32>
    tpu.vector_store %arg9[%c2_51, %c256_52], %99 {strides = array<i32>} : memref<8x1024xf32, #tpu.memory_space<vmem>>, vector<1x256xf32>,
    %101 = vector.extract_strided_slice %78 {offsets = [1, 768], sizes = [1, 256], strides = [1, 1]} : vector<4x2048xf32> to vector<1x256xf32>
    %c3_53 = arith.constant 3 : index
    %c256_54 = arith.constant 256 : index
    %102 = vector.load %arg9[%c3_53, %c256_54] : memref<8x1024xf32, #tpu.memory_space<vmem>>, vector<1x256xf32>
    tpu.vector_store %arg9[%c3_53, %c256_54], %101 {strides = array<i32>} : memref<8x1024xf32, #tpu.memory_space<vmem>>, vector<1x256xf32>,
    %103 = vector.extract_strided_slice %78 {offsets = [1, 1024], sizes = [1, 256], strides = [1, 1]} : vector<4x2048xf32> to vector<1x256xf32>
    %c4_55 = arith.constant 4 : index
    %c256_56 = arith.constant 256 : index
    %104 = vector.load %arg9[%c4_55, %c256_56] : memref<8x1024xf32, #tpu.memory_space<vmem>>, vector<1x256xf32>
    tpu.vector_store %arg9[%c4_55, %c256_56], %103 {strides = array<i32>} : memref<8x1024xf32, #tpu.memory_space<vmem>>, vector<1x256xf32>,
    %105 = vector.extract_strided_slice %78 {offsets = [1, 1280], sizes = [1, 256], strides = [1, 1]} : vector<4x2048xf32> to vector<1x256xf32>
    %c5_57 = arith.constant 5 : index
    %c256_58 = arith.constant 256 : index
    %106 = vector.load %arg9[%c5_57, %c256_58] : memref<8x1024xf32, #tpu.memory_space<vmem>>, vector<1x256xf32>
    tpu.vector_store %arg9[%c5_57, %c256_58], %105 {strides = array<i32>} : memref<8x1024xf32, #tpu.memory_space<vmem>>, vector<1x256xf32>,
    %107 = vector.extract_strided_slice %78 {offsets = [1, 1536], sizes = [1, 256], strides = [1, 1]} : vector<4x2048xf32> to vector<1x256xf32>
    %c6_59 = arith.constant 6 : index
    %c256_60 = arith.constant 256 : index
    %108 = vector.load %arg9[%c6_59, %c256_60] : memref<8x1024xf32, #tpu.memory_space<vmem>>, vector<1x256xf32>
    tpu.vector_store %arg9[%c6_59, %c256_60], %107 {strides = array<i32>} : memref<8x1024xf32, #tpu.memory_space<vmem>>, vector<1x256xf32>,
    %109 = vector.extract_strided_slice %78 {offsets = [1, 1792], sizes = [1, 256], strides = [1, 1]} : vector<4x2048xf32> to vector<1x256xf32>
    %c7_61 = arith.constant 7 : index
    %c256_62 = arith.constant 256 : index
    %110 = vector.load %arg9[%c7_61, %c256_62] : memref<8x1024xf32, #tpu.memory_space<vmem>>, vector<1x256xf32>
    tpu.vector_store %arg9[%c7_61, %c256_62], %109 {strides = array<i32>} : memref<8x1024xf32, #tpu.memory_space<vmem>>, vector<1x256xf32>,
    %111 = vector.extract_strided_slice %78 {offsets = [2, 0], sizes = [1, 256], strides = [1, 1]} : vector<4x2048xf32> to vector<1x256xf32>
    %c0_63 = arith.constant 0 : index
    %c512 = arith.constant 512 : index
    %112 = vector.load %arg9[%c0_63, %c512] : memref<8x1024xf32, #tpu.memory_space<vmem>>, vector<1x256xf32>
    tpu.vector_store %arg9[%c0_63, %c512], %111 {strides = array<i32>} : memref<8x1024xf32, #tpu.memory_space<vmem>>, vector<1x256xf32>,
    %113 = vector.extract_strided_slice %78 {offsets = [2, 256], sizes = [1, 256], strides = [1, 1]} : vector<4x2048xf32> to vector<1x256xf32>
    %c1_64 = arith.constant 1 : index
    %c512_65 = arith.constant 512 : index
    %114 = vector.load %arg9[%c1_64, %c512_65] : memref<8x1024xf32, #tpu.memory_space<vmem>>, vector<1x256xf32>
    tpu.vector_store %arg9[%c1_64, %c512_65], %113 {strides = array<i32>} : memref<8x1024xf32, #tpu.memory_space<vmem>>, vector<1x256xf32>,
    %115 = vector.extract_strided_slice %78 {offsets = [2, 512], sizes = [1, 256], strides = [1, 1]} : vector<4x2048xf32> to vector<1x256xf32>
    %c2_66 = arith.constant 2 : index
    %c512_67 = arith.constant 512 : index
    %116 = vector.load %arg9[%c2_66, %c512_67] : memref<8x1024xf32, #tpu.memory_space<vmem>>, vector<1x256xf32>
    tpu.vector_store %arg9[%c2_66, %c512_67], %115 {strides = array<i32>} : memref<8x1024xf32, #tpu.memory_space<vmem>>, vector<1x256xf32>,
    %117 = vector.extract_strided_slice %78 {offsets = [2, 768], sizes = [1, 256], strides = [1, 1]} : vector<4x2048xf32> to vector<1x256xf32>
    %c3_68 = arith.constant 3 : index
    %c512_69 = arith.constant 512 : index
    %118 = vector.load %arg9[%c3_68, %c512_69] : memref<8x1024xf32, #tpu.memory_space<vmem>>, vector<1x256xf32>
    tpu.vector_store %arg9[%c3_68, %c512_69], %117 {strides = array<i32>} : memref<8x1024xf32, #tpu.memory_space<vmem>>, vector<1x256xf32>,
    %119 = vector.extract_strided_slice %78 {offsets = [2, 1024], sizes = [1, 256], strides = [1, 1]} : vector<4x2048xf32> to vector<1x256xf32>
    %c4_70 = arith.constant 4 : index
    %c512_71 = arith.constant 512 : index
    %120 = vector.load %arg9[%c4_70, %c512_71] : memref<8x1024xf32, #tpu.memory_space<vmem>>, vector<1x256xf32>
    tpu.vector_store %arg9[%c4_70, %c512_71], %119 {strides = array<i32>} : memref<8x1024xf32, #tpu.memory_space<vmem>>, vector<1x256xf32>,
    %121 = vector.extract_strided_slice %78 {offsets = [2, 1280], sizes = [1, 256], strides = [1, 1]} : vector<4x2048xf32> to vector<1x256xf32>
    %c5_72 = arith.constant 5 : index
    %c512_73 = arith.constant 512 : index
    %122 = vector.load %arg9[%c5_72, %c512_73] : memref<8x1024xf32, #tpu.memory_space<vmem>>, vector<1x256xf32>
    tpu.vector_store %arg9[%c5_72, %c512_73], %121 {strides = array<i32>} : memref<8x1024xf32, #tpu.memory_space<vmem>>, vector<1x256xf32>,
    %123 = vector.extract_strided_slice %78 {offsets = [2, 1536], sizes = [1, 256], strides = [1, 1]} : vector<4x2048xf32> to vector<1x256xf32>
    %c6_74 = arith.constant 6 : index
    %c512_75 = arith.constant 512 : index
    %124 = vector.load %arg9[%c6_74, %c512_75] : memref<8x1024xf32, #tpu.memory_space<vmem>>, vector<1x256xf32>
    tpu.vector_store %arg9[%c6_74, %c512_75], %123 {strides = array<i32>} : memref<8x1024xf32, #tpu.memory_space<vmem>>, vector<1x256xf32>,
    %125 = vector.extract_strided_slice %78 {offsets = [2, 1792], sizes = [1, 256], strides = [1, 1]} : vector<4x2048xf32> to vector<1x256xf32>
    %c7_76 = arith.constant 7 : index
    %c512_77 = arith.constant 512 : index
    %126 = vector.load %arg9[%c7_76, %c512_77] : memref<8x1024xf32, #tpu.memory_space<vmem>>, vector<1x256xf32>
    tpu.vector_store %arg9[%c7_76, %c512_77], %125 {strides = array<i32>} : memref<8x1024xf32, #tpu.memory_space<vmem>>, vector<1x256xf32>,
    %127 = vector.extract_strided_slice %78 {offsets = [3, 0], sizes = [1, 256], strides = [1, 1]} : vector<4x2048xf32> to vector<1x256xf32>
    %c0_78 = arith.constant 0 : index
    %c768 = arith.constant 768 : index
    %128 = vector.load %arg9[%c0_78, %c768] : memref<8x1024xf32, #tpu.memory_space<vmem>>, vector<1x256xf32>
    tpu.vector_store %arg9[%c0_78, %c768], %127 {strides = array<i32>} : memref<8x1024xf32, #tpu.memory_space<vmem>>, vector<1x256xf32>,
    %129 = vector.extract_strided_slice %78 {offsets = [3, 256], sizes = [1, 256], strides = [1, 1]} : vector<4x2048xf32> to vector<1x256xf32>
    %c1_79 = arith.constant 1 : index
    %c768_80 = arith.constant 768 : index
    %130 = vector.load %arg9[%c1_79, %c768_80] : memref<8x1024xf32, #tpu.memory_space<vmem>>, vector<1x256xf32>
    tpu.vector_store %arg9[%c1_79, %c768_80], %129 {strides = array<i32>} : memref<8x1024xf32, #tpu.memory_space<vmem>>, vector<1x256xf32>,
    %131 = vector.extract_strided_slice %78 {offsets = [3, 512], sizes = [1, 256], strides = [1, 1]} : vector<4x2048xf32> to vector<1x256xf32>
    %c2_81 = arith.constant 2 : index
    %c768_82 = arith.constant 768 : index
    %132 = vector.load %arg9[%c2_81, %c768_82] : memref<8x1024xf32, #tpu.memory_space<vmem>>, vector<1x256xf32>
    tpu.vector_store %arg9[%c2_81, %c768_82], %131 {strides = array<i32>} : memref<8x1024xf32, #tpu.memory_space<vmem>>, vector<1x256xf32>,
    %133 = vector.extract_strided_slice %78 {offsets = [3, 768], sizes = [1, 256], strides = [1, 1]} : vector<4x2048xf32> to vector<1x256xf32>
    %c3_83 = arith.constant 3 : index
    %c768_84 = arith.constant 768 : index
    %134 = vector.load %arg9[%c3_83, %c768_84] : memref<8x1024xf32, #tpu.memory_space<vmem>>, vector<1x256xf32>
    tpu.vector_store %arg9[%c3_83, %c768_84], %133 {strides = array<i32>} : memref<8x1024xf32, #tpu.memory_space<vmem>>, vector<1x256xf32>,
    %135 = vector.extract_strided_slice %78 {offsets = [3, 1024], sizes = [1, 256], strides = [1, 1]} : vector<4x2048xf32> to vector<1x256xf32>
    %c4_85 = arith.constant 4 : index
    %c768_86 = arith.constant 768 : index
    %136 = vector.load %arg9[%c4_85, %c768_86] : memref<8x1024xf32, #tpu.memory_space<vmem>>, vector<1x256xf32>
    tpu.vector_store %arg9[%c4_85, %c768_86], %135 {strides = array<i32>} : memref<8x1024xf32, #tpu.memory_space<vmem>>, vector<1x256xf32>,
    %137 = vector.extract_strided_slice %78 {offsets = [3, 1280], sizes = [1, 256], strides = [1, 1]} : vector<4x2048xf32> to vector<1x256xf32>
    %c5_87 = arith.constant 5 : index
    %c768_88 = arith.constant 768 : index
    %138 = vector.load %arg9[%c5_87, %c768_88] : memref<8x1024xf32, #tpu.memory_space<vmem>>, vector<1x256xf32>
    tpu.vector_store %arg9[%c5_87, %c768_88], %137 {strides = array<i32>} : memref<8x1024xf32, #tpu.memory_space<vmem>>, vector<1x256xf32>,
    %139 = vector.extract_strided_slice %78 {offsets = [3, 1536], sizes = [1, 256], strides = [1, 1]} : vector<4x2048xf32> to vector<1x256xf32>
    %c6_89 = arith.constant 6 : index
    %c768_90 = arith.constant 768 : index
    %140 = vector.load %arg9[%c6_89, %c768_90] : memref<8x1024xf32, #tpu.memory_space<vmem>>, vector<1x256xf32>
    tpu.vector_store %arg9[%c6_89, %c768_90], %139 {strides = array<i32>} : memref<8x1024xf32, #tpu.memory_space<vmem>>, vector<1x256xf32>,
    %141 = vector.extract_strided_slice %78 {offsets = [3, 1792], sizes = [1, 256], strides = [1, 1]} : vector<4x2048xf32> to vector<1x256xf32>
    %c7_91 = arith.constant 7 : index
    %c768_92 = arith.constant 768 : index
    %142 = vector.load %arg9[%c7_91, %c768_92] : memref<8x1024xf32, #tpu.memory_space<vmem>>, vector<1x256xf32>
    tpu.vector_store %arg9[%c7_91, %c768_92], %141 {strides = array<i32>} : memref<8x1024xf32, #tpu.memory_space<vmem>>, vector<1x256xf32>,
    %c0_93 = arith.constant 0 : index
    %c0_94 = arith.constant 0 : index
    %143 = vector.load %arg9[%c0_93, %c0_94] : memref<8x1024xf32, #tpu.memory_space<vmem>>, vector<8x1024xf32>
    %144 = arith.truncf %143 : vector<8x1024xf32> to vector<8x1024xbf16>
    %c0_95 = arith.constant 0 : index
    %c0_96 = arith.constant 0 : index
    %145 = vector.load %arg4[%c0_95, %c0_96] : memref<1024x100xbf16, #tpu.memory_space<vmem>>, vector<1024x100xbf16>
    %cst_97 = arith.constant dense<0.000000e+00> : vector<8x100xf32>
    %146 = tpu.matmul %144, %145, %cst_97 {dimension_numbers = #tpu.dot_dimension_numbers<[1], [0], [0], [1], [0, 0, 1, 1], [], []>} : vector<8x1024xbf16>, vector<1024x100xbf16>, vector<8x100xf32> -> vector<8x100xf32>
    %c0_98 = arith.constant 0 : index
    %c0_99 = arith.constant 0 : index
    %147 = vector.load %arg5[%c0_98, %c0_99] : memref<1x100xf32, #tpu.memory_space<vmem>>, vector<1x100xf32>
    %148 = vector.broadcast %147 : vector<1x100xf32> to vector<8x100xf32>
    %149 = arith.addf %146, %148 : vector<8x100xf32>
    %c0_100 = arith.constant 0 : index
    %c0_101 = arith.constant 0 : index
    %150 = vector.load %arg6[%c0_100, %c0_101] : memref<8x100xf32, #tpu.memory_space<vmem>>, vector<8x100xf32>
    tpu.vector_store %arg6[%c0_100, %c0_101], %149 {strides = array<i32>} : memref<8x100xf32, #tpu.memory_space<vmem>>, vector<8x100xf32>,
    return
  }
  func.func @transform_0(%arg0: i32) -> (i32, i32) {
    %c0_i32 = arith.constant 0 : i32
    %c0_i32_0 = arith.constant 0 : i32
    return %arg0, %c0_i32 : i32, i32
  }
  func.func @transform_1(%arg0: i32) -> (i32, i32) {
    %c0_i32 = arith.constant 0 : i32
    %c0_i32_0 = arith.constant 0 : i32
    %c0_i32_1 = arith.constant 0 : i32
    return %c0_i32, %c0_i32_0 : i32, i32
  }
  func.func @transform_2(%arg0: i32) -> (i32, i32) {
    %c0_i32 = arith.constant 0 : i32
    %c0_i32_0 = arith.constant 0 : i32
    %c0_i32_1 = arith.constant 0 : i32
    return %c0_i32, %c0_i32_0 : i32, i32
  }
  func.func @transform_3(%arg0: i32) -> (i32, i32) {
    %c0_i32 = arith.constant 0 : i32
    %c0_i32_0 = arith.constant 0 : i32
    %c0_i32_1 = arith.constant 0 : i32
    return %c0_i32, %c0_i32_0 : i32, i32
  }
  func.func @transform_4(%arg0: i32) -> (i32, i32) {
    %c0_i32 = arith.constant 0 : i32
    %c0_i32_0 = arith.constant 0 : i32
    %c0_i32_1 = arith.constant 0 : i32
    return %c0_i32, %c0_i32_0 : i32, i32
  }
  func.func @transform_5(%arg0: i32) -> (i32, i32) {
    %c0_i32 = arith.constant 0 : i32
    %c0_i32_0 = arith.constant 0 : i32
    return %arg0, %c0_i32 : i32, i32
  }
}

</mosaic_0001>

<bundles_post_ra>
// kernel: tpu_custom_call.1
= control target key start
LH: loop header
LB: loop body
LE: loop exit
PB: predicated region body
PF: predicated region fallthrough
CT: control target
= control target key end

     0   :  { %s13568_s0 = inlined_call_operand.hbm [shape: f32[4096,768], index: 0, kind: input, shape index: {}]   ;;  %s13569_s1 = inlined_call_operand.hbm [shape: bf16[80,768], index: 1, kind: input, shape index: {}]   ;;  %s13570_s2 = inlined_call_operand.vmem [shape: f32[4,1], index: 2, kind: input, shape index: {}]   ;;  %s13571_s3 = inlined_call_operand.vmem [shape: bf16[1024,100], index: 3, kind: input, shape index: {}]   ;;  %s13572_s4 = inlined_call_operand.hbm [shape: f32[1,100], index: 4, kind: input, shape index: {}]   ;;  %s13573_s5 = inlined_call_operand.hbm [shape: f32[16,100], index: 5, kind: output, shape index: {}]  }
   0x1   :  { %13703 = sst [smem:[#allocation76_spill]] %s13568_s0 }
   0x2   :  { %13704 = sst [smem:[#allocation77_spill]] %s13569_s1 }
   0x3   :  { %13705 = sst [smem:[#allocation78_spill]] %s13570_s2 }
   0x4   :  { %13706 = sst [smem:[#allocation79_spill]] %s13572_s4 }
   0x5   :  { %10 = vsyncpa [#allocation6], 0 }
   0x6   :  { %12 = vsyncpa [#allocation6 + $0x1], 0 }
   0x7   :  { %13 = vsyncpa [#allocation9], 0 }
   0x8   :  { %14 = vsyncpa [#allocation7], 0 }
   0x9   :  { %16 = vsyncpa [#allocation7 + $0x1], 0  ;;  %s9722_s18 = smov 0   ;;  %s9724_s19 = smov 0  }
   0xa   :  { %s9726_s20 = smov 0   ;;  %s9728_s21 = smov 0  }
   0xb LB: > { %s9743_s22 = sadd.s32 4294967295, %s9660_s21   ;;  %s8686_s23 = sadd.s32 4294967294, %s9660_s21   ;;  %s9660_s21 = sphi %s9728_s21, %s14015_s21   ;;  %s9656_s20 = sphi %s9726_s20, %s14014_s20   ;;  %s9652_s19 = sphi %s9724_s19, %s14013_s19   ;;  %s9648_s18 = sphi %s9722_s18, %s14012_s18  }
   0xc   : > { %p42_p0 = scmp.ne.s32.totalorder %s9652_s19, %s9648_s18  ;;  %p13574_p1 = scmp.eq.s32.totalorder %s9743_s22, 0 }
   0xd   : > { %p156_p3 = scmp.eq.s32.totalorder %s8686_s23, 1  ;;  %p8687_p5 = scmp.ge.s32.totalorder %s9660_s21, 1 }
   0xe   : > { %p9752_p4 = por %p13574_p1, %p42_p0  ;;  %p163_p7 = scmp.lt.s32.totalorder %s9660_s21, 3 }
   0xf   : > { %p9757_p6 = por %p156_p3, %p42_p0  ;;  %s9662_s27 = smov [#allocation8]  }
  0x10   : > { %s13707_s24 = scalar_select %p9752_p4, 1, 0 }
  0x11   : > { %s13708_s25 = scalar_select %p9757_p6, 1, 0 }
  0x12   : > { %p9762_p8 = pnand %p8687_p5, %p163_p7  ;;  %s175_s28 = sshll.u32 %s9662_s27, 4  ;;  %s9766_s28 = int_to_ptr.vmem [resolvable:$true] %s175_s28 }
  0x13   : > { %s9663_s30 = smov [#allocation10]   ;;  %s13711_s1 = sld [smem:[#allocation77_spill]] }
  0x14   : > { %p9220_p9 = pneg %p9762_p8  ;;  %s195_s6 = sshll.u32 %s9663_s30, 4  ;;  %s9777_s6 = int_to_ptr.vmem [resolvable:$true] %s195_s6 }
  0x16   : > { %p9773_p11 = pnand %p9220_p9, %p13574_p1 }
  0x18   : > { %p9506_p13 = pneg %p9773_p11 }
  0x19   : > { %s9504_s9 = scalar_lea.hbm %s13711_s1, 3840 }
  0x1a   : > { %p9505_p12 = scmp.ne.s32.totalorder %s13711_s1, %s9504_s9  ;;  %p9511_p5 = scmp.lt.u32.totalorder %s9504_s9, %s13711_s1 }
  0x1c   : > { %p9507_p0 = pnand %p9506_p13, %p9505_p12 }
  0x1e   : > { %p9508_p3 = pneg %p9507_p0 }
  0x20   : > { %p9513_p7 = pnand %p9511_p5, %p9508_p3 }
  0x22   : > { %9516 = shalt.err (!%p9513_p7)
}
  0x23   : > { %s9517_s14 = scalar_lea.vmem %s9766_s28, 3840  ;;  %p9525_p2 = scmp.lt.s32.totalorder %s9766_s28, %s9766_s28 }
  0x24   : > { %p9518_p9 = scmp.ne.s32.totalorder %s9766_s28, %s9517_s14  ;;  %p9526_p12 = scmp.lt.s32.totalorder %s9517_s14, %s9517_s14 }
  0x26   : > { %p9520_p10 = pnand %p9518_p9, %p9506_p13  ;;  %p9527_p0 = por %p9526_p12, %p9525_p2 }
  0x28   : > { %p9521_p1 = pneg %p9520_p10 }
  0x2a   : > { %p9528_p6 = pnand %p9527_p0, %p9521_p1 }
  0x2c   : > { %9531 = shalt.err (!%p9528_p6)
}
  0x2d   : > { %s9664_s15 = smov 384   ;;  %s9665_s16 = smov 24  }
  0x2e   : > { %9223 = dma.hbm_to_vmem [thread:$0]  (!%p9773_p11), %s13711_s1, 3840, %s9766_s28, [#allocation9], %s9664_s15, %s9664_s15, %s9665_s16  }
  0x2f   : > { %s13712_s4 = sld [smem:[#allocation79_spill]] }
  0x35   : > { %s9532_s7 = scalar_lea.hbm %s13712_s4, 16 }
  0x36   : > { %p9533_p2 = scmp.ne.s32.totalorder %s13712_s4, %s9532_s7  ;;  %p9539_p10 = scmp.lt.u32.totalorder %s9532_s7, %s13712_s4 }
  0x38   : > { %p9535_p1 = pnand %p9533_p2, %p9506_p13 }
  0x3a   : > { %p9536_p6 = pneg %p9535_p1 }
  0x3c   : > { %p9541_p3 = pnand %p9539_p10, %p9536_p6 }
  0x3e   : > { %9544 = shalt.err (!%p9541_p3)
}
  0x3f   : > { %s9545_s28 = scalar_lea.vmem %s9777_s6, 16  ;;  %s9552_s12 = scalar_lea.vmem %s9777_s6, 32 }
  0x40   : > { %p9546_p5 = scmp.ne.s32.totalorder %s9777_s6, %s9545_s28  ;;  %p9553_p12 = scmp.lt.s32.totalorder %s9777_s6, %s9777_s6 }
  0x41   : > { %p9554_p0 = scmp.lt.s32.totalorder %s9552_s12, %s9545_s28 }
  0x42   : > { %p9548_p7 = pnand %p9546_p5, %p9506_p13 }
  0x43   : > { %p9555_p2 = por %p9554_p0, %p9553_p12 }
  0x44   : > { %p9549_p9 = pneg %p9548_p7 }
  0x46   : > { %p9556_p1 = pnand %p9555_p2, %p9549_p9 }
  0x48   : > { %9559 = shalt.err (!%p9556_p1)
}
  0x49   : > { %9226 = dma.hbm_to_vmem [thread:$0]  (!%p9773_p11), %s13712_s4, 16, %s9777_s6, [#allocation9]  }
  0x4a   : > { %s9833_s15 = sadd.s32 1, %s9660_s21   ;;  %s29_s29 = sadd.s32 1, %s9656_s20 }
  0x4b   : > { %s26_s16 = ssub.s32 %s9660_s21, %s9833_s15  ;;  %p36_p13 = scmp.ne.s32.totalorder %s9656_s20, %s9652_s19 }
  0x4c   : > { %p27_p6 = scmp.eq.s32.totalorder %s26_s16, 0  ;;  %p37_p10 = scmp.eq.s32.totalorder %s9660_s21, 0 }
  0x4d   : > { %p13713_p3 = scmp.eq.s32.totalorder %s9743_s22, 1  ;;  %p9237_p7 = scmp.lt.s32.totalorder %s9660_s21, 2 }
  0x4e   : > { %s9849_s23 = scalar_select %p27_p6, %s9656_s20, %s29_s29  }
  0x4f   : > { %p9843_p5 = por %p13713_p3, %p36_p13  ;;  %p38_p9 = por %p37_p10, %p36_p13 }
  0x50   : > { %s206_s27 = sand.u32 1, %s9656_s20   ;;  %s9206_s6 = smul.u32 196608, %s9660_s21 }
  0x51   : > { %s13714_s17 = scalar_select %p9843_p5, 1, 0 }
  0x52   : > { %s9205_s30 = smul.u32 12288, %s206_s27  ;;  %p9853_p11 = pnand %p9237_p7, %p38_p9 }
  0x53   : > { %s13716_s0 = sld [smem:[#allocation76_spill]]  ;;  %s9864_s12 = scalar_lea.sflag [#allocation6], %s206_s27 }
  0x54   : > { %s210_s11 = scalar_lea.vmem [#allocation5], %s9205_s30  ;;  %p9562_p0 = pneg %p9853_p11 }
  0x55   : > { %s218_s28 = sshll.u32 %s210_s11, 4  ;;  %s9862_s28 = int_to_ptr.vmem [resolvable:$true] %s218_s28 }
  0x59   : > { %s9860_s10 = scalar_lea.hbm %s13716_s0, %s9206_s6  ;;  %s9565_s16 = scalar_lea.hbm %s13716_s0, 393216 }
  0x5a   : > { %s9560_s13 = scalar_lea.hbm %s9860_s10, 196608  ;;  %p9566_p13 = scmp.lt.u32.totalorder %s9860_s10, %s13716_s0 }
  0x5b   : > { %p9561_p12 = scmp.ne.s32.totalorder %s9860_s10, %s9560_s13  ;;  %p9567_p6 = scmp.lt.u32.totalorder %s9565_s16, %s9560_s13 }
  0x5c   : > { %p9569_p3 = scmp.lt.u32.totalorder %s9560_s13, %s9860_s10 }
  0x5d   : > { %p9563_p2 = pnand %p9562_p0, %p9561_p12  ;;  %p9568_p10 = por %p9567_p6, %p9566_p13 }
  0x5f   : > { %p9564_p1 = pneg %p9563_p2  ;;  %p9570_p7 = por %p9569_p3, %p9568_p10 }
  0x61   : > { %p9571_p9 = pnand %p9570_p7, %p9564_p1 }
  0x63   : > { %9574 = shalt.err (!%p9571_p9)
}
  0x64   : > { %s9575_s27 = scalar_lea.vmem %s9862_s28, 196608  ;;  %s9666_s30 = smov [#allocation5]  }
  0x65   : > { %p9576_p12 = scmp.ne.s32.totalorder %s9862_s28, %s9575_s27  ;;  %s9580_s9 = sshll.u32 %s9666_s30, 4  ;;  %s9581_s9 = int_to_ptr.vmem [resolvable:$false] %s9580_s9 }
  0x66   : > { %s9582_s11 = scalar_lea.vmem %s9581_s9, 393216  ;;  %p9583_p4 = scmp.lt.s32.totalorder %s9862_s28, %s9581_s9 }
  0x67   : > { %p9578_p2 = pnand %p9576_p12, %p9562_p0  ;;  %p9584_p13 = scmp.lt.s32.totalorder %s9582_s11, %s9575_s27 }
  0x69   : > { %p9579_p5 = pneg %p9578_p2  ;;  %p9585_p6 = por %p9584_p13, %p9583_p4 }
  0x6b   : > { %p9586_p10 = pnand %p9585_p6, %p9579_p5 }
  0x6d   : > { %9589 = shalt.err (!%p9586_p10)
}
  0x6e   : > { %s9667_s13 = smov 768   ;;  %s9668_s14 = smov 48  }
  0x6f   : > { %9230 = dma.hbm_to_vmem [thread:$0]  (!%p9853_p11), %s9860_s10, 196608, %s9862_s28, %s9864_s12, %s9667_s13, %s9667_s13, %s9668_s14  }
  0x70   : > { %230 = sbr.rel (%p9762_p8) target bundleno = 2693 (0xa85), region = 40 }
  0x77   : > { %s9895_s29 = sand.u32 1, %s9652_s19   ;;  %p13717_p4 = scmp.ne.s32.totalorder %s13707_s24, 0 }
  0x78   : > { %s9207_s16 = smul.u32 12288, %s9895_s29  ;;  %s233_s6 = scalar_lea.sflag [#allocation6], %s9895_s29 }
  0x7a   : > { %s9899_s8 = scalar_lea.vmem [#allocation5], %s9207_s16 }
  0x7b   : > { %9635 = dma.done.wait (%p13717_p4), %s233_s6, 196608  }
  0x7c   : > { %9637 = vsyncadd (%p13717_p4), %s233_s6, 4294770688  ;;  %p13718_p5 = scmp.eq.s32.totalorder %s9743_s22, 0 }
  0x7e   : > { %9639 = dma.done.wait (%p13718_p5), [#allocation9], 3856   ;;  %p13719_p8 = pmov %p13718_p5 }
  0x7f   : > { %v274_v0 = vld [vmem:[%s9899_s8 + $0x8] sm:$0xff]  ;;  %v280_v1 = vld [vmem:[%s9899_s8 + $0x38] sm:$0xff]  ;;  %v273_v5 = vld [vmem:[%s9899_s8] sm:$0xff]  ;;  %s13659_s24 = smov 126   ;;  %s13616_s26 = smov 124   ;;  %vm5020_vm0 = vcmask 1039360  }
  0x80   : > { %9641 = vsyncadd (%p13719_p8), [#allocation9], 4294963440  ;;  %v466_v2 = vld [vmem:[%s9899_s8 + $0x608] sm:$0xff]  ;;  %v1810_v3 = vpack.c.bf16 %v280_v1, %v274_v0  ;;  %v472_v4 = vld [vmem:[%s9899_s8 + $0x638] sm:$0xff]  ;;  %s13661_s7 = smov 127   ;;  %s13612_s10 = smov 122  }
  0x81   : > { %v279_v6 = vld [vmem:[%s9899_s8 + $0x30] sm:$0xff]  ;;  %v1906_v7 = vpack.c.bf16 %v472_v4, %v466_v2  ;;  %v465_v9 = vld [vmem:[%s9899_s8 + $0x600] sm:$0xff]  ;;  %v286_v11 = vld [vmem:[%s9899_s8 + $0x68] sm:$0xff]  ;;  %s13610_s28 = smov 120   ;;  %s13657_s12 = smov 125   ;;  %vm13655_vm1 = vcmask 1031168  }
  0x82   : > { %v1809_v8 = vpack.c.bf16 %v279_v6, %v273_v5  ;;  %v471_v10 = vld [vmem:[%s9899_s8 + $0x630] sm:$0xff]  ;;  %2757 = vmatprep.subr.bf16.mxu0 %v1810_v3  ;;  %v292_v13 = vld [vmem:[%s9899_s8 + $0x98] sm:$0xff]  ;;  %v478_v14 = vld [vmem:[%s9899_s8 + $0x668] sm:$0xff]  ;;  %s13585_s27 = smov 118   ;;  %s13614_s30 = smov 123   ;;  %vm5271_vm2 = vcmask 1022976  }
  0x83   : > { %v1905_v12 = vpack.c.bf16 %v471_v10, %v465_v9  ;;  %v484_v15 = vld [vmem:[%s9899_s8 + $0x698] sm:$0xff]  ;;  %3006 = vmatprep.subr.bf16.mxu1 %v1906_v7  ;;  %v1816_v16 = vpack.c.bf16 %v292_v13, %v286_v11  ;;  %v285_v18 = vld [vmem:[%s9899_s8 + $0x60] sm:$0xff]  ;;  %v291_v19 = vld [vmem:[%s9899_s8 + $0x90] sm:$0xff]  ;;  %s13579_s9 = smov 116   ;;  %s13608_s11 = smov 121   ;;  %vm5388_vm3 = vcmask 1014784  }
  0x84   : > { %2758 = vmatpush1.bf16.xpose.msra.mxu0 %v1809_v8  ;;  %v1912_v17 = vpack.c.bf16 %v484_v15, %v478_v14  ;;  %v477_v20 = vld [vmem:[%s9899_s8 + $0x660] sm:$0xff]  ;;  %v483_v21 = vld [vmem:[%s9899_s8 + $0x690] sm:$0xff]  ;;  %v298_v22 = vld [vmem:[%s9899_s8 + $0xc8] sm:$0xff]  ;;  %v1815_v26 = vpack.c.bf16 %v291_v19, %v285_v18  ;;  %s13577_s13 = smov 114   ;;  %s13593_s14 = smov 119   ;;  %vm5522_vm4 = vcmask 1006592  }
  0x85   : > { %3007 = vmatpush1.bf16.xpose.msra.mxu1 %v1905_v12  ;;  %2759 = vmatprep.subr.bf16.mxu0 %v1816_v16  ;;  %v304_v23 = vld [vmem:[%s9899_s8 + $0xf8] sm:$0xff]  ;;  %v490_v24 = vld [vmem:[%s9899_s8 + $0x6c8] sm:$0xff]  ;;  %v1911_v27 = vpack.c.bf16 %v483_v21, %v477_v20  ;;  %v297_v30 = vld [vmem:[%s9899_s8 + $0xc0] sm:$0xff]  ;;  %s13581_s16 = smov 112   ;;  %s13587_s6 = smov 117   ;;  %vm5639_vm5 = vcmask 998400  }
  0x86   : > { %3008 = vmatprep.subr.bf16.mxu1 %v1912_v17  ;;  %v496_v25 = vld [vmem:[%s9899_s8 + $0x6f8] sm:$0xff]  ;;  %v1822_v28 = vpack.c.bf16 %v304_v23, %v298_v22  ;;  %v303_v31 = vld [vmem:[%s9899_s8 + $0xf0] sm:$0xff]  ;;  %v489_v32 = vld [vmem:[%s9899_s8 + $0x6c0] sm:$0xff]  ;;  %s13720_s2 = sld [smem:[#allocation78_spill]]  ;;  %vm13700_vm6 = vcmask 990208   ;;  %vm5890_vm7 = vcmask 982016  }
  0x87   : > { %v1918_v29 = vpack.c.bf16 %v496_v25, %v490_v24  ;;  %v495_v33 = vld [vmem:[%s9899_s8 + $0x6f0] sm:$0xff]  ;;  %v310_v34 = vld [vmem:[%s9899_s8 + $0x128] sm:$0xff]  ;;  %v316_v35 = vld [vmem:[%s9899_s8 + $0x158] sm:$0xff]  ;;  %v1821_v38 = vpack.c.bf16 %v303_v31, %v297_v30  ;;  %vm13656_vm8 = vcmask 973824   ;;  %vm6141_vm9 = vcmask 965632   ;;  %s13860_s0 = smov 110  }
  0x88   : > { %v502_v36 = vld [vmem:[%s9899_s8 + $0x728] sm:$0xff]  ;;  %v508_v37 = vld [vmem:[%s9899_s8 + $0x758] sm:$0xff]  ;;  %v1917_v39 = vpack.c.bf16 %v495_v33, %v489_v32  ;;  %v1828_v40 = vpack.c.bf16 %v316_v35, %v310_v34  ;;  %v309_v42 = vld [vmem:[%s9899_s8 + $0x120] sm:$0xff]  ;;  %vm13701_vm10 = vcmask 957440   ;;  %vm13606_vm11 = vcmask 949248   ;;  %s13862_s1 = smov 109  }
  0x89   : > { %v1924_v41 = vpack.c.bf16 %v508_v37, %v502_v36  ;;  %v315_v43 = vld [vmem:[%s9899_s8 + $0x150] sm:$0xff]  ;;  %v501_v44 = vld [vmem:[%s9899_s8 + $0x720] sm:$0xff]  ;;  %v322_v46 = vld [vmem:[%s9899_s8 + $0x188] sm:$0xff]  ;;  %vm13605_vm12 = vcmask 941056   ;;  %vm6643_vm13 = vcmask 932864   ;;  %vm13607_vm14 = vcmask 924672  }
  0x8a   : > { %v507_v45 = vld [vmem:[%s9899_s8 + $0x750] sm:$0xff]  ;;  %v328_v47 = vld [vmem:[%s9899_s8 + $0x1b8] sm:$0xff]  ;;  %v514_v48 = vld [vmem:[%s9899_s8 + $0x788] sm:$0xff]  ;;  %v1827_v50 = vpack.c.bf16 %v315_v43, %v309_v42  ;;  %vm6894_vm15 = vcmask 916480   ;;  %s13928_s4 = smov 125   ;;  %p14009_p0 = scmp.ne.s32.totalorder %s13714_s17, 0 }
  0x8b   : > { %v520_v49 = vld [vmem:[%s9899_s8 + $0x7b8] sm:$0xff]  ;;  %v1923_v51 = vpack.c.bf16 %v507_v45, %v501_v44  ;;  %v1834_v52 = vpack.c.bf16 %v328_v47, %v322_v46  ;;  %v321_v54 = vld [vmem:[%s9899_s8 + $0x180] sm:$0xff]  ;;  %v327_v55 = vld [vmem:[%s9899_s8 + $0x1b0] sm:$0xff] }
  0x8c   : > { %2760 = vmatpush1.bf16.xpose.msra.mxu0 %v1815_v26  ;;  %v1930_v53 = vpack.c.bf16 %v520_v49, %v514_v48  ;;  %v513_v56 = vld [vmem:[%s9899_s8 + $0x780] sm:$0xff]  ;;  %v519_v57 = vld [vmem:[%s9899_s8 + $0x7b0] sm:$0xff]  ;;  %v334_v58 = vld [vmem:[%s9899_s8 + $0x1e8] sm:$0xff]  ;;  %v1833_v62 = vpack.c.bf16 %v327_v55, %v321_v54 }
  0x8d   : > { %3009 = vmatpush1.bf16.xpose.msra.mxu1 %v1911_v27  ;;  %2761 = vmatprep.subr.bf16.mxu0 %v1822_v28  ;;  %v340_v59 = vld [vmem:[%s9899_s8 + $0x218] sm:$0xff]  ;;  %v526_v60 = vld [vmem:[%s9899_s8 + $0x7e8] sm:$0xff]  ;;  %v1929_v63 = vpack.c.bf16 %v519_v57, %v513_v56  ;;  %v333_v2 = vld [vmem:[%s9899_s8 + $0x1e0] sm:$0xff] }
  0x8e   : > { %3010 = vmatprep.subr.bf16.mxu1 %v1918_v29  ;;  %v532_v61 = vld [vmem:[%s9899_s8 + $0x818] sm:$0xff]  ;;  %v1840_v0 = vpack.c.bf16 %v340_v59, %v334_v58  ;;  %v339_v3 = vld [vmem:[%s9899_s8 + $0x210] sm:$0xff]  ;;  %v525_v4 = vld [vmem:[%s9899_s8 + $0x7e0] sm:$0xff] }
  0x8f   : > { %v1936_v1 = vpack.c.bf16 %v532_v61, %v526_v60  ;;  %v531_v5 = vld [vmem:[%s9899_s8 + $0x810] sm:$0xff]  ;;  %v346_v6 = vld [vmem:[%s9899_s8 + $0x248] sm:$0xff]  ;;  %v352_v7 = vld [vmem:[%s9899_s8 + $0x278] sm:$0xff]  ;;  %v1839_v10 = vpack.c.bf16 %v339_v3, %v333_v2 }
  0x90   : > { %v538_v8 = vld [vmem:[%s9899_s8 + $0x848] sm:$0xff]  ;;  %v544_v9 = vld [vmem:[%s9899_s8 + $0x878] sm:$0xff]  ;;  %v1935_v11 = vpack.c.bf16 %v531_v5, %v525_v4  ;;  %v1846_v12 = vpack.c.bf16 %v352_v7, %v346_v6  ;;  %v345_v15 = vld [vmem:[%s9899_s8 + $0x240] sm:$0xff] }
  0x91   : > { %v1942_v13 = vpack.c.bf16 %v544_v9, %v538_v8  ;;  %v9303_v14 = vld [vmem:[#allocation8 + $0x4] ss:$24 sps:$4 sm:$0xff]   ;;  %v351_v16 = vld [vmem:[%s9899_s8 + $0x270] sm:$0xff]  ;;  %v358_v19 = vld [vmem:[%s9899_s8 + $0x2a8] sm:$0xff] }
  0x92   : > { %v537_v17 = vld [vmem:[%s9899_s8 + $0x840] sm:$0xff]  ;;  %v543_v18 = vld [vmem:[%s9899_s8 + $0x870] sm:$0xff]  ;;  %v364_v20 = vld [vmem:[%s9899_s8 + $0x2d8] sm:$0xff]  ;;  %2789 = vmatprep.mubr.bf16.mxu0 %v9303_v14  ;;  %3038 = vmatprep.mubr.bf16.mxu1 %v9303_v14  ;;  %v1845_v23 = vpack.c.bf16 %v351_v16, %v345_v15 }
  0x93   : > { %v550_v21 = vld [vmem:[%s9899_s8 + $0x8a8] sm:$0xff]  ;;  %v556_v22 = vld [vmem:[%s9899_s8 + $0x8d8] sm:$0xff]  ;;  %v1941_v24 = vpack.c.bf16 %v543_v18, %v537_v17  ;;  %v1852_v25 = vpack.c.bf16 %v364_v20, %v358_v19  ;;  %v357_v27 = vld [vmem:[%s9899_s8 + $0x2a0] sm:$0xff] }
  0x94   : > { %2762 = vmatpush1.bf16.xpose.msra.mxu0 %v1821_v38  ;;  %v1948_v26 = vpack.c.bf16 %v556_v22, %v550_v21  ;;  %v363_v28 = vld [vmem:[%s9899_s8 + $0x2d0] sm:$0xff]  ;;  %v549_v29 = vld [vmem:[%s9899_s8 + $0x8a0] sm:$0xff]  ;;  %v370_v31 = vld [vmem:[%s9899_s8 + $0x308] sm:$0xff] }
  0x95   : > { %3011 = vmatpush1.bf16.xpose.msra.mxu1 %v1917_v39  ;;  %2763 = vmatprep.subr.bf16.mxu0 %v1828_v40  ;;  %v555_v30 = vld [vmem:[%s9899_s8 + $0x8d0] sm:$0xff]  ;;  %v376_v32 = vld [vmem:[%s9899_s8 + $0x338] sm:$0xff]  ;;  %v562_v33 = vld [vmem:[%s9899_s8 + $0x908] sm:$0xff]  ;;  %v1851_v35 = vpack.c.bf16 %v363_v28, %v357_v27 }
  0x96   : > { %3012 = vmatprep.subr.bf16.mxu1 %v1924_v41  ;;  %v568_v34 = vld [vmem:[%s9899_s8 + $0x938] sm:$0xff]  ;;  %v1947_v36 = vpack.c.bf16 %v555_v30, %v549_v29  ;;  %v1858_v37 = vpack.c.bf16 %v376_v32, %v370_v31  ;;  %v369_v39 = vld [vmem:[%s9899_s8 + $0x300] sm:$0xff]  ;;  %v375_v40 = vld [vmem:[%s9899_s8 + $0x330] sm:$0xff] }
  0x97   : > { %v1954_v38 = vpack.c.bf16 %v568_v34, %v562_v33  ;;  %v561_v41 = vld [vmem:[%s9899_s8 + $0x900] sm:$0xff]  ;;  %v567_v42 = vld [vmem:[%s9899_s8 + $0x930] sm:$0xff]  ;;  %v382_v43 = vld [vmem:[%s9899_s8 + $0x368] sm:$0xff]  ;;  %v1857_v47 = vpack.c.bf16 %v375_v40, %v369_v39 }
  0x98   : > { %v388_v44 = vld [vmem:[%s9899_s8 + $0x398] sm:$0xff]  ;;  %v574_v45 = vld [vmem:[%s9899_s8 + $0x968] sm:$0xff]  ;;  %v1953_v48 = vpack.c.bf16 %v567_v42, %v561_v41  ;;  %v579_v54 = vld [vmem:[%s9899_s8 + $0x990] sm:$0xff] }
  0x99   : > { %v580_v46 = vld [vmem:[%s9899_s8 + $0x998] sm:$0xff]  ;;  %v1864_v49 = vpack.c.bf16 %v388_v44, %v382_v43  ;;  %v394_v55 = vld [vmem:[%s9899_s8 + $0x3c8] sm:$0xff]  ;;  %v591_v2 = vld [vmem:[%s9899_s8 + $0x9f0] sm:$0xff] }
  0x9a   : > { %v400_v56 = vld [vmem:[%s9899_s8 + $0x3f8] sm:$0xff]  ;;  %v586_v57 = vld [vmem:[%s9899_s8 + $0x9c8] sm:$0xff]  ;;  %v603_v14 = vld [vmem:[%s9899_s8 + $0xa50] sm:$0xff] }
  0x9b   : > { %v592_v58 = vld [vmem:[%s9899_s8 + $0x9f8] sm:$0xff]  ;;  %v1870_v61 = vpack.c.bf16 %v400_v56, %v394_v55  ;;  %v406_v3 = vld [vmem:[%s9899_s8 + $0x428] sm:$0xff] }
  0x9c   : > { %2764 = vmatpush1.bf16.xpose.msra.mxu0 %v1827_v50  ;;  %v1960_v50 = vpack.c.bf16 %v580_v46, %v574_v45  ;;  %v412_v4 = vld [vmem:[%s9899_s8 + $0x458] sm:$0xff]  ;;  %v598_v5 = vld [vmem:[%s9899_s8 + $0xa28] sm:$0xff] }
  0x9d   : > { %3013 = vmatpush1.bf16.xpose.msra.mxu1 %v1923_v51  ;;  %2765 = vmatprep.subr.bf16.mxu0 %v1834_v52  ;;  %v381_v51 = vld [vmem:[%s9899_s8 + $0x360] sm:$0xff]  ;;  %v387_v52 = vld [vmem:[%s9899_s8 + $0x390] sm:$0xff]  ;;  %v604_v6 = vld [vmem:[%s9899_s8 + $0xa58] sm:$0xff]  ;;  %v1876_v9 = vpack.c.bf16 %v412_v4, %v406_v3 }
  0x9e   : > { %3014 = vmatprep.subr.bf16.mxu1 %v1930_v53  ;;  %v573_v53 = vld [vmem:[%s9899_s8 + $0x960] sm:$0xff]  ;;  %v1863_v59 = vpack.c.bf16 %v387_v52, %v381_v51  ;;  %v418_v15 = vld [vmem:[%s9899_s8 + $0x488] sm:$0xff]  ;;  %v424_v16 = vld [vmem:[%s9899_s8 + $0x4b8] sm:$0xff] }
  0x9f   : > { %v1959_v60 = vpack.c.bf16 %v579_v54, %v573_v53  ;;  %v610_v17 = vld [vmem:[%s9899_s8 + $0xa88] sm:$0xff]  ;;  %v616_v18 = vld [vmem:[%s9899_s8 + $0xab8] sm:$0xff]  ;;  %v1882_v21 = vpack.c.bf16 %v424_v16, %v418_v15 }
  0xa0   : > { %v1978_v22 = vpack.c.bf16 %v616_v18, %v610_v17  ;;  %v430_v27 = vld [vmem:[%s9899_s8 + $0x4e8] sm:$0xff]  ;;  %v436_v28 = vld [vmem:[%s9899_s8 + $0x518] sm:$0xff] }
  0xa1   : > { %v622_v29 = vld [vmem:[%s9899_s8 + $0xae8] sm:$0xff]  ;;  %v628_v30 = vld [vmem:[%s9899_s8 + $0xb18] sm:$0xff]  ;;  %v1888_v33 = vpack.c.bf16 %v436_v28, %v430_v27 }
  0xa2   : > { %v1984_v34 = vpack.c.bf16 %v628_v30, %v622_v29  ;;  %v442_v39 = vld [vmem:[%s9899_s8 + $0x548] sm:$0xff]  ;;  %v448_v40 = vld [vmem:[%s9899_s8 + $0x578] sm:$0xff] }
  0xa3   : > { %v634_v41 = vld [vmem:[%s9899_s8 + $0xb48] sm:$0xff]  ;;  %v640_v42 = vld [vmem:[%s9899_s8 + $0xb78] sm:$0xff]  ;;  %v1894_v45 = vpack.c.bf16 %v448_v40, %v442_v39 }
  0xa4   : > { %2766 = vmatpush1.bf16.xpose.msra.mxu0 %v1833_v62  ;;  %v1966_v62 = vpack.c.bf16 %v592_v58, %v586_v57  ;;  %v1990_v46 = vpack.c.bf16 %v640_v42, %v634_v41  ;;  %v454_v51 = vld [vmem:[%s9899_s8 + $0x5a8] sm:$0xff]  ;;  %v460_v52 = vld [vmem:[%s9899_s8 + $0x5d8] sm:$0xff] }
  0xa5   : > { %3015 = vmatpush1.bf16.xpose.msra.mxu1 %v1929_v63  ;;  %2767 = vmatprep.subr.bf16.mxu0 %v1840_v0  ;;  %v393_v63 = vld [vmem:[%s9899_s8 + $0x3c0] sm:$0xff]  ;;  %v399_v0 = vld [vmem:[%s9899_s8 + $0x3f0] sm:$0xff]  ;;  %v646_v53 = vld [vmem:[%s9899_s8 + $0xba8] sm:$0xff]  ;;  %v1900_v57 = vpack.c.bf16 %v460_v52, %v454_v51 }
  0xa6   : > { %3016 = vmatprep.subr.bf16.mxu1 %v1936_v1  ;;  %v585_v1 = vld [vmem:[%s9899_s8 + $0x9c0] sm:$0xff]  ;;  %v1869_v7 = vpack.c.bf16 %v399_v0, %v393_v63  ;;  %v652_v54 = vld [vmem:[%s9899_s8 + $0xbd8] sm:$0xff]  ;;  %v282_v0 = vld [vmem:[%s9899_s8 + $0x48] sm:$0xff] }
  0xa7   : > { %v1965_v8 = vpack.c.bf16 %v591_v2, %v585_v1  ;;  %v1996_v58 = vpack.c.bf16 %v652_v54, %v646_v53  ;;  %v276_v63 = vld [vmem:[%s9899_s8 + $0x18] sm:$0xff]  ;;  %v474_v2 = vld [vmem:[%s9899_s8 + $0x648] sm:$0xff]  ;;  %v503_v51 = vld [vmem:[%s9899_s8 + $0x730] sm:$0xff] }
  0xa8   : > { %v468_v1 = vld [vmem:[%s9899_s8 + $0x618] sm:$0xff]  ;;  %v486_v15 = vld [vmem:[%s9899_s8 + $0x6a8] sm:$0xff]  ;;  %v509_v52 = vld [vmem:[%s9899_s8 + $0x760] sm:$0xff] }
  0xa9   : > { %v492_v27 = vld [vmem:[%s9899_s8 + $0x6d8] sm:$0xff]  ;;  %v498_v28 = vld [vmem:[%s9899_s8 + $0x708] sm:$0xff] }
  0xaa   : > { %v9308_v29 = vld [vmem:[#allocation8 + $0x30] ss:$24 sps:$4 sm:$0xff]   ;;  %v312_v39 = vld [vmem:[%s9899_s8 + $0x138] sm:$0xff] }
  0xab   : > { %v318_v40 = vld [vmem:[%s9899_s8 + $0x168] sm:$0xff]  ;;  %v504_v41 = vld [vmem:[%s9899_s8 + $0x738] sm:$0xff] }
  0xac   : > { %2768 = vmatpush1.bf16.xpose.msra.mxu0 %v1839_v10  ;;  %v1972_v10 = vpack.c.bf16 %v604_v6, %v598_v5  ;;  %v1812_v5 = vpack.c.bf16 %v282_v0, %v276_v63  ;;  %v1908_v6 = vpack.c.bf16 %v474_v2, %v468_v1  ;;  %v510_v42 = vld [vmem:[%s9899_s8 + $0x768] sm:$0xff]  ;;  %v324_v53 = vld [vmem:[%s9899_s8 + $0x198] sm:$0xff]  ;;  %v323_v63 = vld [vmem:[%s9899_s8 + $0x190] sm:$0xff] }
  0xad   : > { %3017 = vmatpush1.bf16.xpose.msra.mxu1 %v1935_v11  ;;  %2769 = vmatprep.subr.bf16.mxu0 %v1846_v12  ;;  %v405_v11 = vld [vmem:[%s9899_s8 + $0x420] sm:$0xff]  ;;  %v411_v12 = vld [vmem:[%s9899_s8 + $0x450] sm:$0xff]  ;;  %v330_v54 = vld [vmem:[%s9899_s8 + $0x1c8] sm:$0xff] }
  0xae   : > { %3018 = vmatprep.subr.bf16.mxu1 %v1942_v13  ;;  %v597_v13 = vld [vmem:[%s9899_s8 + $0xa20] sm:$0xff]  ;;  %v1875_v19 = vpack.c.bf16 %v411_v12, %v405_v11  ;;  %v288_v12 = vld [vmem:[%s9899_s8 + $0x78] sm:$0xff]  ;;  %v515_v1 = vld [vmem:[%s9899_s8 + $0x790] sm:$0xff] }
  0xaf   : > { %v1971_v20 = vpack.c.bf16 %v603_v14, %v597_v13  ;;  %v473_v11 = vld [vmem:[%s9899_s8 + $0x640] sm:$0xff]  ;;  %v294_v13 = vld [vmem:[%s9899_s8 + $0xa8] sm:$0xff]  ;;  %v480_v14 = vld [vmem:[%s9899_s8 + $0x678] sm:$0xff] }
  0xb0   : > { %v1818_v18 = vpack.c.bf16 %v294_v13, %v288_v12  ;;  %v329_v0 = vld [vmem:[%s9899_s8 + $0x1c0] sm:$0xff]  ;;  %v335_v13 = vld [vmem:[%s9899_s8 + $0x1f0] sm:$0xff] }
  0xb1   : > { %v521_v2 = vld [vmem:[%s9899_s8 + $0x7c0] sm:$0xff] }
  0xb2   : > { %v9318_v12 = vld [vmem:[#allocation8 + $0xc] ss:$24 sps:$4 sm:$0xff]  }
  0xb4   : > { %2770 = vmatpush1.bf16.xpose.msra.mxu0 %v1845_v23  ;;  %v417_v23 = vld [vmem:[%s9899_s8 + $0x480] sm:$0xff] }
  0xb5   : > { %3019 = vmatpush1.bf16.xpose.msra.mxu1 %v1941_v24  ;;  %2771 = vmatprep.subr.bf16.mxu0 %v1852_v25  ;;  %v423_v24 = vld [vmem:[%s9899_s8 + $0x4b0] sm:$0xff]  ;;  %v609_v25 = vld [vmem:[%s9899_s8 + $0xa80] sm:$0xff] }
  0xb6   : > { %3020 = vmatprep.subr.bf16.mxu1 %v1948_v26  ;;  %v615_v26 = vld [vmem:[%s9899_s8 + $0xab0] sm:$0xff]  ;;  %v1881_v31 = vpack.c.bf16 %v423_v24, %v417_v23  ;;  %v485_v24 = vld [vmem:[%s9899_s8 + $0x6a0] sm:$0xff] }
  0xb7   : > { %v1977_v32 = vpack.c.bf16 %v615_v26, %v609_v25  ;;  %v479_v23 = vld [vmem:[%s9899_s8 + $0x670] sm:$0xff]  ;;  %v300_v25 = vld [vmem:[%s9899_s8 + $0xd8] sm:$0xff]  ;;  %v306_v26 = vld [vmem:[%s9899_s8 + $0x108] sm:$0xff] }
  0xbc   : > { %2772 = vmatpush1.bf16.xpose.msra.mxu0 %v1851_v35  ;;  %v429_v35 = vld [vmem:[%s9899_s8 + $0x4e0] sm:$0xff] }
  0xbd   : > { %3021 = vmatpush1.bf16.xpose.msra.mxu1 %v1947_v36  ;;  %2773 = vmatprep.subr.bf16.mxu0 %v1858_v37  ;;  %v435_v36 = vld [vmem:[%s9899_s8 + $0x510] sm:$0xff]  ;;  %v621_v37 = vld [vmem:[%s9899_s8 + $0xae0] sm:$0xff] }
  0xbe   : > { %3022 = vmatprep.subr.bf16.mxu1 %v1954_v38  ;;  %v627_v38 = vld [vmem:[%s9899_s8 + $0xb10] sm:$0xff]  ;;  %v1887_v43 = vpack.c.bf16 %v435_v36, %v429_v35  ;;  %v305_v36 = vld [vmem:[%s9899_s8 + $0x100] sm:$0xff] }
  0xbf   : > { %v1983_v44 = vpack.c.bf16 %v627_v38, %v621_v37  ;;  %v299_v35 = vld [vmem:[%s9899_s8 + $0xd0] sm:$0xff]  ;;  %v497_v38 = vld [vmem:[%s9899_s8 + $0x700] sm:$0xff] }
  0xc0   : > { %v491_v37 = vld [vmem:[%s9899_s8 + $0x6d0] sm:$0xff] }
  0xc4   : > { %2774 = vmatpush1.bf16.xpose.msra.mxu0 %v1857_v47  ;;  %v441_v47 = vld [vmem:[%s9899_s8 + $0x540] sm:$0xff] }
  0xc5   : > { %3023 = vmatpush1.bf16.xpose.msra.mxu1 %v1953_v48  ;;  %2775 = vmatprep.subr.bf16.mxu0 %v1864_v49  ;;  %v447_v48 = vld [vmem:[%s9899_s8 + $0x570] sm:$0xff]  ;;  %v633_v49 = vld [vmem:[%s9899_s8 + $0xb40] sm:$0xff] }
  0xc6   : > { %3024 = vmatprep.subr.bf16.mxu1 %v1960_v50  ;;  %v639_v50 = vld [vmem:[%s9899_s8 + $0xb70] sm:$0xff]  ;;  %v1893_v55 = vpack.c.bf16 %v447_v48, %v441_v47  ;;  %v1926_v47 = vpack.c.bf16 %v510_v42, %v504_v41  ;;  %v372_v41 = vld [vmem:[%s9899_s8 + $0x318] sm:$0xff]  ;;  %v378_v42 = vld [vmem:[%s9899_s8 + $0x348] sm:$0xff] }
  0xc7   : > { %v1989_v56 = vpack.c.bf16 %v639_v50, %v633_v49  ;;  %v9312_v48 = vld [vmem:[#allocation8 + $0x94] ss:$24 sps:$4 sm:$0xff]   ;;  %v317_v50 = vld [vmem:[%s9899_s8 + $0x160] sm:$0xff] }
  0xc8   : > { %v311_v49 = vld [vmem:[%s9899_s8 + $0x130] sm:$0xff] }
  0xcc   : > { %2776 = vmatpush1.bf16.xpose.msra.mxu0 %v1863_v59  ;;  %v453_v59 = vld [vmem:[%s9899_s8 + $0x5a0] sm:$0xff] }
  0xcd   : > { %3025 = vmatpush1.bf16.xpose.msra.mxu1 %v1959_v60  ;;  %2777 = vmatprep.subr.bf16.mxu0 %v1870_v61  ;;  %v459_v60 = vld [vmem:[%s9899_s8 + $0x5d0] sm:$0xff]  ;;  %v645_v61 = vld [vmem:[%s9899_s8 + $0xba0] sm:$0xff] }
  0xce   : > { %3026 = vmatprep.subr.bf16.mxu1 %v1966_v62  ;;  %v651_v62 = vld [vmem:[%s9899_s8 + $0xbd0] sm:$0xff]  ;;  %v1899_v3 = vpack.c.bf16 %v459_v60, %v453_v59  ;;  %v1925_v59 = vpack.c.bf16 %v509_v52, %v503_v51  ;;  %v1836_v60 = vpack.c.bf16 %v330_v54, %v324_v53  ;;  %v569_v52 = vld [vmem:[%s9899_s8 + $0x940] sm:$0xff]  ;;  %v384_v53 = vld [vmem:[%s9899_s8 + $0x378] sm:$0xff] }
  0xcf   : > { %v1995_v4 = vpack.c.bf16 %v651_v62, %v645_v61  ;;  %v9315_v62 = vld [vmem:[#allocation8 + $0xc4] ss:$24 sps:$4 sm:$0xff]   ;;  %v563_v51 = vld [vmem:[%s9899_s8 + $0x910] sm:$0xff]  ;;  %v390_v54 = vld [vmem:[%s9899_s8 + $0x3a8] sm:$0xff] }
  0xd4   : > { %2778 = vmatpush1.bf16.xpose.msra.mxu0 %v1869_v7  ;;  %v275_v7 = vld [vmem:[%s9899_s8 + $0x10] sm:$0xff] }
  0xd5   : > { %3027 = vmatpush1.bf16.xpose.msra.mxu1 %v1965_v8  ;;  %2779 = vmatprep.subr.bf16.mxu0 %v1876_v9  ;;  %v281_v8 = vld [vmem:[%s9899_s8 + $0x40] sm:$0xff] }
  0xd6   : > { %3028 = vmatprep.subr.bf16.mxu1 %v1972_v10  ;;  %v9305_v9 = vld [vmem:[#allocation8] ss:$24 sps:$4 sm:$0xff]   ;;  %v467_v10 = vld [vmem:[%s9899_s8 + $0x610] sm:$0xff]  ;;  %v1811_v16 = vpack.c.bf16 %v281_v8, %v275_v7  ;;  %v1835_v8 = vpack.c.bf16 %v329_v0, %v323_v63 }
  0xd7   : > { %v1907_v17 = vpack.c.bf16 %v473_v11, %v467_v10  ;;  %v9317_v7 = vld [vmem:[#allocation8 + $0xc0] ss:$24 sps:$4 sm:$0xff]   ;;  %v575_v63 = vld [vmem:[%s9899_s8 + $0x970] sm:$0xff] }
  0xd8   : > { %v581_v0 = vld [vmem:[%s9899_s8 + $0x9a0] sm:$0xff] }
  0xdc   : > { %2780 = vmatpush1.bf16.xpose.msra.mxu0 %v1875_v19  ;;  %v1914_v19 = vpack.c.bf16 %v486_v15, %v480_v14  ;;  %v341_v14 = vld [vmem:[%s9899_s8 + $0x220] sm:$0xff]  ;;  %v527_v15 = vld [vmem:[%s9899_s8 + $0x7f0] sm:$0xff] }
  0xdd   : > { %3029 = vmatpush1.bf16.xpose.msra.mxu1 %v1971_v20  ;;  %2781 = vmatprep.subr.bf16.mxu0 %v1882_v21  ;;  %v9306_v20 = vld [vmem:[#allocation8 + $0x34] ss:$24 sps:$4 sm:$0xff]  }
  0xde   : > { %3030 = vmatprep.subr.bf16.mxu1 %v1978_v22  ;;  %v287_v21 = vld [vmem:[%s9899_s8 + $0x70] sm:$0xff]  ;;  %v293_v22 = vld [vmem:[%s9899_s8 + $0xa0] sm:$0xff] }
  0xdf   : > { %v1817_v30 = vpack.c.bf16 %v293_v22, %v287_v21  ;;  %v1841_v21 = vpack.c.bf16 %v341_v14, %v335_v13  ;;  %v408_v13 = vld [vmem:[%s9899_s8 + $0x438] sm:$0xff]  ;;  %v414_v14 = vld [vmem:[%s9899_s8 + $0x468] sm:$0xff] }
  0xe4   : > { %2782 = vmatpush1.bf16.xpose.msra.mxu0 %v1881_v31  ;;  %v1913_v31 = vpack.c.bf16 %v485_v24, %v479_v23 }
  0xe5   : > { %3031 = vmatpush1.bf16.xpose.msra.mxu1 %v1977_v32  ;;  %2783 = vmatprep.subr.bf16.mxu0 %v1888_v33  ;;  %v1824_v32 = vpack.c.bf16 %v306_v26, %v300_v25  ;;  %v1920_v33 = vpack.c.bf16 %v498_v28, %v492_v27  ;;  %v347_v25 = vld [vmem:[%s9899_s8 + $0x250] sm:$0xff]  ;;  %v353_v26 = vld [vmem:[%s9899_s8 + $0x280] sm:$0xff] }
  0xe6   : > { %3032 = vmatprep.subr.bf16.mxu1 %v1984_v34  ;;  %v9309_v34 = vld [vmem:[#allocation8 + $0x64] ss:$24 sps:$4 sm:$0xff]   ;;  %v539_v27 = vld [vmem:[%s9899_s8 + $0x850] sm:$0xff] }
  0xe7   : > { %v545_v28 = vld [vmem:[%s9899_s8 + $0x880] sm:$0xff] }
  0xec   : > { %2784 = vmatpush1.bf16.xpose.msra.mxu0 %v1887_v43  ;;  %v9311_v43 = vld [vmem:[#allocation8 + $0x60] ss:$24 sps:$4 sm:$0xff]  }
  0xed   : > { %3033 = vmatpush1.bf16.xpose.msra.mxu1 %v1983_v44  ;;  %2785 = vmatprep.subr.bf16.mxu0 %v1894_v45  ;;  %v1823_v44 = vpack.c.bf16 %v305_v36, %v299_v35  ;;  %v1919_v45 = vpack.c.bf16 %v497_v38, %v491_v37  ;;  %v359_v37 = vld [vmem:[%s9899_s8 + $0x2b0] sm:$0xff]  ;;  %v365_v38 = vld [vmem:[%s9899_s8 + $0x2e0] sm:$0xff] }
  0xee   : > { %3034 = vmatprep.subr.bf16.mxu1 %v1990_v46  ;;  %v1830_v46 = vpack.c.bf16 %v318_v40, %v312_v39  ;;  %v551_v39 = vld [vmem:[%s9899_s8 + $0x8b0] sm:$0xff]  ;;  %v557_v40 = vld [vmem:[%s9899_s8 + $0x8e0] sm:$0xff] }
  0xf4   : > { %2786 = vmatpush1.bf16.xpose.msra.mxu0 %v1893_v55  ;;  %v516_v55 = vld [vmem:[%s9899_s8 + $0x798] sm:$0xff] }
  0xf5   : > { %3035 = vmatpush1.bf16.xpose.msra.mxu1 %v1989_v56  ;;  %2787 = vmatprep.subr.bf16.mxu0 %v1900_v57  ;;  %v522_v56 = vld [vmem:[%s9899_s8 + $0x7c8] sm:$0xff] }
  0xf6   : > { %3036 = vmatprep.subr.bf16.mxu1 %v1996_v58  ;;  %v9314_v57 = vld [vmem:[#allocation8 + $0x90] ss:$24 sps:$4 sm:$0xff]   ;;  %v1829_v58 = vpack.c.bf16 %v317_v50, %v311_v49  ;;  %v1932_v61 = vpack.c.bf16 %v522_v56, %v516_v55  ;;  %v377_v50 = vld [vmem:[%s9899_s8 + $0x340] sm:$0xff]  ;;  %v576_v55 = vld [vmem:[%s9899_s8 + $0x978] sm:$0xff] }
  0xf7   : > { %v371_v49 = vld [vmem:[%s9899_s8 + $0x310] sm:$0xff]  ;;  %v582_v56 = vld [vmem:[%s9899_s8 + $0x9a8] sm:$0xff] }
  0xfc   : > { %2788 = vmatpush1.bf16.xpose.msra.mxu0 %v1899_v3  ;;  %v336_v3 = vld [vmem:[%s9899_s8 + $0x1f8] sm:$0xff] }
  0xfd   : > { %3037 = vmatpush1.bf16.xpose.msra.mxu1 %v1995_v4  ;;  %2840 = vmatprep.subr.bf16.mxu0 %v1812_v5  ;;  %v342_v4 = vld [vmem:[%s9899_s8 + $0x228] sm:$0xff]  ;;  %v528_v5 = vld [vmem:[%s9899_s8 + $0x7f8] sm:$0xff] }
  0xfe   : > { %3089 = vmatprep.subr.bf16.mxu1 %v1908_v6  ;;  %v534_v6 = vld [vmem:[%s9899_s8 + $0x828] sm:$0xff]  ;;  %v1842_v10 = vpack.c.bf16 %v342_v4, %v336_v3  ;;  %v588_v3 = vld [vmem:[%s9899_s8 + $0x9d8] sm:$0xff] }
  0xff   : > { %v1938_v11 = vpack.c.bf16 %v534_v6, %v528_v5  ;;  %v594_v4 = vld [vmem:[%s9899_s8 + $0xa08] sm:$0xff]  ;;  %v1961_v6 = vpack.c.bf16 %v581_v0, %v575_v63  ;;  %v648_v63 = vld [vmem:[%s9899_s8 + $0xbb8] sm:$0xff] }
 0x100   : > { %v654_v0 = vld [vmem:[%s9899_s8 + $0xbe8] sm:$0xff] }
 0x103   : > { %2790 = vmatmul.mubr.bf16.vlgmr.msra.gmra.mrb[0].mxu0 %v9305_v9 }
 0x104   : > { %2841 = vmatpush1.bf16.xpose.msra.mxu0 %v1811_v16  ;;  %3039 = vmatmul.mubr.bf16.vlgmr.msra.gmra.mrb[0].mxu1 %v9305_v9  ;;  %v1931_v9 = vpack.c.bf16 %v521_v2, %v515_v1  ;;  %v533_v16 = vld [vmem:[%s9899_s8 + $0x820] sm:$0xff]  ;;  %v396_v1 = vld [vmem:[%s9899_s8 + $0x3d8] sm:$0xff]  ;;  %v402_v2 = vld [vmem:[%s9899_s8 + $0x408] sm:$0xff] }
 0x105   : > { %3090 = vmatpush1.bf16.xpose.msra.mxu1 %v1907_v17  ;;  %2842 = vmatprep.subr.bf16.mxu0 %v1818_v18  ;;  %v348_v17 = vld [vmem:[%s9899_s8 + $0x258] sm:$0xff]  ;;  %v354_v18 = vld [vmem:[%s9899_s8 + $0x288] sm:$0xff]  ;;  %v1937_v22 = vpack.c.bf16 %v533_v16, %v527_v15 }
 0x106   : > { %3091 = vmatprep.subr.bf16.mxu1 %v1914_v19  ;;  %2799 = vmatprep.mubr.bf16.mxu0 %v9306_v20  ;;  %v540_v19 = vld [vmem:[%s9899_s8 + $0x858] sm:$0xff]  ;;  %v1848_v23 = vpack.c.bf16 %v354_v18, %v348_v17  ;;  %v606_v16 = vld [vmem:[%s9899_s8 + $0xa68] sm:$0xff] }
 0x107   : > { %3048 = vmatprep.mubr.bf16.mxu1 %v9306_v20  ;;  %v546_v20 = vld [vmem:[%s9899_s8 + $0x888] sm:$0xff]  ;;  %v600_v15 = vld [vmem:[%s9899_s8 + $0xa38] sm:$0xff] }
 0x108   : > { %v1944_v24 = vpack.c.bf16 %v546_v20, %v540_v19  ;;  %v1878_v19 = vpack.c.bf16 %v414_v14, %v408_v13  ;;  %v1974_v20 = vpack.c.bf16 %v606_v16, %v600_v15 }
 0x10b   : > { %2800 = vmatmul.mubr.bf16.gmra.mrb[4].mxu0 %v9308_v29 }
 0x10c   : > { %2843 = vmatpush1.bf16.xpose.msra.mxu0 %v1817_v30  ;;  %3049 = vmatmul.mubr.bf16.gmra.mrb[4].mxu1 %v9308_v29  ;;  %v360_v29 = vld [vmem:[%s9899_s8 + $0x2b8] sm:$0xff]  ;;  %v366_v30 = vld [vmem:[%s9899_s8 + $0x2e8] sm:$0xff] }
 0x10d   : > { %3092 = vmatpush1.bf16.xpose.msra.mxu1 %v1913_v31  ;;  %2844 = vmatprep.subr.bf16.mxu0 %v1824_v32  ;;  %v552_v31 = vld [vmem:[%s9899_s8 + $0x8b8] sm:$0xff]  ;;  %v558_v32 = vld [vmem:[%s9899_s8 + $0x8e8] sm:$0xff]  ;;  %v1854_v35 = vpack.c.bf16 %v366_v30, %v360_v29 }
 0x10e   : > { %3093 = vmatprep.subr.bf16.mxu1 %v1920_v33  ;;  %2809 = vmatprep.mubr.bf16.mxu0 %v9309_v34  ;;  %v1847_v33 = vpack.c.bf16 %v353_v26, %v347_v25  ;;  %v1950_v36 = vpack.c.bf16 %v558_v32, %v552_v31  ;;  %v420_v25 = vld [vmem:[%s9899_s8 + $0x498] sm:$0xff]  ;;  %v426_v26 = vld [vmem:[%s9899_s8 + $0x4c8] sm:$0xff] }
 0x10f   : > { %3058 = vmatprep.mubr.bf16.mxu1 %v9309_v34  ;;  %v1943_v34 = vpack.c.bf16 %v545_v28, %v539_v27  ;;  %v612_v27 = vld [vmem:[%s9899_s8 + $0xa98] sm:$0xff]  ;;  %v618_v28 = vld [vmem:[%s9899_s8 + $0xac8] sm:$0xff]  ;;  %v1884_v31 = vpack.c.bf16 %v426_v26, %v420_v25 }
 0x110   : > { %v1980_v32 = vpack.c.bf16 %v618_v28, %v612_v27  ;;  %v488_v25 = vld [vmem:[%s9899_s8 + $0x6b8] sm:$0xff] }
 0x113   : > { %2810 = vmatmul.mubr.bf16.gmra.mrb[8].mxu0 %v9311_v43 }
 0x114   : > { %2845 = vmatpush1.bf16.xpose.msra.mxu0 %v1823_v44  ;;  %3059 = vmatmul.mubr.bf16.gmra.mrb[8].mxu1 %v9311_v43  ;;  %v564_v43 = vld [vmem:[%s9899_s8 + $0x918] sm:$0xff]  ;;  %v570_v44 = vld [vmem:[%s9899_s8 + $0x948] sm:$0xff] }
 0x115   : > { %3094 = vmatpush1.bf16.xpose.msra.mxu1 %v1919_v45  ;;  %2846 = vmatprep.subr.bf16.mxu0 %v1830_v46  ;;  %v1853_v45 = vpack.c.bf16 %v365_v38, %v359_v37  ;;  %v1949_v46 = vpack.c.bf16 %v557_v40, %v551_v39  ;;  %v432_v37 = vld [vmem:[%s9899_s8 + $0x4f8] sm:$0xff]  ;;  %v438_v38 = vld [vmem:[%s9899_s8 + $0x528] sm:$0xff] }
 0x116   : > { %3095 = vmatprep.subr.bf16.mxu1 %v1926_v47  ;;  %2819 = vmatprep.mubr.bf16.mxu0 %v9312_v48  ;;  %v1860_v47 = vpack.c.bf16 %v378_v42, %v372_v41  ;;  %v624_v39 = vld [vmem:[%s9899_s8 + $0xaf8] sm:$0xff]  ;;  %v630_v40 = vld [vmem:[%s9899_s8 + $0xb28] sm:$0xff] }
 0x117   : > { %3068 = vmatprep.mubr.bf16.mxu1 %v9312_v48  ;;  %v1956_v48 = vpack.c.bf16 %v570_v44, %v564_v43  ;;  %v1890_v43 = vpack.c.bf16 %v438_v38, %v432_v37  ;;  %v1986_v44 = vpack.c.bf16 %v630_v40, %v624_v39  ;;  %v494_v37 = vld [vmem:[%s9899_s8 + $0x6e8] sm:$0xff]  ;;  %v500_v38 = vld [vmem:[%s9899_s8 + $0x718] sm:$0xff] }
 0x118   : > { %v9323_v39 = vld [vmem:[#allocation8 + $0x38] ss:$24 sps:$4 sm:$0xff]  }
 0x11b   : > { %2820 = vmatmul.mubr.bf16.gmra.mrb[12].mxu0 %v9314_v57 }
 0x11c   : > { %2847 = vmatpush1.bf16.xpose.msra.mxu0 %v1829_v58  ;;  %3069 = vmatmul.mubr.bf16.gmra.mrb[12].mxu1 %v9314_v57  ;;  %v1859_v57 = vpack.c.bf16 %v377_v50, %v371_v49  ;;  %v1955_v58 = vpack.c.bf16 %v569_v52, %v563_v51  ;;  %v444_v49 = vld [vmem:[%s9899_s8 + $0x558] sm:$0xff]  ;;  %v450_v50 = vld [vmem:[%s9899_s8 + $0x588] sm:$0xff] }
 0x11d   : > { %3096 = vmatpush1.bf16.xpose.msra.mxu1 %v1925_v59  ;;  %2848 = vmatprep.subr.bf16.mxu0 %v1836_v60  ;;  %v1866_v59 = vpack.c.bf16 %v390_v54, %v384_v53  ;;  %v1962_v60 = vpack.c.bf16 %v582_v56, %v576_v55  ;;  %v636_v51 = vld [vmem:[%s9899_s8 + $0xb58] sm:$0xff]  ;;  %v642_v52 = vld [vmem:[%s9899_s8 + $0xb88] sm:$0xff]  ;;  %v1896_v55 = vpack.c.bf16 %v450_v50, %v444_v49 }
 0x11e   : > { %3097 = vmatprep.subr.bf16.mxu1 %v1932_v61  ;;  %2829 = vmatprep.mubr.bf16.mxu0 %v9315_v62  ;;  %v383_v61 = vld [vmem:[%s9899_s8 + $0x370] sm:$0xff]  ;;  %v1992_v56 = vpack.c.bf16 %v642_v52, %v636_v51  ;;  %v314_v49 = vld [vmem:[%s9899_s8 + $0x148] sm:$0xff]  ;;  %v320_v50 = vld [vmem:[%s9899_s8 + $0x178] sm:$0xff] }
 0x11f   : > { %3078 = vmatprep.mubr.bf16.mxu1 %v9315_v62  ;;  %v389_v62 = vld [vmem:[%s9899_s8 + $0x3a0] sm:$0xff]  ;;  %v506_v51 = vld [vmem:[%s9899_s8 + $0x748] sm:$0xff]  ;;  %v512_v52 = vld [vmem:[%s9899_s8 + $0x778] sm:$0xff] }
 0x120   : > { %v1865_v5 = vpack.c.bf16 %v389_v62, %v383_v61  ;;  %v456_v61 = vld [vmem:[%s9899_s8 + $0x5b8] sm:$0xff]  ;;  %v462_v62 = vld [vmem:[%s9899_s8 + $0x5e8] sm:$0xff] }
 0x123   : > { %2830 = vmatmul.mubr.bf16.gmra.mrb[16].mxu0 %v9317_v7 }
 0x124   : > { %2849 = vmatpush1.bf16.xpose.msra.mxu0 %v1835_v8  ;;  %3079 = vmatmul.mubr.bf16.gmra.mrb[16].mxu1 %v9317_v7  ;;  %v1872_v7 = vpack.c.bf16 %v402_v2, %v396_v1  ;;  %v1968_v8 = vpack.c.bf16 %v594_v4, %v588_v3  ;;  %v1902_v3 = vpack.c.bf16 %v462_v62, %v456_v61  ;;  %v505_v61 = vld [vmem:[%s9899_s8 + $0x740] sm:$0xff]  ;;  %v511_v62 = vld [vmem:[%s9899_s8 + $0x770] sm:$0xff] }
 0x125   : > { %3098 = vmatpush1.bf16.xpose.msra.mxu1 %v1931_v9  ;;  %2850 = vmatprep.subr.bf16.mxu0 %v1842_v10  ;;  %v395_v9 = vld [vmem:[%s9899_s8 + $0x3d0] sm:$0xff]  ;;  %v401_v10 = vld [vmem:[%s9899_s8 + $0x400] sm:$0xff]  ;;  %v1998_v4 = vpack.c.bf16 %v654_v0, %v648_v63  ;;  %v326_v63 = vld [vmem:[%s9899_s8 + $0x1a8] sm:$0xff] }
 0x126   : > { %3099 = vmatprep.subr.bf16.mxu1 %v1938_v11  ;;  %2872 = vmatprep.mubr.bf16.mxu0 %v9318_v12  ;;  %v587_v11 = vld [vmem:[%s9899_s8 + $0x9d0] sm:$0xff]  ;;  %v1871_v17 = vpack.c.bf16 %v401_v10, %v395_v9  ;;  %v278_v9 = vld [vmem:[%s9899_s8 + $0x28] sm:$0xff]  ;;  %v284_v10 = vld [vmem:[%s9899_s8 + $0x58] sm:$0xff] }
 0x127   : > { %3121 = vmatprep.mubr.bf16.mxu1 %v9318_v12  ;;  %v593_v12 = vld [vmem:[%s9899_s8 + $0xa00] sm:$0xff]  ;;  %v1814_v15 = vpack.c.bf16 %v284_v10, %v278_v9  ;;  %v332_v0 = vld [vmem:[%s9899_s8 + $0x1d8] sm:$0xff]  ;;  %v331_v10 = vld [vmem:[%s9899_s8 + $0x1d0] sm:$0xff] }
 0x128   : > { %v1967_v18 = vpack.c.bf16 %v593_v12, %v587_v11  ;;  %v470_v11 = vld [vmem:[%s9899_s8 + $0x628] sm:$0xff]  ;;  %v476_v12 = vld [vmem:[%s9899_s8 + $0x658] sm:$0xff]  ;;  %v325_v9 = vld [vmem:[%s9899_s8 + $0x1a0] sm:$0xff] }
 0x129   : > { %v1910_v16 = vpack.c.bf16 %v476_v12, %v470_v11  ;;  %v517_v11 = vld [vmem:[%s9899_s8 + $0x7a0] sm:$0xff]  ;;  %v523_v12 = vld [vmem:[%s9899_s8 + $0x7d0] sm:$0xff] }
 0x12c   : > { %2851 = vmatpush1.bf16.xpose.msra.mxu0 %v1841_v21  ;;  %v407_v21 = vld [vmem:[%s9899_s8 + $0x430] sm:$0xff] }
 0x12d   : > { %3100 = vmatpush1.bf16.xpose.msra.mxu1 %v1937_v22  ;;  %2852 = vmatprep.subr.bf16.mxu0 %v1848_v23  ;;  %v413_v22 = vld [vmem:[%s9899_s8 + $0x460] sm:$0xff]  ;;  %v599_v23 = vld [vmem:[%s9899_s8 + $0xa30] sm:$0xff] }
 0x12e   : > { %3101 = vmatprep.subr.bf16.mxu1 %v1944_v24  ;;  %v605_v24 = vld [vmem:[%s9899_s8 + $0xa60] sm:$0xff]  ;;  %v1877_v29 = vpack.c.bf16 %v413_v22, %v407_v21  ;;  %v290_v21 = vld [vmem:[%s9899_s8 + $0x88] sm:$0xff]  ;;  %v296_v22 = vld [vmem:[%s9899_s8 + $0xb8] sm:$0xff] }
 0x12f   : > { %v1973_v30 = vpack.c.bf16 %v605_v24, %v599_v23  ;;  %v9320_v23 = vld [vmem:[#allocation8 + $0x8] ss:$24 sps:$4 sm:$0xff]   ;;  %v1820_v28 = vpack.c.bf16 %v296_v22, %v290_v21  ;;  %v9333_v22 = vld [vmem:[#allocation8 + $0x14] ss:$24 sps:$4 sm:$0xff]  }
 0x130   : > { %v482_v24 = vld [vmem:[%s9899_s8 + $0x688] sm:$0xff] }
 0x134   : > { %2853 = vmatpush1.bf16.xpose.msra.mxu0 %v1847_v33  ;;  %v419_v33 = vld [vmem:[%s9899_s8 + $0x490] sm:$0xff] }
 0x135   : > { %3102 = vmatpush1.bf16.xpose.msra.mxu1 %v1943_v34  ;;  %2854 = vmatprep.subr.bf16.mxu0 %v1854_v35  ;;  %v425_v34 = vld [vmem:[%s9899_s8 + $0x4c0] sm:$0xff]  ;;  %v611_v35 = vld [vmem:[%s9899_s8 + $0xa90] sm:$0xff] }
 0x136   : > { %3103 = vmatprep.subr.bf16.mxu1 %v1950_v36  ;;  %v617_v36 = vld [vmem:[%s9899_s8 + $0xac0] sm:$0xff]  ;;  %v1883_v41 = vpack.c.bf16 %v425_v34, %v419_v33  ;;  %v487_v34 = vld [vmem:[%s9899_s8 + $0x6b0] sm:$0xff] }
 0x137   : > { %v1979_v42 = vpack.c.bf16 %v617_v36, %v611_v35  ;;  %v481_v33 = vld [vmem:[%s9899_s8 + $0x680] sm:$0xff]  ;;  %v302_v35 = vld [vmem:[%s9899_s8 + $0xe8] sm:$0xff]  ;;  %v308_v36 = vld [vmem:[%s9899_s8 + $0x118] sm:$0xff] }
 0x13c   : > { %2855 = vmatpush1.bf16.xpose.msra.mxu0 %v1853_v45  ;;  %v431_v45 = vld [vmem:[%s9899_s8 + $0x4f0] sm:$0xff] }
 0x13d   : > { %3104 = vmatpush1.bf16.xpose.msra.mxu1 %v1949_v46  ;;  %2856 = vmatprep.subr.bf16.mxu0 %v1860_v47  ;;  %v437_v46 = vld [vmem:[%s9899_s8 + $0x520] sm:$0xff]  ;;  %v623_v47 = vld [vmem:[%s9899_s8 + $0xaf0] sm:$0xff] }
 0x13e   : > { %3105 = vmatprep.subr.bf16.mxu1 %v1956_v48  ;;  %v629_v48 = vld [vmem:[%s9899_s8 + $0xb20] sm:$0xff]  ;;  %v1889_v53 = vpack.c.bf16 %v437_v46, %v431_v45  ;;  %v307_v46 = vld [vmem:[%s9899_s8 + $0x110] sm:$0xff] }
 0x13f   : > { %v1985_v54 = vpack.c.bf16 %v629_v48, %v623_v47  ;;  %v301_v45 = vld [vmem:[%s9899_s8 + $0xe0] sm:$0xff]  ;;  %v499_v48 = vld [vmem:[%s9899_s8 + $0x710] sm:$0xff] }
 0x140   : > { %v493_v47 = vld [vmem:[%s9899_s8 + $0x6e0] sm:$0xff] }
 0x144   : > { %2857 = vmatpush1.bf16.xpose.msra.mxu0 %v1859_v57  ;;  %v443_v57 = vld [vmem:[%s9899_s8 + $0x550] sm:$0xff] }
 0x145   : > { %3106 = vmatpush1.bf16.xpose.msra.mxu1 %v1955_v58  ;;  %2858 = vmatprep.subr.bf16.mxu0 %v1866_v59  ;;  %v449_v58 = vld [vmem:[%s9899_s8 + $0x580] sm:$0xff]  ;;  %v635_v59 = vld [vmem:[%s9899_s8 + $0xb50] sm:$0xff] }
 0x146   : > { %3107 = vmatprep.subr.bf16.mxu1 %v1962_v60  ;;  %v641_v60 = vld [vmem:[%s9899_s8 + $0xb80] sm:$0xff]  ;;  %v1895_v1 = vpack.c.bf16 %v449_v58, %v443_v57  ;;  %v1928_v57 = vpack.c.bf16 %v512_v52, %v506_v51  ;;  %v9327_v58 = vld [vmem:[#allocation8 + $0x9c] ss:$24 sps:$4 sm:$0xff]   ;;  %v374_v51 = vld [vmem:[%s9899_s8 + $0x328] sm:$0xff] }
 0x147   : > { %v1991_v2 = vpack.c.bf16 %v641_v60, %v635_v59  ;;  %v313_v59 = vld [vmem:[%s9899_s8 + $0x140] sm:$0xff]  ;;  %v319_v60 = vld [vmem:[%s9899_s8 + $0x170] sm:$0xff]  ;;  %v380_v52 = vld [vmem:[%s9899_s8 + $0x358] sm:$0xff] }
 0x14c   : > { %2859 = vmatpush1.bf16.xpose.msra.mxu0 %v1865_v5  ;;  %v455_v5 = vld [vmem:[%s9899_s8 + $0x5b0] sm:$0xff] }
 0x14d   : > { %3108 = vmatpush1.bf16.xpose.msra.mxu1 %v1961_v6  ;;  %2860 = vmatprep.subr.bf16.mxu0 %v1872_v7  ;;  %v461_v6 = vld [vmem:[%s9899_s8 + $0x5e0] sm:$0xff]  ;;  %v647_v7 = vld [vmem:[%s9899_s8 + $0xbb0] sm:$0xff] }
 0x14e   : > { %3109 = vmatprep.subr.bf16.mxu1 %v1968_v8  ;;  %v653_v8 = vld [vmem:[%s9899_s8 + $0xbe0] sm:$0xff]  ;;  %v1901_v13 = vpack.c.bf16 %v461_v6, %v455_v5  ;;  %v1927_v5 = vpack.c.bf16 %v511_v62, %v505_v61  ;;  %v1838_v6 = vpack.c.bf16 %v332_v0, %v326_v63  ;;  %v571_v62 = vld [vmem:[%s9899_s8 + $0x950] sm:$0xff]  ;;  %v386_v63 = vld [vmem:[%s9899_s8 + $0x388] sm:$0xff] }
 0x14f   : > { %v1997_v14 = vpack.c.bf16 %v653_v8, %v647_v7  ;;  %v9330_v8 = vld [vmem:[#allocation8 + $0xcc] ss:$24 sps:$4 sm:$0xff]   ;;  %v392_v0 = vld [vmem:[%s9899_s8 + $0x3b8] sm:$0xff] }
 0x150   : > { %v565_v61 = vld [vmem:[%s9899_s8 + $0x920] sm:$0xff] }
 0x154   : > { %2861 = vmatpush1.bf16.xpose.msra.mxu0 %v1871_v17  ;;  %v277_v17 = vld [vmem:[%s9899_s8 + $0x20] sm:$0xff] }
 0x155   : > { %3110 = vmatpush1.bf16.xpose.msra.mxu1 %v1967_v18  ;;  %2862 = vmatprep.subr.bf16.mxu0 %v1878_v19  ;;  %v283_v18 = vld [vmem:[%s9899_s8 + $0x50] sm:$0xff]  ;;  %v469_v19 = vld [vmem:[%s9899_s8 + $0x620] sm:$0xff] }
 0x156   : > { %3111 = vmatprep.subr.bf16.mxu1 %v1974_v20  ;;  %v475_v20 = vld [vmem:[%s9899_s8 + $0x650] sm:$0xff]  ;;  %v1813_v26 = vpack.c.bf16 %v283_v18, %v277_v17  ;;  %v9332_v17 = vld [vmem:[#allocation8 + $0xc8] ss:$24 sps:$4 sm:$0xff]   ;;  %v1837_v18 = vpack.c.bf16 %v331_v10, %v325_v9 }
 0x157   : > { %v1909_v27 = vpack.c.bf16 %v475_v20, %v469_v19  ;;  %v1933_v19 = vpack.c.bf16 %v523_v12, %v517_v11  ;;  %v577_v9 = vld [vmem:[%s9899_s8 + $0x980] sm:$0xff]  ;;  %v583_v10 = vld [vmem:[%s9899_s8 + $0x9b0] sm:$0xff]  ;;  %v398_v11 = vld [vmem:[%s9899_s8 + $0x3e8] sm:$0xff] }
 0x158   : > { %v404_v12 = vld [vmem:[%s9899_s8 + $0x418] sm:$0xff] }
 0x15c   : > { %2863 = vmatpush1.bf16.xpose.msra.mxu0 %v1877_v29  ;;  %v1916_v29 = vpack.c.bf16 %v488_v25, %v482_v24  ;;  %v343_v24 = vld [vmem:[%s9899_s8 + $0x230] sm:$0xff]  ;;  %v529_v25 = vld [vmem:[%s9899_s8 + $0x800] sm:$0xff] }
 0x15d   : > { %3112 = vmatpush1.bf16.xpose.msra.mxu1 %v1973_v30  ;;  %2864 = vmatprep.subr.bf16.mxu0 %v1884_v31  ;;  %v9321_v30 = vld [vmem:[#allocation8 + $0x3c] ss:$24 sps:$4 sm:$0xff]   ;;  %v289_v31 = vld [vmem:[%s9899_s8 + $0x80] sm:$0xff] }
 0x15e   : > { %3113 = vmatprep.subr.bf16.mxu1 %v1980_v32  ;;  %v295_v32 = vld [vmem:[%s9899_s8 + $0xb0] sm:$0xff] }
 0x15f   : > { %v1819_v40 = vpack.c.bf16 %v295_v32, %v289_v31 }
 0x164   : > { %2865 = vmatpush1.bf16.xpose.msra.mxu0 %v1883_v41  ;;  %v1915_v41 = vpack.c.bf16 %v487_v34, %v481_v33 }
 0x165   : > { %3114 = vmatpush1.bf16.xpose.msra.mxu1 %v1979_v42  ;;  %2866 = vmatprep.subr.bf16.mxu0 %v1890_v43  ;;  %v1826_v42 = vpack.c.bf16 %v308_v36, %v302_v35  ;;  %v1922_v43 = vpack.c.bf16 %v500_v38, %v494_v37  ;;  %v349_v35 = vld [vmem:[%s9899_s8 + $0x260] sm:$0xff]  ;;  %v355_v36 = vld [vmem:[%s9899_s8 + $0x290] sm:$0xff] }
 0x166   : > { %3115 = vmatprep.subr.bf16.mxu1 %v1986_v44  ;;  %v9324_v44 = vld [vmem:[#allocation8 + $0x6c] ss:$24 sps:$4 sm:$0xff]   ;;  %v547_v38 = vld [vmem:[%s9899_s8 + $0x890] sm:$0xff] }
 0x167   : > { %v541_v37 = vld [vmem:[%s9899_s8 + $0x860] sm:$0xff] }
 0x16c   : > { %2867 = vmatpush1.bf16.xpose.msra.mxu0 %v1889_v53  ;;  %v9326_v53 = vld [vmem:[#allocation8 + $0x68] ss:$24 sps:$4 sm:$0xff]  }
 0x16d   : > { %3116 = vmatpush1.bf16.xpose.msra.mxu1 %v1985_v54  ;;  %2868 = vmatprep.subr.bf16.mxu0 %v1896_v55  ;;  %v1825_v54 = vpack.c.bf16 %v307_v46, %v301_v45  ;;  %v1921_v55 = vpack.c.bf16 %v499_v48, %v493_v47  ;;  %v361_v47 = vld [vmem:[%s9899_s8 + $0x2c0] sm:$0xff]  ;;  %v367_v48 = vld [vmem:[%s9899_s8 + $0x2f0] sm:$0xff] }
 0x16e   : > { %3117 = vmatprep.subr.bf16.mxu1 %v1992_v56  ;;  %v1832_v56 = vpack.c.bf16 %v320_v50, %v314_v49  ;;  %v553_v49 = vld [vmem:[%s9899_s8 + $0x8c0] sm:$0xff]  ;;  %v559_v50 = vld [vmem:[%s9899_s8 + $0x8f0] sm:$0xff] }
 0x174   : > { %2869 = vmatpush1.bf16.xpose.msra.mxu0 %v1895_v1  ;;  %v518_v1 = vld [vmem:[%s9899_s8 + $0x7a8] sm:$0xff] }
 0x175   : > { %3118 = vmatpush1.bf16.xpose.msra.mxu1 %v1991_v2  ;;  %2870 = vmatprep.subr.bf16.mxu0 %v1902_v3  ;;  %v524_v2 = vld [vmem:[%s9899_s8 + $0x7d8] sm:$0xff] }
 0x176   : > { %3119 = vmatprep.subr.bf16.mxu1 %v1998_v4  ;;  %v9329_v3 = vld [vmem:[#allocation8 + $0x98] ss:$24 sps:$4 sm:$0xff]   ;;  %v1831_v4 = vpack.c.bf16 %v319_v60, %v313_v59  ;;  %v1934_v7 = vpack.c.bf16 %v524_v2, %v518_v1  ;;  %v373_v59 = vld [vmem:[%s9899_s8 + $0x320] sm:$0xff]  ;;  %v578_v1 = vld [vmem:[%s9899_s8 + $0x988] sm:$0xff] }
 0x177   : > { %v379_v60 = vld [vmem:[%s9899_s8 + $0x350] sm:$0xff]  ;;  %v584_v2 = vld [vmem:[%s9899_s8 + $0x9b8] sm:$0xff] }
 0x17c   : > { %2871 = vmatpush1.bf16.xpose.msra.mxu0 %v1901_v13  ;;  %v338_v13 = vld [vmem:[%s9899_s8 + $0x208] sm:$0xff] }
 0x17d   : > { %3120 = vmatpush1.bf16.xpose.msra.mxu1 %v1997_v14  ;;  %2923 = vmatprep.subr.bf16.mxu0 %v1814_v15  ;;  %v344_v14 = vld [vmem:[%s9899_s8 + $0x238] sm:$0xff]  ;;  %v530_v15 = vld [vmem:[%s9899_s8 + $0x808] sm:$0xff] }
 0x17e   : > { %3172 = vmatprep.subr.bf16.mxu1 %v1910_v16  ;;  %v536_v16 = vld [vmem:[%s9899_s8 + $0x838] sm:$0xff]  ;;  %v1844_v20 = vpack.c.bf16 %v344_v14, %v338_v13  ;;  %v590_v13 = vld [vmem:[%s9899_s8 + $0x9e8] sm:$0xff] }
 0x17f   : > { %v1940_v21 = vpack.c.bf16 %v536_v16, %v530_v15  ;;  %v596_v14 = vld [vmem:[%s9899_s8 + $0xa18] sm:$0xff]  ;;  %v1963_v16 = vpack.c.bf16 %v583_v10, %v577_v9  ;;  %v650_v9 = vld [vmem:[%s9899_s8 + $0xbc8] sm:$0xff] }
 0x180   : > { %v656_v10 = vld [vmem:[%s9899_s8 + $0xbf8] sm:$0xff] }
 0x183   : > { %2873 = vmatmul.mubr.bf16.vlgmr.msra.gmra.mrb[0].mxu0 %v9320_v23 }
 0x184   : > { %2924 = vmatpush1.bf16.xpose.msra.mxu0 %v1813_v26  ;;  %3122 = vmatmul.mubr.bf16.vlgmr.msra.gmra.mrb[0].mxu1 %v9320_v23  ;;  %v337_v23 = vld [vmem:[%s9899_s8 + $0x200] sm:$0xff]  ;;  %v535_v26 = vld [vmem:[%s9899_s8 + $0x830] sm:$0xff] }
 0x185   : > { %3173 = vmatpush1.bf16.xpose.msra.mxu1 %v1909_v27  ;;  %2925 = vmatprep.subr.bf16.mxu0 %v1820_v28  ;;  %v350_v27 = vld [vmem:[%s9899_s8 + $0x268] sm:$0xff]  ;;  %v356_v28 = vld [vmem:[%s9899_s8 + $0x298] sm:$0xff]  ;;  %v1843_v31 = vpack.c.bf16 %v343_v24, %v337_v23  ;;  %v1939_v32 = vpack.c.bf16 %v535_v26, %v529_v25 }
 0x186   : > { %3174 = vmatprep.subr.bf16.mxu1 %v1916_v29  ;;  %2882 = vmatprep.mubr.bf16.mxu0 %v9321_v30  ;;  %v542_v29 = vld [vmem:[%s9899_s8 + $0x868] sm:$0xff]  ;;  %v1850_v33 = vpack.c.bf16 %v356_v28, %v350_v27  ;;  %v416_v24 = vld [vmem:[%s9899_s8 + $0x478] sm:$0xff] }
 0x187   : > { %3131 = vmatprep.mubr.bf16.mxu1 %v9321_v30  ;;  %v548_v30 = vld [vmem:[%s9899_s8 + $0x898] sm:$0xff]  ;;  %v410_v23 = vld [vmem:[%s9899_s8 + $0x448] sm:$0xff] }
 0x188   : > { %v1946_v34 = vpack.c.bf16 %v548_v30, %v542_v29  ;;  %v602_v25 = vld [vmem:[%s9899_s8 + $0xa48] sm:$0xff]  ;;  %v608_v26 = vld [vmem:[%s9899_s8 + $0xa78] sm:$0xff]  ;;  %v1880_v29 = vpack.c.bf16 %v416_v24, %v410_v23 }
 0x189   : > { %v1976_v30 = vpack.c.bf16 %v608_v26, %v602_v25 }
 0x18b   : > { %2883 = vmatmul.mubr.bf16.gmra.mrb[4].mxu0 %v9323_v39 }
 0x18c   : > { %2926 = vmatpush1.bf16.xpose.msra.mxu0 %v1819_v40  ;;  %3132 = vmatmul.mubr.bf16.gmra.mrb[4].mxu1 %v9323_v39  ;;  %v362_v39 = vld [vmem:[%s9899_s8 + $0x2c8] sm:$0xff]  ;;  %v368_v40 = vld [vmem:[%s9899_s8 + $0x2f8] sm:$0xff] }
 0x18d   : > { %3175 = vmatpush1.bf16.xpose.msra.mxu1 %v1915_v41  ;;  %2927 = vmatprep.subr.bf16.mxu0 %v1826_v42  ;;  %v554_v41 = vld [vmem:[%s9899_s8 + $0x8c8] sm:$0xff]  ;;  %v560_v42 = vld [vmem:[%s9899_s8 + $0x8f8] sm:$0xff]  ;;  %v1856_v45 = vpack.c.bf16 %v368_v40, %v362_v39 }
 0x18e   : > { %3176 = vmatprep.subr.bf16.mxu1 %v1922_v43  ;;  %2892 = vmatprep.mubr.bf16.mxu0 %v9324_v44  ;;  %v1849_v43 = vpack.c.bf16 %v355_v36, %v349_v35  ;;  %v1952_v46 = vpack.c.bf16 %v560_v42, %v554_v41  ;;  %v422_v35 = vld [vmem:[%s9899_s8 + $0x4a8] sm:$0xff]  ;;  %v428_v36 = vld [vmem:[%s9899_s8 + $0x4d8] sm:$0xff] }
 0x18f   : > { %3141 = vmatprep.mubr.bf16.mxu1 %v9324_v44  ;;  %v1945_v44 = vpack.c.bf16 %v547_v38, %v541_v37  ;;  %v614_v37 = vld [vmem:[%s9899_s8 + $0xaa8] sm:$0xff]  ;;  %v620_v38 = vld [vmem:[%s9899_s8 + $0xad8] sm:$0xff]  ;;  %v1886_v41 = vpack.c.bf16 %v428_v36, %v422_v35 }
 0x190   : > { %v1982_v42 = vpack.c.bf16 %v620_v38, %v614_v37  ;;  %v862_v35 = vld [vmem:[%s9899_s8 + $0x1268] sm:$0xff]  ;;  %v868_v36 = vld [vmem:[%s9899_s8 + $0x1298] sm:$0xff] }
 0x191   : > { %v9336_v38 = vld [vmem:[#allocation8 + $0x44] ss:$24 sps:$4 sm:$0xff]  }
 0x193   : > { %2893 = vmatmul.mubr.bf16.gmra.mrb[8].mxu0 %v9326_v53 }
 0x194   : > { %2928 = vmatpush1.bf16.xpose.msra.mxu0 %v1825_v54  ;;  %3142 = vmatmul.mubr.bf16.gmra.mrb[8].mxu1 %v9326_v53  ;;  %v566_v53 = vld [vmem:[%s9899_s8 + $0x928] sm:$0xff]  ;;  %v572_v54 = vld [vmem:[%s9899_s8 + $0x958] sm:$0xff] }
 0x195   : > { %3177 = vmatpush1.bf16.xpose.msra.mxu1 %v1921_v55  ;;  %2929 = vmatprep.subr.bf16.mxu0 %v1832_v56  ;;  %v1855_v55 = vpack.c.bf16 %v367_v48, %v361_v47  ;;  %v1951_v56 = vpack.c.bf16 %v559_v50, %v553_v49  ;;  %v434_v47 = vld [vmem:[%s9899_s8 + $0x508] sm:$0xff]  ;;  %v440_v48 = vld [vmem:[%s9899_s8 + $0x538] sm:$0xff] }
 0x196   : > { %3178 = vmatprep.subr.bf16.mxu1 %v1928_v57  ;;  %2902 = vmatprep.mubr.bf16.mxu0 %v9327_v58  ;;  %v1862_v57 = vpack.c.bf16 %v380_v52, %v374_v51  ;;  %v626_v49 = vld [vmem:[%s9899_s8 + $0xb08] sm:$0xff]  ;;  %v632_v50 = vld [vmem:[%s9899_s8 + $0xb38] sm:$0xff] }
 0x197   : > { %3151 = vmatprep.mubr.bf16.mxu1 %v9327_v58  ;;  %v1958_v58 = vpack.c.bf16 %v572_v54, %v566_v53  ;;  %v1892_v53 = vpack.c.bf16 %v440_v48, %v434_v47  ;;  %v1988_v54 = vpack.c.bf16 %v632_v50, %v626_v49  ;;  %v688_v47 = vld [vmem:[%s9899_s8 + $0xcf8] sm:$0xff]  ;;  %v874_v49 = vld [vmem:[%s9899_s8 + $0x12c8] sm:$0xff] }
 0x198   : > { %v880_v50 = vld [vmem:[%s9899_s8 + $0x12f8] sm:$0xff] }
 0x19b   : > { %2903 = vmatmul.mubr.bf16.gmra.mrb[12].mxu0 %v9329_v3 }
 0x19c   : > { %2930 = vmatpush1.bf16.xpose.msra.mxu0 %v1831_v4  ;;  %3152 = vmatmul.mubr.bf16.gmra.mrb[12].mxu1 %v9329_v3  ;;  %v1861_v3 = vpack.c.bf16 %v379_v60, %v373_v59  ;;  %v1957_v4 = vpack.c.bf16 %v571_v62, %v565_v61  ;;  %v446_v59 = vld [vmem:[%s9899_s8 + $0x568] sm:$0xff]  ;;  %v452_v60 = vld [vmem:[%s9899_s8 + $0x598] sm:$0xff] }
 0x19d   : > { %3179 = vmatpush1.bf16.xpose.msra.mxu1 %v1927_v5  ;;  %2931 = vmatprep.subr.bf16.mxu0 %v1838_v6  ;;  %v1868_v5 = vpack.c.bf16 %v392_v0, %v386_v63  ;;  %v1964_v6 = vpack.c.bf16 %v584_v2, %v578_v1  ;;  %v638_v61 = vld [vmem:[%s9899_s8 + $0xb68] sm:$0xff]  ;;  %v644_v62 = vld [vmem:[%s9899_s8 + $0xb98] sm:$0xff]  ;;  %v1898_v1 = vpack.c.bf16 %v452_v60, %v446_v59 }
 0x19e   : > { %3180 = vmatprep.subr.bf16.mxu1 %v1934_v7  ;;  %2912 = vmatprep.mubr.bf16.mxu0 %v9330_v8  ;;  %v385_v7 = vld [vmem:[%s9899_s8 + $0x380] sm:$0xff]  ;;  %v1994_v2 = vpack.c.bf16 %v644_v62, %v638_v61  ;;  %v9341_v59 = vld [vmem:[#allocation8 + $0x70] ss:$24 sps:$4 sm:$0xff]   ;;  %v700_v61 = vld [vmem:[%s9899_s8 + $0xd58] sm:$0xff] }
 0x19f   : > { %3161 = vmatprep.mubr.bf16.mxu1 %v9330_v8  ;;  %v391_v8 = vld [vmem:[%s9899_s8 + $0x3b0] sm:$0xff]  ;;  %v694_v60 = vld [vmem:[%s9899_s8 + $0xd28] sm:$0xff] }
 0x1a0   : > { %v1867_v15 = vpack.c.bf16 %v391_v8, %v385_v7  ;;  %v458_v7 = vld [vmem:[%s9899_s8 + $0x5c8] sm:$0xff]  ;;  %v464_v8 = vld [vmem:[%s9899_s8 + $0x5f8] sm:$0xff] }
 0x1a3   : > { %2913 = vmatmul.mubr.bf16.gmra.mrb[16].mxu0 %v9332_v17 }
 0x1a4   : > { %2932 = vmatpush1.bf16.xpose.msra.mxu0 %v1837_v18  ;;  %3162 = vmatmul.mubr.bf16.gmra.mrb[16].mxu1 %v9332_v17  ;;  %v1874_v17 = vpack.c.bf16 %v404_v12, %v398_v11  ;;  %v1970_v18 = vpack.c.bf16 %v596_v14, %v590_v13  ;;  %v1904_v13 = vpack.c.bf16 %v464_v8, %v458_v7  ;;  %v885_v7 = vld [vmem:[%s9899_s8 + $0x1320] sm:$0xff]  ;;  %v891_v8 = vld [vmem:[%s9899_s8 + $0x1350] sm:$0xff] }
 0x1a5   : > { %3181 = vmatpush1.bf16.xpose.msra.mxu1 %v1933_v19  ;;  %2933 = vmatprep.subr.bf16.mxu0 %v1844_v20  ;;  %v397_v19 = vld [vmem:[%s9899_s8 + $0x3e0] sm:$0xff]  ;;  %v403_v20 = vld [vmem:[%s9899_s8 + $0x410] sm:$0xff]  ;;  %v2000_v14 = vpack.c.bf16 %v656_v10, %v650_v9  ;;  %v706_v10 = vld [vmem:[%s9899_s8 + $0xd88] sm:$0xff] }
 0x1a6   : > { %3182 = vmatprep.subr.bf16.mxu1 %v1940_v21  ;;  %2955 = vmatprep.mubr.bf16.mxu0 %v9333_v22  ;;  %v589_v21 = vld [vmem:[%s9899_s8 + $0x9e0] sm:$0xff]  ;;  %v1873_v27 = vpack.c.bf16 %v403_v20, %v397_v19  ;;  %v658_v19 = vld [vmem:[%s9899_s8 + $0xc08] sm:$0xff]  ;;  %v664_v20 = vld [vmem:[%s9899_s8 + $0xc38] sm:$0xff] }
 0x1a7   : > { %3204 = vmatprep.mubr.bf16.mxu1 %v9333_v22  ;;  %v595_v22 = vld [vmem:[%s9899_s8 + $0xa10] sm:$0xff]  ;;  %v2002_v25 = vpack.c.bf16 %v664_v20, %v658_v19  ;;  %v9344_v9 = vld [vmem:[#allocation8 + $0xa0] ss:$24 sps:$4 sm:$0xff]  }
 0x1a8   : > { %v1969_v28 = vpack.c.bf16 %v595_v22, %v589_v21  ;;  %v850_v21 = vld [vmem:[%s9899_s8 + $0x1208] sm:$0xff]  ;;  %v856_v22 = vld [vmem:[%s9899_s8 + $0x1238] sm:$0xff]  ;;  %v705_v19 = vld [vmem:[%s9899_s8 + $0xd80] sm:$0xff] }
 0x1a9   : > { %v2098_v26 = vpack.c.bf16 %v856_v22, %v850_v21  ;;  %v711_v20 = vld [vmem:[%s9899_s8 + $0xdb0] sm:$0xff]  ;;  %v897_v21 = vld [vmem:[%s9899_s8 + $0x1380] sm:$0xff] }
 0x1aa   : > { %v903_v22 = vld [vmem:[%s9899_s8 + $0x13b0] sm:$0xff] }
 0x1ac   : > { %2934 = vmatpush1.bf16.xpose.msra.mxu0 %v1843_v31  ;;  %v409_v31 = vld [vmem:[%s9899_s8 + $0x440] sm:$0xff] }
 0x1ad   : > { %3183 = vmatpush1.bf16.xpose.msra.mxu1 %v1939_v32  ;;  %2935 = vmatprep.subr.bf16.mxu0 %v1850_v33  ;;  %v415_v32 = vld [vmem:[%s9899_s8 + $0x470] sm:$0xff]  ;;  %v601_v33 = vld [vmem:[%s9899_s8 + $0xa40] sm:$0xff] }
 0x1ae   : > { %3184 = vmatprep.subr.bf16.mxu1 %v1946_v34  ;;  %v607_v34 = vld [vmem:[%s9899_s8 + $0xa70] sm:$0xff]  ;;  %v1879_v39 = vpack.c.bf16 %v415_v32, %v409_v31  ;;  %v670_v32 = vld [vmem:[%s9899_s8 + $0xc68] sm:$0xff] }
 0x1af   : > { %v1975_v40 = vpack.c.bf16 %v607_v34, %v601_v33  ;;  %v9335_v31 = vld [vmem:[#allocation8 + $0x10] ss:$24 sps:$4 sm:$0xff]   ;;  %v676_v33 = vld [vmem:[%s9899_s8 + $0xc98] sm:$0xff] }
 0x1b4   : > { %2936 = vmatpush1.bf16.xpose.msra.mxu0 %v1849_v43  ;;  %v421_v43 = vld [vmem:[%s9899_s8 + $0x4a0] sm:$0xff] }
 0x1b5   : > { %3185 = vmatpush1.bf16.xpose.msra.mxu1 %v1945_v44  ;;  %2937 = vmatprep.subr.bf16.mxu0 %v1856_v45  ;;  %v427_v44 = vld [vmem:[%s9899_s8 + $0x4d0] sm:$0xff]  ;;  %v613_v45 = vld [vmem:[%s9899_s8 + $0xaa0] sm:$0xff] }
 0x1b6   : > { %3186 = vmatprep.subr.bf16.mxu1 %v1952_v46  ;;  %v619_v46 = vld [vmem:[%s9899_s8 + $0xad0] sm:$0xff]  ;;  %v1885_v51 = vpack.c.bf16 %v427_v44, %v421_v43  ;;  %v861_v43 = vld [vmem:[%s9899_s8 + $0x1260] sm:$0xff] }
 0x1b7   : > { %v1981_v52 = vpack.c.bf16 %v619_v46, %v613_v45  ;;  %v867_v44 = vld [vmem:[%s9899_s8 + $0x1290] sm:$0xff]  ;;  %v9338_v45 = vld [vmem:[#allocation8 + $0x40] ss:$24 sps:$4 sm:$0xff]   ;;  %v682_v46 = vld [vmem:[%s9899_s8 + $0xcc8] sm:$0xff] }
 0x1bc   : > { %2938 = vmatpush1.bf16.xpose.msra.mxu0 %v1855_v55  ;;  %v433_v55 = vld [vmem:[%s9899_s8 + $0x500] sm:$0xff] }
 0x1bd   : > { %3187 = vmatpush1.bf16.xpose.msra.mxu1 %v1951_v56  ;;  %2939 = vmatprep.subr.bf16.mxu0 %v1862_v57  ;;  %v439_v56 = vld [vmem:[%s9899_s8 + $0x530] sm:$0xff]  ;;  %v625_v57 = vld [vmem:[%s9899_s8 + $0xb00] sm:$0xff] }
 0x1be   : > { %3188 = vmatprep.subr.bf16.mxu1 %v1958_v58  ;;  %v631_v58 = vld [vmem:[%s9899_s8 + $0xb30] sm:$0xff]  ;;  %v1891_v63 = vpack.c.bf16 %v439_v56, %v433_v55  ;;  %v681_v55 = vld [vmem:[%s9899_s8 + $0xcc0] sm:$0xff] }
 0x1bf   : > { %v1987_v0 = vpack.c.bf16 %v631_v58, %v625_v57  ;;  %v687_v56 = vld [vmem:[%s9899_s8 + $0xcf0] sm:$0xff]  ;;  %v873_v57 = vld [vmem:[%s9899_s8 + $0x12c0] sm:$0xff] }
 0x1c0   : > { %v879_v58 = vld [vmem:[%s9899_s8 + $0x12f0] sm:$0xff]  ;;  %v2013_v62 = vpack.c.bf16 %v687_v56, %v681_v55 }
 0x1c4   : > { %2940 = vmatpush1.bf16.xpose.msra.mxu0 %v1861_v3  ;;  %v445_v3 = vld [vmem:[%s9899_s8 + $0x560] sm:$0xff] }
 0x1c5   : > { %3189 = vmatpush1.bf16.xpose.msra.mxu1 %v1957_v4  ;;  %2941 = vmatprep.subr.bf16.mxu0 %v1868_v5  ;;  %v451_v4 = vld [vmem:[%s9899_s8 + $0x590] sm:$0xff]  ;;  %v637_v5 = vld [vmem:[%s9899_s8 + $0xb60] sm:$0xff] }
 0x1c6   : > { %3190 = vmatprep.subr.bf16.mxu1 %v1964_v6  ;;  %v643_v6 = vld [vmem:[%s9899_s8 + $0xb90] sm:$0xff]  ;;  %v1897_v11 = vpack.c.bf16 %v451_v4, %v445_v3  ;;  %v2020_v3 = vpack.c.bf16 %v700_v61, %v694_v60  ;;  %v741_v60 = vld [vmem:[%s9899_s8 + $0xea0] sm:$0xff] }
 0x1c7   : > { %v1993_v12 = vpack.c.bf16 %v643_v6, %v637_v5  ;;  %v693_v5 = vld [vmem:[%s9899_s8 + $0xd20] sm:$0xff]  ;;  %v699_v6 = vld [vmem:[%s9899_s8 + $0xd50] sm:$0xff] }
 0x1c8   : > { %v747_v61 = vld [vmem:[%s9899_s8 + $0xed0] sm:$0xff] }
 0x1cc   : > { %2942 = vmatpush1.bf16.xpose.msra.mxu0 %v1867_v15  ;;  %v457_v15 = vld [vmem:[%s9899_s8 + $0x5c0] sm:$0xff] }
 0x1cd   : > { %3191 = vmatpush1.bf16.xpose.msra.mxu1 %v1963_v16  ;;  %2943 = vmatprep.subr.bf16.mxu0 %v1874_v17  ;;  %v463_v16 = vld [vmem:[%s9899_s8 + $0x5f0] sm:$0xff]  ;;  %v649_v17 = vld [vmem:[%s9899_s8 + $0xbc0] sm:$0xff] }
 0x1ce   : > { %3192 = vmatprep.subr.bf16.mxu1 %v1970_v18  ;;  %v655_v18 = vld [vmem:[%s9899_s8 + $0xbf0] sm:$0xff]  ;;  %v1903_v23 = vpack.c.bf16 %v463_v16, %v457_v15  ;;  %v2115_v15 = vpack.c.bf16 %v891_v8, %v885_v7  ;;  %v2043_v7 = vpack.c.bf16 %v747_v61, %v741_v60  ;;  %v7328_v60 = vld [vmem:[%s13720_s2] sm:$0xf]  ;;  %s13927_s2 = smov 126  }
 0x1cf   : > { %v1999_v24 = vpack.c.bf16 %v655_v18, %v649_v17  ;;  %v9345_v16 = vld [vmem:[#allocation8 + $0xd4] ss:$24 sps:$4 sm:$0xff]  }
 0x1d4   : > { %2944 = vmatpush1.bf16.xpose.msra.mxu0 %v1873_v27  ;;  %v657_v27 = vld [vmem:[%s9899_s8 + $0xc00] sm:$0xff] }
 0x1d5   : > { %3193 = vmatpush1.bf16.xpose.msra.mxu1 %v1969_v28  ;;  %2945 = vmatprep.subr.bf16.mxu0 %v1880_v29  ;;  %v663_v28 = vld [vmem:[%s9899_s8 + $0xc30] sm:$0xff]  ;;  %v849_v29 = vld [vmem:[%s9899_s8 + $0x1200] sm:$0xff] }
 0x1d6   : > { %3194 = vmatprep.subr.bf16.mxu1 %v1976_v30  ;;  %v855_v30 = vld [vmem:[%s9899_s8 + $0x1230] sm:$0xff]  ;;  %v2001_v34 = vpack.c.bf16 %v663_v28, %v657_v27  ;;  %v916_v27 = vld [vmem:[%s9899_s8 + $0x1418] sm:$0xff]  ;;  %v2025_v28 = vpack.c.bf16 %v711_v20, %v705_v19  ;;  %v766_v19 = vld [vmem:[%s9899_s8 + $0xf68] sm:$0xff] }
 0x1d7   : > { %v2097_v37 = vpack.c.bf16 %v855_v30, %v849_v29  ;;  %v2121_v29 = vpack.c.bf16 %v903_v22, %v897_v21  ;;  %v772_v20 = vld [vmem:[%s9899_s8 + $0xf98] sm:$0xff]  ;;  %v958_v21 = vld [vmem:[%s9899_s8 + $0x1568] sm:$0xff] }
 0x1d8   : > { %v964_v22 = vld [vmem:[%s9899_s8 + $0x1598] sm:$0xff] }
 0x1dc   : > { %2946 = vmatpush1.bf16.xpose.msra.mxu0 %v1879_v39  ;;  %v2008_v39 = vpack.c.bf16 %v676_v33, %v670_v32  ;;  %v717_v32 = vld [vmem:[%s9899_s8 + $0xde0] sm:$0xff]  ;;  %v723_v33 = vld [vmem:[%s9899_s8 + $0xe10] sm:$0xff] }
 0x1dd   : > { %3195 = vmatpush1.bf16.xpose.msra.mxu1 %v1975_v40  ;;  %2947 = vmatprep.subr.bf16.mxu0 %v1886_v41  ;;  %v2104_v40 = vpack.c.bf16 %v868_v36, %v862_v35  ;;  %v669_v41 = vld [vmem:[%s9899_s8 + $0xc60] sm:$0xff]  ;;  %v915_v35 = vld [vmem:[%s9899_s8 + $0x1410] sm:$0xff]  ;;  %v730_v36 = vld [vmem:[%s9899_s8 + $0xe48] sm:$0xff] }
 0x1de   : > { %3196 = vmatprep.subr.bf16.mxu1 %v1982_v42  ;;  %v675_v42 = vld [vmem:[%s9899_s8 + $0xc90] sm:$0xff] }
 0x1df   : > { %v2007_v48 = vpack.c.bf16 %v675_v42, %v669_v41  ;;  %v2031_v41 = vpack.c.bf16 %v723_v33, %v717_v32  ;;  %v771_v33 = vld [vmem:[%s9899_s8 + $0xf90] sm:$0xff] }
 0x1e4   : > { %2948 = vmatpush1.bf16.xpose.msra.mxu0 %v1885_v51  ;;  %v2103_v51 = vpack.c.bf16 %v867_v44, %v861_v43  ;;  %v9669_v44 = vmov 0.0  }
 0x1e5   : > { %3197 = vmatpush1.bf16.xpose.msra.mxu1 %v1981_v52  ;;  %2949 = vmatprep.subr.bf16.mxu0 %v1892_v53  ;;  %v9339_v52 = vld [vmem:[#allocation8 + $0x74] ss:$24 sps:$4 sm:$0xff]   ;;  %v2014_v53 = vpack.c.bf16 %v688_v47, %v682_v46  ;;  %4910 = vst [vmem:[#allocation2 + $0x108] sm:$0xff] %v9669_v44  ;;  %4909 = vst [vmem:[#allocation2 + $0x80] sm:$0xff] %v9669_v44  ;;  %v729_v46 = vld [vmem:[%s9899_s8 + $0xe40] sm:$0xff] }
 0x1e6   : > { %3198 = vmatprep.subr.bf16.mxu1 %v1988_v54  ;;  %v2110_v54 = vpack.c.bf16 %v880_v50, %v874_v49  ;;  %4911 = vst [vmem:[#allocation2 + $0x190] sm:$0xff] %v9669_v44  ;;  %4912 = vst [vmem:[#allocation2 + $0x218] sm:$0xff] %v9669_v44  ;;  %v735_v47 = vld [vmem:[%s9899_s8 + $0xe70] sm:$0xff]  ;;  %v742_v50 = vld [vmem:[%s9899_s8 + $0xea8] sm:$0xff] }
 0x1e7   : > { %4913 = vst [vmem:[#allocation2 + $0x2a0] sm:$0xff] %v9669_v44  ;;  %4914 = vst [vmem:[#allocation2 + $0x328] sm:$0xff] %v9669_v44  ;;  %v927_v49 = vld [vmem:[%s9899_s8 + $0x1470] sm:$0xff] }
 0x1e8   : > { %4915 = vst [vmem:[#allocation2 + $0x3b0] sm:$0xff] %v9669_v44  ;;  %4916 = vst [vmem:[#allocation2 + $0x438] sm:$0xff] %v9669_v44 }
 0x1e9   : > { %4917 = vst [vmem:[#allocation2 + $0x4c0] sm:$0xff] %v9669_v44  ;;  %4918 = vst [vmem:[#allocation2 + $0x548] sm:$0xff] %v9669_v44 }
 0x1ea   : > { %7406 = vst [vmem:[#allocation3 + $0x40] sm:$0xf] %v9669_v44 }
 0x1ec   : > { %2950 = vmatpush1.bf16.xpose.msra.mxu0 %v1891_v63  ;;  %v886_v63 = vld [vmem:[%s9899_s8 + $0x1328] sm:$0xff]  ;;  %v5085_v55 = vld [vmem:[#allocation2 + $0x108] sm:$0xf] }
 0x1ed   : > { %3199 = vmatpush1.bf16.xpose.msra.mxu1 %v1987_v0  ;;  %2951 = vmatprep.subr.bf16.mxu0 %v1898_v1  ;;  %v892_v0 = vld [vmem:[%s9899_s8 + $0x1358] sm:$0xff]  ;;  %v2109_v1 = vpack.c.bf16 %v879_v58, %v873_v57 }
 0x1ee   : > { %3200 = vmatprep.subr.bf16.mxu1 %v1994_v2  ;;  %v9342_v2 = vld [vmem:[#allocation8 + $0xa4] ss:$24 sps:$4 sm:$0xff]   ;;  %v2116_v4 = vpack.c.bf16 %v892_v0, %v886_v63  ;;  %5135 = vrot.lane.b32.xlu1 %v5085_v55, %s13659_s24  ;;  %v4951_v63 = vld [vmem:[#allocation2 + $0x80] sm:$0xf0]  ;;  %v790_v55 = vld [vmem:[%s9899_s8 + $0x1028] sm:$0xff] }
 0x1ef   : > { %v939_v0 = vld [vmem:[%s9899_s8 + $0x14d0] sm:$0xff] }
 0x1f4   : > { %2952 = vmatpush1.bf16.xpose.msra.mxu0 %v1897_v11  ;;  %v712_v11 = vld [vmem:[%s9899_s8 + $0xdb8] sm:$0xff] }
 0x1f5   : > { %3201 = vmatpush1.bf16.xpose.msra.mxu1 %v1993_v12  ;;  %2953 = vmatprep.subr.bf16.mxu0 %v1904_v13  ;;  %v2019_v12 = vpack.c.bf16 %v699_v6, %v693_v5  ;;  %v898_v13 = vld [vmem:[%s9899_s8 + $0x1388] sm:$0xff]  ;;  %v2026_v17 = vpack.c.bf16 %v712_v11, %v706_v10  ;;  %v952_v5 = vld [vmem:[%s9899_s8 + $0x1538] sm:$0xff]  ;;  %v5587_v6 = vld [vmem:[#allocation2 + $0x218] sm:$0xf] }
 0x1f6   : > { %3202 = vmatprep.subr.bf16.mxu1 %v2000_v14  ;;  %v904_v14 = vld [vmem:[%s9899_s8 + $0x13b8] sm:$0xff]  ;;  %v5838_v11 = vld [vmem:[#allocation2 + $0x2a0] sm:$0xf] }
 0x1f7   : > { %v2122_v18 = vpack.c.bf16 %v904_v14, %v898_v13  ;;  %v753_v13 = vld [vmem:[%s9899_s8 + $0xf00] sm:$0xff] }
 0x1fc   : > { %2954 = vmatpush1.bf16.xpose.msra.mxu0 %v1903_v23  ;;  %v718_v23 = vld [vmem:[%s9899_s8 + $0xde8] sm:$0xff] }
 0x1fd   : > { %3203 = vmatpush1.bf16.xpose.msra.mxu1 %v1999_v24  ;;  %3255 = vmatprep.subr.bf16.mxu0 %v2002_v25  ;;  %v724_v24 = vld [vmem:[%s9899_s8 + $0xe18] sm:$0xff]  ;;  %v9347_v25 = vld [vmem:[#allocation8 + $0xd0] ss:$24 sps:$4 sm:$0xff]  }
 0x1fe   : > { %3504 = vmatprep.subr.bf16.mxu1 %v2098_v26  ;;  %v910_v26 = vld [vmem:[%s9899_s8 + $0x13e8] sm:$0xff]  ;;  %v2032_v30 = vpack.c.bf16 %v724_v24, %v718_v23  ;;  %v6089_v23 = vld [vmem:[#allocation2 + $0x328] sm:$0xf] }
 0x203   : > { %2956 = vmatmul.mubr.bf16.vlgmr.msra.gmra.mrb[0].mxu0 %v9335_v31 }
 0x204   : > { %3205 = vmatmul.mubr.bf16.vlgmr.msra.gmra.mrb[0].mxu1 %v9335_v31  ;;  %3256 = vmatpush1.bf16.xpose.msra.mxu0 %v2001_v34  ;;  %v2128_v31 = vpack.c.bf16 %v916_v27, %v910_v26  ;;  %v909_v34 = vld [vmem:[%s9899_s8 + $0x13e0] sm:$0xff]  ;;  %v2056_v27 = vpack.c.bf16 %v772_v20, %v766_v19  ;;  %v807_v19 = vld [vmem:[%s9899_s8 + $0x10b0] sm:$0xff] }
 0x205   : > { %3505 = vmatpush1.bf16.xpose.msra.mxu1 %v2097_v37  ;;  %2965 = vmatprep.mubr.bf16.mxu0 %v9336_v38  ;;  %v736_v37 = vld [vmem:[%s9899_s8 + $0xe78] sm:$0xff]  ;;  %v2127_v42 = vpack.c.bf16 %v915_v35, %v909_v34  ;;  %v957_v34 = vld [vmem:[%s9899_s8 + $0x1560] sm:$0xff]  ;;  %v5955_v35 = vld [vmem:[#allocation2 + $0x2a0] sm:$0xf0] }
 0x206   : > { %3214 = vmatprep.mubr.bf16.mxu1 %v9336_v38  ;;  %3257 = vmatprep.subr.bf16.mxu0 %v2008_v39  ;;  %v9412_v38 = vld [vmem:[#allocation8 + $0x4] ss:$24 sps:$4 sm:$0xff]   ;;  %v922_v39 = vld [vmem:[%s9899_s8 + $0x1448] sm:$0xff]  ;;  %v2038_v43 = vpack.c.bf16 %v736_v37, %v730_v36  ;;  %v963_v36 = vld [vmem:[%s9899_s8 + $0x1590] sm:$0xff] }
 0x207   : > { %3506 = vmatprep.subr.bf16.mxu1 %v2104_v40  ;;  %v928_v40 = vld [vmem:[%s9899_s8 + $0x1478] sm:$0xff]  ;;  %v778_v37 = vld [vmem:[%s9899_s8 + $0xfc8] sm:$0xff]  ;;  %v2151_v44 = vpack.c.bf16 %v963_v36, %v957_v34  ;;  %v993_v20 = vld [vmem:[%s9899_s8 + $0x1680] sm:$0xff] }
 0x208   : > { %v1011_v34 = vld [vmem:[%s9899_s8 + $0x1710] sm:$0xff]  ;;  %v832_v36 = vld [vmem:[%s9899_s8 + $0x1178] sm:$0xff] }
 0x20b   : > { %2966 = vmatmul.mubr.bf16.gmra.mrb[4].mxu0 %v9338_v45 }
 0x20c   : > { %3215 = vmatmul.mubr.bf16.gmra.mrb[4].mxu1 %v9338_v45  ;;  %3258 = vmatpush1.bf16.xpose.msra.mxu0 %v2007_v48  ;;  %v2134_v45 = vpack.c.bf16 %v928_v40, %v922_v39  ;;  %v921_v48 = vld [vmem:[%s9899_s8 + $0x1440] sm:$0xff]  ;;  %v970_v39 = vld [vmem:[%s9899_s8 + $0x15c8] sm:$0xff]  ;;  %v976_v40 = vld [vmem:[%s9899_s8 + $0x15f8] sm:$0xff] }
 0x20d   : > { %3507 = vmatpush1.bf16.xpose.msra.mxu1 %v2103_v51  ;;  %2975 = vmatprep.mubr.bf16.mxu0 %v9339_v52  ;;  %v748_v51 = vld [vmem:[%s9899_s8 + $0xed8] sm:$0xff]  ;;  %v2133_v56 = vpack.c.bf16 %v927_v49, %v921_v48  ;;  %v777_v49 = vld [vmem:[%s9899_s8 + $0xfc0] sm:$0xff] }
 0x20e   : > { %3224 = vmatprep.mubr.bf16.mxu1 %v9339_v52  ;;  %3259 = vmatprep.subr.bf16.mxu0 %v2014_v53  ;;  %v934_v52 = vld [vmem:[%s9899_s8 + $0x14a8] sm:$0xff]  ;;  %v940_v53 = vld [vmem:[%s9899_s8 + $0x14d8] sm:$0xff]  ;;  %v2044_v57 = vpack.c.bf16 %v748_v51, %v742_v50  ;;  %v783_v51 = vld [vmem:[%s9899_s8 + $0xff0] sm:$0xff] }
 0x20f   : > { %3508 = vmatprep.subr.bf16.mxu1 %v2110_v54  ;;  %v2037_v54 = vpack.c.bf16 %v735_v47, %v729_v46  ;;  %v2140_v58 = vpack.c.bf16 %v940_v53, %v934_v52  ;;  %v2158_v46 = vpack.c.bf16 %v976_v40, %v970_v39  ;;  %v6842_v47 = vld [vmem:[#allocation2 + $0x4c0] sm:$0xf]  ;;  %v6206_v48 = vld [vmem:[#allocation2 + $0x328] sm:$0xf0]  ;;  %v969_v52 = vld [vmem:[%s9899_s8 + $0x15c0] sm:$0xff] }
 0x210   : > { %v6240_v50 = vrot.slane %v6206_v48, 4  ;;  %v6457_v53 = vld [vmem:[#allocation2 + $0x3b0] sm:$0xf0]  ;;  %v844_v48 = vld [vmem:[%s9899_s8 + $0x11d8] sm:$0xff] }
 0x211   : > { %v6491_v61 = vrot.slane %v6457_v53, 4 }
 0x213   : > { %2976 = vmatmul.mubr.bf16.gmra.mrb[8].mxu0 %v9341_v59 }
 0x214   : > { %3225 = vmatmul.mubr.bf16.gmra.mrb[8].mxu1 %v9341_v59  ;;  %3260 = vmatpush1.bf16.xpose.msra.mxu0 %v2013_v62  ;;  %v5336_v59 = vld [vmem:[#allocation2 + $0x190] sm:$0xf]  ;;  %v933_v62 = vld [vmem:[%s9899_s8 + $0x14a0] sm:$0xff] }
 0x215   : > { %3509 = vmatpush1.bf16.xpose.msra.mxu1 %v2109_v1  ;;  %2985 = vmatprep.mubr.bf16.mxu0 %v9342_v2  ;;  %v754_v1 = vld [vmem:[%s9899_s8 + $0xf08] sm:$0xff]  ;;  %v2139_v8 = vpack.c.bf16 %v939_v0, %v933_v62  ;;  %v2061_v62 = vpack.c.bf16 %v783_v51, %v777_v49 }
 0x216   : > { %3234 = vmatprep.mubr.bf16.mxu1 %v9342_v2  ;;  %3261 = vmatprep.subr.bf16.mxu0 %v2020_v3  ;;  %v760_v2 = vld [vmem:[%s9899_s8 + $0xf38] sm:$0xff]  ;;  %v4985_v3 = vrot.slane %v4951_v63, 4  ;;  %v1030_v49 = vld [vmem:[%s9899_s8 + $0x17a8] sm:$0xff] }
 0x217   : > { %3510 = vmatprep.subr.bf16.mxu1 %v2116_v4  ;;  %5386 = vrot.lane.b32.xlu1 %v5336_v59, %s13616_s26  ;;  %v946_v4 = vld [vmem:[%s9899_s8 + $0x1508] sm:$0xff]  ;;  %v9684_v59 = vmov 0  }
 0x218   : > { %5018 = vrot.lane.b32.xlu0 %v4985_v3, %s13661_s7  ;;  %v2146_v10 = vpack.c.bf16 %v952_v5, %v946_v4  ;;  %9301 = vset.pattern.permute.xlu1 %v9684_v59  ;;  %v789_v4 = vld [vmem:[%s9899_s8 + $0x1020] sm:$0xff]  ;;  %v795_v5 = vld [vmem:[%s9899_s8 + $0x1050] sm:$0xff] }
 0x219   : > { %9302 = vset.pattern.permute.xlu0 %v9684_v59  ;;  %v660_v59 = vld [vmem:[%s9899_s8 + $0xc18] sm:$0xff] }
 0x21b   : > { %2986 = vmatmul.mubr.bf16.gmra.mrb[12].mxu0 %v9344_v9  ;;  %5637 = vrot.lane.b32.xlu1 %v5587_v6, %s13612_s10  ;;  %v981_v6 = vld [vmem:[%s9899_s8 + $0x1620] sm:$0xff] }
 0x21c   : > { %3235 = vmatmul.mubr.bf16.gmra.mrb[12].mxu1 %v9344_v9  ;;  %3262 = vmatpush1.bf16.xpose.msra.mxu0 %v2019_v12  ;;  %v2050_v9 = vpack.c.bf16 %v760_v2, %v754_v1  ;;  %v5202_v12 = vld [vmem:[#allocation2 + $0x108] sm:$0xf0]  ;;  %v6708_v2 = vld [vmem:[#allocation2 + $0x438] sm:$0xf0] }
 0x21d   : > { %3511 = vmatpush1.bf16.xpose.msra.mxu1 %v2115_v15  ;;  %2995 = vmatprep.mubr.bf16.mxu0 %v9345_v16  ;;  %v5236_v14 = vrot.slane %v5202_v12, 4  ;;  %v759_v15 = vld [vmem:[%s9899_s8 + $0xf30] sm:$0xff]  ;;  %v6742_v3 = vrot.slane %v6708_v2, 4 }
 0x21e   : > { %3244 = vmatprep.mubr.bf16.mxu1 %v9345_v16  ;;  %3263 = vmatprep.subr.bf16.mxu0 %v2026_v17  ;;  %v945_v16 = vld [vmem:[%s9899_s8 + $0x1500] sm:$0xff]  ;;  %v6959_v12 = vld [vmem:[#allocation2 + $0x4c0] sm:$0xf0] }
 0x21f   : > { %3512 = vmatprep.subr.bf16.mxu1 %v2122_v18  ;;  %v5453_v17 = vld [vmem:[#allocation2 + $0x190] sm:$0xf0]  ;;  %v951_v18 = vld [vmem:[%s9899_s8 + $0x1530] sm:$0xff]  ;;  %5888 = vrot.lane.b32.xlu1 %v5838_v11, %s13610_s28  ;;  %v1000_v11 = vld [vmem:[%s9899_s8 + $0x16b8] sm:$0xff] }
 0x220   : > { %5269 = vrot.lane.b32.xlu0 %v5236_v14, %s13657_s12  ;;  %v5487_v24 = vrot.slane %v5453_v17, 4  ;;  %v2145_v26 = vpack.c.bf16 %v951_v18, %v945_v16  ;;  %v6993_v14 = vrot.slane %v6959_v12, 4  ;;  %v801_v18 = vld [vmem:[%s9899_s8 + $0x1080] sm:$0xff] }
 0x223   : > { %2996 = vmatmul.mubr.bf16.gmra.mrb[16].mxu0 %v9347_v25  ;;  %6139 = vrot.lane.b32.xlu1 %v6089_v23, %s13585_s27  ;;  %v814_v23 = vld [vmem:[%s9899_s8 + $0x10e8] sm:$0xff] }
 0x224   : > { %3245 = vmatmul.mubr.bf16.gmra.mrb[16].mxu1 %v9347_v25  ;;  %3264 = vmatpush1.bf16.xpose.msra.mxu0 %v2025_v28  ;;  %v2049_v25 = vpack.c.bf16 %v759_v15, %v753_v13  ;;  %v2152_v28 = vpack.c.bf16 %v964_v22, %v958_v21  ;;  %v2067_v13 = vpack.c.bf16 %v795_v5, %v789_v4  ;;  %v7093_v21 = vld [vmem:[#allocation2 + $0x548] sm:$0xf]  ;;  %v665_v4 = vld [vmem:[%s9899_s8 + $0xc40] sm:$0xff] }
 0x225   : > { %3513 = vmatpush1.bf16.xpose.msra.mxu1 %v2121_v29  ;;  %3265 = vmatprep.subr.bf16.mxu0 %v2032_v30  ;;  %v6340_v29 = vld [vmem:[#allocation2 + $0x3b0] sm:$0xf]  ;;  %v5704_v30 = vld [vmem:[#allocation2 + $0x218] sm:$0xf0]  ;;  %v999_v22 = vld [vmem:[%s9899_s8 + $0x16b0] sm:$0xff] }
 0x226   : > { %3514 = vmatprep.subr.bf16.mxu1 %v2128_v31  ;;  %3287 = vmatprep.mubr.bf16.mxu0 %v9412_v38  ;;  %v765_v31 = vld [vmem:[%s9899_s8 + $0xf60] sm:$0xff]  ;;  %v5738_v32 = vrot.slane %v5704_v30, 4  ;;  %v851_v5 = vld [vmem:[%s9899_s8 + $0x1210] sm:$0xff] }
 0x227   : > { %3536 = vmatprep.mubr.bf16.mxu1 %v9412_v38  ;;  %5520 = vrot.lane.b32.xlu0 %v5487_v24, %s13614_s30  ;;  %v784_v38 = vld [vmem:[%s9899_s8 + $0xff8] sm:$0xff] }
 0x228   : > { %6390 = vrot.lane.b32.xlu1 %v6340_v29, %s13579_s9  ;;  %s13591_s9 = smov 113   ;;  %v820_v24 = vld [vmem:[%s9899_s8 + $0x1118] sm:$0xff] }
 0x229   : > { %v2080_v29 = vpack.c.bf16 %v820_v24, %v814_v23  ;;  %v876_v23 = vld [vmem:[%s9899_s8 + $0x12d8] sm:$0xff]  ;;  %v882_v24 = vld [vmem:[%s9899_s8 + $0x1308] sm:$0xff] }
 0x22b   : > { %5771 = vrot.lane.b32.xlu0 %v5738_v32, %s13608_s11  ;;  %v819_v32 = vld [vmem:[%s9899_s8 + $0x1110] sm:$0xff] }
 0x22c   : > { %3266 = vmatpush1.bf16.xpose.msra.mxu0 %v2031_v41  ;;  %v6591_v41 = vld [vmem:[#allocation2 + $0x438] sm:$0xf] }
 0x22d   : > { %3515 = vmatpush1.bf16.xpose.msra.mxu1 %v2127_v42  ;;  %3267 = vmatprep.subr.bf16.mxu0 %v2038_v43  ;;  %v5989_v42 = vrot.slane %v5955_v35, 4  ;;  %v2055_v43 = vpack.c.bf16 %v771_v33, %v765_v31  ;;  %v813_v31 = vld [vmem:[%s9899_s8 + $0x10e0] sm:$0xff]  ;;  %v826_v35 = vld [vmem:[%s9899_s8 + $0x1148] sm:$0xff] }
 0x22e   : > { %3516 = vmatprep.subr.bf16.mxu1 %v2134_v45  ;;  %v2062_v45 = vpack.c.bf16 %v784_v38, %v778_v37  ;;  %6641 = vrot.lane.b32.xlu1 %v6591_v41, %s13577_s13  ;;  %s13583_s13 = smov 111   ;;  %v1005_v33 = vld [vmem:[%s9899_s8 + $0x16e0] sm:$0xff]  ;;  %v1018_v37 = vld [vmem:[%s9899_s8 + $0x1748] sm:$0xff]  ;;  %v1024_v38 = vld [vmem:[%s9899_s8 + $0x1778] sm:$0xff]  ;;  %v2079_v39 = vpack.c.bf16 %v819_v32, %v813_v31  ;;  %v2086_v41 = vpack.c.bf16 %v832_v36, %v826_v35 }
 0x22f   : > { %6022 = vrot.lane.b32.xlu0 %v5989_v42, %s13593_s14  ;;  %v2175_v40 = vpack.c.bf16 %v1011_v34, %v1005_v33  ;;  %v2182_v42 = vpack.c.bf16 %v1024_v38, %v1018_v37  ;;  %v689_v31 = vld [vmem:[%s9899_s8 + $0xd00] sm:$0xff]  ;;  %v875_v32 = vld [vmem:[%s9899_s8 + $0x12d0] sm:$0xff]  ;;  %v696_v34 = vld [vmem:[%s9899_s8 + $0xd38] sm:$0xff] }
 0x230   : > { %v881_v33 = vld [vmem:[%s9899_s8 + $0x1300] sm:$0xff]  ;;  %v702_v35 = vld [vmem:[%s9899_s8 + $0xd68] sm:$0xff]  ;;  %v888_v37 = vld [vmem:[%s9899_s8 + $0x1338] sm:$0xff] }
 0x231   : > { %v9416_v36 = vld [vmem:[#allocation8 + $0x64] ss:$24 sps:$4 sm:$0xff]   ;;  %v894_v38 = vld [vmem:[%s9899_s8 + $0x1368] sm:$0xff] }
 0x232   : > { %6892 = vrot.lane.b32.xlu1 %v6842_v47, %s13581_s16  ;;  %s13589_s16 = smov 115   ;;  %v838_v47 = vld [vmem:[%s9899_s8 + $0x11a8] sm:$0xff] }
 0x233   : > { %6273 = vrot.lane.b32.xlu0 %v6240_v50, %s13587_s6  ;;  %v1036_v50 = vld [vmem:[%s9899_s8 + $0x17d8] sm:$0xff]  ;;  %v2092_v53 = vpack.c.bf16 %v844_v48, %v838_v47  ;;  %v893_v47 = vld [vmem:[%s9899_s8 + $0x1360] sm:$0xff] }
 0x234   : > { %3268 = vmatpush1.bf16.xpose.msra.mxu0 %v2037_v54  ;;  %v975_v54 = vld [vmem:[%s9899_s8 + $0x15f0] sm:$0xff]  ;;  %v708_v48 = vld [vmem:[%s9899_s8 + $0xd98] sm:$0xff] }
 0x235   : > { %3517 = vmatpush1.bf16.xpose.msra.mxu1 %v2133_v56  ;;  %3269 = vmatprep.subr.bf16.mxu0 %v2044_v57  ;;  %v796_v56 = vld [vmem:[%s9899_s8 + $0x1058] sm:$0xff]  ;;  %v982_v57 = vld [vmem:[%s9899_s8 + $0x1628] sm:$0xff]  ;;  %v2157_v63 = vpack.c.bf16 %v975_v54, %v969_v52  ;;  %v2188_v54 = vpack.c.bf16 %v1036_v50, %v1030_v49 }
 0x236   : > { %3518 = vmatprep.subr.bf16.mxu1 %v2140_v58  ;;  %v988_v58 = vld [vmem:[%s9899_s8 + $0x1658] sm:$0xff]  ;;  %v2068_v0 = vpack.c.bf16 %v796_v56, %v790_v55  ;;  %7331 = vperm.xlu1 %9301, %v7328_v60   ;;  %v837_v55 = vld [vmem:[%s9899_s8 + $0x11a0] sm:$0xff]  ;;  %v843_v56 = vld [vmem:[%s9899_s8 + $0x11d0] sm:$0xff] }
 0x237   : > { %v2164_v1 = vpack.c.bf16 %v988_v58, %v982_v57  ;;  %6524 = vrot.lane.b32.xlu0 %v6491_v61, %s13589_s16  ;;  %v1029_v57 = vld [vmem:[%s9899_s8 + $0x17a0] sm:$0xff]  ;;  %v1035_v58 = vld [vmem:[%s9899_s8 + $0x17d0] sm:$0xff]  ;;  %v666_v60 = vld [vmem:[%s9899_s8 + $0xc48] sm:$0xff] }
 0x238   : > { %v852_v61 = vld [vmem:[%s9899_s8 + $0x1218] sm:$0xff]  ;;  %v714_v49 = vld [vmem:[%s9899_s8 + $0xdc8] sm:$0xff] }
 0x239   : > { %v9418_v50 = vld [vmem:[#allocation8 + $0x94] ss:$24 sps:$4 sm:$0xff]  }
 0x23b   : > { %6775 = vrot.lane.b32.xlu0 %v6742_v3, %s13591_s9  ;;  %v659_v3 = vld [vmem:[%s9899_s8 + $0xc10] sm:$0xff] }
 0x23c   : > { %3270 = vmatpush1.bf16.xpose.msra.mxu0 %v2043_v7  ;;  %v987_v7 = vld [vmem:[%s9899_s8 + $0x1650] sm:$0xff] }
 0x23d   : > { %3519 = vmatpush1.bf16.xpose.msra.mxu1 %v2139_v8  ;;  %3271 = vmatprep.subr.bf16.mxu0 %v2050_v9  ;;  %v802_v8 = vld [vmem:[%s9899_s8 + $0x1088] sm:$0xff]  ;;  %v808_v9 = vld [vmem:[%s9899_s8 + $0x10b8] sm:$0xff]  ;;  %v2163_v15 = vpack.c.bf16 %v987_v7, %v981_v6  ;;  %v857_v6 = vld [vmem:[%s9899_s8 + $0x1240] sm:$0xff] }
 0x23e   : > { %3520 = vmatprep.subr.bf16.mxu1 %v2146_v10  ;;  %v994_v10 = vld [vmem:[%s9899_s8 + $0x1688] sm:$0xff]  ;;  %v2074_v16 = vpack.c.bf16 %v808_v9, %v802_v8  ;;  %v672_v7 = vld [vmem:[%s9899_s8 + $0xc78] sm:$0xff]  ;;  %v2099_v12 = vpack.c.bf16 %v857_v6, %v851_v5 }
 0x23f   : > { %v2170_v17 = vpack.c.bf16 %v1000_v11, %v994_v10  ;;  %7026 = vrot.lane.b32.xlu0 %v6993_v14, %s13583_s13  ;;  %s13665_s13 = smov 110   ;;  %v678_v8 = vld [vmem:[%s9899_s8 + $0xca8] sm:$0xff]  ;;  %v864_v9 = vld [vmem:[%s9899_s8 + $0x1278] sm:$0xff]  ;;  %v2003_v11 = vpack.c.bf16 %v665_v4, %v659_v3 }
 0x240   : > { %v870_v10 = vld [vmem:[%s9899_s8 + $0x12a8] sm:$0xff] }
 0x241   : > { %v2106_v14 = vpack.c.bf16 %v870_v10, %v864_v9  ;;  %v725_v9 = vld [vmem:[%s9899_s8 + $0xe20] sm:$0xff]  ;;  %v911_v10 = vld [vmem:[%s9899_s8 + $0x13f0] sm:$0xff] }
 0x243   : > { %7143 = vrot.lane.b32.xlu0 %v7093_v21, %s13665_s13  ;;  %v690_v21 = vld [vmem:[%s9899_s8 + $0xd08] sm:$0xff] }
 0x244   : > { %3272 = vmatpush1.bf16.xpose.msra.mxu0 %v2049_v25  ;;  %v1006_v25 = vld [vmem:[%s9899_s8 + $0x16e8] sm:$0xff] }
 0x245   : > { %3521 = vmatpush1.bf16.xpose.msra.mxu1 %v2145_v26  ;;  %3273 = vmatprep.subr.bf16.mxu0 %v2056_v27  ;;  %v1012_v26 = vld [vmem:[%s9899_s8 + $0x1718] sm:$0xff]  ;;  %v2073_v27 = vpack.c.bf16 %v807_v19, %v801_v18  ;;  %v863_v18 = vld [vmem:[%s9899_s8 + $0x1270] sm:$0xff]  ;;  %v869_v19 = vld [vmem:[%s9899_s8 + $0x12a0] sm:$0xff] }
 0x246   : > { %3522 = vmatprep.subr.bf16.mxu1 %v2152_v28  ;;  %v2169_v28 = vpack.c.bf16 %v999_v22, %v993_v20  ;;  %v2176_v30 = vpack.c.bf16 %v1012_v26, %v1006_v25  ;;  %v684_v20 = vld [vmem:[%s9899_s8 + $0xcd8] sm:$0xff]  ;;  %v9414_v22 = vld [vmem:[#allocation8 + $0x34] ss:$24 sps:$4 sm:$0xff]   ;;  %v2105_v26 = vpack.c.bf16 %v869_v19, %v863_v18 }
 0x24c   : > { %3274 = vmatpush1.bf16.xpose.msra.mxu0 %v2055_v43  ;;  %v825_v43 = vld [vmem:[%s9899_s8 + $0x1140] sm:$0xff] }
 0x24d   : > { %3523 = vmatpush1.bf16.xpose.msra.mxu1 %v2151_v44  ;;  %3275 = vmatprep.subr.bf16.mxu0 %v2062_v45  ;;  %v831_v44 = vld [vmem:[%s9899_s8 + $0x1170] sm:$0xff]  ;;  %v1017_v45 = vld [vmem:[%s9899_s8 + $0x1740] sm:$0xff] }
 0x24e   : > { %3524 = vmatprep.subr.bf16.mxu1 %v2158_v46  ;;  %v1023_v46 = vld [vmem:[%s9899_s8 + $0x1770] sm:$0xff]  ;;  %v2085_v51 = vpack.c.bf16 %v831_v44, %v825_v43  ;;  %v9417_v43 = vld [vmem:[#allocation8 + $0x60] ss:$24 sps:$4 sm:$0xff]  }
 0x24f   : > { %v2181_v52 = vpack.c.bf16 %v1023_v46, %v1017_v45  ;;  %v695_v44 = vld [vmem:[%s9899_s8 + $0xd30] sm:$0xff]  ;;  %v701_v45 = vld [vmem:[%s9899_s8 + $0xd60] sm:$0xff] }
 0x250   : > { %v887_v46 = vld [vmem:[%s9899_s8 + $0x1330] sm:$0xff] }
 0x254   : > { %3276 = vmatpush1.bf16.xpose.msra.mxu0 %v2061_v62  ;;  %v858_v62 = vld [vmem:[%s9899_s8 + $0x1248] sm:$0xff] }
 0x255   : > { %3525 = vmatpush1.bf16.xpose.msra.mxu1 %v2157_v63  ;;  %3277 = vmatprep.subr.bf16.mxu0 %v2068_v0  ;;  %v2091_v63 = vpack.c.bf16 %v843_v56, %v837_v55  ;;  %v2187_v0 = vpack.c.bf16 %v1035_v58, %v1029_v57  ;;  %v2100_v2 = vpack.c.bf16 %v858_v62, %v852_v61  ;;  %v9419_v57 = vld [vmem:[#allocation8 + $0x90] ss:$24 sps:$4 sm:$0xff]   ;;  %v905_v61 = vld [vmem:[%s9899_s8 + $0x13c0] sm:$0xff]  ;;  %v720_v62 = vld [vmem:[%s9899_s8 + $0xdf8] sm:$0xff] }
 0x256   : > { %3526 = vmatprep.subr.bf16.mxu1 %v2164_v1  ;;  %v2004_v1 = vpack.c.bf16 %v666_v60, %v660_v59  ;;  %v2028_v55 = vpack.c.bf16 %v714_v49, %v708_v48  ;;  %v707_v58 = vld [vmem:[%s9899_s8 + $0xd90] sm:$0xff]  ;;  %v713_v59 = vld [vmem:[%s9899_s8 + $0xdc0] sm:$0xff]  ;;  %v768_v49 = vld [vmem:[%s9899_s8 + $0xf78] sm:$0xff] }
 0x257   : > { %v899_v60 = vld [vmem:[%s9899_s8 + $0x1390] sm:$0xff]  ;;  %v2027_v3 = vpack.c.bf16 %v713_v59, %v707_v58  ;;  %v953_v48 = vld [vmem:[%s9899_s8 + $0x1540] sm:$0xff] }
 0x258   : > { %v2123_v4 = vpack.c.bf16 %v905_v61, %v899_v60  ;;  %v773_v58 = vld [vmem:[%s9899_s8 + $0xfa0] sm:$0xff]  ;;  %v959_v59 = vld [vmem:[%s9899_s8 + $0x1570] sm:$0xff]  ;;  %v780_v61 = vld [vmem:[%s9899_s8 + $0xfd8] sm:$0xff] }
 0x259   : > { %v965_v60 = vld [vmem:[%s9899_s8 + $0x15a0] sm:$0xff] }
 0x25c   : > { %3278 = vmatpush1.bf16.xpose.msra.mxu0 %v2067_v13  ;;  %v2010_v13 = vpack.c.bf16 %v678_v8, %v672_v7  ;;  %v9421_v7 = vld [vmem:[#allocation8 + $0xc0] ss:$24 sps:$4 sm:$0xff]   ;;  %v719_v8 = vld [vmem:[%s9899_s8 + $0xdf0] sm:$0xff] }
 0x25d   : > { %3527 = vmatpush1.bf16.xpose.msra.mxu1 %v2163_v15  ;;  %3279 = vmatprep.subr.bf16.mxu0 %v2074_v16  ;;  %v9413_v15 = vld [vmem:[#allocation8] ss:$24 sps:$4 sm:$0xff]   ;;  %v671_v16 = vld [vmem:[%s9899_s8 + $0xc70] sm:$0xff] }
 0x25e   : > { %3528 = vmatprep.subr.bf16.mxu1 %v2170_v17  ;;  %v677_v17 = vld [vmem:[%s9899_s8 + $0xca0] sm:$0xff] }
 0x25f   : > { %v2009_v25 = vpack.c.bf16 %v677_v17, %v671_v16  ;;  %v930_v16 = vld [vmem:[%s9899_s8 + $0x1488] sm:$0xff]  ;;  %v2033_v17 = vpack.c.bf16 %v725_v9, %v719_v8  ;;  %v977_v8 = vld [vmem:[%s9899_s8 + $0x1600] sm:$0xff]  ;;  %v792_v9 = vld [vmem:[%s9899_s8 + $0x1038] sm:$0xff] }
 0x264   : > { %3280 = vmatpush1.bf16.xpose.msra.mxu0 %v2073_v27  ;;  %v2016_v27 = vpack.c.bf16 %v690_v21, %v684_v20  ;;  %v731_v21 = vld [vmem:[%s9899_s8 + $0xe50] sm:$0xff] }
 0x265   : > { %3529 = vmatpush1.bf16.xpose.msra.mxu1 %v2169_v28  ;;  %3281 = vmatprep.subr.bf16.mxu0 %v2080_v29  ;;  %v2112_v28 = vpack.c.bf16 %v882_v24, %v876_v23  ;;  %v9415_v29 = vld [vmem:[#allocation8 + $0x30] ss:$24 sps:$4 sm:$0xff]   ;;  %v929_v24 = vld [vmem:[%s9899_s8 + $0x1480] sm:$0xff] }
 0x266   : > { %3530 = vmatprep.subr.bf16.mxu1 %v2176_v30  ;;  %v683_v30 = vld [vmem:[%s9899_s8 + $0xcd0] sm:$0xff] }
 0x267   : > { %v923_v23 = vld [vmem:[%s9899_s8 + $0x1450] sm:$0xff] }
 0x26c   : > { %3282 = vmatpush1.bf16.xpose.msra.mxu0 %v2079_v39  ;;  %v2015_v39 = vpack.c.bf16 %v689_v31, %v683_v30  ;;  %v2135_v30 = vpack.c.bf16 %v929_v24, %v923_v23  ;;  %v810_v23 = vld [vmem:[%s9899_s8 + $0x10c8] sm:$0xff] }
 0x26d   : > { %3531 = vmatpush1.bf16.xpose.msra.mxu1 %v2175_v40  ;;  %3283 = vmatprep.subr.bf16.mxu0 %v2086_v41  ;;  %v2111_v40 = vpack.c.bf16 %v881_v33, %v875_v32  ;;  %v2022_v41 = vpack.c.bf16 %v702_v35, %v696_v34  ;;  %v743_v33 = vld [vmem:[%s9899_s8 + $0xeb0] sm:$0xff]  ;;  %v749_v34 = vld [vmem:[%s9899_s8 + $0xee0] sm:$0xff] }
 0x26e   : > { %3532 = vmatprep.subr.bf16.mxu1 %v2182_v42  ;;  %v2118_v42 = vpack.c.bf16 %v894_v38, %v888_v37  ;;  %v935_v35 = vld [vmem:[%s9899_s8 + $0x14b0] sm:$0xff]  ;;  %v756_v37 = vld [vmem:[%s9899_s8 + $0xf18] sm:$0xff]  ;;  %v762_v38 = vld [vmem:[%s9899_s8 + $0xf48] sm:$0xff] }
 0x274   : > { %3284 = vmatpush1.bf16.xpose.msra.mxu0 %v2085_v51  ;;  %v900_v51 = vld [vmem:[%s9899_s8 + $0x1398] sm:$0xff] }
 0x275   : > { %3533 = vmatpush1.bf16.xpose.msra.mxu1 %v2181_v52  ;;  %3285 = vmatprep.subr.bf16.mxu0 %v2092_v53  ;;  %v906_v52 = vld [vmem:[%s9899_s8 + $0x13c8] sm:$0xff]  ;;  %v2021_v53 = vpack.c.bf16 %v701_v45, %v695_v44  ;;  %v755_v45 = vld [vmem:[%s9899_s8 + $0xf10] sm:$0xff] }
 0x276   : > { %3534 = vmatprep.subr.bf16.mxu1 %v2188_v54  ;;  %v2117_v54 = vpack.c.bf16 %v893_v47, %v887_v46  ;;  %v2124_v56 = vpack.c.bf16 %v906_v52, %v900_v51  ;;  %v761_v46 = vld [vmem:[%s9899_s8 + $0xf40] sm:$0xff]  ;;  %v947_v47 = vld [vmem:[%s9899_s8 + $0x1510] sm:$0xff]  ;;  %v960_v51 = vld [vmem:[%s9899_s8 + $0x1578] sm:$0xff] }
 0x277   : > { %v966_v52 = vld [vmem:[%s9899_s8 + $0x15a8] sm:$0xff] }
 0x27c   : > { %3286 = vmatpush1.bf16.xpose.msra.mxu0 %v2091_v63  ;;  %v726_v63 = vld [vmem:[%s9899_s8 + $0xe28] sm:$0xff] }
 0x27d   : > { %3535 = vmatpush1.bf16.xpose.msra.mxu1 %v2187_v0  ;;  %3338 = vmatprep.subr.bf16.mxu0 %v2004_v1  ;;  %v9420_v0 = vld [vmem:[#allocation8 + $0xc4] ss:$24 sps:$4 sm:$0xff]   ;;  %v2034_v5 = vpack.c.bf16 %v726_v63, %v720_v62  ;;  %v786_v62 = vld [vmem:[%s9899_s8 + $0x1008] sm:$0xff] }
 0x27e   : > { %3587 = vmatprep.subr.bf16.mxu1 %v2100_v2  ;;  %v912_v1 = vld [vmem:[%s9899_s8 + $0x13f8] sm:$0xff]  ;;  %v918_v2 = vld [vmem:[%s9899_s8 + $0x1428] sm:$0xff] }
 0x27f   : > { %v2130_v6 = vpack.c.bf16 %v918_v2, %v912_v1  ;;  %v972_v63 = vld [vmem:[%s9899_s8 + $0x15d8] sm:$0xff]  ;;  %v2153_v2 = vpack.c.bf16 %v965_v60, %v959_v59 }
 0x283   : > { %3288 = vmatmul.mubr.bf16.vlgmr.msra.gmra.mrb[20].mxu0 %v9413_v15 }
 0x284   : > { %3339 = vmatpush1.bf16.xpose.msra.mxu0 %v2003_v11  ;;  %3537 = vmatmul.mubr.bf16.vlgmr.msra.gmra.mrb[20].mxu1 %v9413_v15  ;;  %v917_v11 = vld [vmem:[%s9899_s8 + $0x1420] sm:$0xff]  ;;  %v924_v15 = vld [vmem:[%s9899_s8 + $0x1458] sm:$0xff] }
 0x285   : > { %3588 = vmatpush1.bf16.xpose.msra.mxu1 %v2099_v12  ;;  %3340 = vmatprep.subr.bf16.mxu0 %v2010_v13  ;;  %v732_v12 = vld [vmem:[%s9899_s8 + $0xe58] sm:$0xff]  ;;  %v738_v13 = vld [vmem:[%s9899_s8 + $0xe88] sm:$0xff]  ;;  %v2129_v18 = vpack.c.bf16 %v917_v11, %v911_v10  ;;  %v2136_v20 = vpack.c.bf16 %v930_v16, %v924_v15 }
 0x286   : > { %3589 = vmatprep.subr.bf16.mxu1 %v2106_v14  ;;  %3297 = vmatprep.mubr.bf16.mxu0 %v9414_v22  ;;  %v9422_v14 = vld [vmem:[#allocation8 + $0xc] ss:$24 sps:$4 sm:$0xff]   ;;  %v2040_v19 = vpack.c.bf16 %v738_v13, %v732_v12  ;;  %v984_v11 = vld [vmem:[%s9899_s8 + $0x1638] sm:$0xff] }
 0x287   : > { %3546 = vmatprep.mubr.bf16.mxu1 %v9414_v22  ;;  %v737_v22 = vld [vmem:[%s9899_s8 + $0xe80] sm:$0xff]  ;;  %v798_v10 = vld [vmem:[%s9899_s8 + $0x1068] sm:$0xff] }
 0x288   : > { %v990_v12 = vld [vmem:[%s9899_s8 + $0x1668] sm:$0xff]  ;;  %v2070_v15 = vpack.c.bf16 %v798_v10, %v792_v9 }
 0x289   : > { %v2166_v16 = vpack.c.bf16 %v990_v12, %v984_v11 }
 0x28b   : > { %3298 = vmatmul.mubr.bf16.gmra.mrb[24].mxu0 %v9415_v29 }
 0x28c   : > { %3341 = vmatpush1.bf16.xpose.msra.mxu0 %v2009_v25  ;;  %3547 = vmatmul.mubr.bf16.gmra.mrb[24].mxu1 %v9415_v29  ;;  %v744_v25 = vld [vmem:[%s9899_s8 + $0xeb8] sm:$0xff]  ;;  %v2039_v29 = vpack.c.bf16 %v737_v22, %v731_v21  ;;  %v989_v21 = vld [vmem:[%s9899_s8 + $0x1660] sm:$0xff] }
 0x28d   : > { %3590 = vmatpush1.bf16.xpose.msra.mxu1 %v2105_v26  ;;  %3342 = vmatprep.subr.bf16.mxu0 %v2016_v27  ;;  %v750_v26 = vld [vmem:[%s9899_s8 + $0xee8] sm:$0xff]  ;;  %v936_v27 = vld [vmem:[%s9899_s8 + $0x14b8] sm:$0xff] }
 0x28e   : > { %3591 = vmatprep.subr.bf16.mxu1 %v2112_v28  ;;  %3307 = vmatprep.mubr.bf16.mxu0 %v9416_v36  ;;  %v942_v28 = vld [vmem:[%s9899_s8 + $0x14e8] sm:$0xff]  ;;  %v2046_v31 = vpack.c.bf16 %v750_v26, %v744_v25  ;;  %v804_v22 = vld [vmem:[%s9899_s8 + $0x1098] sm:$0xff] }
 0x28f   : > { %3556 = vmatprep.mubr.bf16.mxu1 %v9416_v36  ;;  %v2142_v32 = vpack.c.bf16 %v942_v28, %v936_v27  ;;  %v941_v36 = vld [vmem:[%s9899_s8 + $0x14e0] sm:$0xff]  ;;  %v996_v26 = vld [vmem:[%s9899_s8 + $0x1698] sm:$0xff]  ;;  %v1002_v27 = vld [vmem:[%s9899_s8 + $0x16c8] sm:$0xff] }
 0x293   : > { %3308 = vmatmul.mubr.bf16.gmra.mrb[28].mxu0 %v9417_v43 }
 0x294   : > { %3343 = vmatpush1.bf16.xpose.msra.mxu0 %v2015_v39  ;;  %3557 = vmatmul.mubr.bf16.gmra.mrb[28].mxu1 %v9417_v43  ;;  %v948_v39 = vld [vmem:[%s9899_s8 + $0x1518] sm:$0xff]  ;;  %v2052_v43 = vpack.c.bf16 %v762_v38, %v756_v37  ;;  %v803_v37 = vld [vmem:[%s9899_s8 + $0x1090] sm:$0xff]  ;;  %v809_v38 = vld [vmem:[%s9899_s8 + $0x10c0] sm:$0xff] }
 0x295   : > { %3592 = vmatpush1.bf16.xpose.msra.mxu1 %v2111_v40  ;;  %3344 = vmatprep.subr.bf16.mxu0 %v2022_v41  ;;  %v954_v40 = vld [vmem:[%s9899_s8 + $0x1548] sm:$0xff]  ;;  %v2045_v41 = vpack.c.bf16 %v749_v34, %v743_v33  ;;  %v2076_v34 = vpack.c.bf16 %v810_v23, %v804_v22 }
 0x296   : > { %3593 = vmatprep.subr.bf16.mxu1 %v2118_v42  ;;  %3317 = vmatprep.mubr.bf16.mxu0 %v9418_v50  ;;  %v2141_v42 = vpack.c.bf16 %v941_v36, %v935_v35  ;;  %v2148_v44 = vpack.c.bf16 %v954_v40, %v948_v39  ;;  %v2172_v36 = vpack.c.bf16 %v1002_v27, %v996_v26  ;;  %v995_v39 = vld [vmem:[%s9899_s8 + $0x1690] sm:$0xff]  ;;  %v1001_v40 = vld [vmem:[%s9899_s8 + $0x16c0] sm:$0xff] }
 0x297   : > { %3566 = vmatprep.mubr.bf16.mxu1 %v9418_v50  ;;  %v774_v50 = vld [vmem:[%s9899_s8 + $0xfa8] sm:$0xff]  ;;  %v827_v27 = vld [vmem:[%s9899_s8 + $0x1150] sm:$0xff] }
 0x29b   : > { %3318 = vmatmul.mubr.bf16.gmra.mrb[32].mxu0 %v9419_v57 }
 0x29c   : > { %3345 = vmatpush1.bf16.xpose.msra.mxu0 %v2021_v53  ;;  %3567 = vmatmul.mubr.bf16.gmra.mrb[32].mxu1 %v9419_v57  ;;  %v2051_v53 = vpack.c.bf16 %v761_v46, %v755_v45  ;;  %v767_v57 = vld [vmem:[%s9899_s8 + $0xf70] sm:$0xff] }
 0x29d   : > { %3594 = vmatpush1.bf16.xpose.msra.mxu1 %v2117_v54  ;;  %3346 = vmatprep.subr.bf16.mxu0 %v2028_v55  ;;  %v2147_v54 = vpack.c.bf16 %v953_v48, %v947_v47  ;;  %v2058_v55 = vpack.c.bf16 %v774_v50, %v768_v49  ;;  %v2057_v1 = vpack.c.bf16 %v773_v58, %v767_v57  ;;  %v1008_v49 = vld [vmem:[%s9899_s8 + $0x16f8] sm:$0xff] }
 0x29e   : > { %3595 = vmatprep.subr.bf16.mxu1 %v2124_v56  ;;  %3327 = vmatprep.mubr.bf16.mxu0 %v9420_v0  ;;  %v2154_v56 = vpack.c.bf16 %v966_v52, %v960_v51  ;;  %v2171_v58 = vpack.c.bf16 %v1001_v40, %v995_v39 }
 0x29f   : > { %3576 = vmatprep.mubr.bf16.mxu1 %v9420_v0  ;;  %v978_v0 = vld [vmem:[%s9899_s8 + $0x1608] sm:$0xff] }
 0x2a3   : > { %3328 = vmatmul.mubr.bf16.gmra.mrb[36].mxu0 %v9421_v7 }
 0x2a4   : > { %3347 = vmatpush1.bf16.xpose.msra.mxu0 %v2027_v3  ;;  %3577 = vmatmul.mubr.bf16.gmra.mrb[36].mxu1 %v9421_v7  ;;  %v2064_v3 = vpack.c.bf16 %v786_v62, %v780_v61  ;;  %v971_v7 = vld [vmem:[%s9899_s8 + $0x15d0] sm:$0xff] }
 0x2a5   : > { %3596 = vmatpush1.bf16.xpose.msra.mxu1 %v2123_v4  ;;  %3348 = vmatprep.subr.bf16.mxu0 %v2034_v5  ;;  %v2160_v4 = vpack.c.bf16 %v978_v0, %v972_v63  ;;  %v779_v5 = vld [vmem:[%s9899_s8 + $0xfd0] sm:$0xff] }
 0x2a6   : > { %3597 = vmatprep.subr.bf16.mxu1 %v2130_v6  ;;  %3370 = vmatprep.mubr.bf16.mxu0 %v9422_v14  ;;  %v785_v6 = vld [vmem:[%s9899_s8 + $0x1000] sm:$0xff]  ;;  %v815_v0 = vld [vmem:[%s9899_s8 + $0x10f0] sm:$0xff] }
 0x2a7   : > { %3619 = vmatprep.mubr.bf16.mxu1 %v9422_v14  ;;  %v2063_v13 = vpack.c.bf16 %v785_v6, %v779_v5  ;;  %v2159_v14 = vpack.c.bf16 %v977_v8, %v971_v7  ;;  %v828_v7 = vld [vmem:[%s9899_s8 + $0x1158] sm:$0xff]  ;;  %v834_v8 = vld [vmem:[%s9899_s8 + $0x1188] sm:$0xff] }
 0x2ac   : > { %3349 = vmatpush1.bf16.xpose.msra.mxu0 %v2033_v17  ;;  %v791_v17 = vld [vmem:[%s9899_s8 + $0x1030] sm:$0xff] }
 0x2ad   : > { %3598 = vmatpush1.bf16.xpose.msra.mxu1 %v2129_v18  ;;  %3350 = vmatprep.subr.bf16.mxu0 %v2040_v19  ;;  %v797_v18 = vld [vmem:[%s9899_s8 + $0x1060] sm:$0xff]  ;;  %v983_v19 = vld [vmem:[%s9899_s8 + $0x1630] sm:$0xff] }
 0x2ae   : > { %3599 = vmatprep.subr.bf16.mxu1 %v2136_v20  ;;  %v2165_v33 = vpack.c.bf16 %v989_v21, %v983_v19  ;;  %v2088_v21 = vpack.c.bf16 %v834_v8, %v828_v7 }
 0x2b4   : > { %3351 = vmatpush1.bf16.xpose.msra.mxu0 %v2039_v29 }
 0x2b5   : > { %3600 = vmatpush1.bf16.xpose.msra.mxu1 %v2135_v30  ;;  %3352 = vmatprep.subr.bf16.mxu0 %v2046_v31  ;;  %v2069_v30 = vpack.c.bf16 %v797_v18, %v791_v17 }
 0x2b6   : > { %3601 = vmatprep.subr.bf16.mxu1 %v2142_v32 }
 0x2bc   : > { %3353 = vmatpush1.bf16.xpose.msra.mxu0 %v2045_v41 }
 0x2bd   : > { %3602 = vmatpush1.bf16.xpose.msra.mxu1 %v2141_v42  ;;  %3354 = vmatprep.subr.bf16.mxu0 %v2052_v43  ;;  %v816_v43 = vld [vmem:[%s9899_s8 + $0x10f8] sm:$0xff] }
 0x2be   : > { %3603 = vmatprep.subr.bf16.mxu1 %v2148_v44  ;;  %v822_v44 = vld [vmem:[%s9899_s8 + $0x1128] sm:$0xff] }
 0x2bf   : > { %v2082_v60 = vpack.c.bf16 %v822_v44, %v816_v43  ;;  %v1038_v43 = vld [vmem:[%s9899_s8 + $0x17e8] sm:$0xff] }
 0x2c4   : > { %3355 = vmatpush1.bf16.xpose.msra.mxu0 %v2051_v53  ;;  %v2075_v53 = vpack.c.bf16 %v809_v38, %v803_v37  ;;  %v1032_v37 = vld [vmem:[%s9899_s8 + $0x17b8] sm:$0xff] }
 0x2c5   : > { %3604 = vmatpush1.bf16.xpose.msra.mxu1 %v2147_v54  ;;  %3356 = vmatprep.subr.bf16.mxu0 %v2058_v55  ;;  %v1014_v55 = vld [vmem:[%s9899_s8 + $0x1728] sm:$0xff] }
 0x2c6   : > { %3605 = vmatprep.subr.bf16.mxu1 %v2154_v56  ;;  %v2178_v62 = vpack.c.bf16 %v1014_v55, %v1008_v49 }
 0x2cc   : > { %3357 = vmatpush1.bf16.xpose.msra.mxu0 %v2057_v1  ;;  %v821_v1 = vld [vmem:[%s9899_s8 + $0x1120] sm:$0xff] }
 0x2cd   : > { %3606 = vmatpush1.bf16.xpose.msra.mxu1 %v2153_v2  ;;  %3358 = vmatprep.subr.bf16.mxu0 %v2064_v3  ;;  %v1007_v3 = vld [vmem:[%s9899_s8 + $0x16f0] sm:$0xff]  ;;  %v2081_v12 = vpack.c.bf16 %v821_v1, %v815_v0 }
 0x2ce   : > { %3607 = vmatprep.subr.bf16.mxu1 %v2160_v4  ;;  %v1013_v4 = vld [vmem:[%s9899_s8 + $0x1720] sm:$0xff] }
 0x2cf   : > { %v2177_v18 = vpack.c.bf16 %v1013_v4, %v1007_v3  ;;  %v860_v3 = vld [vmem:[%s9899_s8 + $0x1258] sm:$0xff] }
 0x2d4   : > { %3359 = vmatpush1.bf16.xpose.msra.mxu0 %v2063_v13  ;;  %v1020_v13 = vld [vmem:[%s9899_s8 + $0x1758] sm:$0xff] }
 0x2d5   : > { %3608 = vmatpush1.bf16.xpose.msra.mxu1 %v2159_v14  ;;  %3360 = vmatprep.subr.bf16.mxu0 %v2070_v15  ;;  %v1026_v14 = vld [vmem:[%s9899_s8 + $0x1788] sm:$0xff] }
 0x2d6   : > { %v2957_v20 = vpop.f32.mrb[0].mxu0  ;;  %3609 = vmatprep.subr.bf16.mxu1 %v2166_v16  ;;  %v2184_v22 = vpack.c.bf16 %v1026_v14, %v1020_v13  ;;  %v661_v14 = vld [vmem:[%s9899_s8 + $0xc20] sm:$0xff] }
 0x2d7   : > { %4749 = vst [vmem:[#allocation2] sm:$0xff] %v2957_v20  ;;  %v3206_v24 = vpop.f32.mrb[0].mxu1  ;;  %v2959_v25 = vpop.f32.mrb[1].mxu0 }
 0x2d8   : > { %4751 = vst [vmem:[#allocation2 + $0x10] sm:$0xff] %v3206_v24  ;;  %4750 = vst [vmem:[#allocation2 + $0x8] sm:$0xff] %v2959_v25  ;;  %v3208_v28 = vpop.f32.mrb[1].mxu1  ;;  %v2961_v29 = vpop.f32.mrb[2].mxu0 }
 0x2d9   : > { %4752 = vst [vmem:[#allocation2 + $0x18] sm:$0xff] %v3208_v28  ;;  %4765 = vst [vmem:[#allocation2 + $0x88] sm:$0xff] %v2961_v29  ;;  %v3210_v31 = vpop.f32.mrb[2].mxu1  ;;  %v2963_v32 = vpop.f32.mrb[3].mxu0  ;;  %v833_v28 = vld [vmem:[%s9899_s8 + $0x1180] sm:$0xff] }
 0x2da   : > { %4767 = vst [vmem:[#allocation2 + $0x98] sm:$0xff] %v3210_v31  ;;  %4766 = vst [vmem:[#allocation2 + $0x90] sm:$0xff] %v2963_v32  ;;  %v3212_v35 = vpop.f32.mrb[3].mxu1  ;;  %v1025_v31 = vld [vmem:[%s9899_s8 + $0x1780] sm:$0xff] }
 0x2db   : > { %4768 = vst [vmem:[#allocation2 + $0xa0] sm:$0xff] %v3212_v35  ;;  %v840_v35 = vld [vmem:[%s9899_s8 + $0x11b8] sm:$0xff] }
 0x2dc   : > { %3361 = vmatpush1.bf16.xpose.msra.mxu0 %v2069_v30  ;;  %v1019_v30 = vld [vmem:[%s9899_s8 + $0x1750] sm:$0xff] }
 0x2dd   : > { %3610 = vmatpush1.bf16.xpose.msra.mxu1 %v2165_v33  ;;  %3362 = vmatprep.subr.bf16.mxu0 %v2076_v34 }
 0x2de   : > { %v2967_v41 = vpop.f32.mrb[4].mxu0  ;;  %v4935_v42 = vld [vmem:[#allocation2] sm:$0xf0]  ;;  %3611 = vmatprep.subr.bf16.mxu1 %v2172_v36  ;;  %v846_v36 = vld [vmem:[%s9899_s8 + $0x11e8] sm:$0xff] }
 0x2df   : > { %4781 = vst [vmem:[#allocation2 + $0x110] sm:$0xff] %v2967_v41  ;;  %v3216_v45 = vpop.f32.mrb[4].mxu1  ;;  %v2969_v46 = vpop.f32.mrb[5].mxu0  ;;  %v4937_v47 = vld [vmem:[#allocation2 + $0x10] sm:$0xf0]  ;;  %v4969_v48 = vrot.slane %v4935_v42, 4  ;;  %v2087_v41 = vpack.c.bf16 %v833_v28, %v827_v27  ;;  %v2094_v49 = vpack.c.bf16 %v846_v36, %v840_v35 }
 0x2e0   : > { %4783 = vst [vmem:[#allocation2 + $0x120] sm:$0xff] %v3216_v45  ;;  %4782 = vst [vmem:[#allocation2 + $0x118] sm:$0xff] %v2969_v46  ;;  %v3218_v50 = vpop.f32.mrb[5].mxu1  ;;  %v2971_v51 = vpop.f32.mrb[6].mxu0  ;;  %v4971_v52 = vrot.slane %v4937_v47, 4  ;;  %v2183_v46 = vpack.c.bf16 %v1025_v31, %v1019_v30  ;;  %v673_v31 = vld [vmem:[%s9899_s8 + $0xc80] sm:$0xff] }
 0x2e1   : > { %v4936_v54 = vld [vmem:[#allocation2 + $0x8] sm:$0xf0]  ;;  %4784 = vst [vmem:[#allocation2 + $0x128] sm:$0xff] %v3218_v50  ;;  %4797 = vst [vmem:[#allocation2 + $0x198] sm:$0xff] %v2971_v51  ;;  %v3220_v56 = vpop.f32.mrb[6].mxu1  ;;  %4986 = vrot.lane.b32.xlu0 %v4969_v48, %s13661_s7  ;;  %v2973_v57 = vpop.f32.mrb[7].mxu0  ;;  %v2190_v51 = vpack.c.bf16 %v1038_v43, %v1032_v37 }
 0x2e2   : > { %4799 = vst [vmem:[#allocation2 + $0x1a8] sm:$0xff] %v3220_v56  ;;  %4990 = vrot.lane.b32.xlu1 %v4971_v52, %s13661_s7  ;;  %v3222_v59 = vpop.f32.mrb[7].mxu1  ;;  %4798 = vst [vmem:[#allocation2 + $0x1a0] sm:$0xff] %v2973_v57  ;;  %v4970_v61 = vrot.slane %v4936_v54, 4  ;;  %v5069_v63 = vld [vmem:[#allocation2 + $0x88] sm:$0xf] }
 0x2e3   : > { %4800 = vst [vmem:[#allocation2 + $0x1b0] sm:$0xff] %v3222_v59  ;;  %v5070_v11 = vld [vmem:[#allocation2 + $0x90] sm:$0xf]  ;;  %v5071_v16 = vld [vmem:[#allocation2 + $0x98] sm:$0xf]  ;;  %v1031_v56 = vld [vmem:[%s9899_s8 + $0x17b0] sm:$0xff] }
 0x2e4   : > { %3363 = vmatpush1.bf16.xpose.msra.mxu0 %v2075_v53  ;;  %v4938_v19 = vld [vmem:[#allocation2 + $0x18] sm:$0xf0]  ;;  %v5072_v24 = vld [vmem:[#allocation2 + $0xa0] sm:$0xf]  ;;  %v5186_v25 = vld [vmem:[#allocation2 + $0x88] sm:$0xf0] }
 0x2e5   : > { %3612 = vmatpush1.bf16.xpose.msra.mxu1 %v2171_v58  ;;  %4988 = vrot.lane.b32.xlu0 %v4970_v61, %s13661_s7  ;;  %v4972_v23 = vrot.slane %v4938_v19, 4  ;;  %v5187_v26 = vld [vmem:[#allocation2 + $0x90] sm:$0xf0]  ;;  %v5220_v34 = vrot.slane %v5186_v25, 4  ;;  %v5188_v42 = vld [vmem:[#allocation2 + $0x98] sm:$0xf0] }
 0x2e6   : > { %5103 = vrot.lane.b32.xlu1 %v5069_v63, %s13659_s24  ;;  %v2977_v2 = vpop.f32.mrb[8].mxu0  ;;  %3364 = vmatprep.subr.bf16.mxu0 %v2082_v60  ;;  %v5221_v40 = vrot.slane %v5187_v26, 4  ;;  %v5189_v47 = vld [vmem:[#allocation2 + $0xa0] sm:$0xf0]  ;;  %v5222_v50 = vrot.slane %v5188_v42, 4  ;;  %v845_v54 = vld [vmem:[%s9899_s8 + $0x11e0] sm:$0xff] }
 0x2e7   : > { %4813 = vst [vmem:[#allocation2 + $0x220] sm:$0xff] %v2977_v2  ;;  %v3226_v5 = vpop.f32.mrb[8].mxu1  ;;  %v2979_v6 = vpop.f32.mrb[9].mxu0  ;;  %3613 = vmatprep.subr.bf16.mxu1 %v2178_v62  ;;  %v5223_v52 = vrot.slane %v5189_v47, 4  ;;  %v839_v53 = vld [vmem:[%s9899_s8 + $0x11b0] sm:$0xff]  ;;  %v1037_v57 = vld [vmem:[%s9899_s8 + $0x17e0] sm:$0xff] }
 0x2e8   : > { %4815 = vst [vmem:[#allocation2 + $0x230] sm:$0xff] %v3226_v5  ;;  %4814 = vst [vmem:[#allocation2 + $0x228] sm:$0xff] %v2979_v6  ;;  %v3228_v9 = vpop.f32.mrb[9].mxu1  ;;  %v2981_v10 = vpop.f32.mrb[10].mxu0  ;;  %v662_v60 = vld [vmem:[%s9899_s8 + $0xc28] sm:$0xff]  ;;  %v668_v61 = vld [vmem:[%s9899_s8 + $0xc58] sm:$0xff]  ;;  %v2093_v1 = vpack.c.bf16 %v845_v54, %v839_v53  ;;  %v2189_v7 = vpack.c.bf16 %v1037_v57, %v1031_v56 }
 0x2e9   : > { %4816 = vst [vmem:[#allocation2 + $0x238] sm:$0xff] %v3228_v9  ;;  %4829 = vst [vmem:[#allocation2 + $0x2a8] sm:$0xff] %v2981_v10  ;;  %v3230_v15 = vpop.f32.mrb[10].mxu1  ;;  %5105 = vrot.lane.b32.xlu0 %v5070_v11, %s13659_s24  ;;  %v2983_v17 = vpop.f32.mrb[11].mxu0  ;;  %v5321_v0 = vld [vmem:[#allocation2 + $0x118] sm:$0xf]  ;;  %v2006_v9 = vpack.c.bf16 %v668_v61, %v662_v60 }
 0x2ea   : > { %4831 = vst [vmem:[#allocation2 + $0x2b8] sm:$0xff] %v3230_v15  ;;  %v3232_v20 = vpop.f32.mrb[11].mxu1  ;;  %5107 = vrot.lane.b32.xlu1 %v5071_v16, %s13659_s24  ;;  %4830 = vst [vmem:[#allocation2 + $0x2b0] sm:$0xff] %v2983_v17  ;;  %v854_v2 = vld [vmem:[%s9899_s8 + $0x1228] sm:$0xff]  ;;  %v5320_v5 = vld [vmem:[#allocation2 + $0x110] sm:$0xf] }
 0x2eb   : > { %4832 = vst [vmem:[#allocation2 + $0x2c0] sm:$0xff] %v3232_v20  ;;  %v2102_v10 = vpack.c.bf16 %v860_v3, %v854_v2  ;;  %v5323_v11 = vld [vmem:[#allocation2 + $0x128] sm:$0xf]  ;;  %v5322_v13 = vld [vmem:[#allocation2 + $0x120] sm:$0xf]  ;;  %v853_v16 = vld [vmem:[%s9899_s8 + $0x1220] sm:$0xff] }
 0x2ec   : > { %3365 = vmatpush1.bf16.xpose.msra.mxu0 %v2081_v12  ;;  %v5437_v12 = vld [vmem:[#allocation2 + $0x110] sm:$0xf0]  ;;  %v667_v15 = vld [vmem:[%s9899_s8 + $0xc50] sm:$0xff]  ;;  %v674_v19 = vld [vmem:[%s9899_s8 + $0xc88] sm:$0xff] }
 0x2ed   : > { %3614 = vmatpush1.bf16.xpose.msra.mxu1 %v2177_v18  ;;  %5109 = vrot.lane.b32.xlu0 %v5072_v24, %s13659_s24  ;;  %v859_v17 = vld [vmem:[%s9899_s8 + $0x1250] sm:$0xff]  ;;  %v5471_v18 = vrot.slane %v5437_v12, 4  ;;  %v680_v20 = vld [vmem:[%s9899_s8 + $0xcb8] sm:$0xff]  ;;  %v5571_v25 = vld [vmem:[#allocation2 + $0x198] sm:$0xf] }
 0x2ee   : > { %4992 = vrot.lane.b32.xlu1 %v4972_v23, %s13661_s7  ;;  %v2987_v29 = vpop.f32.mrb[12].mxu0  ;;  %3366 = vmatprep.subr.bf16.mxu0 %v2088_v21  ;;  %v2005_v21 = vpack.c.bf16 %v667_v15, %v661_v14  ;;  %v866_v23 = vld [vmem:[%s9899_s8 + $0x1288] sm:$0xff]  ;;  %v872_v24 = vld [vmem:[%s9899_s8 + $0x12b8] sm:$0xff]  ;;  %v2101_v26 = vpack.c.bf16 %v859_v17, %v853_v16  ;;  %v2012_v27 = vpack.c.bf16 %v680_v20, %v674_v19  ;;  %v865_v35 = vld [vmem:[%s9899_s8 + $0x1280] sm:$0xff]  ;;  %v10632_v16 = vpop.permute.xlu0 %5018 }
 0x2ef   : > { %4845 = vst [vmem:[#allocation2 + $0x330] sm:$0xff] %v2987_v29  ;;  %v3236_v32 = vpop.f32.mrb[12].mxu1  ;;  %v2989_v33 = vpop.f32.mrb[13].mxu0  ;;  %3615 = vmatprep.subr.bf16.mxu1 %v2184_v22  ;;  %v5439_v22 = vld [vmem:[#allocation2 + $0x120] sm:$0xf0]  ;;  %v2108_v30 = vpack.c.bf16 %v872_v24, %v866_v23  ;;  %v686_v37 = vld [vmem:[%s9899_s8 + $0xce8] sm:$0xff] }
 0x2f0   : > { %4847 = vst [vmem:[#allocation2 + $0x340] sm:$0xff] %v3236_v32  ;;  %4846 = vst [vmem:[#allocation2 + $0x338] sm:$0xff] %v2989_v33  ;;  %v3238_v38 = vpop.f32.mrb[13].mxu1  ;;  %v2991_v39 = vpop.f32.mrb[14].mxu0  ;;  %v9423_v28 = vld [vmem:[#allocation8 + $0x8] ss:$24 sps:$4 sm:$0xff]  }
 0x2f1   : > { %4848 = vst [vmem:[#allocation2 + $0x348] sm:$0xff] %v3238_v38  ;;  %4861 = vst [vmem:[#allocation2 + $0x3b8] sm:$0xff] %v2991_v39  ;;  %v3240_v44 = vpop.f32.mrb[14].mxu1  ;;  %5237 = vrot.lane.b32.xlu0 %v5220_v34, %s13657_s12  ;;  %v2993_v45 = vpop.f32.mrb[15].mxu0  ;;  %v5473_v29 = vrot.slane %v5439_v22, 4  ;;  %v679_v34 = vld [vmem:[%s9899_s8 + $0xcb0] sm:$0xff] }
 0x2f2   : > { %4863 = vst [vmem:[#allocation2 + $0x3c8] sm:$0xff] %v3240_v44  ;;  %v3242_v48 = vpop.f32.mrb[15].mxu1  ;;  %5239 = vrot.lane.b32.xlu1 %v5221_v40, %s13657_s12  ;;  %4862 = vst [vmem:[#allocation2 + $0x3c0] sm:$0xff] %v2993_v45  ;;  %v5573_v32 = vld [vmem:[#allocation2 + $0x1a8] sm:$0xf]  ;;  %v692_v38 = vld [vmem:[%s9899_s8 + $0xd18] sm:$0xff]  ;;  %v2011_v42 = vpack.c.bf16 %v679_v34, %v673_v31 }
 0x2f3   : > { %4864 = vst [vmem:[#allocation2 + $0x3d0] sm:$0xff] %v3242_v48  ;;  %v5438_v33 = vld [vmem:[#allocation2 + $0x118] sm:$0xf0]  ;;  %v871_v36 = vld [vmem:[%s9899_s8 + $0x12b0] sm:$0xff]  ;;  %v884_v44 = vld [vmem:[%s9899_s8 + $0x1318] sm:$0xff]  ;;  %v2018_v47 = vpack.c.bf16 %v692_v38, %v686_v37 }
 0x2f4   : > { %3367 = vmatpush1.bf16.xpose.msra.mxu0 %v2087_v41  ;;  %v9424_v39 = vld [vmem:[#allocation8 + $0x3c] ss:$24 sps:$4 sm:$0xff]   ;;  %v5472_v40 = vrot.slane %v5438_v33, 4  ;;  %v5572_v41 = vld [vmem:[#allocation2 + $0x1a0] sm:$0xf]  ;;  %v2107_v45 = vpack.c.bf16 %v871_v36, %v865_v35  ;;  %v685_v54 = vld [vmem:[%s9899_s8 + $0xce0] sm:$0xff]  ;;  %v10646_v35 = vpop.permute.xlu1 %5135 }
 0x2f5   : > { %3616 = vmatpush1.bf16.xpose.msra.mxu1 %v2183_v46  ;;  %5241 = vrot.lane.b32.xlu0 %v5222_v50, %s13657_s12  ;;  %v878_v43 = vld [vmem:[%s9899_s8 + $0x12e8] sm:$0xff]  ;;  %v5440_v46 = vld [vmem:[#allocation2 + $0x128] sm:$0xf0]  ;;  %v5689_v53 = vld [vmem:[#allocation2 + $0x1a0] sm:$0xf0]  ;;  %13721 = vst [vmem:[#allocation15_spill] sm:$0xff] %v10632_v16 }
 0x2f6   : > { %5243 = vrot.lane.b32.xlu1 %v5223_v52, %s13657_s12  ;;  %v2997_v55 = vpop.f32.mrb[16].mxu0  ;;  %3368 = vmatprep.subr.bf16.mxu0 %v2094_v49  ;;  %v2114_v48 = vpack.c.bf16 %v884_v44, %v878_v43  ;;  %v9425_v49 = vld [vmem:[#allocation8 + $0x38] ss:$24 sps:$4 sm:$0xff]   ;;  %v5474_v50 = vrot.slane %v5440_v46, 4  ;;  %v5688_v52 = vld [vmem:[#allocation2 + $0x198] sm:$0xf0] }
 0x2f7   : > { %4877 = vst [vmem:[#allocation2 + $0x440] sm:$0xff] %v2997_v55  ;;  %v3246_v58 = vpop.f32.mrb[16].mxu1  ;;  %v2999_v59 = vpop.f32.mrb[17].mxu0  ;;  %3617 = vmatprep.subr.bf16.mxu1 %v2190_v51  ;;  %v5574_v51 = vld [vmem:[#allocation2 + $0x1b0] sm:$0xf]  ;;  %v691_v55 = vld [vmem:[%s9899_s8 + $0xd10] sm:$0xff] }
 0x2f8   : > { %4879 = vst [vmem:[#allocation2 + $0x450] sm:$0xff] %v3246_v58  ;;  %4878 = vst [vmem:[#allocation2 + $0x448] sm:$0xff] %v2999_v59  ;;  %v3248_v62 = vpop.f32.mrb[17].mxu1  ;;  %v3001_v63 = vpop.f32.mrb[18].mxu0  ;;  %v877_v56 = vld [vmem:[%s9899_s8 + $0x12e0] sm:$0xff]  ;;  %v883_v57 = vld [vmem:[%s9899_s8 + $0x1310] sm:$0xff] }
 0x2f9   : > { %4880 = vst [vmem:[#allocation2 + $0x458] sm:$0xff] %v3248_v62  ;;  %4893 = vst [vmem:[#allocation2 + $0x4c8] sm:$0xff] %v3001_v63  ;;  %v3250_v4 = vpop.f32.mrb[18].mxu1  ;;  %5356 = vrot.lane.b32.xlu0 %v5321_v0, %s13616_s26  ;;  %v3003_v6 = vpop.f32.mrb[19].mxu0  ;;  %v5722_v58 = vrot.slane %v5688_v52, 4  ;;  %v698_v59 = vld [vmem:[%s9899_s8 + $0xd48] sm:$0xff]  ;;  %v2017_v63 = vpack.c.bf16 %v691_v55, %v685_v54  ;;  %v2113_v3 = vpack.c.bf16 %v883_v57, %v877_v56 }
 0x2fa   : > { %4895 = vst [vmem:[#allocation2 + $0x4d8] sm:$0xff] %v3250_v4  ;;  %v3252_v8 = vpop.f32.mrb[19].mxu1  ;;  %5354 = vrot.lane.b32.xlu1 %v5320_v5, %s13616_s26  ;;  %4894 = vst [vmem:[#allocation2 + $0x4d0] sm:$0xff] %v3003_v6  ;;  %v704_v60 = vld [vmem:[%s9899_s8 + $0xd78] sm:$0xff]  ;;  %v9426_v61 = vld [vmem:[#allocation8 + $0x6c] ss:$24 sps:$4 sm:$0xff]   ;;  %v10657_v52 = vpop.permute.xlu1 %5386 }
 0x2fb   : > { %4896 = vst [vmem:[#allocation2 + $0x4e0] sm:$0xff] %v3252_v8  ;;  %v5723_v62 = vrot.slane %v5689_v53, 4  ;;  %v5690_v0 = vld [vmem:[#allocation2 + $0x1a8] sm:$0xf0]  ;;  %v5691_v4 = vld [vmem:[#allocation2 + $0x1b0] sm:$0xf0]  ;;  %v2024_v5 = vpack.c.bf16 %v704_v60, %v698_v59 }
 0x2fc   : > { %3369 = vmatpush1.bf16.xpose.msra.mxu0 %v2093_v1  ;;  %v890_v1 = vld [vmem:[%s9899_s8 + $0x1348] sm:$0xff]  ;;  %v896_v2 = vld [vmem:[%s9899_s8 + $0x1378] sm:$0xff]  ;;  %v5724_v6 = vrot.slane %v5690_v0, 4  ;;  %v889_v12 = vld [vmem:[%s9899_s8 + $0x1340] sm:$0xff]  ;;  %13723 = vst [vmem:[#allocation17_spill] sm:$0xff] %v10646_v35 }
 0x2fd   : > { %3618 = vmatpush1.bf16.xpose.msra.mxu1 %v2189_v7  ;;  %5360 = vrot.lane.b32.xlu0 %v5323_v11, %s13616_s26  ;;  %v2120_v7 = vpack.c.bf16 %v896_v2, %v890_v1  ;;  %v9427_v8 = vld [vmem:[#allocation8 + $0x68] ss:$24 sps:$4 sm:$0xff]   ;;  %v703_v11 = vld [vmem:[%s9899_s8 + $0xd70] sm:$0xff]  ;;  %v716_v15 = vld [vmem:[%s9899_s8 + $0xdd8] sm:$0xff]  ;;  %13725 = vst [vmem:[#allocation19_spill] sm:$0xff] %v10657_v52 }
 0x2fe   : > { %5358 = vrot.lane.b32.xlu1 %v5322_v13, %s13616_s26  ;;  %3421 = vmatprep.subr.bf16.mxu0 %v2006_v9  ;;  %v5725_v9 = vrot.slane %v5691_v4, 4  ;;  %v895_v13 = vld [vmem:[%s9899_s8 + $0x1370] sm:$0xff]  ;;  %v710_v14 = vld [vmem:[%s9899_s8 + $0xda8] sm:$0xff]  ;;  %v901_v33 = vld [vmem:[%s9899_s8 + $0x13a0] sm:$0xff] }
 0x2ff   : > { %3670 = vmatprep.subr.bf16.mxu1 %v2102_v10  ;;  %v697_v10 = vld [vmem:[%s9899_s8 + $0xd40] sm:$0xff]  ;;  %v9428_v17 = vld [vmem:[#allocation8 + $0x9c] ss:$24 sps:$4 sm:$0xff]   ;;  %v902_v20 = vld [vmem:[%s9899_s8 + $0x13a8] sm:$0xff]  ;;  %v2119_v23 = vpack.c.bf16 %v895_v13, %v889_v12  ;;  %v2030_v24 = vpack.c.bf16 %v716_v15, %v710_v14 }
 0x300   : > { %v2023_v19 = vpack.c.bf16 %v703_v11, %v697_v10  ;;  %v5822_v22 = vld [vmem:[#allocation2 + $0x220] sm:$0xf]  ;;  %v715_v31 = vld [vmem:[%s9899_s8 + $0xdd0] sm:$0xff]  ;;  %v728_v38 = vld [vmem:[%s9899_s8 + $0xe38] sm:$0xff] }
 0x301   : > { %5488 = vrot.lane.b32.xlu0 %v5471_v18, %s13614_s30  ;;  %v5823_v18 = vld [vmem:[#allocation2 + $0x228] sm:$0xf]  ;;  %v722_v37 = vld [vmem:[%s9899_s8 + $0xe08] sm:$0xff]  ;;  %v920_v43 = vld [vmem:[%s9899_s8 + $0x1438] sm:$0xff] }
 0x302   : > { %5605 = vrot.lane.b32.xlu1 %v5571_v25, %s13612_s10  ;;  %v907_v34 = vld [vmem:[%s9899_s8 + $0x13d0] sm:$0xff]  ;;  %v2036_v46 = vpack.c.bf16 %v728_v38, %v722_v37  ;;  %v6075_v53 = vld [vmem:[#allocation2 + $0x2b8] sm:$0xf]  ;;  %v5940_v54 = vld [vmem:[#allocation2 + $0x228] sm:$0xf0] }
 0x303   : > { %3371 = vmatmul.mubr.bf16.vlgmr.msra.gmra.mrb[20].mxu0 %v9423_v28  ;;  %v6073_v44 = vld [vmem:[#allocation2 + $0x2a8] sm:$0xf]  ;;  %v913_v56 = vld [vmem:[%s9899_s8 + $0x1400] sm:$0xff]  ;;  %v740_v59 = vld [vmem:[%s9899_s8 + $0xe98] sm:$0xff] }
 0x304   : > { %3422 = vmatpush1.bf16.xpose.msra.mxu0 %v2005_v21  ;;  %3620 = vmatmul.mubr.bf16.vlgmr.msra.gmra.mrb[20].mxu1 %v9423_v28  ;;  %v908_v21 = vld [vmem:[%s9899_s8 + $0x13d8] sm:$0xff]  ;;  %v5939_v28 = vld [vmem:[#allocation2 + $0x220] sm:$0xf0]  ;;  %v9432_v60 = vld [vmem:[#allocation8 + $0x14] ss:$24 sps:$4 sm:$0xff]  }
 0x305   : > { %3671 = vmatpush1.bf16.xpose.msra.mxu1 %v2101_v26  ;;  %5492 = vrot.lane.b32.xlu0 %v5473_v29, %s13614_s30  ;;  %v2126_v25 = vpack.c.bf16 %v908_v21, %v902_v20  ;;  %v9429_v26 = vld [vmem:[#allocation8 + $0x98] ss:$24 sps:$4 sm:$0xff]   ;;  %v5824_v29 = vld [vmem:[#allocation2 + $0x230] sm:$0xf]  ;;  %v5973_v36 = vrot.slane %v5939_v28, 4  ;;  %v926_v0 = vld [vmem:[%s9899_s8 + $0x1468] sm:$0xff] }
 0x306   : > { %5609 = vrot.lane.b32.xlu1 %v5573_v32, %s13612_s10  ;;  %3423 = vmatprep.subr.bf16.mxu0 %v2012_v27  ;;  %v5825_v27 = vld [vmem:[#allocation2 + $0x238] sm:$0xf]  ;;  %v10641_v32 = vpop.permute.xlu0 %5269  ;;  %v727_v55 = vld [vmem:[%s9899_s8 + $0xe30] sm:$0xff]  ;;  %v932_v1 = vld [vmem:[%s9899_s8 + $0x1498] sm:$0xff] }
 0x307   : > { %3672 = vmatprep.subr.bf16.mxu1 %v2108_v30  ;;  %3380 = vmatprep.mubr.bf16.mxu0 %v9424_v39  ;;  %v709_v30 = vld [vmem:[%s9899_s8 + $0xda0] sm:$0xff]  ;;  %13722 = vst [vmem:[#allocation16_spill] sm:$0xff] %v10641_v32  ;;  %v919_v57 = vld [vmem:[%s9899_s8 + $0x1430] sm:$0xff]  ;;  %v6190_v10 = vld [vmem:[#allocation2 + $0x2a8] sm:$0xf0] }
 0x308   : > { %3629 = vmatprep.mubr.bf16.mxu1 %v9424_v39  ;;  %v9430_v39 = vld [vmem:[#allocation8 + $0xcc] ss:$24 sps:$4 sm:$0xff]   ;;  %v2131_v2 = vpack.c.bf16 %v919_v57, %v913_v56  ;;  %v6191_v11 = vld [vmem:[#allocation2 + $0x2b0] sm:$0xf0]  ;;  %v739_v13 = vld [vmem:[%s9899_s8 + $0xe90] sm:$0xff] }
 0x309   : > { %5607 = vrot.lane.b32.xlu0 %v5572_v41, %s13612_s10  ;;  %v5941_v41 = vld [vmem:[#allocation2 + $0x230] sm:$0xf0]  ;;  %v931_v15 = vld [vmem:[%s9899_s8 + $0x1490] sm:$0xff]  ;;  %v752_v20 = vld [vmem:[%s9899_s8 + $0xef8] sm:$0xff]  ;;  %v6225_v21 = vrot.slane %v6191_v11, 4 }
 0x30a   : > { %5490 = vrot.lane.b32.xlu1 %v5472_v40, %s13614_s30  ;;  %v2029_v40 = vpack.c.bf16 %v715_v31, %v709_v30  ;;  %v733_v12 = vld [vmem:[%s9899_s8 + $0xe60] sm:$0xff]  ;;  %v6193_v28 = vld [vmem:[#allocation2 + $0x2c0] sm:$0xf0]  ;;  %v6326_v57 = vld [vmem:[#allocation2 + $0x340] sm:$0xf] }
 0x30b   : > { %3381 = vmatmul.mubr.bf16.gmra.mrb[24].mxu0 %v9425_v49  ;;  %v925_v14 = vld [vmem:[%s9899_s8 + $0x1460] sm:$0xff]  ;;  %v1119_v32 = vld [vmem:[%s9899_s8 + $0x1a70] sm:$0xff]  ;;  %v1126_v16 = vld [vmem:[%s9899_s8 + $0x1aa8] sm:$0xff] }
 0x30c   : > { %3424 = vmatpush1.bf16.xpose.msra.mxu0 %v2011_v42  ;;  %3630 = vmatmul.mubr.bf16.gmra.mrb[24].mxu1 %v9425_v49  ;;  %v914_v42 = vld [vmem:[%s9899_s8 + $0x1408] sm:$0xff]  ;;  %v10654_v49 = vpop.permute.xlu0 %5520  ;;  %v937_v38 = vld [vmem:[%s9899_s8 + $0x14c0] sm:$0xff]  ;;  %v1311_v35 = vld [vmem:[%s9899_s8 + $0x2070] sm:$0xff] }
 0x30d   : > { %3673 = vmatpush1.bf16.xpose.msra.mxu1 %v2107_v45  ;;  %5611 = vrot.lane.b32.xlu0 %v5574_v51, %s13612_s10  ;;  %v2125_v45 = vpack.c.bf16 %v907_v34, %v901_v33  ;;  %13724 = vst [vmem:[#allocation18_spill] sm:$0xff] %v10654_v49  ;;  %v721_v51 = vld [vmem:[%s9899_s8 + $0xe00] sm:$0xff]  ;;  %v6227_v33 = vrot.slane %v6193_v28, 4 }
 0x30e   : > { %5494 = vrot.lane.b32.xlu1 %v5474_v50, %s13614_s30  ;;  %3425 = vmatprep.subr.bf16.mxu0 %v2018_v47  ;;  %v5975_v47 = vrot.slane %v5941_v41, 4  ;;  %v9431_v50 = vld [vmem:[#allocation8 + $0xc8] ss:$24 sps:$4 sm:$0xff]  }
 0x30f   : > { %3674 = vmatprep.subr.bf16.mxu1 %v2114_v48  ;;  %3390 = vmatprep.mubr.bf16.mxu0 %v9426_v61  ;;  %v2132_v48 = vpack.c.bf16 %v920_v43, %v914_v42  ;;  %v745_v34 = vld [vmem:[%s9899_s8 + $0xec0] sm:$0xff]  ;;  %v758_v41 = vld [vmem:[%s9899_s8 + $0xf28] sm:$0xff]  ;;  %v764_v42 = vld [vmem:[%s9899_s8 + $0xf58] sm:$0xff] }
 0x310   : > { %3639 = vmatprep.mubr.bf16.mxu1 %v9426_v61  ;;  %v5974_v61 = vrot.slane %v5940_v54, 4  ;;  %v10669_v4 = vpop.permute.xlu0 %5771  ;;  %v6325_v43 = vld [vmem:[#allocation2 + $0x338] sm:$0xf]  ;;  %v6327_v54 = vld [vmem:[#allocation2 + $0x348] sm:$0xf] }
 0x311   : > { %5739 = vrot.lane.b32.xlu0 %v5722_v58, %s13608_s11  ;;  %v734_v58 = vld [vmem:[%s9899_s8 + $0xe68] sm:$0xff]  ;;  %13726 = vst [vmem:[#allocation20_spill] sm:$0xff] %v10669_v4  ;;  %v1113_v52 = vld [vmem:[%s9899_s8 + $0x1a40] sm:$0xff] }
 0x312   : > { %5741 = vrot.lane.b32.xlu1 %v5723_v62, %s13608_s11  ;;  %v6074_v62 = vld [vmem:[#allocation2 + $0x2b0] sm:$0xf] }
 0x313   : > { %3391 = vmatmul.mubr.bf16.gmra.mrb[28].mxu0 %v9427_v8 }
 0x314   : > { %3426 = vmatpush1.bf16.xpose.msra.mxu0 %v2017_v63  ;;  %3640 = vmatmul.mubr.bf16.gmra.mrb[28].mxu1 %v9427_v8  ;;  %v2035_v63 = vpack.c.bf16 %v727_v55, %v721_v51  ;;  %v6441_v55 = vld [vmem:[#allocation2 + $0x330] sm:$0xf0] }
 0x315   : > { %3675 = vmatpush1.bf16.xpose.msra.mxu1 %v2113_v3  ;;  %5743 = vrot.lane.b32.xlu0 %v5724_v6, %s13608_s11  ;;  %v5942_v3 = vld [vmem:[#allocation2 + $0x238] sm:$0xf0]  ;;  %v10672_v6 = vpop.permute.xlu1 %5637 }
 0x316   : > { %5745 = vrot.lane.b32.xlu1 %v5725_v9, %s13608_s11  ;;  %3427 = vmatprep.subr.bf16.mxu0 %v2024_v5  ;;  %v2042_v5 = vpack.c.bf16 %v740_v59, %v734_v58  ;;  %13727 = vst [vmem:[#allocation21_spill] sm:$0xff] %v10672_v6  ;;  %v5976_v8 = vrot.slane %v5942_v3, 4  ;;  %v6076_v9 = vld [vmem:[#allocation2 + $0x2c0] sm:$0xf]  ;;  %v757_v58 = vld [vmem:[%s9899_s8 + $0xf20] sm:$0xff]  ;;  %v763_v59 = vld [vmem:[%s9899_s8 + $0xf50] sm:$0xff] }
 0x317   : > { %3676 = vmatprep.subr.bf16.mxu1 %v2120_v7  ;;  %3400 = vmatprep.mubr.bf16.mxu0 %v9428_v17  ;;  %v2138_v7 = vpack.c.bf16 %v932_v1, %v926_v0  ;;  %v776_v0 = vld [vmem:[%s9899_s8 + $0xfb8] sm:$0xff]  ;;  %v2053_v1 = vpack.c.bf16 %v763_v59, %v757_v58  ;;  %v962_v3 = vld [vmem:[%s9899_s8 + $0x1588] sm:$0xff] }
 0x318   : > { %3649 = vmatprep.mubr.bf16.mxu1 %v9428_v17  ;;  %v6224_v17 = vrot.slane %v6190_v10, 4  ;;  %v6694_v59 = vld [vmem:[#allocation2 + $0x3c8] sm:$0xf0] }
 0x319   : > { %5858 = vrot.lane.b32.xlu0 %v5823_v18, %s13610_s28  ;;  %v10680_v18 = vpop.permute.xlu0 %6022 }
 0x31a   : > { %5856 = vrot.lane.b32.xlu1 %v5822_v22, %s13610_s28  ;;  %13728 = vst [vmem:[#allocation22_spill] sm:$0xff] %v10680_v18  ;;  %v2041_v22 = vpack.c.bf16 %v739_v13, %v733_v12 }
 0x31b   : > { %3401 = vmatmul.mubr.bf16.gmra.mrb[32].mxu0 %v9429_v26 }
 0x31c   : > { %3428 = vmatpush1.bf16.xpose.msra.mxu0 %v2023_v19  ;;  %3650 = vmatmul.mubr.bf16.gmra.mrb[32].mxu1 %v9429_v26  ;;  %v746_v19 = vld [vmem:[%s9899_s8 + $0xec8] sm:$0xff]  ;;  %v944_v26 = vld [vmem:[%s9899_s8 + $0x14f8] sm:$0xff] }
 0x31d   : > { %3677 = vmatpush1.bf16.xpose.msra.mxu1 %v2119_v23  ;;  %5862 = vrot.lane.b32.xlu0 %v5825_v27, %s13610_s28  ;;  %v6192_v23 = vld [vmem:[#allocation2 + $0x2b8] sm:$0xf0]  ;;  %v2137_v27 = vpack.c.bf16 %v931_v15, %v925_v14  ;;  %v10693_v37 = vpop.permute.xlu0 %6273  ;;  %v769_v14 = vld [vmem:[%s9899_s8 + $0xf80] sm:$0xff]  ;;  %v6577_v15 = vld [vmem:[#allocation2 + $0x3c8] sm:$0xf] }
 0x31e   : > { %5860 = vrot.lane.b32.xlu1 %v5824_v29, %s13610_s28  ;;  %3429 = vmatprep.subr.bf16.mxu0 %v2030_v24  ;;  %v10684_v24 = vpop.permute.xlu1 %5888  ;;  %v2048_v29 = vpack.c.bf16 %v752_v20, %v746_v19  ;;  %v6226_v30 = vrot.slane %v6192_v23, 4  ;;  %13730 = vst [vmem:[#allocation24_spill] sm:$0xff] %v10693_v37  ;;  %v775_v19 = vld [vmem:[%s9899_s8 + $0xfb0] sm:$0xff]  ;;  %v961_v20 = vld [vmem:[%s9899_s8 + $0x1580] sm:$0xff]  ;;  %v974_v23 = vld [vmem:[%s9899_s8 + $0x15e8] sm:$0xff] }
 0x31f   : > { %3678 = vmatprep.subr.bf16.mxu1 %v2126_v25  ;;  %3410 = vmatprep.mubr.bf16.mxu0 %v9430_v39  ;;  %13729 = vst [vmem:[#allocation23_spill] sm:$0xff] %v10684_v24  ;;  %v938_v25 = vld [vmem:[%s9899_s8 + $0x14c8] sm:$0xff]  ;;  %v1101_v24 = vld [vmem:[%s9899_s8 + $0x19e0] sm:$0xff] }
 0x320   : > { %3659 = vmatprep.mubr.bf16.mxu1 %v9430_v39  ;;  %v2144_v31 = vpack.c.bf16 %v944_v26, %v938_v25  ;;  %v943_v39 = vld [vmem:[%s9899_s8 + $0x14f0] sm:$0xff]  ;;  %v980_v25 = vld [vmem:[%s9899_s8 + $0x1618] sm:$0xff] }
 0x321   : > { %5990 = vrot.lane.b32.xlu0 %v5973_v36, %s13593_s14  ;;  %v751_v36 = vld [vmem:[%s9899_s8 + $0xef0] sm:$0xff]  ;;  %v10706_v51 = vpop.permute.xlu0 %6524 }
 0x322   : > { %6107 = vrot.lane.b32.xlu1 %v6073_v44, %s13585_s27  ;;  %v2047_v44 = vpack.c.bf16 %v751_v36, %v745_v34  ;;  %13733 = vst [vmem:[#allocation26_spill] sm:$0xff] %v10706_v51  ;;  %v6444_v34 = vld [vmem:[#allocation2 + $0x348] sm:$0xf0]  ;;  %v2162_v36 = vpack.c.bf16 %v980_v25, %v974_v23  ;;  %v998_v23 = vld [vmem:[%s9899_s8 + $0x16a8] sm:$0xff] }
 0x323   : > { %3411 = vmatmul.mubr.bf16.gmra.mrb[36].mxu0 %v9431_v50  ;;  %v1004_v25 = vld [vmem:[%s9899_s8 + $0x16d8] sm:$0xff] }
 0x324   : > { %3430 = vmatpush1.bf16.xpose.msra.mxu0 %v2029_v40  ;;  %3660 = vmatmul.mubr.bf16.gmra.mrb[36].mxu1 %v9431_v50  ;;  %v10698_v40 = vpop.permute.xlu1 %6139  ;;  %v2054_v50 = vpack.c.bf16 %v764_v42, %v758_v41  ;;  %v6578_v41 = vld [vmem:[#allocation2 + $0x3d0] sm:$0xf]  ;;  %v6692_v42 = vld [vmem:[#allocation2 + $0x3b8] sm:$0xf0] }
 0x325   : > { %3679 = vmatpush1.bf16.xpose.msra.mxu1 %v2125_v45  ;;  %5994 = vrot.lane.b32.xlu0 %v5975_v47, %s13593_s14  ;;  %13731 = vst [vmem:[#allocation25_spill] sm:$0xff] %v10698_v40  ;;  %v950_v45 = vld [vmem:[%s9899_s8 + $0x1528] sm:$0xff]  ;;  %v6324_v47 = vld [vmem:[#allocation2 + $0x330] sm:$0xf] }
 0x326   : > { %6111 = vrot.lane.b32.xlu1 %v6075_v53, %s13585_s27  ;;  %3431 = vmatprep.subr.bf16.mxu0 %v2036_v46  ;;  %v956_v46 = vld [vmem:[%s9899_s8 + $0x1558] sm:$0xff] }
 0x327   : > { %3680 = vmatprep.subr.bf16.mxu1 %v2132_v48  ;;  %3453 = vmatprep.mubr.bf16.mxu0 %v9432_v60  ;;  %v2143_v48 = vpack.c.bf16 %v943_v39, %v937_v38  ;;  %v2150_v53 = vpack.c.bf16 %v956_v46, %v950_v45  ;;  %v6478_v39 = vrot.slane %v6444_v34, 4  ;;  %v781_v45 = vld [vmem:[%s9899_s8 + $0xfe0] sm:$0xff]  ;;  %v787_v46 = vld [vmem:[%s9899_s8 + $0x1010] sm:$0xff] }
 0x328   : > { %3702 = vmatprep.mubr.bf16.mxu1 %v9432_v60  ;;  %v10708_v56 = vpop.permute.xlu1 %6390  ;;  %v949_v60 = vld [vmem:[%s9899_s8 + $0x1520] sm:$0xff]  ;;  %v2065_v58 = vpack.c.bf16 %v787_v46, %v781_v45  ;;  %v1003_v45 = vld [vmem:[%s9899_s8 + $0x16d0] sm:$0xff] }
 0x329   : > { %6109 = vrot.lane.b32.xlu0 %v6074_v62, %s13585_s27  ;;  %13734 = vst [vmem:[#allocation27_spill] sm:$0xff] %v10708_v56  ;;  %v6475_v62 = vrot.slane %v6441_v55, 4  ;;  %v800_v55 = vld [vmem:[%s9899_s8 + $0x1078] sm:$0xff]  ;;  %v6829_v34 = vld [vmem:[#allocation2 + $0x458] sm:$0xf] }
 0x32a   : > { %5992 = vrot.lane.b32.xlu1 %v5974_v61, %s13593_s14  ;;  %v955_v61 = vld [vmem:[%s9899_s8 + $0x1550] sm:$0xff]  ;;  %v1108_v56 = vld [vmem:[%s9899_s8 + $0x1a18] sm:$0xff] }
 0x32c   : > { %3432 = vmatpush1.bf16.xpose.msra.mxu0 %v2035_v63  ;;  %v770_v63 = vld [vmem:[%s9899_s8 + $0xf88] sm:$0xff]  ;;  %v10724_v10 = vpop.permute.xlu1 %6641 }
 0x32d   : > { %3681 = vmatpush1.bf16.xpose.msra.mxu1 %v2131_v2  ;;  %6113 = vrot.lane.b32.xlu0 %v6076_v9, %s13585_s27  ;;  %s13732_s27 = smov 116   ;;  %v6443_v2 = vld [vmem:[#allocation2 + $0x340] sm:$0xf0]  ;;  %v10721_v9 = vpop.permute.xlu0 %6775  ;;  %13737 = vst [vmem:[#allocation29_spill] sm:$0xff] %v10724_v10  ;;  %v2060_v11 = vpack.c.bf16 %v776_v0, %v770_v63  ;;  %v6695_v63 = vld [vmem:[#allocation2 + $0x3d0] sm:$0xf0] }
 0x32e   : > { %5996 = vrot.lane.b32.xlu1 %v5976_v8, %s13593_s14  ;;  %3433 = vmatprep.subr.bf16.mxu0 %v2042_v5  ;;  %v968_v5 = vld [vmem:[%s9899_s8 + $0x15b8] sm:$0xff]  ;;  %v2149_v8 = vpack.c.bf16 %v955_v61, %v949_v60  ;;  %13735 = vst [vmem:[#allocation28_spill] sm:$0xff] %v10721_v9  ;;  %v6477_v12 = vrot.slane %v6443_v2, 4  ;;  %v986_v60 = vld [vmem:[%s9899_s8 + $0x1648] sm:$0xff]  ;;  %v6728_v2 = vrot.slane %v6694_v59, 4  ;;  %s13663_s14 = smov 109  }
 0x32f   : > { %3682 = vmatprep.subr.bf16.mxu1 %v2138_v7  ;;  %v6575_v7 = vld [vmem:[#allocation2 + $0x3b8] sm:$0xf]  ;;  %v2156_v13 = vpack.c.bf16 %v968_v5, %v962_v3  ;;  %v992_v61 = vld [vmem:[%s9899_s8 + $0x1678] sm:$0xff]  ;;  %v1010_v59 = vld [vmem:[%s9899_s8 + $0x1708] sm:$0xff] }
 0x330   : > { %v10736_v28 = vpop.permute.xlu1 %6892  ;;  %v2168_v3 = vpack.c.bf16 %v992_v61, %v986_v60  ;;  %v1016_v60 = vld [vmem:[%s9899_s8 + $0x1738] sm:$0xff] }
 0x331   : > { %6241 = vrot.lane.b32.xlu0 %v6224_v17, %s13587_s6  ;;  %v6442_v17 = vld [vmem:[#allocation2 + $0x338] sm:$0xf0]  ;;  %13739 = vst [vmem:[#allocation31_spill] sm:$0xff] %v10736_v28  ;;  %v1288_v28 = vld [vmem:[%s9899_s8 + $0x1fb8] sm:$0xff] }
 0x332   : > { %6243 = vrot.lane.b32.xlu1 %v6225_v21, %s13587_s6  ;;  %v967_v21 = vld [vmem:[%s9899_s8 + $0x15b0] sm:$0xff]  ;;  %v6476_v26 = vrot.slane %v6442_v17, 4  ;;  %v812_v17 = vld [vmem:[%s9899_s8 + $0x10d8] sm:$0xff] }
 0x334   : > { %3434 = vmatpush1.bf16.xpose.msra.mxu0 %v2041_v22  ;;  %v10732_v22 = vpop.permute.xlu0 %7026 }
 0x335   : > { %3683 = vmatpush1.bf16.xpose.msra.mxu1 %v2137_v27  ;;  %6245 = vrot.lane.b32.xlu0 %v6226_v30, %s13587_s6  ;;  %13738 = vst [vmem:[#allocation30_spill] sm:$0xff] %v10732_v22  ;;  %v6576_v27 = vld [vmem:[#allocation2 + $0x3c0] sm:$0xf] }
 0x336   : > { %6247 = vrot.lane.b32.xlu1 %v6227_v33, %s13587_s6  ;;  %3435 = vmatprep.subr.bf16.mxu0 %v2048_v29  ;;  %s13736_s6 = smov 114   ;;  %v2059_v29 = vpack.c.bf16 %v775_v19, %v769_v14  ;;  %v782_v30 = vld [vmem:[%s9899_s8 + $0xfe8] sm:$0xff]  ;;  %v2155_v33 = vpack.c.bf16 %v967_v21, %v961_v20  ;;  %v6827_v20 = vld [vmem:[#allocation2 + $0x448] sm:$0xf] }
 0x337   : > { %3684 = vmatprep.subr.bf16.mxu1 %v2144_v31  ;;  %v788_v31 = vld [vmem:[%s9899_s8 + $0x1018] sm:$0xff] }
 0x338   : > { %v2066_v38 = vpack.c.bf16 %v788_v31, %v782_v30  ;;  %v2174_v31 = vpack.c.bf16 %v1004_v25, %v998_v23  ;;  %v7077_v25 = vld [vmem:[#allocation2 + $0x4c8] sm:$0xf] }
 0x339   : > { %6360 = vrot.lane.b32.xlu0 %v6325_v43, %s13732_s27  ;;  %v10743_v43 = vpop.permute.xlu0 %7143 }
 0x33a   : > { %6358 = vrot.lane.b32.xlu1 %v6324_v47, %s13732_s27  ;;  %13740 = vst [vmem:[#allocation32_spill] sm:$0xff] %v10743_v43  ;;  %v10748_v47 = vpop.permute.xlu1 %7331 }
 0x33b   : > { %13741 = vst [vmem:[#allocation33_spill] sm:$0xff] %v10748_v47 }
 0x33c   : > { %3436 = vmatpush1.bf16.xpose.msra.mxu0 %v2047_v44  ;;  %v6693_v44 = vld [vmem:[#allocation2 + $0x3c0] sm:$0xf0] }
 0x33d   : > { %3685 = vmatpush1.bf16.xpose.msra.mxu1 %v2143_v48  ;;  %6364 = vrot.lane.b32.xlu0 %v6327_v54, %s13732_s27  ;;  %v973_v48 = vld [vmem:[%s9899_s8 + $0x15e0] sm:$0xff]  ;;  %v794_v54 = vld [vmem:[%s9899_s8 + $0x1048] sm:$0xff] }
 0x33e   : > { %6362 = vrot.lane.b32.xlu1 %v6326_v57, %s13732_s27  ;;  %3437 = vmatprep.subr.bf16.mxu0 %v2054_v50  ;;  %v979_v50 = vld [vmem:[%s9899_s8 + $0x1610] sm:$0xff]  ;;  %v6727_v57 = vrot.slane %v6693_v44, 4  ;;  %v2072_v0 = vpack.c.bf16 %v800_v55, %v794_v54  ;;  %v997_v44 = vld [vmem:[%s9899_s8 + $0x16a0] sm:$0xff] }
 0x33f   : > { %3686 = vmatprep.subr.bf16.mxu1 %v2150_v53  ;;  %v6726_v53 = vrot.slane %v6692_v42, 4  ;;  %v811_v42 = vld [vmem:[%s9899_s8 + $0x10d0] sm:$0xff]  ;;  %v2173_v61 = vpack.c.bf16 %v1003_v45, %v997_v44  ;;  %v7080_v44 = vld [vmem:[#allocation2 + $0x4e0] sm:$0xf]  ;;  %v7195_v45 = vld [vmem:[#allocation2 + $0x4d0] sm:$0xf0] }
 0x341   : > { %6492 = vrot.lane.b32.xlu0 %v6475_v62, %s13589_s16  ;;  %v2161_v62 = vpack.c.bf16 %v979_v50, %v973_v48  ;;  %v818_v50 = vld [vmem:[%s9899_s8 + $0x1108] sm:$0xff] }
 0x342   : > { %6609 = vrot.lane.b32.xlu1 %v6575_v7, %s13736_s6  ;;  %v6729_v7 = vrot.slane %v6695_v63, 4 }
 0x344   : > { %3438 = vmatpush1.bf16.xpose.msra.mxu0 %v2053_v1 }
 0x345   : > { %3687 = vmatpush1.bf16.xpose.msra.mxu1 %v2149_v8  ;;  %6496 = vrot.lane.b32.xlu0 %v6477_v12, %s13589_s16  ;;  %v793_v8 = vld [vmem:[%s9899_s8 + $0x1040] sm:$0xff] }
 0x346   : > { %6613 = vrot.lane.b32.xlu1 %v6577_v15, %s13736_s6  ;;  %3439 = vmatprep.subr.bf16.mxu0 %v2060_v11  ;;  %v799_v11 = vld [vmem:[%s9899_s8 + $0x1070] sm:$0xff]  ;;  %v985_v12 = vld [vmem:[%s9899_s8 + $0x1640] sm:$0xff]  ;;  %v806_v15 = vld [vmem:[%s9899_s8 + $0x10a8] sm:$0xff] }
 0x347   : > { %3688 = vmatprep.subr.bf16.mxu1 %v2156_v13  ;;  %v991_v13 = vld [vmem:[%s9899_s8 + $0x1670] sm:$0xff]  ;;  %v2071_v21 = vpack.c.bf16 %v799_v11, %v793_v8  ;;  %v817_v11 = vld [vmem:[%s9899_s8 + $0x1100] sm:$0xff] }
 0x349   : > { %6611 = vrot.lane.b32.xlu0 %v6576_v27, %s13736_s6  ;;  %v2167_v27 = vpack.c.bf16 %v991_v13, %v985_v12  ;;  %v823_v12 = vld [vmem:[%s9899_s8 + $0x1130] sm:$0xff]  ;;  %v1009_v13 = vld [vmem:[%s9899_s8 + $0x1700] sm:$0xff] }
 0x34a   : > { %6494 = vrot.lane.b32.xlu1 %v6476_v26, %s13589_s16  ;;  %v6826_v26 = vld [vmem:[#allocation2 + $0x440] sm:$0xf] }
 0x34c   : > { %3440 = vmatpush1.bf16.xpose.msra.mxu0 %v2059_v29  ;;  %v2078_v29 = vpack.c.bf16 %v812_v17, %v806_v15  ;;  %v1015_v15 = vld [vmem:[%s9899_s8 + $0x1730] sm:$0xff] }
 0x34d   : > { %3689 = vmatpush1.bf16.xpose.msra.mxu1 %v2155_v33  ;;  %6615 = vrot.lane.b32.xlu0 %v6578_v41, %s13736_s6  ;;  %v6944_v41 = vld [vmem:[#allocation2 + $0x448] sm:$0xf0] }
 0x34e   : > { %6498 = vrot.lane.b32.xlu1 %v6478_v39, %s13589_s16  ;;  %3690 = vmatprep.subr.bf16.mxu1 %v2162_v36  ;;  %s13742_s16 = smov 112   ;;  %v6943_v36 = vld [vmem:[#allocation2 + $0x440] sm:$0xf0]  ;;  %v6828_v39 = vld [vmem:[#allocation2 + $0x450] sm:$0xf]  ;;  %v6978_v55 = vrot.slane %v6944_v41, 4 }
 0x34f   : > { %3441 = vmatprep.subr.bf16.mxu0 %v2066_v38  ;;  %v805_v38 = vld [vmem:[%s9899_s8 + $0x10a0] sm:$0xff]  ;;  %v6977_v48 = vrot.slane %v6943_v36, 4 }
 0x351   : > { %6743 = vrot.lane.b32.xlu0 %v6726_v53, %s13591_s9  ;;  %v824_v53 = vld [vmem:[%s9899_s8 + $0x1138] sm:$0xff] }
 0x352   : > { %6745 = vrot.lane.b32.xlu1 %v6727_v57, %s13591_s9  ;;  %v2077_v57 = vpack.c.bf16 %v811_v42, %v805_v38  ;;  %v2084_v63 = vpack.c.bf16 %v824_v53, %v818_v50  ;;  %v7079_v42 = vld [vmem:[#allocation2 + $0x4d8] sm:$0xf]  ;;  %v835_v53 = vld [vmem:[%s9899_s8 + $0x1190] sm:$0xff] }
 0x353   : > { %v10758_v1 = vpop.permute.xlu0 %4986  ;;  %v829_v50 = vld [vmem:[%s9899_s8 + $0x1160] sm:$0xff] }
 0x354   : > { %v10760_v5 = vpop.permute.xlu1 %4990  ;;  %3442 = vmatpush1.bf16.xpose.msra.mxu0 %v2065_v58  ;;  %v6945_v58 = vld [vmem:[#allocation2 + $0x450] sm:$0xf0] }
 0x355   : > { %3691 = vmatpush1.bf16.xpose.msra.mxu1 %v2161_v62  ;;  %6747 = vrot.lane.b32.xlu0 %v6728_v2, %s13591_s9  ;;  %v6946_v62 = vld [vmem:[#allocation2 + $0x458] sm:$0xf0]  ;;  %v6979_v2 = vrot.slane %v6945_v58, 4 }
 0x356   : > { %6749 = vrot.lane.b32.xlu1 %v6729_v7, %s13591_s9  ;;  %3443 = vmatprep.subr.bf16.mxu0 %v2072_v0  ;;  %s13743_s9 = smov 111   ;;  %v6980_v8 = vrot.slane %v6946_v62, 4 }
 0x357   : > { %v10768_v14 = vpop.permute.xlu0 %4988  ;;  %3692 = vmatprep.subr.bf16.mxu1 %v2168_v3  ;;  %v2180_v3 = vpack.c.bf16 %v1016_v60, %v1010_v59  ;;  %v7229_v59 = vrot.slane %v7195_v45, 4  ;;  %v842_v60 = vld [vmem:[%s9899_s8 + $0x11c8] sm:$0xff] }
 0x358   : > { %v10772_v19 = vpop.permute.xlu1 %5103  ;;  %v1234_v45 = vld [vmem:[%s9899_s8 + $0x1e08] sm:$0xff] }
 0x359   : > { %6862 = vrot.lane.b32.xlu0 %v6827_v20, %s13742_s16  ;;  %v830_v20 = vld [vmem:[%s9899_s8 + $0x1168] sm:$0xff] }
 0x35a   : > { %6860 = vrot.lane.b32.xlu1 %v6826_v26, %s13742_s16  ;;  %v2083_v26 = vpack.c.bf16 %v823_v12, %v817_v11  ;;  %v1040_v11 = vld [vmem:[%s9899_s8 + $0x17f8] sm:$0xff] }
 0x35b   : > { %v10778_v30 = vpop.permute.xlu0 %5105 }
 0x35c   : > { %v10780_v33 = vpop.permute.xlu1 %5107  ;;  %3444 = vmatpush1.bf16.xpose.msra.mxu0 %v2071_v21  ;;  %v836_v21 = vld [vmem:[%s9899_s8 + $0x1198] sm:$0xff] }
 0x35d   : > { %3693 = vmatpush1.bf16.xpose.msra.mxu1 %v2167_v27  ;;  %6866 = vrot.lane.b32.xlu0 %v6829_v34, %s13742_s16  ;;  %v1022_v27 = vld [vmem:[%s9899_s8 + $0x1768] sm:$0xff]  ;;  %v2179_v34 = vpack.c.bf16 %v1015_v15, %v1009_v13  ;;  %v2090_v36 = vpack.c.bf16 %v836_v21, %v830_v20 }
 0x35e   : > { %6864 = vrot.lane.b32.xlu1 %v6828_v39, %s13742_s16  ;;  %3445 = vmatprep.subr.bf16.mxu0 %v2078_v29  ;;  %v1028_v29 = vld [vmem:[%s9899_s8 + $0x1798] sm:$0xff]  ;;  %v7196_v13 = vld [vmem:[#allocation2 + $0x4d8] sm:$0xf0] }
 0x35f   : > { %v10788_v46 = vpop.permute.xlu0 %5109  ;;  %3694 = vmatprep.subr.bf16.mxu1 %v2174_v31  ;;  %v7078_v31 = vld [vmem:[#allocation2 + $0x4d0] sm:$0xf]  ;;  %v2186_v39 = vpack.c.bf16 %v1028_v29, %v1022_v27  ;;  %v7230_v27 = vrot.slane %v7196_v13, 4  ;;  %v841_v29 = vld [vmem:[%s9899_s8 + $0x11c0] sm:$0xff] }
 0x360   : > { %v10792_v54 = vpop.permute.xlu1 %4992  ;;  %v1060_v13 = vld [vmem:[%s9899_s8 + $0x1898] sm:$0xff] }
 0x361   : > { %6994 = vrot.lane.b32.xlu0 %v6977_v48, %s13743_s9  ;;  %v7194_v48 = vld [vmem:[#allocation2 + $0x4c8] sm:$0xf0] }
 0x362   : > { %6996 = vrot.lane.b32.xlu1 %v6978_v55, %s13743_s9  ;;  %v1021_v55 = vld [vmem:[%s9899_s8 + $0x1760] sm:$0xff] }
 0x363   : > { %v10798_v0 = vpop.permute.xlu0 %5237 }
 0x364   : > { %v10800_v7 = vpop.permute.xlu1 %5239  ;;  %3446 = vmatpush1.bf16.xpose.msra.mxu0 %v2077_v57  ;;  %v1027_v57 = vld [vmem:[%s9899_s8 + $0x1790] sm:$0xff] }
 0x365   : > { %3695 = vmatpush1.bf16.xpose.msra.mxu1 %v2173_v61  ;;  %6998 = vrot.lane.b32.xlu0 %v6979_v2, %s13743_s9  ;;  %v848_v61 = vld [vmem:[%s9899_s8 + $0x11f8] sm:$0xff]  ;;  %v2089_v2 = vpack.c.bf16 %v835_v53, %v829_v50  ;;  %v2185_v12 = vpack.c.bf16 %v1027_v57, %v1021_v55 }
 0x366   : > { %7000 = vrot.lane.b32.xlu1 %v6980_v8, %s13743_s9  ;;  %3447 = vmatprep.subr.bf16.mxu0 %v2084_v63  ;;  %v7228_v63 = vrot.slane %v7194_v48, 4  ;;  %v1034_v8 = vld [vmem:[%s9899_s8 + $0x17c8] sm:$0xff]  ;;  %v2096_v15 = vpack.c.bf16 %v848_v61, %v842_v60  ;;  %v1240_v48 = vld [vmem:[%s9899_s8 + $0x1e38] sm:$0xff] }
 0x367   : > { %v10808_v17 = vpop.permute.xlu0 %5241  ;;  %3696 = vmatprep.subr.bf16.mxu1 %v2180_v3  ;;  %v7197_v3 = vld [vmem:[#allocation2 + $0x4e0] sm:$0xf0] }
 0x368   : > { %v10812_v23 = vpop.permute.xlu1 %5243  ;;  %v7231_v21 = vrot.slane %v7197_v3, 4  ;;  %v1233_v3 = vld [vmem:[%s9899_s8 + $0x1e00] sm:$0xff] }
 0x369   : > { %7111 = vrot.lane.b32.xlu0 %v7077_v25, %s13665_s13  ;;  %v2192_v25 = vpack.c.bf16 %v1040_v11, %v1034_v8  ;;  %v1239_v8 = vld [vmem:[%s9899_s8 + $0x1e30] sm:$0xff] }
 0x36a   : > { %7113 = vrot.lane.b32.xlu1 %v7078_v31, %s13665_s13  ;;  %v847_v31 = vld [vmem:[%s9899_s8 + $0x11f0] sm:$0xff] }
 0x36b   : > { %v10818_v38 = vpop.permute.xlu0 %5356  ;;  %v2095_v53 = vpack.c.bf16 %v847_v31, %v841_v29  ;;  %v2289_v29 = vpack.c.bf16 %v1239_v8, %v1233_v3 }
 0x36c   : > { %v10820_v41 = vpop.permute.xlu1 %5354  ;;  %3448 = vmatpush1.bf16.xpose.msra.mxu0 %v2083_v26 }
 0x36d   : > { %3697 = vmatpush1.bf16.xpose.msra.mxu1 %v2179_v34  ;;  %7115 = vrot.lane.b32.xlu0 %v7079_v42, %s13665_s13  ;;  %v1033_v34 = vld [vmem:[%s9899_s8 + $0x17c0] sm:$0xff]  ;;  %v1048_v42 = vld [vmem:[%s9899_s8 + $0x1838] sm:$0xff] }
 0x36e   : > { %7117 = vrot.lane.b32.xlu1 %v7080_v44, %s13665_s13  ;;  %3449 = vmatprep.subr.bf16.mxu0 %v2090_v36  ;;  %v1039_v36 = vld [vmem:[%s9899_s8 + $0x17f0] sm:$0xff] }
 0x36f   : > { %v10828_v58 = vpop.permute.xlu0 %5360  ;;  %3698 = vmatprep.subr.bf16.mxu1 %v2186_v39  ;;  %v1042_v39 = vld [vmem:[%s9899_s8 + $0x1808] sm:$0xff]  ;;  %v2191_v55 = vpack.c.bf16 %v1039_v36, %v1033_v34 }
 0x370   : > { %13744 = vst [vmem:[#allocation34_spill] sm:$0xff] %v10828_v58  ;;  %v10832_v62 = vpop.permute.xlu1 %5358  ;;  %v2194_v57 = vpack.c.bf16 %v1048_v42, %v1042_v39  ;;  %v9433_v34 = vld [vmem:[#allocation8 + $0x10] ss:$24 sps:$4 sm:$0xff]  }
 0x371   : > { %7247 = vrot.lane.b32.xlu0 %v7229_v59, %s13663_s14  ;;  %v2290_v59 = vpack.c.bf16 %v1240_v48, %v1234_v45  ;;  %v9434_v45 = vld [vmem:[#allocation8 + $0x44] ss:$24 sps:$4 sm:$0xff]  }
 0x372   : > { %7245 = vrot.lane.b32.xlu1 %v7228_v63, %s13663_s14  ;;  %v1041_v63 = vld [vmem:[%s9899_s8 + $0x1800] sm:$0xff] }
 0x373   : > { %v10838_v20 = vpop.permute.xlu0 %5488  ;;  %v1053_v48 = vld [vmem:[%s9899_s8 + $0x1860] sm:$0xff] }
 0x374   : > { %v10840_v26 = vpop.permute.xlu1 %5605  ;;  %3450 = vmatpush1.bf16.xpose.msra.mxu0 %v2089_v2  ;;  %v1047_v2 = vld [vmem:[%s9899_s8 + $0x1830] sm:$0xff] }
 0x375   : > { %3699 = vmatpush1.bf16.xpose.msra.mxu1 %v2185_v12  ;;  %7251 = vrot.lane.b32.xlu0 %v7231_v21, %s13663_s14  ;;  %v1054_v12 = vld [vmem:[%s9899_s8 + $0x1868] sm:$0xff]  ;;  %v2193_v21 = vpack.c.bf16 %v1047_v2, %v1041_v63  ;;  %v1072_v2 = vld [vmem:[%s9899_s8 + $0x18f8] sm:$0xff] }
 0x376   : > { %7249 = vrot.lane.b32.xlu1 %v7230_v27, %s13663_s14  ;;  %3451 = vmatprep.subr.bf16.mxu0 %v2096_v15  ;;  %v1252_v27 = vld [vmem:[%s9899_s8 + $0x1e98] sm:$0xff]  ;;  %v2200_v31 = vpack.c.bf16 %v1060_v13, %v1054_v12  ;;  %v1066_v63 = vld [vmem:[%s9899_s8 + $0x18c8] sm:$0xff] }
 0x377   : > { %v10850_v44 = vpop.permute.xlu0 %5492  ;;  %3700 = vmatprep.subr.bf16.mxu1 %v2192_v25  ;;  %v1246_v25 = vld [vmem:[%s9899_s8 + $0x1e68] sm:$0xff]  ;;  %v1264_v13 = vld [vmem:[%s9899_s8 + $0x1ef8] sm:$0xff] }
 0x378   : > { %v10854_v50 = vpop.permute.xlu1 %5609  ;;  %v2296_v39 = vpack.c.bf16 %v1252_v27, %v1246_v25  ;;  %v1258_v12 = vld [vmem:[%s9899_s8 + $0x1ec8] sm:$0xff]  ;;  %v2206_v25 = vpack.c.bf16 %v1072_v2, %v1066_v63  ;;  %v9435_v27 = vld [vmem:[#allocation8 + $0x40] ss:$24 sps:$4 sm:$0xff]  }
 0x379   : > { %v1078_v63 = vld [vmem:[%s9899_s8 + $0x1928] sm:$0xff]  ;;  %v1084_v2 = vld [vmem:[%s9899_s8 + $0x1958] sm:$0xff] }
 0x37a   : > { %v2212_v43 = vpack.c.bf16 %v1084_v2, %v1078_v63  ;;  %v1275_v63 = vld [vmem:[%s9899_s8 + $0x1f50] sm:$0xff] }
 0x37b   : > { %v10856_v60 = vpop.permute.xlu0 %5607 }
 0x37c   : > { %v10858_v61 = vpop.permute.xlu1 %5490  ;;  %3452 = vmatpush1.bf16.xpose.msra.mxu0 %v2095_v53  ;;  %v1059_v53 = vld [vmem:[%s9899_s8 + $0x1890] sm:$0xff] }
 0x37d   : > { %3701 = vmatpush1.bf16.xpose.msra.mxu1 %v2191_v55  ;;  %3753 = vmatprep.subr.bf16.mxu0 %v2194_v57  ;;  %v1245_v55 = vld [vmem:[%s9899_s8 + $0x1e60] sm:$0xff]  ;;  %v1251_v57 = vld [vmem:[%s9899_s8 + $0x1e90] sm:$0xff]  ;;  %v2199_v8 = vpack.c.bf16 %v1059_v53, %v1053_v48 }
 0x37e   : > { %4002 = vmatprep.subr.bf16.mxu1 %v2290_v59  ;;  %v1071_v48 = vld [vmem:[%s9899_s8 + $0x18f0] sm:$0xff]  ;;  %v1257_v53 = vld [vmem:[%s9899_s8 + $0x1ec0] sm:$0xff] }
 0x37f   : > { %v10864_v11 = vpop.permute.xlu0 %5611 }
 0x380   : > { %13745 = vst [vmem:[#allocation35_spill] sm:$0xff] %v10864_v11  ;;  %v10868_v15 = vpop.permute.xlu1 %5494  ;;  %v5273_v11 = vsel %vm5271_vm2, %v10800_v7, %v10808_v17 }
 0x381   : > { %13746 = vst [vmem:[#allocation36_spill] sm:$0xff] %v10868_v15 }
 0x383   : > { %3454 = vmatmul.mubr.bf16.vlgmr.msra.gmra.mrb[20].mxu0 %v9433_v34  ;;  %v10872_v36 = vpop.permute.xlu0 %5739 }
 0x384   : > { %3703 = vmatmul.mubr.bf16.vlgmr.msra.gmra.mrb[20].mxu1 %v9433_v34  ;;  %v10874_v42 = vpop.permute.xlu1 %5741  ;;  %3754 = vmatpush1.bf16.xpose.msra.mxu0 %v2193_v21  ;;  %v2295_v21 = vpack.c.bf16 %v1251_v57, %v1245_v55  ;;  %v1263_v55 = vld [vmem:[%s9899_s8 + $0x1ef0] sm:$0xff] }
 0x385   : > { %4003 = vmatpush1.bf16.xpose.msra.mxu1 %v2289_v29  ;;  %3463 = vmatprep.mubr.bf16.mxu0 %v9434_v45 }
 0x386   : > { %3712 = vmatprep.mubr.bf16.mxu1 %v9434_v45  ;;  %3755 = vmatprep.subr.bf16.mxu0 %v2200_v31  ;;  %v2302_v31 = vpack.c.bf16 %v1264_v13, %v1258_v12  ;;  %v1065_v45 = vld [vmem:[%s9899_s8 + $0x18c0] sm:$0xff]  ;;  %v1270_v13 = vld [vmem:[%s9899_s8 + $0x1f28] sm:$0xff] }
 0x387   : > { %v10880_v59 = vpop.permute.xlu0 %5743  ;;  %4004 = vmatprep.subr.bf16.mxu1 %v2296_v39  ;;  %v9436_v39 = vld [vmem:[#allocation8 + $0x74] ss:$24 sps:$4 sm:$0xff]  }
 0x388   : > { %v10884_v3 = vpop.permute.xlu1 %5745 }
 0x389   : > { %13747 = vst [vmem:[#allocation37_spill] sm:$0xff] %v10884_v3 }
 0x38b   : > { %3464 = vmatmul.mubr.bf16.gmra.mrb[24].mxu0 %v9435_v27  ;;  %v10888_v29 = vpop.permute.xlu0 %5858 }
 0x38c   : > { %3713 = vmatmul.mubr.bf16.gmra.mrb[24].mxu1 %v9435_v27  ;;  %v10890_v34 = vpop.permute.xlu1 %5856  ;;  %3756 = vmatpush1.bf16.xpose.msra.mxu0 %v2199_v8  ;;  %v2205_v8 = vpack.c.bf16 %v1071_v48, %v1065_v45  ;;  %v2301_v27 = vpack.c.bf16 %v1263_v55, %v1257_v53  ;;  %v9438_v45 = vld [vmem:[#allocation8 + $0xa4] ss:$24 sps:$4 sm:$0xff]   ;;  %v1083_v53 = vld [vmem:[%s9899_s8 + $0x1950] sm:$0xff] }
 0x38d   : > { %4005 = vmatpush1.bf16.xpose.msra.mxu1 %v2295_v21  ;;  %3473 = vmatprep.mubr.bf16.mxu0 %v9436_v39  ;;  %v1276_v21 = vld [vmem:[%s9899_s8 + $0x1f58] sm:$0xff]  ;;  %v1077_v48 = vld [vmem:[%s9899_s8 + $0x1920] sm:$0xff] }
 0x38e   : > { %3722 = vmatprep.mubr.bf16.mxu1 %v9436_v39  ;;  %3757 = vmatprep.subr.bf16.mxu0 %v2206_v25  ;;  %v9437_v39 = vld [vmem:[#allocation8 + $0x70] ss:$24 sps:$4 sm:$0xff]   ;;  %v2308_v22 = vpack.c.bf16 %v1276_v21, %v1270_v13  ;;  %v1269_v55 = vld [vmem:[%s9899_s8 + $0x1f20] sm:$0xff]  ;;  %v1096_v21 = vld [vmem:[%s9899_s8 + $0x19b8] sm:$0xff] }
 0x38f   : > { %v10896_v57 = vpop.permute.xlu0 %5862  ;;  %4006 = vmatprep.subr.bf16.mxu1 %v2302_v31  ;;  %v1090_v13 = vld [vmem:[%s9899_s8 + $0x1988] sm:$0xff]  ;;  %v2307_v9 = vpack.c.bf16 %v1275_v63, %v1269_v55  ;;  %v1095_v55 = vld [vmem:[%s9899_s8 + $0x19b0] sm:$0xff]  ;;  %v1281_v63 = vld [vmem:[%s9899_s8 + $0x1f80] sm:$0xff] }
 0x390   : > { %13748 = vst [vmem:[#allocation38_spill] sm:$0xff] %v10896_v57  ;;  %v10900_v12 = vpop.permute.xlu1 %5860  ;;  %v2218_v10 = vpack.c.bf16 %v1096_v21, %v1090_v13  ;;  %v1287_v13 = vld [vmem:[%s9899_s8 + $0x1fb0] sm:$0xff]  ;;  %v1102_v21 = vld [vmem:[%s9899_s8 + $0x19e8] sm:$0xff] }
 0x391   : > { %v2224_v40 = vpack.c.bf16 %v1108_v56, %v1102_v21  ;;  %v1114_v56 = vld [vmem:[%s9899_s8 + $0x1a48] sm:$0xff]  ;;  %v9442_v21 = vld [vmem:[#allocation8 + $0x4] ss:$24 sps:$4 sm:$0xff]  }
 0x393   : > { %3474 = vmatmul.mubr.bf16.gmra.mrb[28].mxu0 %v9437_v39  ;;  %v10904_v25 = vpop.permute.xlu0 %5990 }
 0x394   : > { %3723 = vmatmul.mubr.bf16.gmra.mrb[28].mxu1 %v9437_v39  ;;  %v10906_v31 = vpop.permute.xlu1 %6107  ;;  %3758 = vmatpush1.bf16.xpose.msra.mxu0 %v2205_v8  ;;  %v2211_v8 = vpack.c.bf16 %v1083_v53, %v1077_v48  ;;  %v9440_v48 = vld [vmem:[#allocation8 + $0xd4] ss:$24 sps:$4 sm:$0xff]   ;;  %v1089_v53 = vld [vmem:[%s9899_s8 + $0x1980] sm:$0xff] }
 0x395   : > { %4007 = vmatpush1.bf16.xpose.msra.mxu1 %v2301_v27  ;;  %3483 = vmatprep.mubr.bf16.mxu0 %v9438_v45  ;;  %v1282_v27 = vld [vmem:[%s9899_s8 + $0x1f88] sm:$0xff] }
 0x396   : > { %3732 = vmatprep.mubr.bf16.mxu1 %v9438_v45  ;;  %3759 = vmatprep.subr.bf16.mxu0 %v2212_v43  ;;  %v9439_v45 = vld [vmem:[#allocation8 + $0xa0] ss:$24 sps:$4 sm:$0xff]  }
 0x397   : > { %v10912_v2 = vpop.permute.xlu0 %5994  ;;  %4008 = vmatprep.subr.bf16.mxu1 %v2308_v22  ;;  %v2314_v22 = vpack.c.bf16 %v1288_v28, %v1282_v27  ;;  %v1294_v28 = vld [vmem:[%s9899_s8 + $0x1fe8] sm:$0xff]  ;;  %v1300_v27 = vld [vmem:[%s9899_s8 + $0x2018] sm:$0xff] }
 0x398   : > { %v10916_v39 = vpop.permute.xlu1 %6111 }
 0x39b   : > { %3484 = vmatmul.mubr.bf16.gmra.mrb[32].mxu0 %v9439_v45  ;;  %v10920_v43 = vpop.permute.xlu0 %6109 }
 0x39c   : > { %3733 = vmatmul.mubr.bf16.gmra.mrb[32].mxu1 %v9439_v45  ;;  %v10922_v51 = vpop.permute.xlu1 %5992  ;;  %3760 = vmatpush1.bf16.xpose.msra.mxu0 %v2211_v8  ;;  %v2313_v45 = vpack.c.bf16 %v1287_v13, %v1281_v63  ;;  %v1299_v63 = vld [vmem:[%s9899_s8 + $0x2010] sm:$0xff]  ;;  %v1120_v13 = vld [vmem:[%s9899_s8 + $0x1a78] sm:$0xff] }
 0x39d   : > { %4009 = vmatpush1.bf16.xpose.msra.mxu1 %v2307_v9  ;;  %3493 = vmatprep.mubr.bf16.mxu0 %v9440_v48  ;;  %v2217_v9 = vpack.c.bf16 %v1095_v55, %v1089_v53  ;;  %v1107_v53 = vld [vmem:[%s9899_s8 + $0x1a10] sm:$0xff]  ;;  %v1293_v55 = vld [vmem:[%s9899_s8 + $0x1fe0] sm:$0xff] }
 0x39e   : > { %3742 = vmatprep.mubr.bf16.mxu1 %v9440_v48  ;;  %3761 = vmatprep.subr.bf16.mxu0 %v2218_v10  ;;  %v2320_v10 = vpack.c.bf16 %v1300_v27, %v1294_v28  ;;  %v9441_v48 = vld [vmem:[#allocation8 + $0xd0] ss:$24 sps:$4 sm:$0xff]  }
 0x39f   : > { %v10930_v37 = vpop.permute.xlu0 %6113  ;;  %4010 = vmatprep.subr.bf16.mxu1 %v2314_v22  ;;  %v1306_v27 = vld [vmem:[%s9899_s8 + $0x2048] sm:$0xff] }
 0x3a0   : > { %13749 = vst [vmem:[#allocation39_spill] sm:$0xff] %v10930_v37  ;;  %v10934_v8 = vpop.permute.xlu1 %5996  ;;  %v1323_v37 = vld [vmem:[%s9899_s8 + $0x20d0] sm:$0xff] }
 0x3a1   : > { %13750 = vst [vmem:[#allocation40_spill] sm:$0xff] %v10934_v8  ;;  %v5138_v8 = vsel %vm13655_vm1, %v10772_v19, %v10778_v30  ;;  %v1137_v19 = vld [vmem:[%s9899_s8 + $0x1b00] sm:$0xff] }
 0x3a3   : > { %3494 = vmatmul.mubr.bf16.gmra.mrb[36].mxu0 %v9441_v48  ;;  %v10936_v18 = vpop.permute.xlu0 %6241 }
 0x3a4   : > { %3743 = vmatmul.mubr.bf16.gmra.mrb[36].mxu1 %v9441_v48  ;;  %v10938_v22 = vpop.permute.xlu1 %6243  ;;  %3762 = vmatpush1.bf16.xpose.msra.mxu0 %v2217_v9  ;;  %v1312_v48 = vld [vmem:[%s9899_s8 + $0x2078] sm:$0xff]  ;;  %v2223_v9 = vpack.c.bf16 %v1107_v53, %v1101_v24 }
 0x3a5   : > { %4011 = vmatpush1.bf16.xpose.msra.mxu1 %v2313_v45  ;;  %3763 = vmatprep.subr.bf16.mxu0 %v2224_v40  ;;  %v2319_v45 = vpack.c.bf16 %v1299_v63, %v1293_v55  ;;  %v2326_v4 = vpack.c.bf16 %v1312_v48, %v1306_v27  ;;  %v1132_v24 = vld [vmem:[%s9899_s8 + $0x1ad8] sm:$0xff]  ;;  %v1318_v55 = vld [vmem:[%s9899_s8 + $0x20a8] sm:$0xff] }
 0x3a6   : > { %4012 = vmatprep.subr.bf16.mxu1 %v2320_v10  ;;  %3785 = vmatprep.mubr.bf16.mxu0 %v9442_v21  ;;  %v2230_v10 = vpack.c.bf16 %v1120_v13, %v1114_v56  ;;  %v1324_v63 = vld [vmem:[%s9899_s8 + $0x20d8] sm:$0xff]  ;;  %v2229_v13 = vpack.c.bf16 %v1119_v32, %v1113_v52  ;;  %v2236_v48 = vpack.c.bf16 %v1132_v24, %v1126_v16  ;;  %v1138_v32 = vld [vmem:[%s9899_s8 + $0x1b08] sm:$0xff] }
 0x3a7   : > { %v10946_v28 = vpop.permute.xlu0 %6245  ;;  %4034 = vmatprep.mubr.bf16.mxu1 %v9442_v21  ;;  %v1305_v21 = vld [vmem:[%s9899_s8 + $0x2040] sm:$0xff]  ;;  %v1144_v52 = vld [vmem:[%s9899_s8 + $0x1b38] sm:$0xff]  ;;  %v1330_v16 = vld [vmem:[%s9899_s8 + $0x2108] sm:$0xff] }
 0x3a8   : > { %v10950_v40 = vpop.permute.xlu1 %6247  ;;  %v2325_v27 = vpack.c.bf16 %v1311_v35, %v1305_v21  ;;  %v1336_v21 = vld [vmem:[%s9899_s8 + $0x2138] sm:$0xff] }
 0x3a9   : > { %13751 = vst [vmem:[#allocation41_spill] sm:$0xff] %v10950_v40  ;;  %v1317_v40 = vld [vmem:[%s9899_s8 + $0x20a0] sm:$0xff] }
 0x3ab   : > { %v10952_v6 = vpop.permute.xlu0 %6360 }
 0x3ac   : > { %v10954_v49 = vpop.permute.xlu1 %6358  ;;  %3764 = vmatpush1.bf16.xpose.msra.mxu0 %v2223_v9 }
 0x3ad   : > { %4013 = vmatpush1.bf16.xpose.msra.mxu1 %v2319_v45  ;;  %3765 = vmatprep.subr.bf16.mxu0 %v2230_v10  ;;  %v1125_v10 = vld [vmem:[%s9899_s8 + $0x1aa0] sm:$0xff] }
 0x3ae   : > { %4014 = vmatprep.subr.bf16.mxu1 %v2326_v4  ;;  %v2332_v4 = vpack.c.bf16 %v1324_v63, %v1318_v55  ;;  %v5021_v63 = vsel %vm5020_vm0, %v10758_v1, %v10768_v14 }
 0x3af   : > { %v10962_v53 = vpop.permute.xlu0 %6364 }
 0x3b0   : > { %13752 = vst [vmem:[#allocation42_spill] sm:$0xff] %v10962_v53  ;;  %v10966_v56 = vpop.permute.xlu1 %6362  ;;  %v1131_v53 = vld [vmem:[%s9899_s8 + $0x1ad0] sm:$0xff] }
 0x3b1   : > { %v2235_v55 = vpack.c.bf16 %v1131_v53, %v1125_v10  ;;  %v1143_v10 = vld [vmem:[%s9899_s8 + $0x1b30] sm:$0xff] }
 0x3b3   : > { %v10968_v9 = vpop.permute.xlu0 %6492 }
 0x3b4   : > { %v10970_v45 = vpop.permute.xlu1 %6609  ;;  %3766 = vmatpush1.bf16.xpose.msra.mxu0 %v2229_v13  ;;  %v2331_v13 = vpack.c.bf16 %v1323_v37, %v1317_v40  ;;  %v5022_v37 = vsel %vm5020_vm0, %v10768_v14, %v10760_v5  ;;  %v5272_v40 = vsel %vm5271_vm2, %v10798_v0, %v10800_v7  ;;  %v5139_v14 = vsel %vm13655_vm1, %v10778_v30, %v10780_v33 }
 0x3b5   : > { %4015 = vmatpush1.bf16.xpose.msra.mxu1 %v2325_v27  ;;  %3767 = vmatprep.subr.bf16.mxu0 %v2236_v48  ;;  %v2242_v27 = vpack.c.bf16 %v1144_v52, %v1138_v32  ;;  %v2338_v48 = vpack.c.bf16 %v1336_v21, %v1330_v16  ;;  %v1329_v32 = vld [vmem:[%s9899_s8 + $0x2100] sm:$0xff]  ;;  %v1335_v16 = vld [vmem:[%s9899_s8 + $0x2130] sm:$0xff]  ;;  %v1150_v21 = vld [vmem:[%s9899_s8 + $0x1b68] sm:$0xff]  ;;  %v5389_v0 = vsel %vm5388_vm3, %v10820_v41, %v10818_v38 }
 0x3b6   : > { %4016 = vmatprep.subr.bf16.mxu1 %v2332_v4  ;;  %v4919_v4 = vld [vmem:[#allocation2] sm:$0xf]  ;;  %v5523_v30 = vsel %vm5522_vm4, %v10838_v20, %v10858_v61  ;;  %v2337_v15 = vpack.c.bf16 %v1335_v16, %v1329_v32  ;;  %v1155_v32 = vld [vmem:[%s9899_s8 + $0x1b90] sm:$0xff] }
 0x3b7   : > { %v10978_v35 = vpop.permute.xlu0 %6496  ;;  %v5053_v53 = vadd.f32 %v5021_v63, %v4919_v4  ;;  %v4920_v63 = vld [vmem:[#allocation2 + $0x8] sm:$0xf]  ;;  %v1348_v4 = vld [vmem:[%s9899_s8 + $0x2198] sm:$0xff]  ;;  %v1162_v16 = vld [vmem:[%s9899_s8 + $0x1bc8] sm:$0xff] }
 0x3b8   : > { %v10982_v24 = vpop.permute.xlu1 %6613  ;;  %v5054_v3 = vadd.f32 %v5022_v37, %v4920_v63 }
 0x3b9   : > { %13753 = vst [vmem:[#allocation43_spill] sm:$0xff] %v10982_v24  ;;  %v5170_v52 = vadd.f32 %v5138_v8, %v5053_v53 }
 0x3bb   : > { %v10990_v57 = vpop.permute.xlu0 %6611  ;;  %v5304_v8 = vadd.f32 %v5272_v40, %v5170_v52  ;;  %v5390_v40 = vsel %vm5388_vm3, %v10818_v38, %v10832_v62  ;;  %v1149_v38 = vld [vmem:[%s9899_s8 + $0x1b60] sm:$0xff] }
 0x3bc   : > { %v10992_v1 = vpop.permute.xlu1 %6494  ;;  %3768 = vmatpush1.bf16.xpose.msra.mxu0 %v2235_v55  ;;  %v1156_v55 = vld [vmem:[%s9899_s8 + $0x1b98] sm:$0xff]  ;;  %v1341_v52 = vld [vmem:[%s9899_s8 + $0x2160] sm:$0xff] }
 0x3bd   : > { %4017 = vmatpush1.bf16.xpose.msra.mxu1 %v2331_v13  ;;  %3769 = vmatprep.subr.bf16.mxu0 %v2242_v27  ;;  %v1342_v27 = vld [vmem:[%s9899_s8 + $0x2168] sm:$0xff]  ;;  %v2248_v41 = vpack.c.bf16 %v1156_v55, %v1150_v21  ;;  %v5421_v58 = vadd.f32 %v5389_v0, %v5304_v8  ;;  %v1168_v21 = vld [vmem:[%s9899_s8 + $0x1bf8] sm:$0xff]  ;;  %v5640_v55 = vsel %vm5639_vm5, %v10840_v26, %v10856_v60 }
 0x3be   : > { %4018 = vmatprep.subr.bf16.mxu1 %v2338_v48  ;;  %v2241_v48 = vpack.c.bf16 %v1143_v10, %v1137_v19  ;;  %v2344_v37 = vpack.c.bf16 %v1348_v4, %v1342_v27  ;;  %v2247_v4 = vpack.c.bf16 %v1155_v32, %v1149_v38  ;;  %v5891_v8 = vsel %vm5890_vm7, %v10890_v34, %v10888_v29  ;;  %v1353_v38 = vld [vmem:[%s9899_s8 + $0x21c0] sm:$0xff] }
 0x3bf   : > { %v11012_v13 = vpop.permute.xlu0 %6615  ;;  %v5555_v10 = vadd.f32 %v5523_v30, %v5421_v58  ;;  %v1347_v58 = vld [vmem:[%s9899_s8 + $0x2190] sm:$0xff] }
 0x3c0   : > { %13754 = vst [vmem:[#allocation44_spill] sm:$0xff] %v11012_v13  ;;  %v11016_v53 = vpop.permute.xlu1 %6498  ;;  %v5171_v13 = vadd.f32 %v5139_v14, %v5054_v3  ;;  %v5524_v3 = vsel %vm5522_vm4, %v10858_v61, %v10850_v44  ;;  %v5774_v61 = vsel %vm13700_vm6, %v10872_v36, %v10874_v42  ;;  %v1360_v14 = vld [vmem:[%s9899_s8 + $0x21f8] sm:$0xff]  ;;  %v2343_v26 = vpack.c.bf16 %v1347_v58, %v1341_v52  ;;  %v1174_v58 = vld [vmem:[%s9899_s8 + $0x1c28] sm:$0xff] }
 0x3c2   : > { %v5305_v7 = vadd.f32 %v5273_v11, %v5171_v13  ;;  %v5672_v13 = vadd.f32 %v5640_v55, %v5555_v10  ;;  %v1366_v55 = vld [vmem:[%s9899_s8 + $0x2228] sm:$0xff] }
 0x3c3   : > { %v11027_v19 = vpop.permute.xlu0 %6743 }
 0x3c4   : > { %v11029_v20 = vpop.permute.xlu1 %6745  ;;  %3770 = vmatpush1.bf16.xpose.msra.mxu0 %v2241_v48  ;;  %v5422_v11 = vadd.f32 %v5390_v40, %v5305_v7  ;;  %v2254_v48 = vpack.c.bf16 %v1168_v21, %v1162_v16  ;;  %v5806_v36 = vadd.f32 %v5774_v61, %v5672_v13  ;;  %v6025_v40 = vsel %vm13656_vm8, %v10904_v25, %v10922_v51  ;;  %v1167_v25 = vld [vmem:[%s9899_s8 + $0x1bf0] sm:$0xff]  ;;  %v1180_v16 = vld [vmem:[%s9899_s8 + $0x1c58] sm:$0xff] }
 0x3c5   : > { %4019 = vmatpush1.bf16.xpose.msra.mxu1 %v2337_v15  ;;  %3771 = vmatprep.subr.bf16.mxu0 %v2248_v41  ;;  %v1354_v15 = vld [vmem:[%s9899_s8 + $0x21c8] sm:$0xff]  ;;  %v5641_v41 = vsel %vm5639_vm5, %v10856_v60, %v10854_v50  ;;  %v5892_v60 = vsel %vm5890_vm7, %v10888_v29, %v10900_v12  ;;  %v6026_v21 = vsel %vm13656_vm8, %v10922_v51, %v10912_v2  ;;  %v1372_v61 = vld [vmem:[%s9899_s8 + $0x2258] sm:$0xff] }
 0x3c6   : > { %4020 = vmatprep.subr.bf16.mxu1 %v2344_v37  ;;  %v5556_v0 = vadd.f32 %v5524_v3, %v5422_v11  ;;  %v2350_v30 = vpack.c.bf16 %v1360_v14, %v1354_v15  ;;  %v5775_v37 = vsel %vm13700_vm6, %v10874_v42, %v10880_v59  ;;  %v5923_v10 = vadd.f32 %v5891_v8, %v5806_v36  ;;  %v1161_v42 = vld [vmem:[%s9899_s8 + $0x1bc0] sm:$0xff]  ;;  %v1359_v11 = vld [vmem:[%s9899_s8 + $0x21f0] sm:$0xff] }
 0x3c7   : > { %v11046_v63 = vpop.permute.xlu0 %6747  ;;  %v6142_v13 = vsel %vm6141_vm9, %v10906_v31, %v10920_v43  ;;  %v2349_v8 = vpack.c.bf16 %v1359_v11, %v1353_v38  ;;  %v2260_v51 = vpack.c.bf16 %v1180_v16, %v1174_v58  ;;  %v2356_v36 = vpack.c.bf16 %v1372_v61, %v1366_v55  ;;  %v1371_v38 = vld [vmem:[%s9899_s8 + $0x2250] sm:$0xff]  ;;  %v1384_v11 = vld [vmem:[%s9899_s8 + $0x22b8] sm:$0xff] }
 0x3c8   : > { %13755 = vst [vmem:[#allocation45_spill] sm:$0xff] %v11046_v63  ;;  %v11050_v27 = vpop.permute.xlu1 %6749  ;;  %v5673_v7 = vadd.f32 %v5641_v41, %v5556_v0  ;;  %v6057_v52 = vadd.f32 %v6025_v40, %v5923_v10  ;;  %v2253_v0 = vpack.c.bf16 %v1167_v25, %v1161_v42  ;;  %v6277_v40 = vsel %vm13701_vm10, %v10938_v22, %v10946_v28  ;;  %v1179_v10 = vld [vmem:[%s9899_s8 + $0x1c50] sm:$0xff] }
 0x3c9   : > { %13756 = vst [vmem:[#allocation46_spill] sm:$0xff] %v11050_v27  ;;  %v6528_v61 = vsel %vm13605_vm12, %v10992_v1, %v10978_v35 }
 0x3ca   : > { %v5807_v32 = vadd.f32 %v5775_v37, %v5673_v7  ;;  %v1173_v7 = vld [vmem:[%s9899_s8 + $0x1c20] sm:$0xff] }
 0x3cb   : > { %v11064_v34 = vpop.permute.xlu0 %6862  ;;  %v2259_v55 = vpack.c.bf16 %v1179_v10, %v1173_v7  ;;  %v6645_v7 = vsel %vm6643_vm13, %v10990_v57, %v10982_v24 }
 0x3cc   : > { %v11066_v3 = vpop.permute.xlu1 %6860  ;;  %3772 = vmatpush1.bf16.xpose.msra.mxu0 %v2247_v4  ;;  %v5924_v15 = vadd.f32 %v5892_v60, %v5807_v32  ;;  %v6276_v4 = vsel %vm13701_vm10, %v10936_v18, %v10938_v22  ;;  %v6143_v18 = vsel %vm6141_vm9, %v10920_v43, %v10916_v39  ;;  %v1365_v60 = vld [vmem:[%s9899_s8 + $0x2220] sm:$0xff]  ;;  %v1186_v43 = vld [vmem:[%s9899_s8 + $0x1c88] sm:$0xff]  ;;  %v1192_v32 = vld [vmem:[%s9899_s8 + $0x1cb8] sm:$0xff]  ;;  %v6394_v22 = vsel %vm13606_vm11, %v10952_v6, %v10966_v56 }
 0x3cd   : > { %4021 = vmatpush1.bf16.xpose.msra.mxu1 %v2343_v26  ;;  %3773 = vmatprep.subr.bf16.mxu0 %v2254_v48  ;;  %v6174_v48 = vadd.f32 %v6142_v13, %v6057_v52 }
 0x3ce   : > { %4022 = vmatprep.subr.bf16.mxu1 %v2350_v30  ;;  %v6058_v26 = vadd.f32 %v6026_v21, %v5924_v15  ;;  %v6393_v30 = vsel %vm13606_vm11, %v10954_v49, %v10952_v6  ;;  %v6527_v49 = vsel %vm13605_vm12, %v10968_v9, %v10992_v1  ;;  %v1378_v9 = vld [vmem:[%s9899_s8 + $0x2288] sm:$0xff]  ;;  %v2355_v15 = vpack.c.bf16 %v1371_v38, %v1365_v60 }
 0x3cf   : > { %v11080_v29 = vpop.permute.xlu0 %6866  ;;  %v6308_v31 = vadd.f32 %v6276_v4, %v6174_v48  ;;  %v2362_v13 = vpack.c.bf16 %v1384_v11, %v1378_v9  ;;  %v6644_v4 = vsel %vm6643_vm13, %v10970_v45, %v10990_v57  ;;  %vm7028_vm12 = vcmask 908288   ;;  %v1185_v45 = vld [vmem:[%s9899_s8 + $0x1c80] sm:$0xff] }
 0x3d0   : > { %13757 = vst [vmem:[#allocation47_spill] sm:$0xff] %v11080_v29  ;;  %v11084_v14 = vpop.permute.xlu1 %6864  ;;  %v6175_v42 = vadd.f32 %v6143_v18, %v6058_v26  ;;  %vm7145_vm11 = vcmask 900096   ;;  %v1383_v18 = vld [vmem:[%s9899_s8 + $0x22b0] sm:$0xff] }
 0x3d1   : > { %13758 = vst [vmem:[#allocation48_spill] sm:$0xff] %v11084_v14  ;;  %v6425_v25 = vadd.f32 %v6393_v30, %v6308_v31  ;;  %v1191_v30 = vld [vmem:[%s9899_s8 + $0x1cb0] sm:$0xff]  ;;  %v6896_v57 = vsel %vm6894_vm15, %v11064_v34, %v11084_v14 }
 0x3d2   : > { %v6309_v58 = vadd.f32 %v6277_v40, %v6175_v42  ;;  %v1198_v40 = vld [vmem:[%s9899_s8 + $0x1ce8] sm:$0xff] }
 0x3d3   : > { %v6995_v41 = vpop.permute.xlu0 %6994  ;;  %v6559_v16 = vadd.f32 %v6527_v49, %v6425_v25  ;;  %v1204_v49 = vld [vmem:[%s9899_s8 + $0x1d18] sm:$0xff]  ;;  %v1390_v42 = vld [vmem:[%s9899_s8 + $0x22e8] sm:$0xff] }
 0x3d4   : > { %v11095_v37 = vpop.permute.xlu1 %6996  ;;  %3774 = vmatpush1.bf16.xpose.msra.mxu0 %v2253_v0  ;;  %v2266_v0 = vpack.c.bf16 %v1192_v32, %v1186_v43  ;;  %v6426_v6 = vadd.f32 %v6394_v22, %v6309_v58  ;;  %v1396_v25 = vld [vmem:[%s9899_s8 + $0x2318] sm:$0xff]  ;;  %v2265_v22 = vpack.c.bf16 %v1191_v30, %v1185_v45  ;;  %v1402_v30 = vld [vmem:[%s9899_s8 + $0x2348] sm:$0xff] }
 0x3d5   : > { %4023 = vmatpush1.bf16.xpose.msra.mxu1 %v2349_v8  ;;  %3775 = vmatprep.subr.bf16.mxu0 %v2260_v51  ;;  %v6778_v8 = vsel %vm13607_vm14, %v11027_v19, %v11029_v20  ;;  %v6676_v26 = vadd.f32 %v6644_v4, %v6559_v16  ;;  %v1377_v19 = vld [vmem:[%s9899_s8 + $0x2280] sm:$0xff]  ;;  %v7029_v10 = vsel %vm7028_vm12, %v6995_v41, %v11095_v37  ;;  %v1216_v45 = vld [vmem:[%s9899_s8 + $0x1d78] sm:$0xff] }
 0x3d6   : > { %4024 = vmatprep.subr.bf16.mxu1 %v2356_v36  ;;  %v6560_v1 = vadd.f32 %v6528_v61, %v6426_v6  ;;  %v6895_v36 = vsel %vm6894_vm15, %v11066_v3, %v11064_v34  ;;  %v6779_v3 = vsel %vm13607_vm14, %v11029_v20, %v11046_v63  ;;  %v2361_v11 = vpack.c.bf16 %v1383_v18, %v1377_v19  ;;  %v1197_v4 = vld [vmem:[%s9899_s8 + $0x1ce0] sm:$0xff]  ;;  %v1408_v19 = vld [vmem:[%s9899_s8 + $0x2378] sm:$0xff] }
 0x3d7   : > { %v11115_v52 = vpop.permute.xlu0 %6998  ;;  %v6810_v31 = vadd.f32 %v6778_v8, %v6676_v26  ;;  %v2272_v20 = vpack.c.bf16 %v1204_v49, %v1198_v40  ;;  %vm13702_vm14 = vcmask 891904   ;;  %v2368_v16 = vpack.c.bf16 %v1396_v25, %v1390_v42  ;;  %v1203_v8 = vld [vmem:[%s9899_s8 + $0x1d10] sm:$0xff] }
 0x3d8   : > { %13759 = vst [vmem:[#allocation49_spill] sm:$0xff] %v11115_v52  ;;  %v11119_v21 = vpop.permute.xlu1 %7000  ;;  %v6677_v38 = vadd.f32 %v6645_v7, %v6560_v1  ;;  %v1395_v26 = vld [vmem:[%s9899_s8 + $0x2310] sm:$0xff]  ;;  %v2271_v18 = vpack.c.bf16 %v1203_v8, %v1197_v4  ;;  %v2374_v42 = vpack.c.bf16 %v1408_v19, %v1402_v30  ;;  %v1413_v4 = vld [vmem:[%s9899_s8 + $0x23a0] sm:$0xff] }
 0x3d9   : > { %13760 = vst [vmem:[#allocation50_spill] sm:$0xff] %v11119_v21  ;;  %v6927_v43 = vadd.f32 %v6895_v36, %v6810_v31  ;;  %v1210_v36 = vld [vmem:[%s9899_s8 + $0x1d48] sm:$0xff]  ;;  %v1419_v8 = vld [vmem:[%s9899_s8 + $0x23d0] sm:$0xff] }
 0x3da   : > { %v6811_v41 = vadd.f32 %v6779_v3, %v6677_v38  ;;  %v2278_v7 = vpack.c.bf16 %v1216_v45, %v1210_v36  ;;  %v1209_v38 = vld [vmem:[%s9899_s8 + $0x1d40] sm:$0xff]  ;;  %v2379_v45 = vpack.c.bf16 %v1419_v8, %v1413_v4  ;;  %v9445_v4 = vld [vmem:[#allocation8 + $0x30] ss:$24 sps:$4 sm:$0xff]  }
 0x3db   : > { %v7112_v51 = vpop.permute.xlu0 %7111  ;;  %v7061_v58 = vadd.f32 %v7029_v10, %v6927_v43  ;;  %v1215_v43 = vld [vmem:[%s9899_s8 + $0x1d70] sm:$0xff] }
 0x3dc   : > { %v7114_v48 = vpop.permute.xlu1 %7113  ;;  %3776 = vmatpush1.bf16.xpose.msra.mxu0 %v2259_v55  ;;  %v7030_v55 = vsel %vm7028_vm12, %v11095_v37, %v11115_v52  ;;  %v1389_v37 = vld [vmem:[%s9899_s8 + $0x22e0] sm:$0xff]  ;;  %v1067_v8 = vld [vmem:[%s9899_s8 + $0x18d0] sm:$0xff] }
 0x3dd   : > { %4025 = vmatpush1.bf16.xpose.msra.mxu1 %v2355_v15  ;;  %3777 = vmatprep.subr.bf16.mxu0 %v2266_v0  ;;  %v7146_v9 = vsel %vm7145_vm11, %v7112_v51, %v7114_v48  ;;  %v6928_v15 = vadd.f32 %v6896_v57, %v6811_v41  ;;  %v2367_v49 = vpack.c.bf16 %v1395_v26, %v1389_v37  ;;  %v1228_v41 = vld [vmem:[%s9899_s8 + $0x1dd8] sm:$0xff]  ;;  %v1242_v26 = vld [vmem:[%s9899_s8 + $0x1e48] sm:$0xff] }
 0x3de   : > { %4026 = vmatprep.subr.bf16.mxu1 %v2362_v13  ;;  %v7178_v34 = vadd.f32 %v7146_v9, %v7061_v58  ;;  %v1414_v58 = vld [vmem:[%s9899_s8 + $0x23a8] sm:$0xff]  ;;  %v1044_v37 = vld [vmem:[%s9899_s8 + $0x1818] sm:$0xff] }
 0x3df   : > { %v11147_v60 = vpop.permute.xlu0 %7115  ;;  %v7062_v51 = vadd.f32 %v7030_v55, %v6928_v15 }
 0x3e0   : > { %13761 = vst [vmem:[#allocation51_spill] sm:$0xff] %v11147_v60  ;;  %v11151_v32 = vpop.permute.xlu1 %7117  ;;  %v7147_v6 = vsel %vm7145_vm11, %v7114_v48, %v11147_v60 }
 0x3e1   : > { %13762 = vst [vmem:[#allocation52_spill] sm:$0xff] %v11151_v32  ;;  %v7179_v31 = vadd.f32 %v7147_v6, %v7062_v51  ;;  %v1221_v6 = vld [vmem:[%s9899_s8 + $0x1da0] sm:$0xff]  ;;  %v1050_v51 = vld [vmem:[%s9899_s8 + $0x1848] sm:$0xff]  ;;  %v1672_v32 = vld [vmem:[%s9899_s8 + $0x2bb8] sm:$0xff] }
 0x3e2   : > { %v2196_v30 = vpack.c.bf16 %v1050_v51, %v1044_v37  ;;  %v1073_v37 = vld [vmem:[%s9899_s8 + $0x1900] sm:$0xff]  ;;  %v1259_v51 = vld [vmem:[%s9899_s8 + $0x1ed0] sm:$0xff] }
 0x3e3   : > { %v7248_v61 = vpop.permute.xlu0 %7247 }
 0x3e4   : > { %v7246_v0 = vpop.permute.xlu1 %7245  ;;  %3778 = vmatpush1.bf16.xpose.msra.mxu0 %v2265_v22  ;;  %v1401_v22 = vld [vmem:[%s9899_s8 + $0x2340] sm:$0xff] }
 0x3e5   : > { %v7280_v13 = vsel %vm13702_vm14, %v7246_v0, %v7248_v61  ;;  %4027 = vmatpush1.bf16.xpose.msra.mxu1 %v2361_v11  ;;  %3779 = vmatprep.subr.bf16.mxu0 %v2272_v20  ;;  %v1407_v11 = vld [vmem:[%s9899_s8 + $0x2370] sm:$0xff]  ;;  %v1222_v20 = vld [vmem:[%s9899_s8 + $0x1da8] sm:$0xff] }
 0x3e6   : > { %v7312_v1 = vadd.f32 %v7280_v13, %v7178_v34  ;;  %4028 = vmatprep.subr.bf16.mxu1 %v2368_v16  ;;  %v1420_v16 = vld [vmem:[%s9899_s8 + $0x23d8] sm:$0xff]  ;;  %v2373_v15 = vpack.c.bf16 %v1407_v11, %v1401_v22  ;;  %v2284_v34 = vpack.c.bf16 %v1228_v41, %v1222_v20  ;;  %v1227_v13 = vld [vmem:[%s9899_s8 + $0x1dd0] sm:$0xff]  ;;  %v1061_v11 = vld [vmem:[%s9899_s8 + $0x18a0] sm:$0xff] }
 0x3e7   : > { %v2380_v0 = vpack.c.bf16 %v1420_v16, %v1414_v58  ;;  %v2283_v36 = vpack.c.bf16 %v1227_v13, %v1221_v6  ;;  %v1247_v20 = vld [vmem:[%s9899_s8 + $0x1e70] sm:$0xff]  ;;  %v1253_v41 = vld [vmem:[%s9899_s8 + $0x1ea0] sm:$0xff]  ;;  %v1068_v58 = vld [vmem:[%s9899_s8 + $0x18d8] sm:$0xff] }
 0x3e8   : > { %v11171_v48 = vpop.permute.xlu1 %7249  ;;  %v7334_v3 = vadd.f32 %v10748_v47, %v7312_v1  ;;  %v1236_v1 = vld [vmem:[%s9899_s8 + $0x1e18] sm:$0xff]  ;;  %v1074_v16 = vld [vmem:[%s9899_s8 + $0x1908] sm:$0xff] }
 0x3e9   : > { %13763 = vst [vmem:[#allocation53_spill] sm:$0xff] %v11171_v48  ;;  %v7281_v40 = vsel %vm13702_vm14, %v7248_v61, %v11171_v48  ;;  %v2277_v61 = vpack.c.bf16 %v1215_v43, %v1209_v38  ;;  %v2292_v19 = vpack.c.bf16 %v1242_v26, %v1236_v1  ;;  %v2208_v6 = vpack.c.bf16 %v1074_v16, %v1068_v58  ;;  %v1265_v1 = vld [vmem:[%s9899_s8 + $0x1f00] sm:$0xff]  ;;  %v1080_v26 = vld [vmem:[%s9899_s8 + $0x1938] sm:$0xff]  ;;  %v9449_v16 = vld [vmem:[#allocation8 + $0x90] ss:$24 sps:$4 sm:$0xff]  }
 0x3ea   : > { %v7313_v10 = vadd.f32 %v7281_v40, %v7179_v31  ;;  %v7350_v57 = vmax.f32 %v7334_v3, 0.0  ;;  %v1043_v31 = vld [vmem:[%s9899_s8 + $0x1810] sm:$0xff]  ;;  %v1062_v3 = vld [vmem:[%s9899_s8 + $0x18a8] sm:$0xff] }
 0x3eb   : > { %v1235_v40 = vld [vmem:[%s9899_s8 + $0x1e10] sm:$0xff] }
 0x3ec   : > { %v7335_v25 = vadd.f32 %v10748_v47, %v7313_v10  ;;  %3780 = vmatpush1.bf16.xpose.msra.mxu0 %v2271_v18  ;;  %v1049_v18 = vld [vmem:[%s9899_s8 + $0x1840] sm:$0xff]  ;;  %v1248_v10 = vld [vmem:[%s9899_s8 + $0x1e78] sm:$0xff] }
 0x3ed   : > { %4029 = vmatpush1.bf16.xpose.msra.mxu1 %v2367_v49  ;;  %3781 = vmatprep.subr.bf16.mxu0 %v2278_v7  ;;  %v1241_v49 = vld [vmem:[%s9899_s8 + $0x1e40] sm:$0xff]  ;;  %v1056_v7 = vld [vmem:[%s9899_s8 + $0x1878] sm:$0xff] }
 0x3ee   : > { %v7351_v9 = vmax.f32 %v7335_v25, 0.0  ;;  %4030 = vmatprep.subr.bf16.mxu1 %v2374_v42  ;;  %v1254_v42 = vld [vmem:[%s9899_s8 + $0x1ea8] sm:$0xff]  ;;  %v2195_v25 = vpack.c.bf16 %v1049_v18, %v1043_v31  ;;  %v2291_v38 = vpack.c.bf16 %v1241_v49, %v1235_v40  ;;  %v2202_v43 = vpack.c.bf16 %v1062_v3, %v1056_v7  ;;  %v9447_v7 = vld [vmem:[#allocation8 + $0x60] ss:$24 sps:$4 sm:$0xff]   ;;  %v1079_v3 = vld [vmem:[%s9899_s8 + $0x1930] sm:$0xff] }
 0x3ef   : > { %v2298_v22 = vpack.c.bf16 %v1254_v42, %v1248_v10  ;;  %v2207_v31 = vpack.c.bf16 %v1073_v37, %v1067_v8  ;;  %v2303_v18 = vpack.c.bf16 %v1265_v1, %v1259_v51  ;;  %v1085_v10 = vld [vmem:[%s9899_s8 + $0x1960] sm:$0xff]  ;;  %v1271_v42 = vld [vmem:[%s9899_s8 + $0x1f30] sm:$0xff]  ;;  %v1302_v8 = vld [vmem:[%s9899_s8 + $0x2028] sm:$0xff] }
 0x3f0   : > { %v7382_v55 = vcombine.low %v7350_v57, %v7351_v9  ;;  %v9443_v57 = vld [vmem:[#allocation8] ss:$24 sps:$4 sm:$0xff]   ;;  %v1055_v9 = vld [vmem:[%s9899_s8 + $0x1870] sm:$0xff] }
 0x3f2   : > { %7398 = vst [vmem:[#allocation3] sm:$0xff] %v7382_v55  ;;  %v9444_v55 = vld [vmem:[#allocation8 + $0x34] ss:$24 sps:$4 sm:$0xff]  }
 0x3f4   : > { %3782 = vmatpush1.bf16.xpose.msra.mxu0 %v2277_v61  ;;  %v1260_v61 = vld [vmem:[%s9899_s8 + $0x1ed8] sm:$0xff] }
 0x3f5   : > { %4031 = vmatpush1.bf16.xpose.msra.mxu1 %v2373_v15  ;;  %3783 = vmatprep.subr.bf16.mxu0 %v2284_v34  ;;  %v1266_v15 = vld [vmem:[%s9899_s8 + $0x1f08] sm:$0xff]  ;;  %v2201_v34 = vpack.c.bf16 %v1061_v11, %v1055_v9  ;;  %v2213_v11 = vpack.c.bf16 %v1085_v10, %v1079_v3 }
 0x3f6   : > { %4032 = vmatprep.subr.bf16.mxu1 %v2380_v0  ;;  %v2297_v0 = vpack.c.bf16 %v1253_v41, %v1247_v20  ;;  %v2304_v13 = vpack.c.bf16 %v1266_v15, %v1260_v61  ;;  %v1290_v9 = vld [vmem:[%s9899_s8 + $0x1fc8] sm:$0xff]  ;;  %v1097_v61 = vld [vmem:[%s9899_s8 + $0x19c0] sm:$0xff]  ;;  %v1283_v15 = vld [vmem:[%s9899_s8 + $0x1f90] sm:$0xff] }
 0x3f7   : > { %v1314_v3 = vld [vmem:[%s9899_s8 + $0x2088] sm:$0xff] }
 0x3fc   : > { %3784 = vmatpush1.bf16.xpose.msra.mxu0 %v2283_v36  ;;  %v1086_v36 = vld [vmem:[%s9899_s8 + $0x1968] sm:$0xff] }
 0x3fd   : > { %4033 = vmatpush1.bf16.xpose.msra.mxu1 %v2379_v45  ;;  %3836 = vmatprep.subr.bf16.mxu0 %v2196_v30  ;;  %v9446_v45 = vld [vmem:[#allocation8 + $0x64] ss:$24 sps:$4 sm:$0xff]   ;;  %v2214_v40 = vpack.c.bf16 %v1086_v36, %v1080_v26  ;;  %v9451_v36 = vld [vmem:[#allocation8 + $0xc0] ss:$24 sps:$4 sm:$0xff]  }
 0x3fe   : > { %4085 = vmatprep.subr.bf16.mxu1 %v2292_v19  ;;  %v1272_v30 = vld [vmem:[%s9899_s8 + $0x1f38] sm:$0xff]  ;;  %v1278_v19 = vld [vmem:[%s9899_s8 + $0x1f68] sm:$0xff] }
 0x3ff   : > { %v2310_v49 = vpack.c.bf16 %v1278_v19, %v1272_v30  ;;  %v1109_v30 = vld [vmem:[%s9899_s8 + $0x1a20] sm:$0xff]  ;;  %v1295_v19 = vld [vmem:[%s9899_s8 + $0x1ff0] sm:$0xff] }
 0x403   : > { %3786 = vmatmul.mubr.bf16.vlgmr.msra.gmra.mrb[40].mxu0 %v9443_v57 }
 0x404   : > { %3837 = vmatpush1.bf16.xpose.msra.mxu0 %v2195_v25  ;;  %4035 = vmatmul.mubr.bf16.vlgmr.msra.gmra.mrb[40].mxu1 %v9443_v57  ;;  %v1277_v25 = vld [vmem:[%s9899_s8 + $0x1f60] sm:$0xff]  ;;  %v1284_v57 = vld [vmem:[%s9899_s8 + $0x1f98] sm:$0xff] }
 0x405   : > { %4086 = vmatpush1.bf16.xpose.msra.mxu1 %v2291_v38  ;;  %3838 = vmatprep.subr.bf16.mxu0 %v2202_v43  ;;  %v1092_v38 = vld [vmem:[%s9899_s8 + $0x1998] sm:$0xff]  ;;  %v1098_v43 = vld [vmem:[%s9899_s8 + $0x19c8] sm:$0xff]  ;;  %v2309_v20 = vpack.c.bf16 %v1277_v25, %v1271_v42  ;;  %v2316_v58 = vpack.c.bf16 %v1290_v9, %v1284_v57  ;;  %v1307_v57 = vld [vmem:[%s9899_s8 + $0x2050] sm:$0xff] }
 0x406   : > { %4087 = vmatprep.subr.bf16.mxu1 %v2298_v22  ;;  %3795 = vmatprep.mubr.bf16.mxu0 %v9444_v55  ;;  %v9448_v22 = vld [vmem:[#allocation8 + $0x94] ss:$24 sps:$4 sm:$0xff]   ;;  %v2220_v41 = vpack.c.bf16 %v1098_v43, %v1092_v38  ;;  %v1313_v9 = vld [vmem:[%s9899_s8 + $0x2080] sm:$0xff] }
 0x407   : > { %4044 = vmatprep.mubr.bf16.mxu1 %v9444_v55  ;;  %v1091_v55 = vld [vmem:[%s9899_s8 + $0x1990] sm:$0xff] }
 0x408   : > { %v2219_v37 = vpack.c.bf16 %v1097_v61, %v1091_v55  ;;  %v1115_v43 = vld [vmem:[%s9899_s8 + $0x1a50] sm:$0xff]  ;;  %v2327_v55 = vpack.c.bf16 %v1313_v9, %v1307_v57  ;;  %v1349_v9 = vld [vmem:[%s9899_s8 + $0x21a0] sm:$0xff] }
 0x409   : > { %v1343_v57 = vld [vmem:[%s9899_s8 + $0x2170] sm:$0xff] }
 0x40b   : > { %3796 = vmatmul.mubr.bf16.gmra.mrb[44].mxu0 %v9445_v4 }
 0x40c   : > { %3839 = vmatpush1.bf16.xpose.msra.mxu0 %v2201_v34  ;;  %4045 = vmatmul.mubr.bf16.gmra.mrb[44].mxu1 %v9445_v4  ;;  %v1289_v34 = vld [vmem:[%s9899_s8 + $0x1fc0] sm:$0xff]  ;;  %v1296_v4 = vld [vmem:[%s9899_s8 + $0x1ff8] sm:$0xff] }
 0x40d   : > { %4088 = vmatpush1.bf16.xpose.msra.mxu1 %v2297_v0  ;;  %3840 = vmatprep.subr.bf16.mxu0 %v2208_v6  ;;  %v1104_v0 = vld [vmem:[%s9899_s8 + $0x19f8] sm:$0xff]  ;;  %v1110_v6 = vld [vmem:[%s9899_s8 + $0x1a28] sm:$0xff]  ;;  %v2315_v51 = vpack.c.bf16 %v1289_v34, %v1283_v15  ;;  %v2322_v26 = vpack.c.bf16 %v1302_v8, %v1296_v4  ;;  %v1127_v34 = vld [vmem:[%s9899_s8 + $0x1ab0] sm:$0xff] }
 0x40e   : > { %4089 = vmatprep.subr.bf16.mxu1 %v2304_v13  ;;  %3805 = vmatprep.mubr.bf16.mxu0 %v9446_v45  ;;  %v9450_v13 = vld [vmem:[#allocation8 + $0xc4] ss:$24 sps:$4 sm:$0xff]   ;;  %v2226_v1 = vpack.c.bf16 %v1110_v6, %v1104_v0  ;;  %v1319_v6 = vld [vmem:[%s9899_s8 + $0x20b0] sm:$0xff]  ;;  %v1146_v8 = vld [vmem:[%s9899_s8 + $0x1b48] sm:$0xff] }
 0x40f   : > { %4054 = vmatprep.mubr.bf16.mxu1 %v9446_v45  ;;  %v1103_v45 = vld [vmem:[%s9899_s8 + $0x19f0] sm:$0xff]  ;;  %v1133_v0 = vld [vmem:[%s9899_s8 + $0x1ae0] sm:$0xff]  ;;  %v1140_v4 = vld [vmem:[%s9899_s8 + $0x1b18] sm:$0xff] }
 0x410   : > { %v2225_v10 = vpack.c.bf16 %v1109_v30, %v1103_v45  ;;  %v1139_v30 = vld [vmem:[%s9899_s8 + $0x1b10] sm:$0xff] }
 0x413   : > { %3806 = vmatmul.mubr.bf16.gmra.mrb[48].mxu0 %v9447_v7 }
 0x414   : > { %3841 = vmatpush1.bf16.xpose.msra.mxu0 %v2207_v31  ;;  %4055 = vmatmul.mubr.bf16.gmra.mrb[48].mxu1 %v9447_v7  ;;  %v1301_v31 = vld [vmem:[%s9899_s8 + $0x2020] sm:$0xff]  ;;  %v1308_v7 = vld [vmem:[%s9899_s8 + $0x2058] sm:$0xff] }
 0x415   : > { %4090 = vmatpush1.bf16.xpose.msra.mxu1 %v2303_v18  ;;  %3842 = vmatprep.subr.bf16.mxu0 %v2214_v40  ;;  %v1116_v18 = vld [vmem:[%s9899_s8 + $0x1a58] sm:$0xff]  ;;  %v1122_v40 = vld [vmem:[%s9899_s8 + $0x1a88] sm:$0xff]  ;;  %v2321_v42 = vpack.c.bf16 %v1301_v31, %v1295_v19  ;;  %v2328_v38 = vpack.c.bf16 %v1314_v3, %v1308_v7  ;;  %v1145_v19 = vld [vmem:[%s9899_s8 + $0x1b40] sm:$0xff] }
 0x416   : > { %4091 = vmatprep.subr.bf16.mxu1 %v2310_v49  ;;  %3815 = vmatprep.mubr.bf16.mxu0 %v9448_v22  ;;  %v9452_v49 = vld [vmem:[#allocation8 + $0xc] ss:$24 sps:$4 sm:$0xff]   ;;  %v2232_v25 = vpack.c.bf16 %v1122_v40, %v1116_v18  ;;  %v1331_v31 = vld [vmem:[%s9899_s8 + $0x2110] sm:$0xff]  ;;  %v1152_v40 = vld [vmem:[%s9899_s8 + $0x1b78] sm:$0xff] }
 0x417   : > { %4064 = vmatprep.mubr.bf16.mxu1 %v9448_v22  ;;  %v1121_v22 = vld [vmem:[%s9899_s8 + $0x1a80] sm:$0xff]  ;;  %v1344_v7 = vld [vmem:[%s9899_s8 + $0x2178] sm:$0xff]  ;;  %v1350_v3 = vld [vmem:[%s9899_s8 + $0x21a8] sm:$0xff] }
 0x418   : > { %v1337_v18 = vld [vmem:[%s9899_s8 + $0x2140] sm:$0xff] }
 0x41b   : > { %3816 = vmatmul.mubr.bf16.gmra.mrb[52].mxu0 %v9449_v16 }
 0x41c   : > { %3843 = vmatpush1.bf16.xpose.msra.mxu0 %v2213_v11  ;;  %4065 = vmatmul.mubr.bf16.gmra.mrb[52].mxu1 %v9449_v16  ;;  %v1128_v11 = vld [vmem:[%s9899_s8 + $0x1ab8] sm:$0xff]  ;;  %v2231_v16 = vpack.c.bf16 %v1121_v22, %v1115_v43  ;;  %v1151_v43 = vld [vmem:[%s9899_s8 + $0x1b70] sm:$0xff]  ;;  %v1157_v22 = vld [vmem:[%s9899_s8 + $0x1ba0] sm:$0xff] }
 0x41d   : > { %4092 = vmatpush1.bf16.xpose.msra.mxu1 %v2309_v20  ;;  %3844 = vmatprep.subr.bf16.mxu0 %v2220_v41  ;;  %v1134_v20 = vld [vmem:[%s9899_s8 + $0x1ae8] sm:$0xff]  ;;  %v1320_v41 = vld [vmem:[%s9899_s8 + $0x20b8] sm:$0xff] }
 0x41e   : > { %4093 = vmatprep.subr.bf16.mxu1 %v2316_v58  ;;  %3825 = vmatprep.mubr.bf16.mxu0 %v9450_v13  ;;  %v1326_v58 = vld [vmem:[%s9899_s8 + $0x20e8] sm:$0xff]  ;;  %v2238_v61 = vpack.c.bf16 %v1134_v20, %v1128_v11  ;;  %v1164_v11 = vld [vmem:[%s9899_s8 + $0x1bd8] sm:$0xff] }
 0x41f   : > { %4074 = vmatprep.mubr.bf16.mxu1 %v9450_v13  ;;  %v2334_v15 = vpack.c.bf16 %v1326_v58, %v1320_v41  ;;  %v1325_v13 = vld [vmem:[%s9899_s8 + $0x20e0] sm:$0xff]  ;;  %v1170_v20 = vld [vmem:[%s9899_s8 + $0x1c08] sm:$0xff]  ;;  %v1356_v41 = vld [vmem:[%s9899_s8 + $0x21d8] sm:$0xff] }
 0x420   : > { %v1362_v58 = vld [vmem:[%s9899_s8 + $0x2208] sm:$0xff] }
 0x423   : > { %3826 = vmatmul.mubr.bf16.gmra.mrb[56].mxu0 %v9451_v36 }
 0x424   : > { %3845 = vmatpush1.bf16.xpose.msra.mxu0 %v2219_v37  ;;  %4075 = vmatmul.mubr.bf16.gmra.mrb[56].mxu1 %v9451_v36  ;;  %v1332_v37 = vld [vmem:[%s9899_s8 + $0x2118] sm:$0xff]  ;;  %v2244_v36 = vpack.c.bf16 %v1146_v8, %v1140_v4  ;;  %v1182_v8 = vld [vmem:[%s9899_s8 + $0x1c68] sm:$0xff] }
 0x425   : > { %4094 = vmatpush1.bf16.xpose.msra.mxu1 %v2315_v51  ;;  %3846 = vmatprep.subr.bf16.mxu0 %v2226_v1  ;;  %v1338_v51 = vld [vmem:[%s9899_s8 + $0x2148] sm:$0xff]  ;;  %v2237_v1 = vpack.c.bf16 %v1133_v0, %v1127_v34  ;;  %v1163_v34 = vld [vmem:[%s9899_s8 + $0x1bd0] sm:$0xff]  ;;  %v1169_v0 = vld [vmem:[%s9899_s8 + $0x1c00] sm:$0xff] }
 0x426   : > { %4095 = vmatprep.subr.bf16.mxu1 %v2322_v26  ;;  %3868 = vmatprep.mubr.bf16.mxu0 %v9452_v49  ;;  %v2333_v26 = vpack.c.bf16 %v1325_v13, %v1319_v6  ;;  %v2340_v45 = vpack.c.bf16 %v1338_v51, %v1332_v37  ;;  %v1355_v6 = vld [vmem:[%s9899_s8 + $0x21d0] sm:$0xff]  ;;  %v1361_v13 = vld [vmem:[%s9899_s8 + $0x2200] sm:$0xff]  ;;  %v1176_v4 = vld [vmem:[%s9899_s8 + $0x1c38] sm:$0xff] }
 0x427   : > { %4117 = vmatprep.mubr.bf16.mxu1 %v9452_v49  ;;  %v1158_v49 = vld [vmem:[%s9899_s8 + $0x1ba8] sm:$0xff]  ;;  %v1368_v37 = vld [vmem:[%s9899_s8 + $0x2238] sm:$0xff] }
 0x428   : > { %v1374_v51 = vld [vmem:[%s9899_s8 + $0x2268] sm:$0xff] }
 0x42c   : > { %3847 = vmatpush1.bf16.xpose.msra.mxu0 %v2225_v10  ;;  %v2243_v10 = vpack.c.bf16 %v1145_v19, %v1139_v30  ;;  %v1175_v30 = vld [vmem:[%s9899_s8 + $0x1c30] sm:$0xff]  ;;  %v1181_v19 = vld [vmem:[%s9899_s8 + $0x1c60] sm:$0xff] }
 0x42d   : > { %4096 = vmatpush1.bf16.xpose.msra.mxu1 %v2321_v42  ;;  %3848 = vmatprep.subr.bf16.mxu0 %v2232_v25  ;;  %v2339_v42 = vpack.c.bf16 %v1337_v18, %v1331_v31  ;;  %v2250_v25 = vpack.c.bf16 %v1158_v49, %v1152_v40  ;;  %v1367_v31 = vld [vmem:[%s9899_s8 + $0x2230] sm:$0xff]  ;;  %v1373_v40 = vld [vmem:[%s9899_s8 + $0x2260] sm:$0xff]  ;;  %v1188_v49 = vld [vmem:[%s9899_s8 + $0x1c98] sm:$0xff] }
 0x42e   : > { %4097 = vmatprep.subr.bf16.mxu1 %v2328_v38  ;;  %v2346_v38 = vpack.c.bf16 %v1350_v3, %v1344_v7  ;;  %v1194_v7 = vld [vmem:[%s9899_s8 + $0x1cc8] sm:$0xff] }
 0x434   : > { %3849 = vmatpush1.bf16.xpose.msra.mxu0 %v2231_v16  ;;  %v2249_v16 = vpack.c.bf16 %v1157_v22, %v1151_v43  ;;  %v2261_v22 = vpack.c.bf16 %v1181_v19, %v1175_v30 }
 0x435   : > { %4098 = vmatpush1.bf16.xpose.msra.mxu1 %v2327_v55  ;;  %3850 = vmatprep.subr.bf16.mxu0 %v2238_v61  ;;  %v2345_v55 = vpack.c.bf16 %v1349_v9, %v1343_v57  ;;  %v2256_v61 = vpack.c.bf16 %v1170_v20, %v1164_v11  ;;  %v2357_v11 = vpack.c.bf16 %v1373_v40, %v1367_v31 }
 0x436   : > { %4099 = vmatprep.subr.bf16.mxu1 %v2334_v15  ;;  %v2352_v15 = vpack.c.bf16 %v1362_v58, %v1356_v41  ;;  %v2268_v20 = vpack.c.bf16 %v1194_v7, %v1188_v49 }
 0x43c   : > { %3851 = vmatpush1.bf16.xpose.msra.mxu0 %v2237_v1  ;;  %v2255_v1 = vpack.c.bf16 %v1169_v0, %v1163_v34  ;;  %v1385_v0 = vld [vmem:[%s9899_s8 + $0x22c0] sm:$0xff] }
 0x43d   : > { %4100 = vmatpush1.bf16.xpose.msra.mxu1 %v2333_v26  ;;  %3852 = vmatprep.subr.bf16.mxu0 %v2244_v36  ;;  %v2351_v26 = vpack.c.bf16 %v1361_v13, %v1355_v6  ;;  %v2262_v36 = vpack.c.bf16 %v1182_v8, %v1176_v4  ;;  %v1200_v6 = vld [vmem:[%s9899_s8 + $0x1cf8] sm:$0xff] }
 0x43e   : > { %4101 = vmatprep.subr.bf16.mxu1 %v2340_v45  ;;  %v2358_v45 = vpack.c.bf16 %v1374_v51, %v1368_v37  ;;  %v1206_v37 = vld [vmem:[%s9899_s8 + $0x1d28] sm:$0xff]  ;;  %v1392_v51 = vld [vmem:[%s9899_s8 + $0x22f8] sm:$0xff] }
 0x43f   : > { %v2274_v7 = vpack.c.bf16 %v1206_v37, %v1200_v6  ;;  %v1410_v6 = vld [vmem:[%s9899_s8 + $0x2388] sm:$0xff] }
 0x444   : > { %3853 = vmatpush1.bf16.xpose.msra.mxu0 %v2243_v10 }
 0x445   : > { %4102 = vmatpush1.bf16.xpose.msra.mxu1 %v2339_v42  ;;  %3854 = vmatprep.subr.bf16.mxu0 %v2250_v25  ;;  %v1380_v42 = vld [vmem:[%s9899_s8 + $0x2298] sm:$0xff]  ;;  %v1386_v25 = vld [vmem:[%s9899_s8 + $0x22c8] sm:$0xff] }
 0x446   : > { %4103 = vmatprep.subr.bf16.mxu1 %v2346_v38  ;;  %v2364_v58 = vpack.c.bf16 %v1386_v25, %v1380_v42  ;;  %v1199_v42 = vld [vmem:[%s9899_s8 + $0x1cf0] sm:$0xff] }
 0x44c   : > { %3855 = vmatpush1.bf16.xpose.msra.mxu0 %v2249_v16  ;;  %v1187_v16 = vld [vmem:[%s9899_s8 + $0x1c90] sm:$0xff] }
 0x44d   : > { %4104 = vmatpush1.bf16.xpose.msra.mxu1 %v2345_v55  ;;  %3856 = vmatprep.subr.bf16.mxu0 %v2256_v61  ;;  %v1193_v55 = vld [vmem:[%s9899_s8 + $0x1cc0] sm:$0xff]  ;;  %v1379_v61 = vld [vmem:[%s9899_s8 + $0x2290] sm:$0xff] }
 0x44e   : > { %4105 = vmatprep.subr.bf16.mxu1 %v2352_v15  ;;  %v2267_v30 = vpack.c.bf16 %v1193_v55, %v1187_v16  ;;  %v2363_v40 = vpack.c.bf16 %v1385_v0, %v1379_v61  ;;  %v1404_v16 = vld [vmem:[%s9899_s8 + $0x2358] sm:$0xff] }
 0x454   : > { %3857 = vmatpush1.bf16.xpose.msra.mxu0 %v2255_v1  ;;  %v1398_v1 = vld [vmem:[%s9899_s8 + $0x2328] sm:$0xff] }
 0x455   : > { %4106 = vmatpush1.bf16.xpose.msra.mxu1 %v2351_v26  ;;  %3858 = vmatprep.subr.bf16.mxu0 %v2262_v36 }
 0x456   : > { %v3455_v18 = vpop.f32.mrb[20].mxu0  ;;  %4107 = vmatprep.subr.bf16.mxu1 %v2358_v45 }
 0x457   : > { %4753 = vst [vmem:[#allocation2 + $0x20] sm:$0xff] %v3455_v18  ;;  %v3704_v3 = vpop.f32.mrb[20].mxu1  ;;  %v3457_v10 = vpop.f32.mrb[21].mxu0 }
 0x458   : > { %4755 = vst [vmem:[#allocation2 + $0x30] sm:$0xff] %v3704_v3  ;;  %4754 = vst [vmem:[#allocation2 + $0x28] sm:$0xff] %v3457_v10  ;;  %v3706_v38 = vpop.f32.mrb[21].mxu1  ;;  %v3459_v43 = vpop.f32.mrb[22].mxu0  ;;  %v2370_v10 = vpack.c.bf16 %v1398_v1, %v1392_v51 }
 0x459   : > { %4756 = vst [vmem:[#allocation2 + $0x38] sm:$0xff] %v3706_v38  ;;  %4769 = vst [vmem:[#allocation2 + $0xa8] sm:$0xff] %v3459_v43  ;;  %v3708_v57 = vpop.f32.mrb[22].mxu1  ;;  %v3461_v9 = vpop.f32.mrb[23].mxu0  ;;  %v1205_v43 = vld [vmem:[%s9899_s8 + $0x1d20] sm:$0xff] }
 0x45a   : > { %4771 = vst [vmem:[#allocation2 + $0xb8] sm:$0xff] %v3708_v57  ;;  %4770 = vst [vmem:[#allocation2 + $0xb0] sm:$0xff] %v3461_v9  ;;  %v3710_v41 = vpop.f32.mrb[23].mxu1  ;;  %v1391_v57 = vld [vmem:[%s9899_s8 + $0x22f0] sm:$0xff]  ;;  %v1397_v9 = vld [vmem:[%s9899_s8 + $0x2320] sm:$0xff]  ;;  %v2273_v0 = vpack.c.bf16 %v1205_v43, %v1199_v42 }
 0x45b   : > { %4772 = vst [vmem:[#allocation2 + $0xc0] sm:$0xff] %v3710_v41  ;;  %v1212_v41 = vld [vmem:[%s9899_s8 + $0x1d58] sm:$0xff] }
 0x45c   : > { %3859 = vmatpush1.bf16.xpose.msra.mxu0 %v2261_v22  ;;  %v1416_v43 = vld [vmem:[%s9899_s8 + $0x23b8] sm:$0xff] }
 0x45d   : > { %4108 = vmatpush1.bf16.xpose.msra.mxu1 %v2357_v11  ;;  %3860 = vmatprep.subr.bf16.mxu0 %v2268_v20 }
 0x45e   : > { %v3465_v15 = vpop.f32.mrb[24].mxu0  ;;  %v4939_v34 = vld [vmem:[#allocation2 + $0x20] sm:$0xf0]  ;;  %4109 = vmatprep.subr.bf16.mxu1 %v2364_v58  ;;  %v1218_v58 = vld [vmem:[%s9899_s8 + $0x1d88] sm:$0xff] }
 0x45f   : > { %4785 = vst [vmem:[#allocation2 + $0x130] sm:$0xff] %v3465_v15  ;;  %v3714_v13 = vpop.f32.mrb[24].mxu1  ;;  %v3467_v4 = vpop.f32.mrb[25].mxu0  ;;  %v4973_v8 = vrot.slane %v4939_v34, 4  ;;  %v4941_v19 = vld [vmem:[#allocation2 + $0x30] sm:$0xf0]  ;;  %v2280_v1 = vpack.c.bf16 %v1218_v58, %v1212_v41 }
 0x460   : > { %4787 = vst [vmem:[#allocation2 + $0x140] sm:$0xff] %v3714_v13  ;;  %4786 = vst [vmem:[#allocation2 + $0x138] sm:$0xff] %v3467_v4  ;;  %v3716_v26 = vpop.f32.mrb[25].mxu1  ;;  %v3469_v36 = vpop.f32.mrb[26].mxu0  ;;  %v5073_v45 = vld [vmem:[#allocation2 + $0xa8] sm:$0xf] }
 0x461   : > { %4788 = vst [vmem:[#allocation2 + $0x148] sm:$0xff] %v3716_v26  ;;  %4801 = vst [vmem:[#allocation2 + $0x1b8] sm:$0xff] %v3469_v36  ;;  %v3718_v31 = vpop.f32.mrb[26].mxu1  ;;  %4994 = vrot.lane.b32.xlu0 %v4973_v8, %s13661_s7  ;;  %5111 = vrot.lane.b32.xlu1 %v5073_v45, %s13659_s24  ;;  %v3471_v18 = vpop.f32.mrb[27].mxu0  ;;  %v4975_v3 = vrot.slane %v4941_v19, 4  ;;  %v2369_v8 = vpack.c.bf16 %v1397_v9, %v1391_v57  ;;  %v2376_v26 = vpack.c.bf16 %v1410_v6, %v1404_v16  ;;  %v1422_v41 = vld [vmem:[%s9899_s8 + $0x23e8] sm:$0xff] }
 0x462   : > { %4803 = vst [vmem:[#allocation2 + $0x1c8] sm:$0xff] %v3718_v31  ;;  %v3720_v49 = vpop.f32.mrb[27].mxu1  ;;  %4802 = vst [vmem:[#allocation2 + $0x1c0] sm:$0xff] %v3471_v18  ;;  %v5075_v25 = vld [vmem:[#allocation2 + $0xb8] sm:$0xf]  ;;  %v1211_v31 = vld [vmem:[%s9899_s8 + $0x1d50] sm:$0xff]  ;;  %v2382_v6 = vpack.c.bf16 %v1422_v41, %v1416_v43 }
 0x463   : > { %4804 = vst [vmem:[#allocation2 + $0x1d0] sm:$0xff] %v3720_v49  ;;  %v4940_v38 = vld [vmem:[#allocation2 + $0x28] sm:$0xf0]  ;;  %v5074_v34 = vld [vmem:[#allocation2 + $0xb0] sm:$0xf]  ;;  %v1217_v18 = vld [vmem:[%s9899_s8 + $0x1d80] sm:$0xff] }
 0x464   : > { %3861 = vmatpush1.bf16.xpose.msra.mxu0 %v2267_v30  ;;  %v4974_v15 = vrot.slane %v4940_v38, 4  ;;  %v4942_v37 = vld [vmem:[#allocation2 + $0x38] sm:$0xf0]  ;;  %v5076_v45 = vld [vmem:[#allocation2 + $0xc0] sm:$0xf]  ;;  %v1403_v49 = vld [vmem:[%s9899_s8 + $0x2350] sm:$0xff] }
 0x465   : > { %4110 = vmatpush1.bf16.xpose.msra.mxu1 %v2363_v40  ;;  %4998 = vrot.lane.b32.xlu0 %v4975_v3, %s13661_s7  ;;  %v4976_v36 = vrot.slane %v4942_v37, 4  ;;  %v5190_v30 = vld [vmem:[#allocation2 + $0xa8] sm:$0xf0]  ;;  %v5191_v19 = vld [vmem:[#allocation2 + $0xb0] sm:$0xf0]  ;;  %v1230_v38 = vld [vmem:[%s9899_s8 + $0x1de8] sm:$0xff] }
 0x466   : > { %5115 = vrot.lane.b32.xlu1 %v5075_v25, %s13659_s24  ;;  %v3475_v22 = vpop.f32.mrb[28].mxu0  ;;  %3862 = vmatprep.subr.bf16.mxu0 %v2274_v7  ;;  %v1409_v7 = vld [vmem:[%s9899_s8 + $0x2380] sm:$0xff]  ;;  %v5224_v42 = vrot.slane %v5190_v30, 4  ;;  %v1224_v25 = vld [vmem:[%s9899_s8 + $0x1db8] sm:$0xff]  ;;  %v5225_v9 = vrot.slane %v5191_v19, 4  ;;  %v1051_v41 = vld [vmem:[%s9899_s8 + $0x1850] sm:$0xff] }
 0x467   : > { %4817 = vst [vmem:[#allocation2 + $0x240] sm:$0xff] %v3475_v22  ;;  %v3724_v11 = vpop.f32.mrb[28].mxu1  ;;  %v3477_v20 = vpop.f32.mrb[29].mxu0  ;;  %4111 = vmatprep.subr.bf16.mxu1 %v2370_v10  ;;  %v1052_v30 = vld [vmem:[%s9899_s8 + $0x1858] sm:$0xff] }
 0x468   : > { %4819 = vst [vmem:[#allocation2 + $0x250] sm:$0xff] %v3724_v11  ;;  %4818 = vst [vmem:[#allocation2 + $0x248] sm:$0xff] %v3477_v20  ;;  %v3726_v55 = vpop.f32.mrb[29].mxu1  ;;  %v3479_v61 = vpop.f32.mrb[30].mxu0  ;;  %v2279_v11 = vpack.c.bf16 %v1217_v18, %v1211_v31  ;;  %v5192_v20 = vld [vmem:[#allocation2 + $0xb8] sm:$0xf0] }
 0x469   : > { %4820 = vst [vmem:[#allocation2 + $0x258] sm:$0xff] %v3726_v55  ;;  %4833 = vst [vmem:[#allocation2 + $0x2c8] sm:$0xff] %v3479_v61  ;;  %v3728_v13 = vpop.f32.mrb[30].mxu1  ;;  %5113 = vrot.lane.b32.xlu0 %v5074_v34, %s13659_s24  ;;  %v3481_v4 = vpop.f32.mrb[31].mxu0  ;;  %v2375_v55 = vpack.c.bf16 %v1409_v7, %v1403_v49  ;;  %v5193_v61 = vld [vmem:[#allocation2 + $0xc0] sm:$0xf0]  ;;  %v2286_v34 = vpack.c.bf16 %v1230_v38, %v1224_v25 }
 0x46a   : > { %4835 = vst [vmem:[#allocation2 + $0x2d8] sm:$0xff] %v3728_v13  ;;  %v3730_v51 = vpop.f32.mrb[31].mxu1  ;;  %4996 = vrot.lane.b32.xlu1 %v4974_v15, %s13661_s7  ;;  %4834 = vst [vmem:[#allocation2 + $0x2d0] sm:$0xff] %v3481_v4  ;;  %v5227_v13 = vrot.slane %v5193_v61, 4  ;;  %v1223_v4 = vld [vmem:[%s9899_s8 + $0x1db0] sm:$0xff]  ;;  %v1238_v49 = vld [vmem:[%s9899_s8 + $0x1e28] sm:$0xff] }
 0x46b   : > { %4836 = vst [vmem:[#allocation2 + $0x2e0] sm:$0xff] %v3730_v51  ;;  %v1415_v51 = vld [vmem:[%s9899_s8 + $0x23b0] sm:$0xff]  ;;  %v5325_v18 = vld [vmem:[#allocation2 + $0x138] sm:$0xf]  ;;  %v1244_v7 = vld [vmem:[%s9899_s8 + $0x1e58] sm:$0xff] }
 0x46c   : > { %3863 = vmatpush1.bf16.xpose.msra.mxu0 %v2273_v0  ;;  %v5226_v0 = vrot.slane %v5192_v20, 4  ;;  %v1045_v20 = vld [vmem:[%s9899_s8 + $0x1820] sm:$0xff]  ;;  %v1058_v61 = vld [vmem:[%s9899_s8 + $0x1888] sm:$0xff] }
 0x46d   : > { %4112 = vmatpush1.bf16.xpose.msra.mxu1 %v2369_v8  ;;  %5117 = vrot.lane.b32.xlu0 %v5076_v45, %s13659_s24  ;;  %v1229_v8 = vld [vmem:[%s9899_s8 + $0x1de0] sm:$0xff]  ;;  %v1046_v45 = vld [vmem:[%s9899_s8 + $0x1828] sm:$0xff] }
 0x46e   : > { %5000 = vrot.lane.b32.xlu1 %v4976_v36, %s13661_s7  ;;  %v3485_v40 = vpop.f32.mrb[32].mxu0  ;;  %3864 = vmatprep.subr.bf16.mxu0 %v2280_v1  ;;  %v1421_v1 = vld [vmem:[%s9899_s8 + $0x23e0] sm:$0xff]  ;;  %v2198_v43 = vpack.c.bf16 %v1052_v30, %v1046_v45  ;;  %v5577_v45 = vld [vmem:[#allocation2 + $0x1c8] sm:$0xf]  ;;  %v5442_v30 = vld [vmem:[#allocation2 + $0x138] sm:$0xf0] }
 0x46f   : > { %4849 = vst [vmem:[#allocation2 + $0x350] sm:$0xff] %v3485_v40  ;;  %v3734_v3 = vpop.f32.mrb[32].mxu1  ;;  %v3487_v10 = vpop.f32.mrb[33].mxu0  ;;  %4113 = vmatprep.subr.bf16.mxu1 %v2376_v26  ;;  %v2285_v40 = vpack.c.bf16 %v1229_v8, %v1223_v4  ;;  %v2381_v25 = vpack.c.bf16 %v1421_v1, %v1415_v51  ;;  %v5575_v4 = vld [vmem:[#allocation2 + $0x1b8] sm:$0xf] }
 0x470   : > { %4851 = vst [vmem:[#allocation2 + $0x360] sm:$0xff] %v3734_v3  ;;  %4850 = vst [vmem:[#allocation2 + $0x358] sm:$0xff] %v3487_v10  ;;  %v3736_v22 = vpop.f32.mrb[33].mxu1  ;;  %v3489_v57 = vpop.f32.mrb[34].mxu0  ;;  %v5324_v10 = vld [vmem:[#allocation2 + $0x130] sm:$0xf] }
 0x471   : > { %4852 = vst [vmem:[#allocation2 + $0x368] sm:$0xff] %v3736_v22  ;;  %4865 = vst [vmem:[#allocation2 + $0x3d8] sm:$0xff] %v3489_v57  ;;  %v3738_v58 = vpop.f32.mrb[34].mxu1  ;;  %5245 = vrot.lane.b32.xlu0 %v5224_v42, %s13657_s12  ;;  %v3491_v16 = vpop.f32.mrb[35].mxu0  ;;  %v2294_v22 = vpack.c.bf16 %v1244_v7, %v1238_v49  ;;  %v5327_v57 = vld [vmem:[#allocation2 + $0x148] sm:$0xf] }
 0x472   : > { %4867 = vst [vmem:[#allocation2 + $0x3e8] sm:$0xff] %v3738_v58  ;;  %v3740_v15 = vpop.f32.mrb[35].mxu1  ;;  %5247 = vrot.lane.b32.xlu1 %v5225_v9, %s13657_s12  ;;  %4866 = vst [vmem:[#allocation2 + $0x3e0] sm:$0xff] %v3491_v16  ;;  %v5441_v9 = vld [vmem:[#allocation2 + $0x130] sm:$0xf0]  ;;  %v1243_v16 = vld [vmem:[%s9899_s8 + $0x1e50] sm:$0xff] }
 0x473   : > { %4868 = vst [vmem:[#allocation2 + $0x3f0] sm:$0xff] %v3740_v15  ;;  %v1237_v58 = vld [vmem:[%s9899_s8 + $0x1e20] sm:$0xff]  ;;  %v1064_v15 = vld [vmem:[%s9899_s8 + $0x18b8] sm:$0xff] }
 0x474   : > { %3865 = vmatpush1.bf16.xpose.msra.mxu0 %v2279_v11  ;;  %v5326_v11 = vld [vmem:[#allocation2 + $0x140] sm:$0xf]  ;;  %v2293_v8 = vpack.c.bf16 %v1243_v16, %v1237_v58  ;;  %v9453_v51 = vld [vmem:[#allocation8 + $0x8] ss:$24 sps:$4 sm:$0xff]   ;;  %v1076_v49 = vld [vmem:[%s9899_s8 + $0x1918] sm:$0xff] }
 0x475   : > { %4114 = vmatpush1.bf16.xpose.msra.mxu1 %v2375_v55  ;;  %5249 = vrot.lane.b32.xlu0 %v5226_v0, %s13657_s12  ;;  %v5475_v55 = vrot.slane %v5441_v9, 4  ;;  %v5443_v0 = vld [vmem:[#allocation2 + $0x140] sm:$0xf0]  ;;  %v9454_v7 = vld [vmem:[#allocation8 + $0x3c] ss:$24 sps:$4 sm:$0xff]  }
 0x476   : > { %5251 = vrot.lane.b32.xlu1 %v5227_v13, %s13657_s12  ;;  %v3495_v37 = vpop.f32.mrb[36].mxu0  ;;  %3866 = vmatprep.subr.bf16.mxu0 %v2286_v34  ;;  %v2197_v34 = vpack.c.bf16 %v1051_v41, %v1045_v20  ;;  %v1256_v13 = vld [vmem:[%s9899_s8 + $0x1eb8] sm:$0xff]  ;;  %v5477_v1 = vrot.slane %v5443_v0, 4  ;;  %v5692_v58 = vld [vmem:[#allocation2 + $0x1b8] sm:$0xf0] }
 0x477   : > { %4881 = vst [vmem:[#allocation2 + $0x460] sm:$0xff] %v3495_v37  ;;  %v3744_v26 = vpop.f32.mrb[36].mxu1  ;;  %v3497_v36 = vpop.f32.mrb[37].mxu0  ;;  %4115 = vmatprep.subr.bf16.mxu1 %v2382_v6  ;;  %v1250_v6 = vld [vmem:[%s9899_s8 + $0x1e88] sm:$0xff]  ;;  %v2204_v37 = vpack.c.bf16 %v1064_v15, %v1058_v61  ;;  %v5578_v41 = vld [vmem:[#allocation2 + $0x1d0] sm:$0xf] }
 0x478   : > { %4883 = vst [vmem:[#allocation2 + $0x470] sm:$0xff] %v3744_v26  ;;  %4882 = vst [vmem:[#allocation2 + $0x468] sm:$0xff] %v3497_v36  ;;  %v3746_v19 = vpop.f32.mrb[37].mxu1  ;;  %v3499_v31 = vpop.f32.mrb[38].mxu0  ;;  %v2300_v26 = vpack.c.bf16 %v1256_v13, %v1250_v6  ;;  %v1057_v36 = vld [vmem:[%s9899_s8 + $0x1880] sm:$0xff]  ;;  %v1075_v61 = vld [vmem:[%s9899_s8 + $0x1910] sm:$0xff] }
 0x479   : > { %4884 = vst [vmem:[#allocation2 + $0x478] sm:$0xff] %v3746_v19  ;;  %4897 = vst [vmem:[#allocation2 + $0x4e8] sm:$0xff] %v3499_v31  ;;  %v3748_v3 = vpop.f32.mrb[38].mxu1  ;;  %5364 = vrot.lane.b32.xlu0 %v5325_v18, %s13616_s26  ;;  %v3501_v42 = vpop.f32.mrb[39].mxu0  ;;  %v1063_v19 = vld [vmem:[%s9899_s8 + $0x18b0] sm:$0xff]  ;;  %v1249_v31 = vld [vmem:[%s9899_s8 + $0x1e80] sm:$0xff] }
 0x47a   : > { %4899 = vst [vmem:[#allocation2 + $0x4f8] sm:$0xff] %v3748_v3  ;;  %v3750_v38 = vpop.f32.mrb[39].mxu1  ;;  %5362 = vrot.lane.b32.xlu1 %v5324_v10, %s13616_s26  ;;  %4898 = vst [vmem:[#allocation2 + $0x4f0] sm:$0xff] %v3501_v42  ;;  %v1255_v18 = vld [vmem:[%s9899_s8 + $0x1eb0] sm:$0xff]  ;;  %v5476_v3 = vrot.slane %v5442_v30, 4  ;;  %v2203_v42 = vpack.c.bf16 %v1063_v19, %v1057_v36  ;;  %v1261_v15 = vld [vmem:[%s9899_s8 + $0x1ee0] sm:$0xff] }
 0x47b   : > { %4900 = vst [vmem:[#allocation2 + $0x500] sm:$0xff] %v3750_v38  ;;  %v5576_v10 = vld [vmem:[#allocation2 + $0x1c0] sm:$0xf]  ;;  %v1268_v38 = vld [vmem:[%s9899_s8 + $0x1f18] sm:$0xff]  ;;  %v5693_v16 = vld [vmem:[#allocation2 + $0x1c0] sm:$0xf0] }
 0x47c   : > { %3867 = vmatpush1.bf16.xpose.msra.mxu0 %v2285_v40  ;;  %v1070_v40 = vld [vmem:[%s9899_s8 + $0x18e8] sm:$0xff]  ;;  %v5726_v0 = vrot.slane %v5692_v58, 4  ;;  %v1088_v13 = vld [vmem:[%s9899_s8 + $0x1978] sm:$0xff] }
 0x47d   : > { %4116 = vmatpush1.bf16.xpose.msra.mxu1 %v2381_v25  ;;  %5368 = vrot.lane.b32.xlu0 %v5327_v57, %s13616_s26  ;;  %v1262_v25 = vld [vmem:[%s9899_s8 + $0x1ee8] sm:$0xff]  ;;  %v2210_v57 = vpack.c.bf16 %v1076_v49, %v1070_v40  ;;  %v1081_v49 = vld [vmem:[%s9899_s8 + $0x1940] sm:$0xff] }
 0x47e   : > { %5366 = vrot.lane.b32.xlu1 %v5326_v11, %s13616_s26  ;;  %3919 = vmatprep.subr.bf16.mxu0 %v2198_v43  ;;  %v2299_v43 = vpack.c.bf16 %v1255_v18, %v1249_v31  ;;  %v2306_v9 = vpack.c.bf16 %v1268_v38, %v1262_v25  ;;  %v9455_v11 = vld [vmem:[#allocation8 + $0x38] ss:$24 sps:$4 sm:$0xff]   ;;  %v1082_v6 = vld [vmem:[%s9899_s8 + $0x1948] sm:$0xff]  ;;  %v9458_v38 = vld [vmem:[#allocation8 + $0x9c] ss:$24 sps:$4 sm:$0xff]   ;;  %s13769_s26 = smov 113  }
 0x47f   : > { %4168 = vmatprep.subr.bf16.mxu1 %v2294_v22  ;;  %v5444_v22 = vld [vmem:[#allocation2 + $0x148] sm:$0xf0]  ;;  %v2216_v30 = vpack.c.bf16 %v1088_v13, %v1082_v6  ;;  %v9457_v18 = vld [vmem:[#allocation8 + $0x68] ss:$24 sps:$4 sm:$0xff]   ;;  %v1291_v13 = vld [vmem:[%s9899_s8 + $0x1fd0] sm:$0xff] }
 0x480   : > { %v5478_v20 = vrot.slane %v5444_v22, 4  ;;  %v1100_v25 = vld [vmem:[%s9899_s8 + $0x19d8] sm:$0xff]  ;;  %v1285_v6 = vld [vmem:[%s9899_s8 + $0x1fa0] sm:$0xff] }
 0x481   : > { %5496 = vrot.lane.b32.xlu0 %v5475_v55, %s13614_s30  ;;  %v1069_v55 = vld [vmem:[%s9899_s8 + $0x18e0] sm:$0xff] }
 0x482   : > { %5613 = vrot.lane.b32.xlu1 %v5575_v4, %s13612_s10  ;;  %v9456_v4 = vld [vmem:[#allocation8 + $0x6c] ss:$24 sps:$4 sm:$0xff]  }
 0x483   : > { %3869 = vmatmul.mubr.bf16.vlgmr.msra.gmra.mrb[40].mxu0 %v9453_v51 }
 0x484   : > { %3920 = vmatpush1.bf16.xpose.msra.mxu0 %v2197_v34  ;;  %4118 = vmatmul.mubr.bf16.vlgmr.msra.gmra.mrb[40].mxu1 %v9453_v51  ;;  %v1267_v34 = vld [vmem:[%s9899_s8 + $0x1f10] sm:$0xff]  ;;  %v5694_v51 = vld [vmem:[#allocation2 + $0x1c8] sm:$0xf0] }
 0x485   : > { %4169 = vmatpush1.bf16.xpose.msra.mxu1 %v2293_v8  ;;  %5500 = vrot.lane.b32.xlu0 %v5477_v1, %s13614_s30  ;;  %v5727_v8 = vrot.slane %v5693_v16, 4  ;;  %v1274_v1 = vld [vmem:[%s9899_s8 + $0x1f48] sm:$0xff]  ;;  %v2305_v36 = vpack.c.bf16 %v1267_v34, %v1261_v15  ;;  %v5728_v19 = vrot.slane %v5694_v51, 4  ;;  %v9459_v16 = vld [vmem:[#allocation8 + $0x98] ss:$24 sps:$4 sm:$0xff]   ;;  %v1093_v34 = vld [vmem:[%s9899_s8 + $0x19a0] sm:$0xff] }
 0x486   : > { %5617 = vrot.lane.b32.xlu1 %v5577_v45, %s13612_s10  ;;  %3921 = vmatprep.subr.bf16.mxu0 %v2204_v37  ;;  %v2209_v37 = vpack.c.bf16 %v1075_v61, %v1069_v55  ;;  %v5695_v45 = vld [vmem:[#allocation2 + $0x1d0] sm:$0xf0]  ;;  %v5829_v55 = vld [vmem:[#allocation2 + $0x258] sm:$0xf]  ;;  %v5943_v61 = vld [vmem:[#allocation2 + $0x240] sm:$0xf0] }
 0x487   : > { %4170 = vmatprep.subr.bf16.mxu1 %v2300_v26  ;;  %3878 = vmatprep.mubr.bf16.mxu0 %v9454_v7  ;;  %v1280_v26 = vld [vmem:[%s9899_s8 + $0x1f78] sm:$0xff]  ;;  %v5729_v40 = vrot.slane %v5695_v45, 4  ;;  %v9460_v51 = vld [vmem:[#allocation8 + $0xcc] ss:$24 sps:$4 sm:$0xff]  }
 0x488   : > { %4127 = vmatprep.mubr.bf16.mxu1 %v9454_v7  ;;  %v2312_v31 = vpack.c.bf16 %v1280_v26, %v1274_v1  ;;  %v1087_v7 = vld [vmem:[%s9899_s8 + $0x1970] sm:$0xff]  ;;  %v5828_v15 = vld [vmem:[#allocation2 + $0x250] sm:$0xf]  ;;  %v5945_v26 = vld [vmem:[#allocation2 + $0x250] sm:$0xf0] }
 0x489   : > { %5615 = vrot.lane.b32.xlu0 %v5576_v10, %s13612_s10  ;;  %v1279_v10 = vld [vmem:[%s9899_s8 + $0x1f70] sm:$0xff]  ;;  %v2215_v22 = vpack.c.bf16 %v1087_v7, %v1081_v49  ;;  %v1304_v45 = vld [vmem:[%s9899_s8 + $0x2038] sm:$0xff]  ;;  %v9461_v49 = vld [vmem:[#allocation8 + $0xc8] ss:$24 sps:$4 sm:$0xff]  }
 0x48a   : > { %5498 = vrot.lane.b32.xlu1 %v5476_v3, %s13614_s30  ;;  %v1273_v3 = vld [vmem:[%s9899_s8 + $0x1f40] sm:$0xff] }
 0x48b   : > { %3879 = vmatmul.mubr.bf16.gmra.mrb[44].mxu0 %v9455_v11  ;;  %v1105_v7 = vld [vmem:[%s9899_s8 + $0x1a00] sm:$0xff] }
 0x48c   : > { %3922 = vmatpush1.bf16.xpose.msra.mxu0 %v2203_v42  ;;  %4128 = vmatmul.mubr.bf16.gmra.mrb[44].mxu1 %v9455_v11  ;;  %v1094_v42 = vld [vmem:[%s9899_s8 + $0x19a8] sm:$0xff] }
 0x48d   : > { %4171 = vmatpush1.bf16.xpose.msra.mxu1 %v2299_v43  ;;  %5619 = vrot.lane.b32.xlu0 %v5578_v41, %s13612_s10  ;;  %v5827_v43 = vld [vmem:[#allocation2 + $0x248] sm:$0xf]  ;;  %v5826_v11 = vld [vmem:[#allocation2 + $0x240] sm:$0xf]  ;;  %v2222_v41 = vpack.c.bf16 %v1100_v25, %v1094_v42  ;;  %v1297_v25 = vld [vmem:[%s9899_s8 + $0x2000] sm:$0xff]  ;;  %s13766_s10 = smov 117  }
 0x48e   : > { %5502 = vrot.lane.b32.xlu1 %v5478_v20, %s13614_s30  ;;  %3923 = vmatprep.subr.bf16.mxu0 %v2210_v57  ;;  %v1286_v57 = vld [vmem:[%s9899_s8 + $0x1fa8] sm:$0xff]  ;;  %v2311_v20 = vpack.c.bf16 %v1279_v10, %v1273_v3  ;;  %v6079_v3 = vld [vmem:[#allocation2 + $0x2d8] sm:$0xf]  ;;  %v5944_v10 = vld [vmem:[#allocation2 + $0x248] sm:$0xf0]  ;;  %s13767_s30 = smov 115  }
 0x48f   : > { %4172 = vmatprep.subr.bf16.mxu1 %v2306_v9  ;;  %3888 = vmatprep.mubr.bf16.mxu0 %v9456_v4  ;;  %v1292_v9 = vld [vmem:[%s9899_s8 + $0x1fd8] sm:$0xff]  ;;  %v1111_v42 = vld [vmem:[%s9899_s8 + $0x1a30] sm:$0xff] }
 0x490   : > { %4137 = vmatprep.mubr.bf16.mxu1 %v9456_v4  ;;  %v2318_v58 = vpack.c.bf16 %v1292_v9, %v1286_v57  ;;  %v5977_v4 = vrot.slane %v5943_v61, 4  ;;  %v9462_v57 = vld [vmem:[#allocation8 + $0x14] ss:$24 sps:$4 sm:$0xff]   ;;  %v5978_v9 = vrot.slane %v5944_v10, 4 }
 0x491   : > { %5747 = vrot.lane.b32.xlu0 %v5726_v0, %s13608_s11  ;;  %v1099_v0 = vld [vmem:[%s9899_s8 + $0x19d0] sm:$0xff] }
 0x492   : > { %5749 = vrot.lane.b32.xlu1 %v5727_v8, %s13608_s11  ;;  %v1106_v8 = vld [vmem:[%s9899_s8 + $0x1a08] sm:$0xff]  ;;  %v2221_v1 = vpack.c.bf16 %v1099_v0, %v1093_v34 }
 0x493   : > { %3889 = vmatmul.mubr.bf16.gmra.mrb[48].mxu0 %v9457_v18  ;;  %v6080_v0 = vld [vmem:[#allocation2 + $0x2e0] sm:$0xf] }
 0x494   : > { %3924 = vmatpush1.bf16.xpose.msra.mxu0 %v2209_v37  ;;  %4138 = vmatmul.mubr.bf16.gmra.mrb[48].mxu1 %v9457_v18  ;;  %v1112_v37 = vld [vmem:[%s9899_s8 + $0x1a38] sm:$0xff]  ;;  %v5979_v18 = vrot.slane %v5945_v26, 4  ;;  %v1130_v26 = vld [vmem:[%s9899_s8 + $0x1ac8] sm:$0xff] }
 0x495   : > { %4173 = vmatpush1.bf16.xpose.msra.mxu1 %v2305_v36  ;;  %5751 = vrot.lane.b32.xlu0 %v5728_v19, %s13608_s11  ;;  %v1298_v36 = vld [vmem:[%s9899_s8 + $0x2008] sm:$0xff]  ;;  %v2317_v19 = vpack.c.bf16 %v1291_v13, %v1285_v6  ;;  %v6194_v6 = vld [vmem:[#allocation2 + $0x2c8] sm:$0xf0]  ;;  %v6195_v13 = vld [vmem:[#allocation2 + $0x2d0] sm:$0xf0] }
 0x496   : > { %5753 = vrot.lane.b32.xlu1 %v5729_v40, %s13608_s11  ;;  %3925 = vmatprep.subr.bf16.mxu0 %v2216_v30  ;;  %s13764_s11 = smov 119   ;;  %v6077_v30 = vld [vmem:[#allocation2 + $0x2c8] sm:$0xf]  ;;  %v2324_v40 = vpack.c.bf16 %v1304_v45, %v1298_v36  ;;  %v1136_v36 = vld [vmem:[%s9899_s8 + $0x1af8] sm:$0xff]  ;;  %v6229_v45 = vrot.slane %v6195_v13, 4  ;;  %v1141_v13 = vld [vmem:[%s9899_s8 + $0x1b20] sm:$0xff] }
 0x497   : > { %4174 = vmatprep.subr.bf16.mxu1 %v2312_v31  ;;  %3898 = vmatprep.mubr.bf16.mxu0 %v9458_v38  ;;  %v2228_v31 = vpack.c.bf16 %v1112_v37, %v1106_v8  ;;  %v1123_v8 = vld [vmem:[%s9899_s8 + $0x1a90] sm:$0xff]  ;;  %v1309_v37 = vld [vmem:[%s9899_s8 + $0x2060] sm:$0xff] }
 0x498   : > { %4147 = vmatprep.mubr.bf16.mxu1 %v9458_v38  ;;  %v1303_v38 = vld [vmem:[%s9899_s8 + $0x2030] sm:$0xff] }
 0x499   : > { %5866 = vrot.lane.b32.xlu0 %v5827_v43, %s13610_s28  ;;  %v1118_v43 = vld [vmem:[%s9899_s8 + $0x1a68] sm:$0xff] }
 0x49a   : > { %5864 = vrot.lane.b32.xlu1 %v5826_v11, %s13610_s28  ;;  %v6078_v11 = vld [vmem:[#allocation2 + $0x2d0] sm:$0xf] }
 0x49b   : > { %3899 = vmatmul.mubr.bf16.gmra.mrb[52].mxu0 %v9459_v16 }
 0x49c   : > { %3926 = vmatpush1.bf16.xpose.msra.mxu0 %v2215_v22  ;;  %4148 = vmatmul.mubr.bf16.gmra.mrb[52].mxu1 %v9459_v16  ;;  %v1124_v22 = vld [vmem:[%s9899_s8 + $0x1a98] sm:$0xff]  ;;  %v2323_v16 = vpack.c.bf16 %v1303_v38, %v1297_v25  ;;  %v1129_v25 = vld [vmem:[%s9899_s8 + $0x1ac0] sm:$0xff]  ;;  %v1135_v38 = vld [vmem:[%s9899_s8 + $0x1af0] sm:$0xff] }
 0x49d   : > { %4175 = vmatpush1.bf16.xpose.msra.mxu1 %v2311_v20  ;;  %5870 = vrot.lane.b32.xlu0 %v5829_v55, %s13610_s28  ;;  %v2227_v20 = vpack.c.bf16 %v1111_v42, %v1105_v7  ;;  %v5946_v55 = vld [vmem:[#allocation2 + $0x258] sm:$0xf0]  ;;  %v2234_v61 = vpack.c.bf16 %v1124_v22, %v1118_v43  ;;  %v2240_v7 = vpack.c.bf16 %v1136_v36, %v1130_v26  ;;  %v1321_v43 = vld [vmem:[%s9899_s8 + $0x20c0] sm:$0xff]  ;;  %v1327_v22 = vld [vmem:[%s9899_s8 + $0x20f0] sm:$0xff] }
 0x49e   : > { %5868 = vrot.lane.b32.xlu1 %v5828_v15, %s13610_s28  ;;  %3927 = vmatprep.subr.bf16.mxu0 %v2222_v41  ;;  %s13765_s28 = smov 118   ;;  %v1310_v41 = vld [vmem:[%s9899_s8 + $0x2068] sm:$0xff]  ;;  %v5980_v34 = vrot.slane %v5946_v55, 4  ;;  %v2335_v55 = vpack.c.bf16 %v1327_v22, %v1321_v43  ;;  %v1160_v26 = vld [vmem:[%s9899_s8 + $0x1bb8] sm:$0xff]  ;;  %v1351_v43 = vld [vmem:[%s9899_s8 + $0x21b0] sm:$0xff] }
 0x49f   : > { %4176 = vmatprep.subr.bf16.mxu1 %v2318_v58  ;;  %3908 = vmatprep.mubr.bf16.mxu0 %v9460_v51  ;;  %v1316_v58 = vld [vmem:[%s9899_s8 + $0x2098] sm:$0xff]  ;;  %v1166_v22 = vld [vmem:[%s9899_s8 + $0x1be8] sm:$0xff] }
 0x4a0   : > { %4157 = vmatprep.mubr.bf16.mxu1 %v9460_v51  ;;  %v2330_v15 = vpack.c.bf16 %v1316_v58, %v1310_v41  ;;  %v1315_v51 = vld [vmem:[%s9899_s8 + $0x2090] sm:$0xff]  ;;  %v1334_v41 = vld [vmem:[%s9899_s8 + $0x2128] sm:$0xff]  ;;  %v1340_v58 = vld [vmem:[%s9899_s8 + $0x2158] sm:$0xff] }
 0x4a1   : > { %5998 = vrot.lane.b32.xlu0 %v5977_v4, %s13764_s11  ;;  %v1117_v4 = vld [vmem:[%s9899_s8 + $0x1a60] sm:$0xff] }
 0x4a2   : > { %6115 = vrot.lane.b32.xlu1 %v6077_v30, %s13765_s28  ;;  %v2233_v30 = vpack.c.bf16 %v1123_v8, %v1117_v4  ;;  %v1147_v4 = vld [vmem:[%s9899_s8 + $0x1b50] sm:$0xff]  ;;  %v1333_v8 = vld [vmem:[%s9899_s8 + $0x2120] sm:$0xff] }
 0x4a3   : > { %3909 = vmatmul.mubr.bf16.gmra.mrb[56].mxu0 %v9461_v49  ;;  %v2245_v36 = vpack.c.bf16 %v1147_v4, %v1141_v13  ;;  %v6697_v13 = vld [vmem:[#allocation2 + $0x3e0] sm:$0xf0]  ;;  %v1165_v4 = vld [vmem:[%s9899_s8 + $0x1be0] sm:$0xff] }
 0x4a4   : > { %3928 = vmatpush1.bf16.xpose.msra.mxu0 %v2221_v1  ;;  %4158 = vmatmul.mubr.bf16.gmra.mrb[56].mxu1 %v9461_v49  ;;  %v6228_v1 = vrot.slane %v6194_v6, 4  ;;  %v6197_v49 = vld [vmem:[#allocation2 + $0x2e0] sm:$0xf0]  ;;  %v6330_v6 = vld [vmem:[#allocation2 + $0x360] sm:$0xf] }
 0x4a5   : > { %4177 = vmatpush1.bf16.xpose.msra.mxu1 %v2317_v19  ;;  %6002 = vrot.lane.b32.xlu0 %v5979_v18, %s13764_s11  ;;  %v6196_v19 = vld [vmem:[#allocation2 + $0x2d8] sm:$0xf0]  ;;  %v1328_v18 = vld [vmem:[%s9899_s8 + $0x20f8] sm:$0xff]  ;;  %v6231_v42 = vrot.slane %v6197_v49, 4 }
 0x4a6   : > { %6119 = vrot.lane.b32.xlu1 %v6079_v3, %s13765_s28  ;;  %3929 = vmatprep.subr.bf16.mxu0 %v2228_v31  ;;  %v1322_v31 = vld [vmem:[%s9899_s8 + $0x20c8] sm:$0xff]  ;;  %v6230_v3 = vrot.slane %v6196_v19, 4  ;;  %v1352_v19 = vld [vmem:[%s9899_s8 + $0x21b8] sm:$0xff] }
 0x4a7   : > { %4178 = vmatprep.subr.bf16.mxu1 %v2324_v40  ;;  %3951 = vmatprep.mubr.bf16.mxu0 %v9462_v57  ;;  %v2329_v40 = vpack.c.bf16 %v1315_v51, %v1309_v37  ;;  %v2336_v10 = vpack.c.bf16 %v1328_v18, %v1322_v31  ;;  %v1339_v37 = vld [vmem:[%s9899_s8 + $0x2150] sm:$0xff]  ;;  %v6579_v31 = vld [vmem:[#allocation2 + $0x3d8] sm:$0xf] }
 0x4a8   : > { %4200 = vmatprep.mubr.bf16.mxu1 %v9462_v57  ;;  %v1142_v57 = vld [vmem:[%s9899_s8 + $0x1b28] sm:$0xff]  ;;  %v2341_v18 = vpack.c.bf16 %v1339_v37, %v1333_v8  ;;  %v1171_v8 = vld [vmem:[%s9899_s8 + $0x1c10] sm:$0xff]  ;;  %v1357_v37 = vld [vmem:[%s9899_s8 + $0x21e0] sm:$0xff] }
 0x4a9   : > { %6117 = vrot.lane.b32.xlu0 %v6078_v11, %s13765_s28  ;;  %v6329_v11 = vld [vmem:[#allocation2 + $0x358] sm:$0xf] }
 0x4aa   : > { %6000 = vrot.lane.b32.xlu1 %v5978_v9, %s13764_s11  ;;  %v1148_v9 = vld [vmem:[%s9899_s8 + $0x1b58] sm:$0xff] }
 0x4ac   : > { %3930 = vmatpush1.bf16.xpose.msra.mxu0 %v2227_v20  ;;  %v2239_v20 = vpack.c.bf16 %v1135_v38, %v1129_v25  ;;  %v1159_v25 = vld [vmem:[%s9899_s8 + $0x1bb0] sm:$0xff]  ;;  %v1345_v38 = vld [vmem:[%s9899_s8 + $0x2180] sm:$0xff] }
 0x4ad   : > { %4179 = vmatpush1.bf16.xpose.msra.mxu1 %v2323_v16  ;;  %6121 = vrot.lane.b32.xlu0 %v6080_v0, %s13765_s28  ;;  %v6328_v16 = vld [vmem:[#allocation2 + $0x350] sm:$0xf]  ;;  %v6445_v0 = vld [vmem:[#allocation2 + $0x350] sm:$0xf0] }
 0x4ae   : > { %6004 = vrot.lane.b32.xlu1 %v5980_v34, %s13764_s11  ;;  %3931 = vmatprep.subr.bf16.mxu0 %v2234_v61  ;;  %v2246_v61 = vpack.c.bf16 %v1148_v9, %v1142_v57  ;;  %v6331_v34 = vld [vmem:[#allocation2 + $0x368] sm:$0xf]  ;;  %v6479_v51 = vrot.slane %v6445_v0, 4  ;;  %v1172_v57 = vld [vmem:[%s9899_s8 + $0x1c18] sm:$0xff] }
 0x4af   : > { %4180 = vmatprep.subr.bf16.mxu1 %v2330_v15  ;;  %v2342_v15 = vpack.c.bf16 %v1340_v58, %v1334_v41  ;;  %v1358_v41 = vld [vmem:[%s9899_s8 + $0x21e8] sm:$0xff]  ;;  %v1364_v58 = vld [vmem:[%s9899_s8 + $0x2218] sm:$0xff] }
 0x4b0   : > { %v6582_v0 = vld [vmem:[#allocation2 + $0x3f0] sm:$0xf] }
 0x4b1   : > { %6249 = vrot.lane.b32.xlu0 %v6228_v1, %s13766_s10  ;;  %v1154_v1 = vld [vmem:[%s9899_s8 + $0x1b88] sm:$0xff] }
 0x4b2   : > { %6251 = vrot.lane.b32.xlu1 %v6229_v45, %s13766_s10  ;;  %v6447_v45 = vld [vmem:[#allocation2 + $0x360] sm:$0xf0] }
 0x4b3   : > { %v6481_v49 = vrot.slane %v6447_v45, 4  ;;  %v1184_v45 = vld [vmem:[%s9899_s8 + $0x1c78] sm:$0xff] }
 0x4b4   : > { %3932 = vmatpush1.bf16.xpose.msra.mxu0 %v2233_v30  ;;  %v1346_v30 = vld [vmem:[%s9899_s8 + $0x2188] sm:$0xff] }
 0x4b5   : > { %4181 = vmatpush1.bf16.xpose.msra.mxu1 %v2329_v40  ;;  %6253 = vrot.lane.b32.xlu0 %v6230_v3, %s13766_s10  ;;  %v2252_v40 = vpack.c.bf16 %v1160_v26, %v1154_v1  ;;  %v1153_v3 = vld [vmem:[%s9899_s8 + $0x1b80] sm:$0xff]  ;;  %v11461_v1 = vpop.permute.xlu0 %7251 }
 0x4b6   : > { %6255 = vrot.lane.b32.xlu1 %v6231_v42, %s13766_s10  ;;  %3933 = vmatprep.subr.bf16.mxu0 %v2240_v7  ;;  %v2348_v7 = vpack.c.bf16 %v1352_v19, %v1346_v30  ;;  %v6446_v42 = vld [vmem:[#allocation2 + $0x358] sm:$0xf0]  ;;  %13768 = vst [vmem:[#allocation54_spill] sm:$0xff] %v11461_v1  ;;  %v6731_v30 = vrot.slane %v6697_v13, 4  ;;  %v2257_v19 = vpack.c.bf16 %v1171_v8, %v1165_v4 }
 0x4b7   : > { %4182 = vmatprep.subr.bf16.mxu1 %v2336_v10  ;;  %v6581_v10 = vld [vmem:[#allocation2 + $0x3e8] sm:$0xf]  ;;  %v6480_v9 = vrot.slane %v6446_v42, 4 }
 0x4b9   : > { %6368 = vrot.lane.b32.xlu0 %v6329_v11, %s13732_s27  ;;  %v6580_v11 = vld [vmem:[#allocation2 + $0x3e0] sm:$0xf] }
 0x4ba   : > { %6366 = vrot.lane.b32.xlu1 %v6328_v16, %s13732_s27  ;;  %v2347_v16 = vpack.c.bf16 %v1351_v43, %v1345_v38 }
 0x4bc   : > { %3934 = vmatpush1.bf16.xpose.msra.mxu0 %v2239_v20  ;;  %v2251_v20 = vpack.c.bf16 %v1159_v25, %v1153_v3 }
 0x4bd   : > { %4183 = vmatpush1.bf16.xpose.msra.mxu1 %v2335_v55  ;;  %6372 = vrot.lane.b32.xlu0 %v6331_v34, %s13732_s27  ;;  %v6448_v55 = vld [vmem:[#allocation2 + $0x368] sm:$0xf0] }
 0x4be   : > { %6370 = vrot.lane.b32.xlu1 %v6330_v6, %s13732_s27  ;;  %3935 = vmatprep.subr.bf16.mxu0 %v2246_v61  ;;  %v2258_v61 = vpack.c.bf16 %v1172_v57, %v1166_v22  ;;  %v6482_v34 = vrot.slane %v6448_v55, 4  ;;  %v6696_v6 = vld [vmem:[#allocation2 + $0x3d8] sm:$0xf0]  ;;  %v1177_v22 = vld [vmem:[%s9899_s8 + $0x1c40] sm:$0xff]  ;;  %v1183_v57 = vld [vmem:[%s9899_s8 + $0x1c70] sm:$0xff] }
 0x4bf   : > { %4184 = vmatprep.subr.bf16.mxu1 %v2342_v15  ;;  %v2354_v15 = vpack.c.bf16 %v1364_v58, %v1358_v41  ;;  %v6730_v26 = vrot.slane %v6696_v6, 4  ;;  %v1190_v41 = vld [vmem:[%s9899_s8 + $0x1ca8] sm:$0xff]  ;;  %v1196_v58 = vld [vmem:[%s9899_s8 + $0x1cd8] sm:$0xff]  ;;  %v6831_v55 = vld [vmem:[#allocation2 + $0x468] sm:$0xf] }
 0x4c0   : > { %v2270_v13 = vpack.c.bf16 %v1196_v58, %v1190_v41  ;;  %v6950_v41 = vld [vmem:[#allocation2 + $0x478] sm:$0xf0] }
 0x4c1   : > { %6500 = vrot.lane.b32.xlu0 %v6479_v51, %s13767_s30  ;;  %v1363_v51 = vld [vmem:[%s9899_s8 + $0x2210] sm:$0xff] }
 0x4c2   : > { %6617 = vrot.lane.b32.xlu1 %v6579_v31, %s13736_s6  ;;  %v6698_v31 = vld [vmem:[#allocation2 + $0x3e8] sm:$0xf0] }
 0x4c3   : > { %v6732_v25 = vrot.slane %v6698_v31, 4  ;;  %v1381_v31 = vld [vmem:[%s9899_s8 + $0x22a0] sm:$0xff] }
 0x4c4   : > { %3936 = vmatpush1.bf16.xpose.msra.mxu0 %v2245_v36  ;;  %v1178_v36 = vld [vmem:[%s9899_s8 + $0x1c48] sm:$0xff] }
 0x4c5   : > { %4185 = vmatpush1.bf16.xpose.msra.mxu1 %v2341_v18  ;;  %6504 = vrot.lane.b32.xlu0 %v6481_v49, %s13767_s30  ;;  %v1370_v18 = vld [vmem:[%s9899_s8 + $0x2248] sm:$0xff]  ;;  %v2353_v49 = vpack.c.bf16 %v1363_v51, %v1357_v37  ;;  %v2264_v3 = vpack.c.bf16 %v1184_v45, %v1178_v36  ;;  %v6833_v51 = vld [vmem:[#allocation2 + $0x478] sm:$0xf]  ;;  %v6832_v45 = vld [vmem:[#allocation2 + $0x470] sm:$0xf] }
 0x4c6   : > { %6621 = vrot.lane.b32.xlu1 %v6581_v10, %s13736_s6  ;;  %3937 = vmatprep.subr.bf16.mxu0 %v2252_v40  ;;  %v1376_v40 = vld [vmem:[%s9899_s8 + $0x2278] sm:$0xff]  ;;  %v1189_v36 = vld [vmem:[%s9899_s8 + $0x1ca0] sm:$0xff] }
 0x4c7   : > { %4186 = vmatprep.subr.bf16.mxu1 %v2348_v7  ;;  %v6699_v7 = vld [vmem:[#allocation2 + $0x3f0] sm:$0xf0]  ;;  %v2360_v38 = vpack.c.bf16 %v1376_v40, %v1370_v18  ;;  %v1387_v18 = vld [vmem:[%s9899_s8 + $0x22d0] sm:$0xff] }
 0x4c8   : > { %v6733_v43 = vrot.slane %v6699_v7, 4  ;;  %v1202_v7 = vld [vmem:[%s9899_s8 + $0x1d08] sm:$0xff] }
 0x4c9   : > { %6619 = vrot.lane.b32.xlu0 %v6580_v11, %s13736_s6  ;;  %v1375_v11 = vld [vmem:[%s9899_s8 + $0x2270] sm:$0xff] }
 0x4ca   : > { %6502 = vrot.lane.b32.xlu1 %v6480_v9, %s13767_s30  ;;  %v1369_v9 = vld [vmem:[%s9899_s8 + $0x2240] sm:$0xff] }
 0x4cb   : > { %v2359_v6 = vpack.c.bf16 %v1375_v11, %v1369_v9  ;;  %v1400_v9 = vld [vmem:[%s9899_s8 + $0x2338] sm:$0xff]  ;;  %v2365_v11 = vpack.c.bf16 %v1387_v18, %v1381_v31  ;;  %v1406_v18 = vld [vmem:[%s9899_s8 + $0x2368] sm:$0xff] }
 0x4cc   : > { %3938 = vmatpush1.bf16.xpose.msra.mxu0 %v2251_v20 }
 0x4cd   : > { %4187 = vmatpush1.bf16.xpose.msra.mxu1 %v2347_v16  ;;  %6623 = vrot.lane.b32.xlu0 %v6582_v0, %s13736_s6  ;;  %v6830_v0 = vld [vmem:[#allocation2 + $0x460] sm:$0xf] }
 0x4ce   : > { %6506 = vrot.lane.b32.xlu1 %v6482_v34, %s13767_s30  ;;  %3939 = vmatprep.subr.bf16.mxu0 %v2258_v61  ;;  %v2263_v61 = vpack.c.bf16 %v1183_v57, %v1177_v22  ;;  %v1388_v34 = vld [vmem:[%s9899_s8 + $0x22d8] sm:$0xff]  ;;  %v6949_v22 = vld [vmem:[#allocation2 + $0x470] sm:$0xf0]  ;;  %v1394_v57 = vld [vmem:[%s9899_s8 + $0x2308] sm:$0xff] }
 0x4cf   : > { %4188 = vmatprep.subr.bf16.mxu1 %v2354_v15  ;;  %v1382_v15 = vld [vmem:[%s9899_s8 + $0x22a8] sm:$0xff] }
 0x4d0   : > { %v2366_v8 = vpack.c.bf16 %v1388_v34, %v1382_v15  ;;  %v2372_v15 = vpack.c.bf16 %v1400_v9, %v1394_v57  ;;  %v7083_v9 = vld [vmem:[#allocation2 + $0x4f8] sm:$0xf] }
 0x4d1   : > { %6751 = vrot.lane.b32.xlu0 %v6730_v26, %s13769_s26  ;;  %v6947_v26 = vld [vmem:[#allocation2 + $0x460] sm:$0xf0] }
 0x4d2   : > { %6753 = vrot.lane.b32.xlu1 %v6731_v30, %s13769_s26  ;;  %v6948_v30 = vld [vmem:[#allocation2 + $0x468] sm:$0xf0] }
 0x4d3   : > { %v11469_v10 = vpop.permute.xlu0 %4994  ;;  %v11471_v42 = vpop.permute.xlu1 %5111 }
 0x4d4   : > { %3940 = vmatpush1.bf16.xpose.msra.mxu0 %v2257_v19  ;;  %v1195_v19 = vld [vmem:[%s9899_s8 + $0x1cd0] sm:$0xff] }
 0x4d5   : > { %4189 = vmatpush1.bf16.xpose.msra.mxu1 %v2353_v49  ;;  %6755 = vrot.lane.b32.xlu0 %v6732_v25, %s13769_s26  ;;  %v6981_v49 = vrot.slane %v6947_v26, 4 }
 0x4d6   : > { %6757 = vrot.lane.b32.xlu1 %v6733_v43, %s13769_s26  ;;  %3941 = vmatprep.subr.bf16.mxu0 %v2264_v3  ;;  %v1208_v3 = vld [vmem:[%s9899_s8 + $0x1d38] sm:$0xff]  ;;  %v2269_v43 = vpack.c.bf16 %v1195_v19, %v1189_v36  ;;  %v1214_v36 = vld [vmem:[%s9899_s8 + $0x1d68] sm:$0xff]  ;;  %v7081_v19 = vld [vmem:[#allocation2 + $0x4e8] sm:$0xf] }
 0x4d7   : > { %v11479_v20 = vpop.permute.xlu0 %4998  ;;  %4190 = vmatprep.subr.bf16.mxu1 %v2360_v38  ;;  %v6982_v38 = vrot.slane %v6948_v30, 4  ;;  %v2276_v58 = vpack.c.bf16 %v1208_v3, %v1202_v7  ;;  %v7082_v7 = vld [vmem:[#allocation2 + $0x4f0] sm:$0xf] }
 0x4d8   : > { %v11483_v16 = vpop.permute.xlu1 %5115 }
 0x4d9   : > { %6870 = vrot.lane.b32.xlu0 %v6831_v55, %s13742_s16 }
 0x4da   : > { %6868 = vrot.lane.b32.xlu1 %v6830_v0, %s13742_s16  ;;  %v6984_v0 = vrot.slane %v6950_v41, 4  ;;  %v7199_v41 = vld [vmem:[#allocation2 + $0x4f0] sm:$0xf0] }
 0x4db   : > { %v11489_v4 = vpop.permute.xlu0 %5113 }
 0x4dc   : > { %v11491_v37 = vpop.permute.xlu1 %4996  ;;  %3942 = vmatpush1.bf16.xpose.msra.mxu0 %v2263_v61  ;;  %v6983_v61 = vrot.slane %v6949_v22, 4 }
 0x4dd   : > { %4191 = vmatpush1.bf16.xpose.msra.mxu1 %v2359_v6  ;;  %6874 = vrot.lane.b32.xlu0 %v6833_v51, %s13742_s16  ;;  %v1201_v6 = vld [vmem:[%s9899_s8 + $0x1d00] sm:$0xff]  ;;  %v1399_v51 = vld [vmem:[%s9899_s8 + $0x2330] sm:$0xff] }
 0x4de   : > { %6872 = vrot.lane.b32.xlu1 %v6832_v45, %s13742_s16  ;;  %3943 = vmatprep.subr.bf16.mxu0 %v2270_v13  ;;  %v1207_v13 = vld [vmem:[%s9899_s8 + $0x1d30] sm:$0xff]  ;;  %v1220_v45 = vld [vmem:[%s9899_s8 + $0x1d98] sm:$0xff] }
 0x4df   : > { %v11499_v40 = vpop.permute.xlu0 %5117  ;;  %4192 = vmatprep.subr.bf16.mxu1 %v2366_v8  ;;  %v1393_v8 = vld [vmem:[%s9899_s8 + $0x2300] sm:$0xff]  ;;  %v2275_v31 = vpack.c.bf16 %v1207_v13, %v1201_v6  ;;  %v1411_v6 = vld [vmem:[%s9899_s8 + $0x2390] sm:$0xff] }
 0x4e0   : > { %13770 = vst [vmem:[#allocation55_spill] sm:$0xff] %v11499_v40  ;;  %v11503_v25 = vpop.permute.xlu1 %5000  ;;  %v2371_v3 = vpack.c.bf16 %v1399_v51, %v1393_v8  ;;  %v7233_v8 = vrot.slane %v7199_v41, 4  ;;  %v1226_v51 = vld [vmem:[%s9899_s8 + $0x1dc8] sm:$0xff]  ;;  %v1623_v40 = vld [vmem:[%s9899_s8 + $0x2a30] sm:$0xff] }
 0x4e1   : > { %13771 = vst [vmem:[#allocation56_spill] sm:$0xff] %v11503_v25  ;;  %7002 = vrot.lane.b32.xlu0 %v6981_v49, %s13743_s9  ;;  %v1412_v49 = vld [vmem:[%s9899_s8 + $0x2398] sm:$0xff] }
 0x4e2   : > { %7004 = vrot.lane.b32.xlu1 %v6982_v38, %s13743_s9  ;;  %v2282_v38 = vpack.c.bf16 %v1220_v45, %v1214_v36  ;;  %v2378_v22 = vpack.c.bf16 %v1412_v49, %v1406_v18  ;;  %v1232_v36 = vld [vmem:[%s9899_s8 + $0x1df8] sm:$0xff]  ;;  %v7201_v18 = vld [vmem:[#allocation2 + $0x500] sm:$0xf0]  ;;  %v1418_v49 = vld [vmem:[%s9899_s8 + $0x23c8] sm:$0xff] }
 0x4e3   : > { %v11509_v55 = vpop.permute.xlu0 %5245 }
 0x4e4   : > { %v11511_v34 = vpop.permute.xlu1 %5247  ;;  %3944 = vmatpush1.bf16.xpose.msra.mxu0 %v2269_v43 }
 0x4e5   : > { %4193 = vmatpush1.bf16.xpose.msra.mxu1 %v2365_v11  ;;  %7006 = vrot.lane.b32.xlu0 %v6983_v61, %s13743_s9  ;;  %v7084_v11 = vld [vmem:[#allocation2 + $0x500] sm:$0xf]  ;;  %v1213_v61 = vld [vmem:[%s9899_s8 + $0x1d60] sm:$0xff] }
 0x4e6   : > { %7008 = vrot.lane.b32.xlu1 %v6984_v0, %s13743_s9  ;;  %3945 = vmatprep.subr.bf16.mxu0 %v2276_v58  ;;  %v7198_v58 = vld [vmem:[#allocation2 + $0x4e8] sm:$0xf0]  ;;  %v1405_v0 = vld [vmem:[%s9899_s8 + $0x2360] sm:$0xff] }
 0x4e7   : > { %v11519_v26 = vpop.permute.xlu0 %5249  ;;  %4194 = vmatprep.subr.bf16.mxu1 %v2372_v15  ;;  %v1219_v15 = vld [vmem:[%s9899_s8 + $0x1d90] sm:$0xff] }
 0x4e8   : > { %v11523_v30 = vpop.permute.xlu1 %5251 }
 0x4e9   : > { %13772 = vst [vmem:[#allocation57_spill] sm:$0xff] %v11523_v30  ;;  %7119 = vrot.lane.b32.xlu0 %v7081_v19, %s13665_s13  ;;  %v7232_v19 = vrot.slane %v7198_v58, 4  ;;  %v1617_v30 = vld [vmem:[%s9899_s8 + $0x2a00] sm:$0xff] }
 0x4ea   : > { %7121 = vrot.lane.b32.xlu1 %v7082_v7, %s13665_s13  ;;  %v1424_v7 = vld [vmem:[%s9899_s8 + $0x23f8] sm:$0xff] }
 0x4eb   : > { %v11529_v43 = vpop.permute.xlu0 %5364  ;;  %v2384_v41 = vpack.c.bf16 %v1424_v7, %v1418_v49 }
 0x4ec   : > { %v11531_v57 = vpop.permute.xlu1 %5362  ;;  %3946 = vmatpush1.bf16.xpose.msra.mxu0 %v2275_v31  ;;  %v2281_v31 = vpack.c.bf16 %v1219_v15, %v1213_v61  ;;  %v1225_v15 = vld [vmem:[%s9899_s8 + $0x1dc0] sm:$0xff] }
 0x4ed   : > { %4195 = vmatpush1.bf16.xpose.msra.mxu1 %v2371_v3  ;;  %7123 = vrot.lane.b32.xlu0 %v7083_v9, %s13665_s13  ;;  %v2377_v3 = vpack.c.bf16 %v1411_v6, %v1405_v0  ;;  %v1231_v0 = vld [vmem:[%s9899_s8 + $0x1df0] sm:$0xff]  ;;  %v1417_v6 = vld [vmem:[%s9899_s8 + $0x23c0] sm:$0xff] }
 0x4ee   : > { %7125 = vrot.lane.b32.xlu1 %v7084_v11, %s13665_s13  ;;  %3947 = vmatprep.subr.bf16.mxu0 %v2282_v38  ;;  %v7200_v38 = vld [vmem:[#allocation2 + $0x4f8] sm:$0xf0]  ;;  %v7235_v11 = vrot.slane %v7201_v18, 4  ;;  %v1624_v18 = vld [vmem:[%s9899_s8 + $0x2a38] sm:$0xff]  ;;  %v2287_v7 = vpack.c.bf16 %v1231_v0, %v1225_v15  ;;  %s13854_s13 = smov 120  }
 0x4ef   : > { %v11539_v13 = vpop.permute.xlu0 %5368  ;;  %4196 = vmatprep.subr.bf16.mxu1 %v2378_v22  ;;  %v2288_v22 = vpack.c.bf16 %v1232_v36, %v1226_v51  ;;  %v7234_v61 = vrot.slane %v7200_v38, 4  ;;  %v1426_v51 = vld [vmem:[%s9899_s8 + $0x2408] sm:$0xff]  ;;  %v1432_v36 = vld [vmem:[%s9899_s8 + $0x2438] sm:$0xff] }
 0x4f0   : > { %13773 = vst [vmem:[#allocation58_spill] sm:$0xff] %v11539_v13  ;;  %v11543_v45 = vpop.permute.xlu1 %5366  ;;  %v2386_v38 = vpack.c.bf16 %v1432_v36, %v1426_v51  ;;  %v1431_v13 = vld [vmem:[%s9899_s8 + $0x2430] sm:$0xff]  ;;  %v1438_v15 = vld [vmem:[%s9899_s8 + $0x2468] sm:$0xff]  ;;  %v1444_v0 = vld [vmem:[%s9899_s8 + $0x2498] sm:$0xff] }
 0x4f1   : > { %7255 = vrot.lane.b32.xlu0 %v7233_v8, %s13663_s14  ;;  %v1423_v8 = vld [vmem:[%s9899_s8 + $0x23f0] sm:$0xff]  ;;  %v1630_v51 = vld [vmem:[%s9899_s8 + $0x2a68] sm:$0xff]  ;;  %v1636_v36 = vld [vmem:[%s9899_s8 + $0x2a98] sm:$0xff] }
 0x4f2   : > { %7253 = vrot.lane.b32.xlu1 %v7232_v19, %s13663_s14 }
 0x4f3   : > { %v11549_v9 = vpop.permute.xlu0 %5496 }
 0x4f4   : > { %v11551_v58 = vpop.permute.xlu1 %5613  ;;  %3948 = vmatpush1.bf16.xpose.msra.mxu0 %v2281_v31  ;;  %v1618_v31 = vld [vmem:[%s9899_s8 + $0x2a08] sm:$0xff] }
 0x4f5   : > { %4197 = vmatpush1.bf16.xpose.msra.mxu1 %v2377_v3  ;;  %7259 = vrot.lane.b32.xlu0 %v7235_v11, %s13663_s14  ;;  %v2383_v3 = vpack.c.bf16 %v1423_v8, %v1417_v6 }
 0x4f6   : > { %7257 = vrot.lane.b32.xlu1 %v7234_v61, %s13663_s14  ;;  %3949 = vmatprep.subr.bf16.mxu0 %v2288_v22  ;;  %v2482_v22 = vpack.c.bf16 %v1624_v18, %v1618_v31  ;;  %v2481_v31 = vpack.c.bf16 %v1623_v40, %v1617_v30  ;;  %v2392_v18 = vpack.c.bf16 %v1444_v0, %v1438_v15  ;;  %v1437_v40 = vld [vmem:[%s9899_s8 + $0x2460] sm:$0xff]  ;;  %v1443_v30 = vld [vmem:[%s9899_s8 + $0x2490] sm:$0xff]  ;;  %s13853_s14 = smov 121  }
 0x4f7   : > { %v11561_v19 = vpop.permute.xlu0 %5500  ;;  %4198 = vmatprep.subr.bf16.mxu1 %v2384_v41  ;;  %v1425_v41 = vld [vmem:[%s9899_s8 + $0x2400] sm:$0xff]  ;;  %v1635_v15 = vld [vmem:[%s9899_s8 + $0x2a90] sm:$0xff] }
 0x4f8   : > { %v11565_v49 = vpop.permute.xlu1 %5617  ;;  %v2385_v8 = vpack.c.bf16 %v1431_v13, %v1425_v41  ;;  %v9464_v13 = vld [vmem:[#allocation8 + $0x44] ss:$24 sps:$4 sm:$0xff]  }
 0x4f9   : > { %v1629_v41 = vld [vmem:[%s9899_s8 + $0x2a60] sm:$0xff] }
 0x4fb   : > { %v11567_v11 = vpop.permute.xlu0 %5615 }
 0x4fc   : > { %v11569_v61 = vpop.permute.xlu1 %5498  ;;  %3950 = vmatpush1.bf16.xpose.msra.mxu0 %v2287_v7  ;;  %v9463_v7 = vld [vmem:[#allocation8 + $0x10] ss:$24 sps:$4 sm:$0xff]  }
 0x4fd   : > { %4199 = vmatpush1.bf16.xpose.msra.mxu1 %v2383_v3  ;;  %4251 = vmatprep.subr.bf16.mxu0 %v2386_v38  ;;  %v2488_v38 = vpack.c.bf16 %v1636_v36, %v1630_v51  ;;  %v1450_v51 = vld [vmem:[%s9899_s8 + $0x24c8] sm:$0xff]  ;;  %v1456_v36 = vld [vmem:[%s9899_s8 + $0x24f8] sm:$0xff] }
 0x4fe   : > { %4500 = vmatprep.subr.bf16.mxu1 %v2482_v22  ;;  %v2398_v47 = vpack.c.bf16 %v1456_v36, %v1450_v51  ;;  %v1647_v51 = vld [vmem:[%s9899_s8 + $0x2af0] sm:$0xff] }
 0x4ff   : > { %v11575_v25 = vpop.permute.xlu0 %5619 }
 0x500   : > { %13774 = vst [vmem:[#allocation59_spill] sm:$0xff] %v11575_v25  ;;  %v11579_v6 = vpop.permute.xlu1 %5502  ;;  %v1648_v25 = vld [vmem:[%s9899_s8 + $0x2af8] sm:$0xff] }
 0x501   : > { %13775 = vst [vmem:[#allocation60_spill] sm:$0xff] %v11579_v6  ;;  %v2487_v6 = vpack.c.bf16 %v1635_v15, %v1629_v41  ;;  %v1455_v41 = vld [vmem:[%s9899_s8 + $0x24f0] sm:$0xff]  ;;  %v1641_v15 = vld [vmem:[%s9899_s8 + $0x2ac0] sm:$0xff] }
 0x502   : > { %v2493_v1 = vpack.c.bf16 %v1647_v51, %v1641_v15  ;;  %v1467_v15 = vld [vmem:[%s9899_s8 + $0x2550] sm:$0xff]  ;;  %v1653_v51 = vld [vmem:[%s9899_s8 + $0x2b20] sm:$0xff] }
 0x503   : > { %3952 = vmatmul.mubr.bf16.vlgmr.msra.gmra.mrb[40].mxu0 %v9463_v7  ;;  %v11583_v3 = vpop.permute.xlu0 %5747 }
 0x504   : > { %4201 = vmatmul.mubr.bf16.vlgmr.msra.gmra.mrb[40].mxu1 %v9463_v7  ;;  %v11585_v22 = vpop.permute.xlu1 %5749  ;;  %4252 = vmatpush1.bf16.xpose.msra.mxu0 %v2385_v8  ;;  %v2391_v8 = vpack.c.bf16 %v1443_v30, %v1437_v40  ;;  %v9466_v40 = vld [vmem:[#allocation8 + $0x74] ss:$24 sps:$4 sm:$0xff]   ;;  %v1449_v30 = vld [vmem:[%s9899_s8 + $0x24c0] sm:$0xff] }
 0x505   : > { %4501 = vmatpush1.bf16.xpose.msra.mxu1 %v2481_v31  ;;  %3961 = vmatprep.mubr.bf16.mxu0 %v9464_v13  ;;  %v1642_v31 = vld [vmem:[%s9899_s8 + $0x2ac8] sm:$0xff] }
 0x506   : > { %4210 = vmatprep.mubr.bf16.mxu1 %v9464_v13  ;;  %4253 = vmatprep.subr.bf16.mxu0 %v2392_v18  ;;  %v9465_v13 = vld [vmem:[#allocation8 + $0x40] ss:$24 sps:$4 sm:$0xff]   ;;  %v2494_v48 = vpack.c.bf16 %v1648_v25, %v1642_v31  ;;  %v1462_v25 = vld [vmem:[%s9899_s8 + $0x2528] sm:$0xff] }
 0x507   : > { %v11591_v0 = vpop.permute.xlu0 %5751  ;;  %4502 = vmatprep.subr.bf16.mxu1 %v2488_v38  ;;  %v1468_v31 = vld [vmem:[%s9899_s8 + $0x2558] sm:$0xff] }
 0x508   : > { %v11595_v7 = vpop.permute.xlu1 %5753  ;;  %v2404_v60 = vpack.c.bf16 %v1468_v31, %v1462_v25  ;;  %v1659_v25 = vld [vmem:[%s9899_s8 + $0x2b50] sm:$0xff] }
 0x509   : > { %13776 = vst [vmem:[#allocation61_spill] sm:$0xff] %v11595_v7  ;;  %v1660_v7 = vld [vmem:[%s9899_s8 + $0x2b58] sm:$0xff]  ;;  %v2499_v52 = vpack.c.bf16 %v1659_v25, %v1653_v51  ;;  %v1479_v51 = vld [vmem:[%s9899_s8 + $0x25b0] sm:$0xff]  ;;  %v1665_v25 = vld [vmem:[%s9899_s8 + $0x2b80] sm:$0xff] }
 0x50b   : > { %3962 = vmatmul.mubr.bf16.gmra.mrb[44].mxu0 %v9465_v13  ;;  %v11599_v18 = vpop.permute.xlu0 %5866 }
 0x50c   : > { %4211 = vmatmul.mubr.bf16.gmra.mrb[44].mxu1 %v9465_v13  ;;  %v11601_v38 = vpop.permute.xlu1 %5864  ;;  %4254 = vmatpush1.bf16.xpose.msra.mxu0 %v2391_v8  ;;  %v2397_v8 = vpack.c.bf16 %v1455_v41, %v1449_v30  ;;  %v9468_v30 = vld [vmem:[#allocation8 + $0xa4] ss:$24 sps:$4 sm:$0xff]  }
 0x50d   : > { %4503 = vmatpush1.bf16.xpose.msra.mxu1 %v2487_v6  ;;  %3971 = vmatprep.mubr.bf16.mxu0 %v9466_v40  ;;  %v1654_v6 = vld [vmem:[%s9899_s8 + $0x2b28] sm:$0xff]  ;;  %v1461_v41 = vld [vmem:[%s9899_s8 + $0x2520] sm:$0xff] }
 0x50e   : > { %4220 = vmatprep.mubr.bf16.mxu1 %v9466_v40  ;;  %4255 = vmatprep.subr.bf16.mxu0 %v2398_v47  ;;  %v9467_v40 = vld [vmem:[#allocation8 + $0x70] ss:$24 sps:$4 sm:$0xff]  }
 0x50f   : > { %v11607_v36 = vpop.permute.xlu0 %5870  ;;  %4504 = vmatprep.subr.bf16.mxu1 %v2494_v48 }
 0x510   : > { %13777 = vst [vmem:[#allocation62_spill] sm:$0xff] %v11607_v36  ;;  %v11611_v13 = vpop.permute.xlu1 %5868  ;;  %v2500_v36 = vpack.c.bf16 %v1660_v7, %v1654_v6  ;;  %v1474_v7 = vld [vmem:[%s9899_s8 + $0x2588] sm:$0xff]  ;;  %v1480_v6 = vld [vmem:[%s9899_s8 + $0x25b8] sm:$0xff] }
 0x511   : > { %v2410_v21 = vpack.c.bf16 %v1480_v6, %v1474_v7  ;;  %v1671_v7 = vld [vmem:[%s9899_s8 + $0x2bb0] sm:$0xff]  ;;  %v1486_v6 = vld [vmem:[%s9899_s8 + $0x25e8] sm:$0xff] }
 0x513   : > { %3972 = vmatmul.mubr.bf16.gmra.mrb[48].mxu0 %v9467_v40  ;;  %v11615_v47 = vpop.permute.xlu0 %5998 }
 0x514   : > { %4221 = vmatmul.mubr.bf16.gmra.mrb[48].mxu1 %v9467_v40  ;;  %v11617_v48 = vpop.permute.xlu1 %6115  ;;  %4256 = vmatpush1.bf16.xpose.msra.mxu0 %v2397_v8  ;;  %v2403_v8 = vpack.c.bf16 %v1467_v15, %v1461_v41  ;;  %v9470_v41 = vld [vmem:[#allocation8 + $0xd4] ss:$24 sps:$4 sm:$0xff]   ;;  %v1473_v15 = vld [vmem:[%s9899_s8 + $0x2580] sm:$0xff] }
 0x515   : > { %13778 = vst [vmem:[#allocation63_spill] sm:$0xff] %v11617_v48  ;;  %4505 = vmatpush1.bf16.xpose.msra.mxu1 %v2493_v1  ;;  %3981 = vmatprep.mubr.bf16.mxu0 %v9468_v30  ;;  %v1666_v1 = vld [vmem:[%s9899_s8 + $0x2b88] sm:$0xff] }
 0x516   : > { %4230 = vmatprep.mubr.bf16.mxu1 %v9468_v30  ;;  %4257 = vmatprep.subr.bf16.mxu0 %v2404_v60  ;;  %v9469_v30 = vld [vmem:[#allocation8 + $0xa0] ss:$24 sps:$4 sm:$0xff]  }
 0x517   : > { %v11623_v31 = vpop.permute.xlu0 %6002  ;;  %4506 = vmatprep.subr.bf16.mxu1 %v2500_v36  ;;  %v2506_v36 = vpack.c.bf16 %v1672_v32, %v1666_v1  ;;  %v1678_v32 = vld [vmem:[%s9899_s8 + $0x2be8] sm:$0xff]  ;;  %v1684_v1 = vld [vmem:[%s9899_s8 + $0x2c18] sm:$0xff] }
 0x518   : > { %13779 = vst [vmem:[#allocation64_spill] sm:$0xff] %v11623_v31  ;;  %v11627_v40 = vpop.permute.xlu1 %6119  ;;  %v2512_v48 = vpack.c.bf16 %v1684_v1, %v1678_v32  ;;  %v9472_v32 = vld [vmem:[#allocation8 + $0x4] ss:$24 sps:$4 sm:$0xff]  }
 0x519   : > { %13780 = vst [vmem:[#allocation65_spill] sm:$0xff] %v11627_v40  ;;  %v1492_v40 = vld [vmem:[%s9899_s8 + $0x2618] sm:$0xff] }
 0x51b   : > { %3982 = vmatmul.mubr.bf16.gmra.mrb[52].mxu0 %v9469_v30  ;;  %v11631_v60 = vpop.permute.xlu0 %6117 }
 0x51c   : > { %13781 = vst [vmem:[#allocation66_spill] sm:$0xff] %v11631_v60  ;;  %4231 = vmatmul.mubr.bf16.gmra.mrb[52].mxu1 %v9469_v30  ;;  %v11633_v14 = vpop.permute.xlu1 %6000  ;;  %4258 = vmatpush1.bf16.xpose.msra.mxu0 %v2403_v8  ;;  %v2505_v8 = vpack.c.bf16 %v1671_v7, %v1665_v25  ;;  %v2416_v60 = vpack.c.bf16 %v1492_v40, %v1486_v6  ;;  %v1485_v40 = vld [vmem:[%s9899_s8 + $0x25e0] sm:$0xff]  ;;  %v1498_v7 = vld [vmem:[%s9899_s8 + $0x2648] sm:$0xff]  ;;  %v1504_v6 = vld [vmem:[%s9899_s8 + $0x2678] sm:$0xff] }
 0x51d   : > { %4507 = vmatpush1.bf16.xpose.msra.mxu1 %v2499_v52  ;;  %3991 = vmatprep.mubr.bf16.mxu0 %v9470_v41  ;;  %v2409_v52 = vpack.c.bf16 %v1479_v51, %v1473_v15  ;;  %v1491_v15 = vld [vmem:[%s9899_s8 + $0x2610] sm:$0xff]  ;;  %v1677_v51 = vld [vmem:[%s9899_s8 + $0x2be0] sm:$0xff] }
 0x51e   : > { %4240 = vmatprep.mubr.bf16.mxu1 %v9470_v41  ;;  %4259 = vmatprep.subr.bf16.mxu0 %v2410_v21  ;;  %v5023_v21 = vsel %vm5020_vm0, %v10760_v5, %v10792_v54  ;;  %v9471_v41 = vld [vmem:[#allocation8 + $0xd0] ss:$24 sps:$4 sm:$0xff]  }
 0x51f   : > { %v11641_v29 = vpop.permute.xlu0 %6121  ;;  %4508 = vmatprep.subr.bf16.mxu1 %v2506_v36  ;;  %v1683_v5 = vld [vmem:[%s9899_s8 + $0x2c10] sm:$0xff] }
 0x520   : > { %13782 = vst [vmem:[#allocation67_spill] sm:$0xff] %v11641_v29  ;;  %v11645_v30 = vpop.permute.xlu1 %6004  ;;  %v4921_v29 = vld [vmem:[#allocation2 + $0x10] sm:$0xf] }
 0x521   : > { %13783 = vst [vmem:[#allocation68_spill] sm:$0xff] %v11645_v30  ;;  %v5055_v25 = vadd.f32 %v5023_v21, %v4921_v29  ;;  %v5140_v29 = vsel %vm13655_vm1, %v10780_v33, %v10788_v46 }
 0x523   : > { %3992 = vmatmul.mubr.bf16.gmra.mrb[56].mxu0 %v9471_v41  ;;  %v11650_v36 = vpop.permute.xlu0 %6249  ;;  %v5172_v21 = vadd.f32 %v5140_v29, %v5055_v25  ;;  %v1503_v25 = vld [vmem:[%s9899_s8 + $0x2670] sm:$0xff] }
 0x524   : > { %13784 = vst [vmem:[#allocation69_spill] sm:$0xff] %v11650_v36  ;;  %4241 = vmatmul.mubr.bf16.gmra.mrb[56].mxu1 %v9471_v41  ;;  %v11652_v30 = vpop.permute.xlu1 %6251  ;;  %4260 = vmatpush1.bf16.xpose.msra.mxu0 %v2409_v52  ;;  %v1690_v41 = vld [vmem:[%s9899_s8 + $0x2c48] sm:$0xff]  ;;  %v1696_v36 = vld [vmem:[%s9899_s8 + $0x2c78] sm:$0xff]  ;;  %v2415_v52 = vpack.c.bf16 %v1491_v15, %v1485_v40 }
 0x525   : > { %13785 = vst [vmem:[#allocation70_spill] sm:$0xff] %v11652_v30  ;;  %4509 = vmatpush1.bf16.xpose.msra.mxu1 %v2505_v8  ;;  %4261 = vmatprep.subr.bf16.mxu0 %v2416_v60  ;;  %v2511_v60 = vpack.c.bf16 %v1683_v5, %v1677_v51  ;;  %v2422_v8 = vpack.c.bf16 %v1504_v6, %v1498_v7  ;;  %v1689_v5 = vld [vmem:[%s9899_s8 + $0x2c40] sm:$0xff]  ;;  %v1510_v6 = vld [vmem:[%s9899_s8 + $0x26a8] sm:$0xff] }
 0x526   : > { %4510 = vmatprep.subr.bf16.mxu1 %v2512_v48  ;;  %4283 = vmatprep.mubr.bf16.mxu0 %v9472_v32  ;;  %v5274_v48 = vsel %vm5271_vm2, %v10808_v17, %v10812_v23  ;;  %v13791_v17 = vld [vmem:[#allocation36_spill] sm:$0xff] }
 0x527   : > { %v11660_v1 = vpop.permute.xlu0 %6253  ;;  %4532 = vmatprep.mubr.bf16.mxu1 %v9472_v32  ;;  %v2518_v32 = vpack.c.bf16 %v1696_v36, %v1690_v41  ;;  %v5306_v33 = vadd.f32 %v5274_v48, %v5172_v21  ;;  %v5525_v51 = vsel %vm5522_vm4, %v10850_v44, %v13791_v17  ;;  %v1497_v36 = vld [vmem:[%s9899_s8 + $0x2640] sm:$0xff]  ;;  %v1516_v41 = vld [vmem:[%s9899_s8 + $0x26d8] sm:$0xff]  ;;  %v1702_v48 = vld [vmem:[%s9899_s8 + $0x2ca8] sm:$0xff] }
 0x528   : > { %13786 = vst [vmem:[#allocation71_spill] sm:$0xff] %v11660_v1  ;;  %v11664_v30 = vpop.permute.xlu1 %6255  ;;  %v13788_v1 = vld [vmem:[#allocation34_spill] sm:$0xff]  ;;  %v2421_v44 = vpack.c.bf16 %v1503_v25, %v1497_v36 }
 0x529   : > { %13787 = vst [vmem:[#allocation72_spill] sm:$0xff] %v11664_v30  ;;  %v5391_v40 = vsel %vm5388_vm3, %v10832_v62, %v13788_v1  ;;  %v1695_v62 = vld [vmem:[%s9899_s8 + $0x2c70] sm:$0xff]  ;;  %v1708_v21 = vld [vmem:[%s9899_s8 + $0x2cd8] sm:$0xff] }
 0x52a   : > { %v5423_v7 = vadd.f32 %v5391_v40, %v5306_v33  ;;  %v13794_v40 = vld [vmem:[#allocation35_spill] sm:$0xff]  ;;  %v13795_v33 = vld [vmem:[#allocation37_spill] sm:$0xff]  ;;  %v13798_v36 = vld [vmem:[#allocation38_spill] sm:$0xff] }
 0x52b   : > { %v11675_v15 = vpop.permute.xlu0 %6368  ;;  %v5893_v25 = vsel %vm5890_vm7, %v10900_v12, %v13798_v36  ;;  %v5025_v12 = vsel %vm5020_vm0, %v11469_v10, %v11491_v37 }
 0x52c   : > { %13789 = vst [vmem:[#allocation34_spill] sm:$0xff] %v11675_v15  ;;  %v11677_v30 = vpop.permute.xlu1 %6366  ;;  %4262 = vmatpush1.bf16.xpose.msra.mxu0 %v2415_v52  ;;  %v5557_v52 = vadd.f32 %v5525_v51, %v5423_v7 }
 0x52d   : > { %13790 = vst [vmem:[#allocation73_spill] sm:$0xff] %v11677_v30  ;;  %4511 = vmatpush1.bf16.xpose.msra.mxu1 %v2511_v60  ;;  %4263 = vmatprep.subr.bf16.mxu0 %v2422_v8  ;;  %v2517_v60 = vpack.c.bf16 %v1695_v62, %v1689_v5  ;;  %v2428_v8 = vpack.c.bf16 %v1516_v41, %v1510_v6  ;;  %v1515_v5 = vld [vmem:[%s9899_s8 + $0x26d0] sm:$0xff]  ;;  %v1701_v62 = vld [vmem:[%s9899_s8 + $0x2ca0] sm:$0xff]  ;;  %v1522_v41 = vld [vmem:[%s9899_s8 + $0x2708] sm:$0xff] }
 0x52e   : > { %4512 = vmatprep.subr.bf16.mxu1 %v2518_v32  ;;  %v2524_v30 = vpack.c.bf16 %v1708_v21, %v1702_v48  ;;  %v5642_v32 = vsel %vm5639_vm5, %v10854_v50, %v13794_v40  ;;  %v1509_v50 = vld [vmem:[%s9899_s8 + $0x26a0] sm:$0xff]  ;;  %v1528_v48 = vld [vmem:[%s9899_s8 + $0x2738] sm:$0xff]  ;;  %v13799_v21 = vld [vmem:[#allocation40_spill] sm:$0xff] }
 0x52f   : > { %v11688_v29 = vpop.permute.xlu0 %6372  ;;  %v5674_v7 = vadd.f32 %v5642_v32, %v5557_v52  ;;  %v6027_v52 = vsel %vm13656_vm8, %v10912_v2, %v13799_v21  ;;  %v4923_v2 = vld [vmem:[#allocation2 + $0x20] sm:$0xf]  ;;  %v2434_v31 = vpack.c.bf16 %v1528_v48, %v1522_v41  ;;  %v1527_v41 = vld [vmem:[%s9899_s8 + $0x2730] sm:$0xff]  ;;  %v1713_v48 = vld [vmem:[%s9899_s8 + $0x2d00] sm:$0xff] }
 0x530   : > { %13792 = vst [vmem:[#allocation36_spill] sm:$0xff] %v11688_v29  ;;  %v11692_v15 = vpop.permute.xlu1 %6370  ;;  %v5776_v29 = vsel %vm13700_vm6, %v10880_v59, %v13795_v33  ;;  %v1707_v59 = vld [vmem:[%s9899_s8 + $0x2cd0] sm:$0xff]  ;;  %v5057_v27 = vadd.f32 %v5025_v12, %v4923_v2  ;;  %v1540_v12 = vld [vmem:[%s9899_s8 + $0x2798] sm:$0xff] }
 0x531   : > { %13793 = vst [vmem:[#allocation74_spill] sm:$0xff] %v11692_v15  ;;  %v5808_v6 = vadd.f32 %v5776_v29, %v5674_v7  ;;  %v1720_v29 = vld [vmem:[%s9899_s8 + $0x2d38] sm:$0xff]  ;;  %v2427_v7 = vpack.c.bf16 %v1515_v5, %v1509_v50  ;;  %v13801_v5 = vld [vmem:[#allocation39_spill] sm:$0xff] }
 0x533   : > { %v11700_v51 = vpop.permute.xlu0 %6500 }
 0x534   : > { %13796 = vst [vmem:[#allocation35_spill] sm:$0xff] %v11700_v51  ;;  %v11702_v15 = vpop.permute.xlu1 %6617  ;;  %4264 = vmatpush1.bf16.xpose.msra.mxu0 %v2421_v44  ;;  %v5024_v44 = vsel %vm5020_vm0, %v10792_v54, %v11469_v10  ;;  %v2523_v51 = vpack.c.bf16 %v1707_v59, %v1701_v62  ;;  %v4924_v10 = vld [vmem:[#allocation2 + $0x28] sm:$0xf]  ;;  %v1521_v59 = vld [vmem:[%s9899_s8 + $0x2700] sm:$0xff] }
 0x535   : > { %13797 = vst [vmem:[#allocation37_spill] sm:$0xff] %v11702_v15  ;;  %4513 = vmatpush1.bf16.xpose.msra.mxu1 %v2517_v60  ;;  %4265 = vmatprep.subr.bf16.mxu0 %v2428_v8  ;;  %v1714_v8 = vld [vmem:[%s9899_s8 + $0x2d08] sm:$0xff]  ;;  %v4922_v15 = vld [vmem:[#allocation2 + $0x18] sm:$0xf]  ;;  %v2433_v2 = vpack.c.bf16 %v1527_v41, %v1521_v59 }
 0x536   : > { %4514 = vmatprep.subr.bf16.mxu1 %v2524_v30  ;;  %v5925_v30 = vadd.f32 %v5893_v25, %v5808_v6  ;;  %v5056_v63 = vadd.f32 %v5024_v44, %v4922_v15  ;;  %v2530_v24 = vpack.c.bf16 %v1720_v29, %v1714_v8  ;;  %v5026_v25 = vsel %vm5020_vm0, %v11491_v37, %v11479_v20  ;;  %v1534_v44 = vld [vmem:[%s9899_s8 + $0x2768] sm:$0xff] }
 0x537   : > { %v11722_v60 = vpop.permute.xlu0 %6504  ;;  %v6144_v6 = vsel %vm6141_vm9, %v10916_v39, %v13801_v5  ;;  %v5141_v15 = vsel %vm13655_vm1, %v10788_v46, %v11471_v42  ;;  %v5142_v37 = vsel %vm13655_vm1, %v11471_v42, %v11489_v4  ;;  %v5276_v39 = vsel %vm5271_vm2, %v11509_v55, %v11511_v34  ;;  %v1719_v46 = vld [vmem:[%s9899_s8 + $0x2d30] sm:$0xff] }
 0x538   : > { %v11726_v32 = vpop.permute.xlu1 %6621  ;;  %v6059_v54 = vadd.f32 %v6027_v52, %v5925_v30  ;;  %v5275_v52 = vsel %vm5271_vm2, %v10812_v23, %v11509_v55  ;;  %v5173_v29 = vadd.f32 %v5141_v15, %v5056_v63  ;;  %v5058_v30 = vadd.f32 %v5026_v25, %v4924_v10  ;;  %v13802_v42 = vld [vmem:[#allocation41_spill] sm:$0xff] }
 0x539   : > { %13800 = vst [vmem:[#allocation38_spill] sm:$0xff] %v11726_v32  ;;  %v6278_v23 = vsel %vm13701_vm10, %v10946_v28, %v13802_v42  ;;  %v5392_v55 = vsel %vm5388_vm3, %v13788_v1, %v11531_v57  ;;  %v1732_v63 = vld [vmem:[%s9899_s8 + $0x2d98] sm:$0xff]  ;;  %v2529_v25 = vpack.c.bf16 %v1719_v46, %v1713_v48  ;;  %v5143_v28 = vsel %vm13655_vm1, %v11489_v4, %v11483_v16 }
 0x53a   : > { %v6176_v8 = vadd.f32 %v6144_v6, %v6059_v54  ;;  %v1726_v54 = vld [vmem:[%s9899_s8 + $0x2d68] sm:$0xff]  ;;  %v5307_v10 = vadd.f32 %v5275_v52, %v5173_v29  ;;  %v2440_v6 = vpack.c.bf16 %v1540_v12, %v1534_v44  ;;  %v5277_v1 = vsel %vm5271_vm2, %v11511_v34, %v11519_v26  ;;  %v13804_v4 = vld [vmem:[#allocation42_spill] sm:$0xff]  ;;  %v1539_v29 = vld [vmem:[%s9899_s8 + $0x2790] sm:$0xff] }
 0x53b   : > { %v11731_v50 = vpop.permute.xlu0 %6619  ;;  %v5527_v15 = vsel %vm5522_vm4, %v11549_v9, %v11569_v61  ;;  %v5175_v59 = vadd.f32 %v5143_v28, %v5058_v30  ;;  %vm13805_vm1 = vcmask 949248   ;;  %v5394_v34 = vsel %vm5388_vm3, %v11529_v43, %v11543_v45 }
 0x53c   : > { %v11739_v62 = vpop.permute.xlu1 %6502  ;;  %4266 = vmatpush1.bf16.xpose.msra.mxu0 %v2427_v7  ;;  %v5174_v7 = vadd.f32 %v5142_v37, %v5057_v27  ;;  %v5424_v41 = vadd.f32 %v5392_v55, %v5307_v10  ;;  %v2536_v37 = vpack.c.bf16 %v1732_v63, %v1726_v54  ;;  %v6395_v52 = vsel %vm13805_vm1, %v10966_v56, %v13804_v4  ;;  %v1731_v55 = vld [vmem:[%s9899_s8 + $0x2d90] sm:$0xff] }
 0x53d   : > { %4515 = vmatpush1.bf16.xpose.msra.mxu1 %v2523_v51  ;;  %4267 = vmatprep.subr.bf16.mxu0 %v2434_v31  ;;  %v5393_v31 = vsel %vm5388_vm3, %v11531_v57, %v11529_v43  ;;  %v5526_v57 = vsel %vm5522_vm4, %v13791_v17, %v11549_v9  ;;  %v5309_v9 = vadd.f32 %v5277_v1, %v5175_v59  ;;  %v1533_v43 = vld [vmem:[%s9899_s8 + $0x2760] sm:$0xff]  ;;  %vm13806_vm1 = vcmask 941056  }
 0x53e   : > { %4516 = vmatprep.subr.bf16.mxu1 %v2530_v24  ;;  %v5308_v27 = vadd.f32 %v5276_v39, %v5174_v7  ;;  %v6310_v39 = vadd.f32 %v6278_v23, %v6176_v8  ;;  %v5558_v46 = vadd.f32 %v5526_v57, %v5424_v41  ;;  %v5528_v56 = vsel %vm5522_vm4, %v11569_v61, %v11561_v19  ;;  %v1725_v8 = vld [vmem:[%s9899_s8 + $0x2d60] sm:$0xff] }
 0x53f   : > { %v11765_v51 = vpop.permute.xlu0 %6623  ;;  %v6529_v7 = vsel %vm13806_vm1, %v10978_v35, %v11016_v53  ;;  %v5426_v23 = vadd.f32 %v5394_v34, %v5309_v9  ;;  %v5643_v61 = vsel %vm5639_vm5, %v13794_v40, %v11551_v58  ;;  %v5644_v54 = vsel %vm5639_vm5, %v11551_v58, %v11567_v11 }
 0x540   : > { %13803 = vst [vmem:[#allocation40_spill] sm:$0xff] %v11765_v51  ;;  %v11769_v24 = vpop.permute.xlu1 %6506  ;;  %v5425_v48 = vadd.f32 %v5393_v31, %v5308_v27  ;;  %v6427_v30 = vadd.f32 %v6395_v52, %v6310_v39  ;;  %v1546_v31 = vld [vmem:[%s9899_s8 + $0x27c8] sm:$0xff]  ;;  %v5777_v63 = vsel %vm13700_vm6, %v13795_v33, %v11583_v3  ;;  %v5778_v35 = vsel %vm13700_vm6, %v11583_v3, %v11585_v22  ;;  %v13881_v51 = vld [vmem:[#allocation58_spill] sm:$0xff] }
 0x541   : > { %v1738_v27 = vld [vmem:[%s9899_s8 + $0x2dc8] sm:$0xff]  ;;  %v5560_v28 = vadd.f32 %v5528_v56, %v5426_v23  ;;  %v2439_v57 = vpack.c.bf16 %v1539_v29, %v1533_v43  ;;  %v5894_v58 = vsel %vm5890_vm7, %v13798_v36, %v11601_v38  ;;  %v5895_v33 = vsel %vm5890_vm7, %v11601_v38, %v11599_v18  ;;  %v1545_v56 = vld [vmem:[%s9899_s8 + $0x27c0] sm:$0xff] }
 0x542   : > { %v5559_v44 = vadd.f32 %v5527_v15, %v5425_v48  ;;  %v2535_v15 = vpack.c.bf16 %v1731_v55, %v1725_v8  ;;  %v6561_v59 = vadd.f32 %v6529_v7, %v6427_v30  ;;  %v5645_v52 = vsel %vm5639_vm5, %v11567_v11, %v11565_v49  ;;  %v1737_v43 = vld [vmem:[%s9899_s8 + $0x2dc0] sm:$0xff]  ;;  %v1558_v29 = vld [vmem:[%s9899_s8 + $0x2828] sm:$0xff]  ;;  %v1564_v8 = vld [vmem:[%s9899_s8 + $0x2858] sm:$0xff] }
 0x543   : > { %v11789_v17 = vpop.permute.xlu0 %6751  ;;  %v5779_v36 = vsel %vm13700_vm6, %v11585_v22, %v11591_v0  ;;  %v6028_v38 = vsel %vm13656_vm8, %v13799_v21, %v11615_v47  ;;  %v6029_v34 = vsel %vm13656_vm8, %v11615_v47, %v11633_v14  ;;  %v5677_v9 = vadd.f32 %v5645_v52, %v5560_v28  ;;  %v1551_v22 = vld [vmem:[%s9899_s8 + $0x27f0] sm:$0xff]  ;;  %v13810_v7 = vld [vmem:[#allocation43_spill] sm:$0xff]  ;;  %v1756_v28 = vld [vmem:[%s9899_s8 + $0x2e58] sm:$0xff] }
 0x544   : > { %v11791_v12 = vpop.permute.xlu1 %6753  ;;  %4268 = vmatpush1.bf16.xpose.msra.mxu0 %v2433_v2  ;;  %v1552_v2 = vld [vmem:[%s9899_s8 + $0x27f8] sm:$0xff]  ;;  %v5676_v1 = vadd.f32 %v5644_v54, %v5559_v44  ;;  %v5896_v21 = vsel %vm5890_vm7, %v11599_v18, %v11611_v13  ;;  %v1743_v47 = vld [vmem:[%s9899_s8 + $0x2df0] sm:$0xff]  ;;  %vm13813_vm1 = vcmask 924672  }
 0x545   : > { %4517 = vmatpush1.bf16.xpose.msra.mxu1 %v2529_v25  ;;  %4269 = vmatprep.subr.bf16.mxu0 %v2440_v6  ;;  %v1744_v25 = vld [vmem:[%s9899_s8 + $0x2df8] sm:$0xff]  ;;  %v5675_v6 = vadd.f32 %v5643_v61, %v5558_v46  ;;  %v2446_v3 = vpack.c.bf16 %v1552_v2, %v1546_v31  ;;  %v13809_v30 = vld [vmem:[#allocation44_spill] sm:$0xff]  ;;  %v5811_v55 = vadd.f32 %v5779_v36, %v5677_v9 }
 0x546   : > { %4518 = vmatprep.subr.bf16.mxu1 %v2536_v37  ;;  %v5810_v48 = vadd.f32 %v5778_v35, %v5676_v1  ;;  %v2542_v37 = vpack.c.bf16 %v1744_v25, %v1738_v27  ;;  %v6646_v23 = vsel %vm6643_vm13, %v13810_v7, %v13809_v30  ;;  %v13811_v54 = vld [vmem:[#allocation46_spill] sm:$0xff]  ;;  %v13814_v18 = vld [vmem:[#allocation64_spill] sm:$0xff] }
 0x547   : > { %v11817_v10 = vpop.permute.xlu0 %6755  ;;  %v5809_v41 = vadd.f32 %v5777_v63, %v5675_v6  ;;  %v6678_v61 = vadd.f32 %v6646_v23, %v6561_v59  ;;  %v13812_v63 = vld [vmem:[#allocation45_spill] sm:$0xff]  ;;  %v6030_v27 = vsel %vm13656_vm8, %v11633_v14, %v13814_v18  ;;  %v1750_v6 = vld [vmem:[%s9899_s8 + $0x2e28] sm:$0xff]  ;;  %v5928_v1 = vadd.f32 %v5896_v21, %v5811_v55  ;;  %v13820_v52 = vld [vmem:[#allocation70_spill] sm:$0xff] }
 0x548   : > { %13807 = vst [vmem:[#allocation39_spill] sm:$0xff] %v11817_v10  ;;  %v11821_v40 = vpop.permute.xlu1 %6757  ;;  %v5927_v11 = vadd.f32 %v5895_v33, %v5810_v48  ;;  %v6780_v35 = vsel %vm13813_vm1, %v13812_v63, %v13811_v54  ;;  %v2541_v33 = vpack.c.bf16 %v1743_v47, %v1737_v43  ;;  %vm13822_vm1 = vcmask 949248   ;;  %v13825_v21 = vld [vmem:[#allocation47_spill] sm:$0xff]  ;;  %v13826_v47 = vld [vmem:[#allocation48_spill] sm:$0xff] }
 0x549   : > { %13808 = vst [vmem:[#allocation41_spill] sm:$0xff] %v11821_v40  ;;  %v5926_v46 = vadd.f32 %v5894_v58, %v5809_v41  ;;  %v2445_v58 = vpack.c.bf16 %v1551_v22, %v1545_v56  ;;  %v13818_v41 = vld [vmem:[#allocation66_spill] sm:$0xff]  ;;  %v13821_v56 = vld [vmem:[#allocation73_spill] sm:$0xff]  ;;  %vm13824_vm8 = vmmov %vm13822_vm1 }
 0x54a   : > { %v6061_v2 = vadd.f32 %v6029_v34, %v5927_v11  ;;  %v6062_v34 = vadd.f32 %v6030_v27, %v5928_v1  ;;  %v6812_v11 = vadd.f32 %v6780_v35, %v6678_v61  ;;  %v13823_v22 = vld [vmem:[#allocation34_spill] sm:$0xff]  ;;  %v13829_v61 = vld [vmem:[#allocation35_spill] sm:$0xff] }
 0x54b   : > { %v11841_v39 = vpop.permute.xlu0 %6870  ;;  %v6060_v31 = vadd.f32 %v6028_v38, %v5926_v46  ;;  %v2548_v46 = vpack.c.bf16 %v1756_v28, %v1750_v6  ;;  %v1557_v27 = vld [vmem:[%s9899_s8 + $0x2820] sm:$0xff]  ;;  %v1563_v6 = vld [vmem:[%s9899_s8 + $0x2850] sm:$0xff] }
 0x54c   : > { %v11843_v44 = vpop.permute.xlu1 %6868  ;;  %4270 = vmatpush1.bf16.xpose.msra.mxu0 %v2439_v57  ;;  %v1749_v28 = vld [vmem:[%s9899_s8 + $0x2e20] sm:$0xff] }
 0x54d   : > { %4519 = vmatpush1.bf16.xpose.msra.mxu1 %v2535_v15  ;;  %4271 = vmatprep.subr.bf16.mxu0 %v2446_v3  ;;  %v2452_v15 = vpack.c.bf16 %v1564_v8, %v1558_v29  ;;  %v13817_v3 = vld [vmem:[#allocation63_spill] sm:$0xff]  ;;  %v6897_v29 = vsel %vm6894_vm15, %v13826_v47, %v13825_v21  ;;  %v13827_v8 = vld [vmem:[#allocation65_spill] sm:$0xff] }
 0x54e   : > { %4520 = vmatprep.subr.bf16.mxu1 %v2542_v37  ;;  %v6145_v59 = vsel %vm6141_vm9, %v13801_v5, %v13817_v3  ;;  %v6146_v48 = vsel %vm6141_vm9, %v13817_v3, %v13818_v41  ;;  %v13819_v37 = vld [vmem:[#allocation69_spill] sm:$0xff]  ;;  %v6396_v5 = vsel %vm13822_vm1, %v13804_v4, %v13821_v56  ;;  %v6147_v7 = vsel %vm6141_vm9, %v13818_v41, %v13827_v8  ;;  %v1570_v41 = vld [vmem:[%s9899_s8 + $0x2888] sm:$0xff] }
 0x54f   : > { %v11863_v25 = vpop.permute.xlu0 %6874  ;;  %v6279_v14 = vsel %vm13701_vm10, %v13802_v42, %v13819_v37  ;;  %v6280_v36 = vsel %vm13701_vm10, %v13819_v37, %v13820_v52  ;;  %v6177_v38 = vadd.f32 %v6145_v59, %v6060_v31  ;;  %v6178_v9 = vadd.f32 %v6146_v48, %v6061_v2  ;;  %v13828_v31 = vld [vmem:[#allocation71_spill] sm:$0xff]  ;;  %v1755_v59 = vld [vmem:[%s9899_s8 + $0x2e50] sm:$0xff]  ;;  %v1576_v48 = vld [vmem:[%s9899_s8 + $0x28b8] sm:$0xff] }
 0x550   : > { %13815 = vst [vmem:[#allocation42_spill] sm:$0xff] %v11863_v25  ;;  %v11867_v57 = vpop.permute.xlu1 %6872  ;;  %v6397_v42 = vsel %vm13824_vm8, %v13821_v56, %v13823_v22  ;;  %v6281_v2 = vsel %vm13701_vm10, %v13820_v52, %v13828_v31  ;;  %vm13830_vm8 = vcmask 941056   ;;  %v6179_v1 = vadd.f32 %v6147_v7, %v6062_v34  ;;  %v13839_v47 = vld [vmem:[#allocation51_spill] sm:$0xff] }
 0x551   : > { %13816 = vst [vmem:[#allocation44_spill] sm:$0xff] %v11867_v57  ;;  %v6311_v23 = vadd.f32 %v6279_v14, %v6177_v38  ;;  %v6312_v55 = vadd.f32 %v6280_v36, %v6178_v9  ;;  %v6530_v63 = vsel %vm13830_vm8, %v11016_v53, %v13829_v61  ;;  %vm13831_vm1 = vmmov %vm13830_vm8  ;;  %v6929_v37 = vadd.f32 %v6897_v29, %v6812_v11  ;;  %v13832_v53 = vld [vmem:[#allocation50_spill] sm:$0xff]  ;;  %v13833_v14 = vld [vmem:[#allocation49_spill] sm:$0xff] }
 0x552   : > { %v6531_v35 = vsel %vm13831_vm1, %v13829_v61, %v11739_v62  ;;  %v7031_v52 = vsel %vm7028_vm12, %v13833_v14, %v13832_v53  ;;  %v13834_v36 = vld [vmem:[#allocation74_spill] sm:$0xff]  ;;  %vm13835_vm8 = vcmask 949248   ;;  %v1762_v38 = vld [vmem:[%s9899_s8 + $0x2e88] sm:$0xff]  ;;  %v6313_v34 = vadd.f32 %v6281_v2, %v6179_v1  ;;  %v13841_v2 = vld [vmem:[#allocation53_spill] sm:$0xff] }
 0x553   : > { %v11887_v43 = vpop.permute.xlu0 %7002  ;;  %v6429_v3 = vadd.f32 %v6397_v42, %v6312_v55  ;;  %v1768_v9 = vld [vmem:[%s9899_s8 + $0x2eb8] sm:$0xff]  ;;  %v2451_v11 = vpack.c.bf16 %v1563_v6, %v1557_v27  ;;  %v13838_v42 = vld [vmem:[#allocation52_spill] sm:$0xff]  ;;  %v2547_v7 = vpack.c.bf16 %v1755_v59, %v1749_v28  ;;  %v7063_v55 = vadd.f32 %v7031_v52, %v6929_v37  ;;  %v1569_v59 = vld [vmem:[%s9899_s8 + $0x2880] sm:$0xff] }
 0x554   : > { %v11895_v4 = vpop.permute.xlu1 %7004  ;;  %4272 = vmatpush1.bf16.xpose.msra.mxu0 %v2445_v58  ;;  %v6428_v58 = vadd.f32 %v6396_v5, %v6311_v23  ;;  %v7148_v29 = vsel %vm7145_vm11, %v13839_v47, %v13838_v42  ;;  %v2458_v23 = vpack.c.bf16 %v1576_v48, %v1570_v41  ;;  %v13840_v61 = vld [vmem:[#allocation54_spill] sm:$0xff]  ;;  %v2554_v1 = vpack.c.bf16 %v1768_v9, %v1762_v38  ;;  %v1575_v41 = vld [vmem:[%s9899_s8 + $0x28b0] sm:$0xff] }
 0x555   : > { %4521 = vmatpush1.bf16.xpose.msra.mxu1 %v2541_v33  ;;  %4273 = vmatprep.subr.bf16.mxu0 %v2452_v15  ;;  %v6398_v33 = vsel %vm13835_vm8, %v13823_v22, %v13834_v36  ;;  %v6563_v5 = vadd.f32 %v6531_v35, %v6429_v3  ;;  %v6532_v22 = vsel %vm13831_vm1, %v11739_v62, %v11722_v60  ;;  %vm13843_vm8 = vcmask 924672   ;;  %v1767_v38 = vld [vmem:[%s9899_s8 + $0x2eb0] sm:$0xff]  ;;  %v1588_v47 = vld [vmem:[%s9899_s8 + $0x2918] sm:$0xff] }
 0x556   : > { %4522 = vmatprep.subr.bf16.mxu1 %v2548_v46  ;;  %v6562_v56 = vadd.f32 %v6530_v63, %v6428_v58  ;;  %v7282_v63 = vsel %vm13702_vm14, %v13841_v2, %v13840_v61  ;;  %v6430_v35 = vadd.f32 %v6398_v33, %v6313_v34  ;;  %v13842_v58 = vld [vmem:[#allocation37_spill] sm:$0xff]  ;;  %v6781_v62 = vsel %vm13843_vm8, %v13811_v54, %v11789_v17  ;;  %vm13844_vm1 = vmmov %vm13843_vm8 }
 0x557   : > { %v11918_v15 = vpop.permute.xlu0 %7006  ;;  %v6647_v27 = vsel %vm6643_vm13, %v13809_v30, %v13842_v58  ;;  %v6648_v6 = vsel %vm6643_vm13, %v13842_v58, %v11731_v50  ;;  %v6782_v28 = vsel %vm13844_vm1, %v11789_v17, %v11791_v12  ;;  %v7180_v48 = vadd.f32 %v7148_v29, %v7063_v55  ;;  %v1761_v17 = vld [vmem:[%s9899_s8 + $0x2e80] sm:$0xff]  ;;  %vm13845_vm8 = vmmov %vm13844_vm1  ;;  %v1780_v55 = vld [vmem:[%s9899_s8 + $0x2f18] sm:$0xff] }
 0x558   : > { %13836 = vst [vmem:[#allocation43_spill] sm:$0xff] %v11918_v15  ;;  %v11922_v46 = vpop.permute.xlu1 %7008  ;;  %v6679_v37 = vadd.f32 %v6647_v27, %v6562_v56  ;;  %v6564_v30 = vadd.f32 %v6532_v22, %v6430_v35  ;;  %v6680_v14 = vadd.f32 %v6648_v6, %v6563_v5  ;;  %v6898_v54 = vsel %vm6894_vm15, %v13825_v21, %v11843_v44 }
 0x559   : > { %13837 = vst [vmem:[#allocation46_spill] sm:$0xff] %v11922_v46  ;;  %v6899_v33 = vsel %vm6894_vm15, %v11843_v44, %v11841_v39  ;;  %v7314_v9 = vadd.f32 %v7282_v63, %v7180_v48  ;;  %v2457_v5 = vpack.c.bf16 %v1575_v41, %v1569_v59  ;;  %v6649_v21 = vsel %vm6643_vm13, %v11731_v50, %v11726_v32  ;;  %v13848_v48 = vld [vmem:[#allocation33_spill] sm:$0xff] }
 0x55a   : > { %v6813_v34 = vadd.f32 %v6781_v62, %v6679_v37  ;;  %v6814_v56 = vadd.f32 %v6782_v28, %v6680_v14  ;;  %v6783_v44 = vsel %vm13845_vm8, %v11791_v12, %v11817_v10  ;;  %v7032_v29 = vsel %vm7028_vm12, %v13832_v53, %v11887_v43  ;;  %v13880_v10 = vld [vmem:[#allocation57_spill] sm:$0xff] }
 0x55b   : > { %v7120_v3 = vpop.permute.xlu0 %7119  ;;  %v7033_v22 = vsel %vm7028_vm12, %v11887_v43, %v11895_v4  ;;  %v6681_v2 = vadd.f32 %v6649_v21, %v6564_v30  ;;  %v6900_v12 = vsel %vm6894_vm15, %v11841_v39, %v11867_v57  ;;  %v7034_v59 = vsel %vm7028_vm12, %v11895_v4, %v11918_v15  ;;  %v1786_v21 = vld [vmem:[%s9899_s8 + $0x2f48] sm:$0xff]  ;;  %v4925_v15 = vld [vmem:[#allocation2 + $0x30] sm:$0xf] }
 0x55c   : > { %v7122_v52 = vpop.permute.xlu1 %7121  ;;  %4274 = vmatpush1.bf16.xpose.msra.mxu0 %v2451_v11  ;;  %v1582_v11 = vld [vmem:[%s9899_s8 + $0x28e8] sm:$0xff]  ;;  %v6930_v63 = vadd.f32 %v6898_v54, %v6813_v34  ;;  %v6931_v35 = vadd.f32 %v6899_v33, %v6814_v56  ;;  %v7149_v53 = vsel %vm7145_vm11, %v13838_v42, %v7120_v3  ;;  %v7336_v39 = vadd.f32 %v13848_v48, %v7314_v9  ;;  %v1581_v33 = vld [vmem:[%s9899_s8 + $0x28e0] sm:$0xff] }
 0x55d   : > { %4523 = vmatpush1.bf16.xpose.msra.mxu1 %v2547_v7  ;;  %4275 = vmatprep.subr.bf16.mxu0 %v2458_v23  ;;  %v1774_v23 = vld [vmem:[%s9899_s8 + $0x2ee8] sm:$0xff]  ;;  %v7150_v58 = vsel %vm7145_vm11, %v7120_v3, %v7122_v52  ;;  %v2464_v43 = vpack.c.bf16 %v1588_v47, %v1582_v11  ;;  %v6815_v27 = vadd.f32 %v6783_v44, %v6681_v2  ;;  %v1600_v47 = vld [vmem:[%s9899_s8 + $0x2978] sm:$0xff]  ;;  %vm13879_vm1 = vcmask 1031168  }
 0x55e   : > { %4524 = vmatprep.subr.bf16.mxu1 %v2554_v1  ;;  %v2553_v1 = vpack.c.bf16 %v1767_v38, %v1761_v17  ;;  %v7064_v6 = vadd.f32 %v7032_v29, %v6930_v63  ;;  %v7065_v62 = vadd.f32 %v7033_v22, %v6931_v35  ;;  %v2560_v28 = vpack.c.bf16 %v1780_v55, %v1774_v23  ;;  %v1587_v17 = vld [vmem:[%s9899_s8 + $0x2910] sm:$0xff]  ;;  %v1773_v38 = vld [vmem:[%s9899_s8 + $0x2ee0] sm:$0xff]  ;;  %v1594_v11 = vld [vmem:[%s9899_s8 + $0x2948] sm:$0xff] }
 0x55f   : > { %v11969_v7 = vpop.permute.xlu0 %7123  ;;  %v6932_v37 = vadd.f32 %v6900_v12, %v6815_v27  ;;  %v2463_v22 = vpack.c.bf16 %v1587_v17, %v1581_v33  ;;  %v7352_v23 = vmax.f32 %v7336_v39, 0.0  ;;  %v2470_v63 = vpack.c.bf16 %v1600_v47, %v1594_v11  ;;  %v1593_v27 = vld [vmem:[%s9899_s8 + $0x2940] sm:$0xff]  ;;  %v1606_v39 = vld [vmem:[%s9899_s8 + $0x29a8] sm:$0xff]  ;;  %v1620_v11 = vld [vmem:[%s9899_s8 + $0x2a18] sm:$0xff] }
 0x560   : > { %13846 = vst [vmem:[#allocation45_spill] sm:$0xff] %v11969_v7  ;;  %v11973_v50 = vpop.permute.xlu1 %7125  ;;  %v7181_v30 = vadd.f32 %v7149_v53, %v7064_v6  ;;  %v7182_v42 = vadd.f32 %v7150_v58, %v7065_v62  ;;  %v7151_v14 = vsel %vm7145_vm11, %v7122_v52, %v11969_v7  ;;  %v1792_v52 = vld [vmem:[%s9899_s8 + $0x2f78] sm:$0xff]  ;;  %v1599_v6 = vld [vmem:[%s9899_s8 + $0x2970] sm:$0xff]  ;;  %v1785_v62 = vld [vmem:[%s9899_s8 + $0x2f40] sm:$0xff] }
 0x561   : > { %13847 = vst [vmem:[#allocation64_spill] sm:$0xff] %v11973_v50  ;;  %v7066_v9 = vadd.f32 %v7034_v59, %v6932_v37  ;;  %v2566_v53 = vpack.c.bf16 %v1792_v52, %v1786_v21  ;;  %v1612_v37 = vld [vmem:[%s9899_s8 + $0x29d8] sm:$0xff]  ;;  %v1605_v17 = vld [vmem:[%s9899_s8 + $0x29a0] sm:$0xff]  ;;  %v1626_v47 = vld [vmem:[%s9899_s8 + $0x2a48] sm:$0xff] }
 0x562   : > { %vm13884_vm8 = vmmov %vm13879_vm1 }
 0x563   : > { %v7256_v41 = vpop.permute.xlu0 %7255  ;;  %v7183_v44 = vadd.f32 %v7151_v14, %v7066_v9  ;;  %v2469_v14 = vpack.c.bf16 %v1599_v6, %v1593_v27  ;;  %v1797_v9 = vld [vmem:[%s9899_s8 + $0x2fa0] sm:$0xff] }
 0x564   : > { %v7254_v3 = vpop.permute.xlu1 %7253  ;;  %4276 = vmatpush1.bf16.xpose.msra.mxu0 %v2457_v5  ;;  %v1779_v5 = vld [vmem:[%s9899_s8 + $0x2f10] sm:$0xff]  ;;  %v9473_v6 = vld [vmem:[#allocation8] ss:$24 sps:$4 sm:$0xff]  }
 0x565   : > { %v7283_v54 = vsel %vm13702_vm14, %v13840_v61, %v7254_v3  ;;  %v7284_v4 = vsel %vm13702_vm14, %v7254_v3, %v7256_v41  ;;  %4525 = vmatpush1.bf16.xpose.msra.mxu1 %v2553_v1  ;;  %4277 = vmatprep.subr.bf16.mxu0 %v2464_v43  ;;  %v2559_v2 = vpack.c.bf16 %v1779_v5, %v1773_v38  ;;  %v1611_v38 = vld [vmem:[%s9899_s8 + $0x29d0] sm:$0xff]  ;;  %v1434_v5 = vld [vmem:[%s9899_s8 + $0x2448] sm:$0xff] }
 0x566   : > { %v7315_v34 = vadd.f32 %v7283_v54, %v7181_v30  ;;  %v7316_v56 = vadd.f32 %v7284_v4, %v7182_v42  ;;  %4526 = vmatprep.subr.bf16.mxu1 %v2560_v28  ;;  %v1798_v30 = vld [vmem:[%s9899_s8 + $0x2fa8] sm:$0xff]  ;;  %v1804_v42 = vld [vmem:[%s9899_s8 + $0x2fd8] sm:$0xff]  ;;  %v2476_v4 = vpack.c.bf16 %v1612_v37, %v1606_v39  ;;  %v2475_v21 = vpack.c.bf16 %v1611_v38, %v1605_v17  ;;  %v1451_v38 = vld [vmem:[%s9899_s8 + $0x24d0] sm:$0xff] }
 0x567   : > { %v2572_v33 = vpack.c.bf16 %v1804_v42, %v1798_v30  ;;  %v1452_v39 = vld [vmem:[%s9899_s8 + $0x24d8] sm:$0xff]  ;;  %v1458_v37 = vld [vmem:[%s9899_s8 + $0x2508] sm:$0xff] }
 0x568   : > { %v7337_v29 = vadd.f32 %v13848_v48, %v7315_v34  ;;  %v11999_v61 = vpop.permute.xlu1 %7257  ;;  %v7338_v35 = vadd.f32 %v13848_v48, %v7316_v56  ;;  %v1803_v34 = vld [vmem:[%s9899_s8 + $0x2fd0] sm:$0xff]  ;;  %v1428_v56 = vld [vmem:[%s9899_s8 + $0x2418] sm:$0xff] }
 0x569   : > { %13849 = vst [vmem:[#allocation63_spill] sm:$0xff] %v11999_v61  ;;  %v7285_v55 = vsel %vm13702_vm14, %v7256_v41, %v11999_v61  ;;  %v1791_v41 = vld [vmem:[%s9899_s8 + $0x2f70] sm:$0xff]  ;;  %v2571_v52 = vpack.c.bf16 %v1803_v34, %v1797_v9  ;;  %v1644_v42 = vld [vmem:[%s9899_s8 + $0x2ad8] sm:$0xff]  ;;  %v1457_v9 = vld [vmem:[%s9899_s8 + $0x2500] sm:$0xff] }
 0x56a   : > { %v7353_v1 = vmax.f32 %v7337_v29, 0.0  ;;  %v7317_v12 = vadd.f32 %v7285_v55, %v7183_v44  ;;  %v7354_v28 = vmax.f32 %v7338_v35, 0.0  ;;  %v2565_v54 = vpack.c.bf16 %v1791_v41, %v1785_v62  ;;  %v1619_v55 = vld [vmem:[%s9899_s8 + $0x2a10] sm:$0xff]  ;;  %v1446_v35 = vld [vmem:[%s9899_s8 + $0x24a8] sm:$0xff]  ;;  %v1637_v41 = vld [vmem:[%s9899_s8 + $0x2aa0] sm:$0xff] }
 0x56b   : > { %v2388_v44 = vpack.c.bf16 %v1434_v5, %v1428_v56  ;;  %v2484_v29 = vpack.c.bf16 %v1626_v47, %v1620_v11  ;;  %v1439_v62 = vld [vmem:[%s9899_s8 + $0x2470] sm:$0xff]  ;;  %v1649_v56 = vld [vmem:[%s9899_s8 + $0x2b00] sm:$0xff]  ;;  %v1464_v5 = vld [vmem:[%s9899_s8 + $0x2538] sm:$0xff] }
 0x56c   : > { %v7383_v58 = vcombine.low %v7352_v23, %v7353_v1  ;;  %v7339_v43 = vadd.f32 %v13848_v48, %v7317_v12  ;;  %4278 = vmatpush1.bf16.xpose.msra.mxu0 %v2463_v22  ;;  %v1427_v22 = vld [vmem:[%s9899_s8 + $0x2410] sm:$0xff]  ;;  %v1433_v23 = vld [vmem:[%s9899_s8 + $0x2440] sm:$0xff]  ;;  %v1632_v1 = vld [vmem:[%s9899_s8 + $0x2a78] sm:$0xff] }
 0x56d   : > { %4527 = vmatpush1.bf16.xpose.msra.mxu1 %v2559_v2  ;;  %4279 = vmatprep.subr.bf16.mxu0 %v2470_v63  ;;  %v1625_v2 = vld [vmem:[%s9899_s8 + $0x2a40] sm:$0xff]  ;;  %v1440_v63 = vld [vmem:[%s9899_s8 + $0x2478] sm:$0xff]  ;;  %v1638_v12 = vld [vmem:[%s9899_s8 + $0x2aa8] sm:$0xff] }
 0x56e   : > { %7399 = vst [vmem:[#allocation3 + $0x8] sm:$0xff] %v7383_v58  ;;  %v7355_v59 = vmax.f32 %v7339_v43, 0.0  ;;  %4528 = vmatprep.subr.bf16.mxu1 %v2566_v53  ;;  %v2387_v53 = vpack.c.bf16 %v1433_v23, %v1427_v22  ;;  %v2483_v58 = vpack.c.bf16 %v1625_v2, %v1619_v55  ;;  %v2394_v43 = vpack.c.bf16 %v1446_v35, %v1440_v63  ;;  %v9474_v30 = vld [vmem:[#allocation8 + $0x34] ss:$24 sps:$4 sm:$0xff]   ;;  %v9475_v17 = vld [vmem:[#allocation8 + $0x30] ss:$24 sps:$4 sm:$0xff]  }
 0x56f   : > { %v2490_v27 = vpack.c.bf16 %v1638_v12, %v1632_v1  ;;  %v1643_v34 = vld [vmem:[%s9899_s8 + $0x2ad0] sm:$0xff]  ;;  %v1470_v11 = vld [vmem:[%s9899_s8 + $0x2568] sm:$0xff]  ;;  %v9476_v47 = vld [vmem:[#allocation8 + $0x64] ss:$24 sps:$4 sm:$0xff]  }
 0x570   : > { %v7384_v3 = vcombine.low %v7354_v28, %v7355_v59  ;;  %v1445_v28 = vld [vmem:[%s9899_s8 + $0x24a0] sm:$0xff]  ;;  %v1631_v59 = vld [vmem:[%s9899_s8 + $0x2a70] sm:$0xff]  ;;  %v2406_v22 = vpack.c.bf16 %v1470_v11, %v1464_v5  ;;  %v1476_v12 = vld [vmem:[%s9899_s8 + $0x2598] sm:$0xff] }
 0x571   : > { %v9477_v55 = vld [vmem:[#allocation8 + $0x60] ss:$24 sps:$4 sm:$0xff]   ;;  %v1463_v2 = vld [vmem:[%s9899_s8 + $0x2530] sm:$0xff] }
 0x572   : > { %7400 = vst [vmem:[#allocation3 + $0x10] sm:$0xff] %v7384_v3  ;;  %v1650_v3 = vld [vmem:[%s9899_s8 + $0x2b08] sm:$0xff]  ;;  %v1469_v63 = vld [vmem:[%s9899_s8 + $0x2560] sm:$0xff]  ;;  %v1655_v35 = vld [vmem:[%s9899_s8 + $0x2b30] sm:$0xff] }
 0x573   : > { %v1661_v1 = vld [vmem:[%s9899_s8 + $0x2b60] sm:$0xff]  ;;  %v1487_v5 = vld [vmem:[%s9899_s8 + $0x25f0] sm:$0xff] }
 0x574   : > { %4280 = vmatpush1.bf16.xpose.msra.mxu0 %v2469_v14  ;;  %v2393_v14 = vpack.c.bf16 %v1445_v28, %v1439_v62  ;;  %v2501_v62 = vpack.c.bf16 %v1661_v1, %v1655_v35  ;;  %v1493_v11 = vld [vmem:[%s9899_s8 + $0x2620] sm:$0xff]  ;;  %v1499_v1 = vld [vmem:[%s9899_s8 + $0x2650] sm:$0xff] }
 0x575   : > { %4529 = vmatpush1.bf16.xpose.msra.mxu1 %v2565_v54  ;;  %4281 = vmatprep.subr.bf16.mxu0 %v2476_v4  ;;  %v2489_v54 = vpack.c.bf16 %v1637_v41, %v1631_v59  ;;  %v2400_v4 = vpack.c.bf16 %v1458_v37, %v1452_v39  ;;  %v9479_v41 = vld [vmem:[#allocation8 + $0x90] ss:$24 sps:$4 sm:$0xff]   ;;  %v1481_v37 = vld [vmem:[%s9899_s8 + $0x25c0] sm:$0xff] }
 0x576   : > { %4530 = vmatprep.subr.bf16.mxu1 %v2572_v33  ;;  %v2496_v33 = vpack.c.bf16 %v1650_v3, %v1644_v42  ;;  %v1475_v39 = vld [vmem:[%s9899_s8 + $0x2590] sm:$0xff]  ;;  %v1673_v42 = vld [vmem:[%s9899_s8 + $0x2bc0] sm:$0xff]  ;;  %v1488_v3 = vld [vmem:[%s9899_s8 + $0x25f8] sm:$0xff] }
 0x57c   : > { %4282 = vmatpush1.bf16.xpose.msra.mxu0 %v2475_v21  ;;  %v1656_v21 = vld [vmem:[%s9899_s8 + $0x2b38] sm:$0xff] }
 0x57d   : > { %4531 = vmatpush1.bf16.xpose.msra.mxu1 %v2571_v52  ;;  %4334 = vmatprep.subr.bf16.mxu0 %v2388_v44  ;;  %v1662_v52 = vld [vmem:[%s9899_s8 + $0x2b68] sm:$0xff]  ;;  %v2399_v44 = vpack.c.bf16 %v1457_v9, %v1451_v38 }
 0x57e   : > { %4583 = vmatprep.subr.bf16.mxu1 %v2484_v29  ;;  %v2495_v29 = vpack.c.bf16 %v1649_v56, %v1643_v34  ;;  %v2502_v23 = vpack.c.bf16 %v1662_v52, %v1656_v21  ;;  %v9481_v56 = vld [vmem:[#allocation8 + $0xc0] ss:$24 sps:$4 sm:$0xff]  }
 0x57f   : > { %v1685_v21 = vld [vmem:[%s9899_s8 + $0x2c20] sm:$0xff]  ;;  %v1500_v52 = vld [vmem:[%s9899_s8 + $0x2658] sm:$0xff] }
 0x583   : > { %4284 = vmatmul.mubr.bf16.vlgmr.msra.gmra.mrb[60].mxu0 %v9473_v6 }
 0x584   : > { %4335 = vmatpush1.bf16.xpose.msra.mxu0 %v2387_v53  ;;  %4533 = vmatmul.mubr.bf16.vlgmr.msra.gmra.mrb[60].mxu1 %v9473_v6  ;;  %v1482_v53 = vld [vmem:[%s9899_s8 + $0x25c8] sm:$0xff]  ;;  %v2405_v6 = vpack.c.bf16 %v1469_v63, %v1463_v2 }
 0x585   : > { %4584 = vmatpush1.bf16.xpose.msra.mxu1 %v2483_v58  ;;  %4336 = vmatprep.subr.bf16.mxu0 %v2394_v43  ;;  %v9478_v58 = vld [vmem:[#allocation8 + $0x94] ss:$24 sps:$4 sm:$0xff]   ;;  %v1668_v43 = vld [vmem:[%s9899_s8 + $0x2b98] sm:$0xff]  ;;  %v2412_v28 = vpack.c.bf16 %v1482_v53, %v1476_v12  ;;  %v1505_v12 = vld [vmem:[%s9899_s8 + $0x2680] sm:$0xff] }
 0x586   : > { %4585 = vmatprep.subr.bf16.mxu1 %v2490_v27  ;;  %4293 = vmatprep.mubr.bf16.mxu0 %v9474_v30  ;;  %v1674_v27 = vld [vmem:[%s9899_s8 + $0x2bc8] sm:$0xff]  ;;  %v1691_v53 = vld [vmem:[%s9899_s8 + $0x2c50] sm:$0xff] }
 0x587   : > { %4542 = vmatprep.mubr.bf16.mxu1 %v9474_v30  ;;  %v2508_v59 = vpack.c.bf16 %v1674_v27, %v1668_v43  ;;  %v1667_v30 = vld [vmem:[%s9899_s8 + $0x2b90] sm:$0xff]  ;;  %v1512_v43 = vld [vmem:[%s9899_s8 + $0x26b8] sm:$0xff]  ;;  %v1518_v27 = vld [vmem:[%s9899_s8 + $0x26e8] sm:$0xff] }
 0x588   : > { %v2507_v38 = vpack.c.bf16 %v1673_v42, %v1667_v30  ;;  %v1517_v30 = vld [vmem:[%s9899_s8 + $0x26e0] sm:$0xff]  ;;  %v1703_v42 = vld [vmem:[%s9899_s8 + $0x2cb0] sm:$0xff] }
 0x58b   : > { %4294 = vmatmul.mubr.bf16.gmra.mrb[64].mxu0 %v9475_v17 }
 0x58c   : > { %4337 = vmatpush1.bf16.xpose.msra.mxu0 %v2393_v14  ;;  %4543 = vmatmul.mubr.bf16.gmra.mrb[64].mxu1 %v9475_v17  ;;  %v1494_v14 = vld [vmem:[%s9899_s8 + $0x2628] sm:$0xff]  ;;  %v2411_v17 = vpack.c.bf16 %v1481_v37, %v1475_v39  ;;  %v1511_v37 = vld [vmem:[%s9899_s8 + $0x26b0] sm:$0xff] }
 0x58d   : > { %4586 = vmatpush1.bf16.xpose.msra.mxu1 %v2489_v54  ;;  %4338 = vmatprep.subr.bf16.mxu0 %v2400_v4  ;;  %v9480_v54 = vld [vmem:[#allocation8 + $0xc4] ss:$24 sps:$4 sm:$0xff]   ;;  %v2418_v9 = vpack.c.bf16 %v1494_v14, %v1488_v3 }
 0x58e   : > { %4587 = vmatprep.subr.bf16.mxu1 %v2496_v33  ;;  %4303 = vmatprep.mubr.bf16.mxu0 %v9476_v47  ;;  %v1680_v4 = vld [vmem:[%s9899_s8 + $0x2bf8] sm:$0xff]  ;;  %v1686_v33 = vld [vmem:[%s9899_s8 + $0x2c28] sm:$0xff]  ;;  %v1709_v3 = vld [vmem:[%s9899_s8 + $0x2ce0] sm:$0xff] }
 0x58f   : > { %4552 = vmatprep.mubr.bf16.mxu1 %v9476_v47  ;;  %v2514_v34 = vpack.c.bf16 %v1686_v33, %v1680_v4  ;;  %v1679_v47 = vld [vmem:[%s9899_s8 + $0x2bf0] sm:$0xff]  ;;  %v1524_v14 = vld [vmem:[%s9899_s8 + $0x2718] sm:$0xff]  ;;  %v1722_v33 = vld [vmem:[%s9899_s8 + $0x2d48] sm:$0xff] }
 0x590   : > { %v2513_v2 = vpack.c.bf16 %v1685_v21, %v1679_v47  ;;  %v1716_v4 = vld [vmem:[%s9899_s8 + $0x2d18] sm:$0xff]  ;;  %v1721_v47 = vld [vmem:[%s9899_s8 + $0x2d40] sm:$0xff] }
 0x591   : > { %v1536_v21 = vld [vmem:[%s9899_s8 + $0x2778] sm:$0xff] }
 0x593   : > { %4304 = vmatmul.mubr.bf16.gmra.mrb[68].mxu0 %v9477_v55 }
 0x594   : > { %4339 = vmatpush1.bf16.xpose.msra.mxu0 %v2399_v44  ;;  %4553 = vmatmul.mubr.bf16.gmra.mrb[68].mxu1 %v9477_v55  ;;  %v1506_v44 = vld [vmem:[%s9899_s8 + $0x2688] sm:$0xff]  ;;  %v2417_v55 = vpack.c.bf16 %v1493_v11, %v1487_v5  ;;  %v1529_v5 = vld [vmem:[%s9899_s8 + $0x2740] sm:$0xff]  ;;  %v1715_v11 = vld [vmem:[%s9899_s8 + $0x2d10] sm:$0xff] }
 0x595   : > { %4588 = vmatpush1.bf16.xpose.msra.mxu1 %v2495_v29  ;;  %4340 = vmatprep.subr.bf16.mxu0 %v2406_v22  ;;  %v9482_v29 = vld [vmem:[#allocation8 + $0xc] ss:$24 sps:$4 sm:$0xff]   ;;  %v1692_v22 = vld [vmem:[%s9899_s8 + $0x2c58] sm:$0xff]  ;;  %v2424_v63 = vpack.c.bf16 %v1506_v44, %v1500_v52 }
 0x596   : > { %4589 = vmatprep.subr.bf16.mxu1 %v2502_v23  ;;  %4313 = vmatprep.mubr.bf16.mxu0 %v9478_v58  ;;  %v1698_v23 = vld [vmem:[%s9899_s8 + $0x2c88] sm:$0xff]  ;;  %v1728_v44 = vld [vmem:[%s9899_s8 + $0x2d78] sm:$0xff] }
 0x597   : > { %4562 = vmatprep.mubr.bf16.mxu1 %v9478_v58  ;;  %v2520_v35 = vpack.c.bf16 %v1698_v23, %v1692_v22  ;;  %v1697_v58 = vld [vmem:[%s9899_s8 + $0x2c80] sm:$0xff]  ;;  %v1542_v52 = vld [vmem:[%s9899_s8 + $0x27a8] sm:$0xff]  ;;  %v2531_v23 = vpack.c.bf16 %v1721_v47, %v1715_v11  ;;  %v1572_v47 = vld [vmem:[%s9899_s8 + $0x2898] sm:$0xff] }
 0x598   : > { %v1757_v11 = vld [vmem:[%s9899_s8 + $0x2e60] sm:$0xff] }
 0x59b   : > { %4314 = vmatmul.mubr.bf16.gmra.mrb[72].mxu0 %v9479_v41 }
 0x59c   : > { %4341 = vmatpush1.bf16.xpose.msra.mxu0 %v2405_v6  ;;  %4563 = vmatmul.mubr.bf16.gmra.mrb[72].mxu1 %v9479_v41  ;;  %v1704_v6 = vld [vmem:[%s9899_s8 + $0x2cb8] sm:$0xff]  ;;  %v2430_v41 = vpack.c.bf16 %v1518_v27, %v1512_v43  ;;  %v1746_v27 = vld [vmem:[%s9899_s8 + $0x2e08] sm:$0xff] }
 0x59d   : > { %4590 = vmatpush1.bf16.xpose.msra.mxu1 %v2501_v62  ;;  %4342 = vmatprep.subr.bf16.mxu0 %v2412_v28  ;;  %v1710_v62 = vld [vmem:[%s9899_s8 + $0x2ce8] sm:$0xff]  ;;  %v2423_v28 = vpack.c.bf16 %v1505_v12, %v1499_v1  ;;  %v1727_v1 = vld [vmem:[%s9899_s8 + $0x2d70] sm:$0xff]  ;;  %v1733_v12 = vld [vmem:[%s9899_s8 + $0x2da0] sm:$0xff] }
 0x59e   : > { %4591 = vmatprep.subr.bf16.mxu1 %v2508_v59  ;;  %4323 = vmatprep.mubr.bf16.mxu0 %v9480_v54  ;;  %v2519_v59 = vpack.c.bf16 %v1697_v58, %v1691_v53  ;;  %v2526_v39 = vpack.c.bf16 %v1710_v62, %v1704_v6  ;;  %v1548_v53 = vld [vmem:[%s9899_s8 + $0x27d8] sm:$0xff]  ;;  %v1554_v58 = vld [vmem:[%s9899_s8 + $0x2808] sm:$0xff]  ;;  %v2537_v62 = vpack.c.bf16 %v1733_v12, %v1727_v1 }
 0x59f   : > { %4572 = vmatprep.mubr.bf16.mxu1 %v9480_v54  ;;  %v1530_v54 = vld [vmem:[%s9899_s8 + $0x2748] sm:$0xff]  ;;  %v1740_v43 = vld [vmem:[%s9899_s8 + $0x2dd8] sm:$0xff] }
 0x5a3   : > { %4324 = vmatmul.mubr.bf16.gmra.mrb[76].mxu0 %v9481_v56 }
 0x5a4   : > { %4343 = vmatpush1.bf16.xpose.msra.mxu0 %v2411_v17  ;;  %4573 = vmatmul.mubr.bf16.gmra.mrb[76].mxu1 %v9481_v56  ;;  %v2429_v17 = vpack.c.bf16 %v1517_v30, %v1511_v37  ;;  %v1523_v56 = vld [vmem:[%s9899_s8 + $0x2710] sm:$0xff]  ;;  %v1745_v30 = vld [vmem:[%s9899_s8 + $0x2e00] sm:$0xff] }
 0x5a5   : > { %4592 = vmatpush1.bf16.xpose.msra.mxu1 %v2507_v38  ;;  %4344 = vmatprep.subr.bf16.mxu0 %v2418_v9  ;;  %v2525_v38 = vpack.c.bf16 %v1709_v3, %v1703_v42  ;;  %v2436_v9 = vpack.c.bf16 %v1530_v54, %v1524_v14  ;;  %v2435_v22 = vpack.c.bf16 %v1529_v5, %v1523_v56  ;;  %v1739_v37 = vld [vmem:[%s9899_s8 + $0x2dd0] sm:$0xff]  ;;  %v1560_v42 = vld [vmem:[%s9899_s8 + $0x2838] sm:$0xff]  ;;  %v1566_v3 = vld [vmem:[%s9899_s8 + $0x2868] sm:$0xff] }
 0x5a6   : > { %4593 = vmatprep.subr.bf16.mxu1 %v2514_v34  ;;  %4366 = vmatprep.mubr.bf16.mxu0 %v9482_v29  ;;  %v2532_v34 = vpack.c.bf16 %v1722_v33, %v1716_v4  ;;  %v1752_v14 = vld [vmem:[%s9899_s8 + $0x2e38] sm:$0xff]  ;;  %v1758_v54 = vld [vmem:[%s9899_s8 + $0x2e68] sm:$0xff]  ;;  %v2543_v33 = vpack.c.bf16 %v1745_v30, %v1739_v37  ;;  %v1751_v56 = vld [vmem:[%s9899_s8 + $0x2e30] sm:$0xff] }
 0x5a7   : > { %4615 = vmatprep.mubr.bf16.mxu1 %v9482_v29  ;;  %v1734_v29 = vld [vmem:[%s9899_s8 + $0x2da8] sm:$0xff]  ;;  %v2549_v1 = vpack.c.bf16 %v1757_v11, %v1751_v56 }
 0x5ac   : > { %4345 = vmatpush1.bf16.xpose.msra.mxu0 %v2417_v55  ;;  %v2442_v55 = vpack.c.bf16 %v1542_v52, %v1536_v21  ;;  %v1578_v21 = vld [vmem:[%s9899_s8 + $0x28c8] sm:$0xff] }
 0x5ad   : > { %4594 = vmatpush1.bf16.xpose.msra.mxu1 %v2513_v2  ;;  %4346 = vmatprep.subr.bf16.mxu0 %v2424_v63  ;;  %v2538_v2 = vpack.c.bf16 %v1734_v29, %v1728_v44  ;;  %v1535_v63 = vld [vmem:[%s9899_s8 + $0x2770] sm:$0xff]  ;;  %v1764_v29 = vld [vmem:[%s9899_s8 + $0x2e98] sm:$0xff]  ;;  %v2460_v12 = vpack.c.bf16 %v1578_v21, %v1572_v47 }
 0x5ae   : > { %4595 = vmatprep.subr.bf16.mxu1 %v2520_v35  ;;  %v1541_v35 = vld [vmem:[%s9899_s8 + $0x27a0] sm:$0xff] }
 0x5af   : > { %v2441_v6 = vpack.c.bf16 %v1541_v35, %v1535_v63 }
 0x5b4   : > { %4347 = vmatpush1.bf16.xpose.msra.mxu0 %v2423_v28  ;;  %v2448_v28 = vpack.c.bf16 %v1554_v58, %v1548_v53 }
 0x5b5   : > { %4596 = vmatpush1.bf16.xpose.msra.mxu1 %v2519_v59  ;;  %4348 = vmatprep.subr.bf16.mxu0 %v2430_v41  ;;  %v2544_v59 = vpack.c.bf16 %v1746_v27, %v1740_v43  ;;  %v1547_v41 = vld [vmem:[%s9899_s8 + $0x27d0] sm:$0xff]  ;;  %v1577_v27 = vld [vmem:[%s9899_s8 + $0x28c0] sm:$0xff] }
 0x5b6   : > { %4597 = vmatprep.subr.bf16.mxu1 %v2526_v39  ;;  %v1553_v39 = vld [vmem:[%s9899_s8 + $0x2800] sm:$0xff]  ;;  %v1571_v43 = vld [vmem:[%s9899_s8 + $0x2890] sm:$0xff] }
 0x5b7   : > { %v2447_v4 = vpack.c.bf16 %v1553_v39, %v1547_v41  ;;  %v1584_v41 = vld [vmem:[%s9899_s8 + $0x28f8] sm:$0xff] }
 0x5bc   : > { %4349 = vmatpush1.bf16.xpose.msra.mxu0 %v2429_v17  ;;  %v2454_v17 = vpack.c.bf16 %v1566_v3, %v1560_v42  ;;  %v1590_v42 = vld [vmem:[%s9899_s8 + $0x2928] sm:$0xff]  ;;  %v1776_v3 = vld [vmem:[%s9899_s8 + $0x2ef8] sm:$0xff] }
 0x5bd   : > { %4598 = vmatpush1.bf16.xpose.msra.mxu1 %v2525_v38  ;;  %4350 = vmatprep.subr.bf16.mxu0 %v2436_v9  ;;  %v2550_v38 = vpack.c.bf16 %v1758_v54, %v1752_v14  ;;  %v1559_v9 = vld [vmem:[%s9899_s8 + $0x2830] sm:$0xff]  ;;  %v1782_v14 = vld [vmem:[%s9899_s8 + $0x2f28] sm:$0xff]  ;;  %v2466_v11 = vpack.c.bf16 %v1590_v42, %v1584_v41 }
 0x5be   : > { %4599 = vmatprep.subr.bf16.mxu1 %v2532_v34  ;;  %v1565_v34 = vld [vmem:[%s9899_s8 + $0x2860] sm:$0xff]  ;;  %v2562_v21 = vpack.c.bf16 %v1782_v14, %v1776_v3 }
 0x5c4   : > { %4351 = vmatpush1.bf16.xpose.msra.mxu0 %v2435_v22  ;;  %v1770_v22 = vld [vmem:[%s9899_s8 + $0x2ec8] sm:$0xff] }
 0x5c5   : > { %4600 = vmatpush1.bf16.xpose.msra.mxu1 %v2531_v23  ;;  %4352 = vmatprep.subr.bf16.mxu0 %v2442_v55  ;;  %v2556_v58 = vpack.c.bf16 %v1770_v22, %v1764_v29  ;;  %v1589_v22 = vld [vmem:[%s9899_s8 + $0x2920] sm:$0xff] }
 0x5c6   : > { %4601 = vmatprep.subr.bf16.mxu1 %v2538_v2  ;;  %v2453_v2 = vpack.c.bf16 %v1565_v34, %v1559_v9 }
 0x5cc   : > { %4353 = vmatpush1.bf16.xpose.msra.mxu0 %v2441_v6  ;;  %v1763_v6 = vld [vmem:[%s9899_s8 + $0x2e90] sm:$0xff] }
 0x5cd   : > { %4602 = vmatpush1.bf16.xpose.msra.mxu1 %v2537_v62  ;;  %4354 = vmatprep.subr.bf16.mxu0 %v2448_v28 }
 0x5ce   : > { %4603 = vmatprep.subr.bf16.mxu1 %v2544_v59  ;;  %v1769_v59 = vld [vmem:[%s9899_s8 + $0x2ec0] sm:$0xff] }
 0x5cf   : > { %v2555_v56 = vpack.c.bf16 %v1769_v59, %v1763_v6 }
 0x5d4   : > { %4355 = vmatpush1.bf16.xpose.msra.mxu0 %v2447_v4 }
 0x5d5   : > { %4604 = vmatpush1.bf16.xpose.msra.mxu1 %v2543_v33  ;;  %4356 = vmatprep.subr.bf16.mxu0 %v2454_v17  ;;  %v2459_v17 = vpack.c.bf16 %v1577_v27, %v1571_v43 }
 0x5d6   : > { %v3953_v5 = vpop.f32.mrb[40].mxu0  ;;  %4605 = vmatprep.subr.bf16.mxu1 %v2550_v38 }
 0x5d7   : > { %4757 = vst [vmem:[#allocation2 + $0x40] sm:$0xff] %v3953_v5  ;;  %v4202_v52 = vpop.f32.mrb[40].mxu1  ;;  %v3955_v44 = vpop.f32.mrb[41].mxu0 }
 0x5d8   : > { %4759 = vst [vmem:[#allocation2 + $0x50] sm:$0xff] %v4202_v52  ;;  %4758 = vst [vmem:[#allocation2 + $0x48] sm:$0xff] %v3955_v44  ;;  %v4204_v23 = vpop.f32.mrb[41].mxu1  ;;  %v3957_v55 = vpop.f32.mrb[42].mxu0  ;;  %v1583_v52 = vld [vmem:[%s9899_s8 + $0x28f0] sm:$0xff] }
 0x5d9   : > { %4760 = vst [vmem:[#allocation2 + $0x58] sm:$0xff] %v4204_v23  ;;  %4773 = vst [vmem:[#allocation2 + $0xc8] sm:$0xff] %v3957_v55  ;;  %v4206_v63 = vpop.f32.mrb[42].mxu1  ;;  %v3959_v35 = vpop.f32.mrb[43].mxu0  ;;  %v1775_v55 = vld [vmem:[%s9899_s8 + $0x2ef0] sm:$0xff] }
 0x5da   : > { %4775 = vst [vmem:[#allocation2 + $0xd8] sm:$0xff] %v4206_v63  ;;  %4774 = vst [vmem:[#allocation2 + $0xd0] sm:$0xff] %v3959_v35  ;;  %v4208_v53 = vpop.f32.mrb[43].mxu1 }
 0x5db   : > { %4776 = vst [vmem:[#allocation2 + $0xe0] sm:$0xff] %v4208_v53  ;;  %v1788_v53 = vld [vmem:[%s9899_s8 + $0x2f58] sm:$0xff] }
 0x5dc   : > { %4357 = vmatpush1.bf16.xpose.msra.mxu0 %v2453_v2  ;;  %v1781_v2 = vld [vmem:[%s9899_s8 + $0x2f20] sm:$0xff] }
 0x5dd   : > { %4606 = vmatpush1.bf16.xpose.msra.mxu1 %v2549_v1  ;;  %4358 = vmatprep.subr.bf16.mxu0 %v2460_v12  ;;  %v1596_v1 = vld [vmem:[%s9899_s8 + $0x2958] sm:$0xff]  ;;  %v1602_v12 = vld [vmem:[%s9899_s8 + $0x2988] sm:$0xff] }
 0x5de   : > { %v3963_v62 = vpop.f32.mrb[44].mxu0  ;;  %v4943_v28 = vld [vmem:[#allocation2 + $0x40] sm:$0xf0]  ;;  %4607 = vmatprep.subr.bf16.mxu1 %v2556_v58  ;;  %v2472_v42 = vpack.c.bf16 %v1602_v12, %v1596_v1 }
 0x5df   : > { %4789 = vst [vmem:[#allocation2 + $0x150] sm:$0xff] %v3963_v62  ;;  %v4212_v39 = vpop.f32.mrb[44].mxu1  ;;  %v3965_v37 = vpop.f32.mrb[45].mxu0  ;;  %v4977_v30 = vrot.slane %v4943_v28, 4  ;;  %v4945_v38 = vld [vmem:[#allocation2 + $0x50] sm:$0xf0]  ;;  %v2465_v62 = vpack.c.bf16 %v1589_v22, %v1583_v52 }
 0x5e0   : > { %4791 = vst [vmem:[#allocation2 + $0x160] sm:$0xff] %v4212_v39  ;;  %4790 = vst [vmem:[#allocation2 + $0x158] sm:$0xff] %v3965_v37  ;;  %v4214_v54 = vpop.f32.mrb[45].mxu1  ;;  %v3967_v4 = vpop.f32.mrb[46].mxu0  ;;  %v5077_v33 = vld [vmem:[#allocation2 + $0xc8] sm:$0xf]  ;;  %v2561_v39 = vpack.c.bf16 %v1781_v2, %v1775_v55 }
 0x5e1   : > { %4792 = vst [vmem:[#allocation2 + $0x168] sm:$0xff] %v4214_v54  ;;  %4805 = vst [vmem:[#allocation2 + $0x1d8] sm:$0xff] %v3967_v4  ;;  %v4216_v9 = vpop.f32.mrb[46].mxu1  ;;  %5002 = vrot.lane.b32.xlu0 %v4977_v30, %s13661_s7  ;;  %5119 = vrot.lane.b32.xlu1 %v5077_v33, %s13659_s24  ;;  %v3969_v34 = vpop.f32.mrb[47].mxu0  ;;  %v4979_v47 = vrot.slane %v4945_v38, 4  ;;  %v1794_v28 = vld [vmem:[%s9899_s8 + $0x2f88] sm:$0xff] }
 0x5e2   : > { %4807 = vst [vmem:[#allocation2 + $0x1e8] sm:$0xff] %v4216_v9  ;;  %v4218_v5 = vpop.f32.mrb[47].mxu1  ;;  %4806 = vst [vmem:[#allocation2 + $0x1e0] sm:$0xff] %v3969_v34  ;;  %v5079_v44 = vld [vmem:[#allocation2 + $0xd8] sm:$0xf]  ;;  %v2568_v3 = vpack.c.bf16 %v1794_v28, %v1788_v53  ;;  %v1787_v34 = vld [vmem:[%s9899_s8 + $0x2f50] sm:$0xff] }
 0x5e3   : > { %4808 = vst [vmem:[#allocation2 + $0x1f0] sm:$0xff] %v4218_v5  ;;  %v4944_v29 = vld [vmem:[#allocation2 + $0x48] sm:$0xf0]  ;;  %v5078_v6 = vld [vmem:[#allocation2 + $0xd0] sm:$0xf]  ;;  %v1601_v38 = vld [vmem:[%s9899_s8 + $0x2980] sm:$0xff] }
 0x5e4   : > { %4359 = vmatpush1.bf16.xpose.msra.mxu0 %v2459_v17  ;;  %v4978_v27 = vrot.slane %v4944_v29, 4  ;;  %v4946_v37 = vld [vmem:[#allocation2 + $0x58] sm:$0xf0]  ;;  %v5080_v54 = vld [vmem:[#allocation2 + $0xe0] sm:$0xf]  ;;  %v1595_v17 = vld [vmem:[%s9899_s8 + $0x2950] sm:$0xff] }
 0x5e5   : > { %4608 = vmatpush1.bf16.xpose.msra.mxu1 %v2555_v56  ;;  %5006 = vrot.lane.b32.xlu0 %v4979_v47, %s13661_s7  ;;  %v4980_v14 = vrot.slane %v4946_v37, 4  ;;  %v5194_v4 = vld [vmem:[#allocation2 + $0xc8] sm:$0xf0]  ;;  %v5195_v33 = vld [vmem:[#allocation2 + $0xd0] sm:$0xf0]  ;;  %v1614_v52 = vld [vmem:[%s9899_s8 + $0x29e8] sm:$0xff]  ;;  %v2471_v55 = vpack.c.bf16 %v1601_v38, %v1595_v17 }
 0x5e6   : > { %5123 = vrot.lane.b32.xlu1 %v5079_v44, %s13659_s24  ;;  %v3973_v23 = vpop.f32.mrb[48].mxu0  ;;  %4360 = vmatprep.subr.bf16.mxu0 %v2466_v11  ;;  %v1793_v56 = vld [vmem:[%s9899_s8 + $0x2f80] sm:$0xff]  ;;  %v5228_v47 = vrot.slane %v5194_v4, 4  ;;  %v1800_v44 = vld [vmem:[%s9899_s8 + $0x2fb8] sm:$0xff]  ;;  %v5196_v2 = vld [vmem:[#allocation2 + $0xd8] sm:$0xf0] }
 0x5e7   : > { %4821 = vst [vmem:[#allocation2 + $0x260] sm:$0xff] %v3973_v23  ;;  %v4222_v63 = vpop.f32.mrb[48].mxu1  ;;  %v3975_v35 = vpop.f32.mrb[49].mxu0  ;;  %4609 = vmatprep.subr.bf16.mxu1 %v2562_v21  ;;  %v1608_v21 = vld [vmem:[%s9899_s8 + $0x29b8] sm:$0xff]  ;;  %v5229_v23 = vrot.slane %v5195_v33, 4  ;;  %v2567_v12 = vpack.c.bf16 %v1793_v56, %v1787_v34  ;;  %v1607_v28 = vld [vmem:[%s9899_s8 + $0x29b0] sm:$0xff] }
 0x5e8   : > { %4823 = vst [vmem:[#allocation2 + $0x270] sm:$0xff] %v4222_v63  ;;  %4822 = vst [vmem:[#allocation2 + $0x268] sm:$0xff] %v3975_v35  ;;  %v4224_v58 = vpop.f32.mrb[49].mxu1  ;;  %v3977_v43 = vpop.f32.mrb[50].mxu0  ;;  %v1806_v63 = vld [vmem:[%s9899_s8 + $0x2fe8] sm:$0xff]  ;;  %v1805_v37 = vld [vmem:[%s9899_s8 + $0x2fe0] sm:$0xff] }
 0x5e9   : > { %4824 = vst [vmem:[#allocation2 + $0x278] sm:$0xff] %v4224_v58  ;;  %4837 = vst [vmem:[#allocation2 + $0x2e8] sm:$0xff] %v3977_v43  ;;  %v4226_v59 = vpop.f32.mrb[50].mxu1  ;;  %5121 = vrot.lane.b32.xlu0 %v5078_v6, %s13659_s24  ;;  %v3979_v41 = vpop.f32.mrb[51].mxu0  ;;  %v5197_v53 = vld [vmem:[#allocation2 + $0xe0] sm:$0xf0]  ;;  %v2478_v43 = vpack.c.bf16 %v1614_v52, %v1608_v21  ;;  %v2574_v6 = vpack.c.bf16 %v1806_v63, %v1800_v44 }
 0x5ea   : > { %4839 = vst [vmem:[#allocation2 + $0x2f8] sm:$0xff] %v4226_v59  ;;  %v4228_v30 = vpop.f32.mrb[51].mxu1  ;;  %5004 = vrot.lane.b32.xlu1 %v4978_v27, %s13661_s7  ;;  %4838 = vst [vmem:[#allocation2 + $0x2f0] sm:$0xff] %v3979_v41  ;;  %v5230_v27 = vrot.slane %v5196_v2, 4  ;;  %v1613_v59 = vld [vmem:[%s9899_s8 + $0x29e0] sm:$0xff]  ;;  %v1622_v38 = vld [vmem:[%s9899_s8 + $0x2a28] sm:$0xff] }
 0x5eb   : > { %4840 = vst [vmem:[#allocation2 + $0x300] sm:$0xff] %v4228_v30  ;;  %v5329_v33 = vld [vmem:[#allocation2 + $0x158] sm:$0xf]  ;;  %v2477_v17 = vpack.c.bf16 %v1613_v59, %v1607_v28  ;;  %v5328_v56 = vld [vmem:[#allocation2 + $0x150] sm:$0xf]  ;;  %v1627_v63 = vld [vmem:[%s9899_s8 + $0x2a50] sm:$0xff] }
 0x5ec   : > { %4361 = vmatpush1.bf16.xpose.msra.mxu0 %v2465_v62  ;;  %v5231_v62 = vrot.slane %v5197_v53, 4  ;;  %v5331_v44 = vld [vmem:[#allocation2 + $0x168] sm:$0xf]  ;;  %v1621_v2 = vld [vmem:[%s9899_s8 + $0x2a20] sm:$0xff] }
 0x5ed   : > { %4610 = vmatpush1.bf16.xpose.msra.mxu1 %v2561_v39  ;;  %5125 = vrot.lane.b32.xlu0 %v5080_v54, %s13659_s24  ;;  %v1799_v39 = vld [vmem:[%s9899_s8 + $0x2fb0] sm:$0xff]  ;;  %s13851_s24 = smov 123   ;;  %v9483_v59 = vld [vmem:[#allocation8 + $0x8] ss:$24 sps:$4 sm:$0xff]  }
 0x5ee   : > { %5008 = vrot.lane.b32.xlu1 %v4980_v14, %s13661_s7  ;;  %v3983_v9 = vpop.f32.mrb[52].mxu0  ;;  %4362 = vmatprep.subr.bf16.mxu0 %v2472_v42  ;;  %v1436_v14 = vld [vmem:[%s9899_s8 + $0x2458] sm:$0xff]  ;;  %s13852_s7 = smov 122  }
 0x5ef   : > { %4853 = vst [vmem:[#allocation2 + $0x370] sm:$0xff] %v3983_v9  ;;  %v4232_v5 = vpop.f32.mrb[52].mxu1  ;;  %v3985_v11 = vpop.f32.mrb[53].mxu0  ;;  %4611 = vmatprep.subr.bf16.mxu1 %v2568_v3  ;;  %v1430_v3 = vld [vmem:[%s9899_s8 + $0x2428] sm:$0xff]  ;;  %v1628_v9 = vld [vmem:[%s9899_s8 + $0x2a58] sm:$0xff] }
 0x5f0   : > { %4855 = vst [vmem:[#allocation2 + $0x380] sm:$0xff] %v4232_v5  ;;  %4854 = vst [vmem:[#allocation2 + $0x378] sm:$0xff] %v3985_v11  ;;  %v4234_v29 = vpop.f32.mrb[53].mxu1  ;;  %v3987_v22 = vpop.f32.mrb[54].mxu0  ;;  %v2573_v11 = vpack.c.bf16 %v1805_v37, %v1799_v39  ;;  %v2390_v21 = vpack.c.bf16 %v1436_v14, %v1430_v3  ;;  %v2486_v52 = vpack.c.bf16 %v1628_v9, %v1622_v38  ;;  %v1441_v37 = vld [vmem:[%s9899_s8 + $0x2480] sm:$0xff]  ;;  %v1447_v3 = vld [vmem:[%s9899_s8 + $0x24b0] sm:$0xff] }
 0x5f1   : > { %4856 = vst [vmem:[#allocation2 + $0x388] sm:$0xff] %v4234_v29  ;;  %4869 = vst [vmem:[#allocation2 + $0x3f8] sm:$0xff] %v3987_v22  ;;  %v4236_v35 = vpop.f32.mrb[54].mxu1  ;;  %5253 = vrot.lane.b32.xlu0 %v5228_v47, %s13657_s12  ;;  %v3989_v1 = vpop.f32.mrb[55].mxu0  ;;  %v5445_v29 = vld [vmem:[#allocation2 + $0x150] sm:$0xf0] }
 0x5f2   : > { %4871 = vst [vmem:[#allocation2 + $0x408] sm:$0xff] %v4236_v35  ;;  %v4238_v58 = vpop.f32.mrb[55].mxu1  ;;  %5255 = vrot.lane.b32.xlu1 %v5229_v23, %s13657_s12  ;;  %4870 = vst [vmem:[#allocation2 + $0x400] sm:$0xff] %v3989_v1  ;;  %v5330_v22 = vld [vmem:[#allocation2 + $0x160] sm:$0xf]  ;;  %v1429_v23 = vld [vmem:[%s9899_s8 + $0x2420] sm:$0xff] }
 0x5f3   : > { %4872 = vst [vmem:[#allocation2 + $0x410] sm:$0xff] %v4238_v58  ;;  %v5479_v35 = vrot.slane %v5445_v29, 4  ;;  %v1442_v1 = vld [vmem:[%s9899_s8 + $0x2488] sm:$0xff]  ;;  %v5447_v58 = vld [vmem:[#allocation2 + $0x160] sm:$0xf0]  ;;  %v1633_v14 = vld [vmem:[%s9899_s8 + $0x2a80] sm:$0xff] }
 0x5f4   : > { %4363 = vmatpush1.bf16.xpose.msra.mxu0 %v2471_v55  ;;  %v1435_v55 = vld [vmem:[%s9899_s8 + $0x2450] sm:$0xff]  ;;  %v5580_v9 = vld [vmem:[#allocation2 + $0x1e0] sm:$0xf] }
 0x5f5   : > { %4612 = vmatpush1.bf16.xpose.msra.mxu1 %v2567_v12  ;;  %5257 = vrot.lane.b32.xlu0 %v5230_v27, %s13657_s12  ;;  %v1448_v12 = vld [vmem:[%s9899_s8 + $0x24b8] sm:$0xff]  ;;  %v2389_v53 = vpack.c.bf16 %v1435_v55, %v1429_v23  ;;  %v5696_v23 = vld [vmem:[#allocation2 + $0x1d8] sm:$0xf0]  ;;  %v5697_v55 = vld [vmem:[#allocation2 + $0x1e0] sm:$0xf0] }
 0x5f6   : > { %5259 = vrot.lane.b32.xlu1 %v5231_v62, %s13657_s12  ;;  %v3993_v41 = vpop.f32.mrb[56].mxu0  ;;  %4364 = vmatprep.subr.bf16.mxu0 %v2478_v43  ;;  %s13850_s12 = smov 124   ;;  %v1634_v43 = vld [vmem:[%s9899_s8 + $0x2a88] sm:$0xff]  ;;  %v1640_v27 = vld [vmem:[%s9899_s8 + $0x2ab8] sm:$0xff]  ;;  %v2485_v62 = vpack.c.bf16 %v1627_v63, %v1621_v2  ;;  %v2396_v28 = vpack.c.bf16 %v1448_v12, %v1442_v1  ;;  %v1453_v2 = vld [vmem:[%s9899_s8 + $0x24e0] sm:$0xff]  ;;  %v5730_v12 = vrot.slane %v5696_v23, 4 }
 0x5f7   : > { %4885 = vst [vmem:[#allocation2 + $0x480] sm:$0xff] %v3993_v41  ;;  %v4242_v30 = vpop.f32.mrb[56].mxu1  ;;  %v3995_v42 = vpop.f32.mrb[57].mxu0  ;;  %4613 = vmatprep.subr.bf16.mxu1 %v2574_v6  ;;  %v5579_v6 = vld [vmem:[#allocation2 + $0x1d8] sm:$0xf]  ;;  %v5481_v41 = vrot.slane %v5447_v58, 4  ;;  %v2492_v39 = vpack.c.bf16 %v1640_v27, %v1634_v43 }
 0x5f8   : > { %4887 = vst [vmem:[#allocation2 + $0x490] sm:$0xff] %v4242_v30  ;;  %4886 = vst [vmem:[#allocation2 + $0x488] sm:$0xff] %v3995_v42  ;;  %v4244_v54 = vpop.f32.mrb[57].mxu1  ;;  %v3997_v4 = vpop.f32.mrb[58].mxu0  ;;  %v5581_v30 = vld [vmem:[#allocation2 + $0x1e8] sm:$0xf] }
 0x5f9   : > { %4888 = vst [vmem:[#allocation2 + $0x498] sm:$0xff] %v4244_v54  ;;  %4901 = vst [vmem:[#allocation2 + $0x508] sm:$0xff] %v3997_v4  ;;  %v4246_v34 = vpop.f32.mrb[58].mxu1  ;;  %5372 = vrot.lane.b32.xlu0 %v5329_v33, %s13850_s12  ;;  %v3999_v5 = vpop.f32.mrb[59].mxu0  ;;  %v5446_v42 = vld [vmem:[#allocation2 + $0x158] sm:$0xf0] }
 0x5fa   : > { %4903 = vst [vmem:[#allocation2 + $0x518] sm:$0xff] %v4246_v34  ;;  %v4248_v47 = vpop.f32.mrb[59].mxu1  ;;  %5370 = vrot.lane.b32.xlu1 %v5328_v56, %s13850_s12  ;;  %4902 = vst [vmem:[#allocation2 + $0x510] sm:$0xff] %v3999_v5  ;;  %v1639_v54 = vld [vmem:[%s9899_s8 + $0x2ab0] sm:$0xff]  ;;  %v1454_v4 = vld [vmem:[%s9899_s8 + $0x24e8] sm:$0xff]  ;;  %v5480_v38 = vrot.slane %v5446_v42, 4  ;;  %v2395_v34 = vpack.c.bf16 %v1447_v3, %v1441_v37 }
 0x5fb   : > { %4904 = vst [vmem:[#allocation2 + $0x520] sm:$0xff] %v4248_v47  ;;  %v1460_v33 = vld [vmem:[%s9899_s8 + $0x2518] sm:$0xff]  ;;  %v1646_v56 = vld [vmem:[%s9899_s8 + $0x2ae8] sm:$0xff]  ;;  %v1459_v63 = vld [vmem:[%s9899_s8 + $0x2510] sm:$0xff]  ;;  %v5731_v27 = vrot.slane %v5697_v55, 4 }
 0x5fc   : > { %4365 = vmatpush1.bf16.xpose.msra.mxu0 %v2477_v17  ;;  %v9484_v17 = vld [vmem:[#allocation8 + $0x3c] ss:$24 sps:$4 sm:$0xff]   ;;  %v5448_v47 = vld [vmem:[#allocation2 + $0x168] sm:$0xf0]  ;;  %v9486_v43 = vld [vmem:[#allocation8 + $0x6c] ss:$24 sps:$4 sm:$0xff]  }
 0x5fd   : > { %4614 = vmatpush1.bf16.xpose.msra.mxu1 %v2573_v11  ;;  %5376 = vrot.lane.b32.xlu0 %v5331_v44, %s13850_s12  ;;  %v1652_v5 = vld [vmem:[%s9899_s8 + $0x2b18] sm:$0xff]  ;;  %v2491_v11 = vpack.c.bf16 %v1639_v54, %v1633_v14  ;;  %v5482_v29 = vrot.slane %v5448_v47, 4  ;;  %v1651_v1 = vld [vmem:[%s9899_s8 + $0x2b10] sm:$0xff]  ;;  %v9487_v3 = vld [vmem:[#allocation8 + $0x68] ss:$24 sps:$4 sm:$0xff]  }
 0x5fe   : > { %5374 = vrot.lane.b32.xlu1 %v5330_v22, %s13850_s12  ;;  %4417 = vmatprep.subr.bf16.mxu0 %v2390_v21  ;;  %v2402_v21 = vpack.c.bf16 %v1460_v33, %v1454_v4  ;;  %v9485_v44 = vld [vmem:[#allocation8 + $0x38] ss:$24 sps:$4 sm:$0xff]   ;;  %v5582_v22 = vld [vmem:[#allocation2 + $0x1f0] sm:$0xf]  ;;  %v1465_v54 = vld [vmem:[%s9899_s8 + $0x2540] sm:$0xff] }
 0x5ff   : > { %4666 = vmatprep.subr.bf16.mxu1 %v2486_v52  ;;  %v2498_v52 = vpack.c.bf16 %v1652_v5, %v1646_v56  ;;  %v1472_v58 = vld [vmem:[%s9899_s8 + $0x2578] sm:$0xff]  ;;  %v1471_v4 = vld [vmem:[%s9899_s8 + $0x2570] sm:$0xff]  ;;  %v1657_v33 = vld [vmem:[%s9899_s8 + $0x2b40] sm:$0xff] }
 0x600   : > { %v5831_v56 = vld [vmem:[#allocation2 + $0x268] sm:$0xf]  ;;  %v2407_v5 = vpack.c.bf16 %v1471_v4, %v1465_v54  ;;  %v1676_v47 = vld [vmem:[%s9899_s8 + $0x2bd8] sm:$0xff]  ;;  %v5833_v23 = vld [vmem:[#allocation2 + $0x278] sm:$0xf] }
 0x601   : > { %5504 = vrot.lane.b32.xlu0 %v5479_v35, %s13851_s24  ;;  %v1645_v35 = vld [vmem:[%s9899_s8 + $0x2ae0] sm:$0xff]  ;;  %v5947_v55 = vld [vmem:[#allocation2 + $0x260] sm:$0xf0]  ;;  %v5948_v4 = vld [vmem:[#allocation2 + $0x268] sm:$0xf0] }
 0x602   : > { %5621 = vrot.lane.b32.xlu1 %v5579_v6, %s13852_s7  ;;  %v2401_v6 = vpack.c.bf16 %v1459_v63, %v1453_v2  ;;  %v5832_v2 = vld [vmem:[#allocation2 + $0x270] sm:$0xf]  ;;  %v1477_v63 = vld [vmem:[%s9899_s8 + $0x25a0] sm:$0xff] }
 0x603   : > { %4367 = vmatmul.mubr.bf16.vlgmr.msra.gmra.mrb[60].mxu0 %v9483_v59  ;;  %v6083_v54 = vld [vmem:[#allocation2 + $0x2f8] sm:$0xf] }
 0x604   : > { %4418 = vmatpush1.bf16.xpose.msra.mxu0 %v2389_v53  ;;  %4616 = vmatmul.mubr.bf16.vlgmr.msra.gmra.mrb[60].mxu1 %v9483_v59  ;;  %v1466_v53 = vld [vmem:[%s9899_s8 + $0x2548] sm:$0xff]  ;;  %v1664_v59 = vld [vmem:[%s9899_s8 + $0x2b78] sm:$0xff] }
 0x605   : > { %4667 = vmatpush1.bf16.xpose.msra.mxu1 %v2485_v62  ;;  %5508 = vrot.lane.b32.xlu0 %v5481_v41, %s13851_s24  ;;  %v5698_v62 = vld [vmem:[#allocation2 + $0x1e8] sm:$0xf0]  ;;  %v2497_v41 = vpack.c.bf16 %v1651_v1, %v1645_v35  ;;  %v2408_v37 = vpack.c.bf16 %v1472_v58, %v1466_v53  ;;  %v1483_v35 = vld [vmem:[%s9899_s8 + $0x25d0] sm:$0xff]  ;;  %v1669_v1 = vld [vmem:[%s9899_s8 + $0x2ba0] sm:$0xff]  ;;  %v5981_v53 = vrot.slane %v5947_v55, 4 }
 0x606   : > { %5625 = vrot.lane.b32.xlu1 %v5581_v30, %s13852_s7  ;;  %4419 = vmatprep.subr.bf16.mxu0 %v2396_v28  ;;  %v1658_v28 = vld [vmem:[%s9899_s8 + $0x2b48] sm:$0xff]  ;;  %v5732_v30 = vrot.slane %v5698_v62, 4  ;;  %v5949_v62 = vld [vmem:[#allocation2 + $0x270] sm:$0xf0] }
 0x607   : > { %4668 = vmatprep.subr.bf16.mxu1 %v2492_v39  ;;  %4376 = vmatprep.mubr.bf16.mxu0 %v9484_v17  ;;  %v5699_v39 = vld [vmem:[#allocation2 + $0x1f0] sm:$0xf0]  ;;  %v2504_v42 = vpack.c.bf16 %v1664_v59, %v1658_v28  ;;  %v1490_v58 = vld [vmem:[%s9899_s8 + $0x2608] sm:$0xff]  ;;  %v1688_v59 = vld [vmem:[%s9899_s8 + $0x2c38] sm:$0xff] }
 0x608   : > { %4625 = vmatprep.mubr.bf16.mxu1 %v9484_v17  ;;  %v5733_v14 = vrot.slane %v5699_v39, 4  ;;  %v1663_v17 = vld [vmem:[%s9899_s8 + $0x2b70] sm:$0xff]  ;;  %v1682_v28 = vld [vmem:[%s9899_s8 + $0x2c08] sm:$0xff] }
 0x609   : > { %5623 = vrot.lane.b32.xlu0 %v5580_v9, %s13852_s7  ;;  %v1484_v9 = vld [vmem:[%s9899_s8 + $0x25d8] sm:$0xff] }
 0x60a   : > { %5506 = vrot.lane.b32.xlu1 %v5480_v38, %s13851_s24  ;;  %v1478_v38 = vld [vmem:[%s9899_s8 + $0x25a8] sm:$0xff] }
 0x60b   : > { %4377 = vmatmul.mubr.bf16.gmra.mrb[64].mxu0 %v9485_v44 }
 0x60c   : > { %4420 = vmatpush1.bf16.xpose.msra.mxu0 %v2395_v34  ;;  %4626 = vmatmul.mubr.bf16.gmra.mrb[64].mxu1 %v9485_v44  ;;  %v9488_v34 = vld [vmem:[#allocation8 + $0x9c] ss:$24 sps:$4 sm:$0xff]   ;;  %v2414_v44 = vpack.c.bf16 %v1484_v9, %v1478_v38  ;;  %v1502_v9 = vld [vmem:[%s9899_s8 + $0x2668] sm:$0xff] }
 0x60d   : > { %4669 = vmatpush1.bf16.xpose.msra.mxu1 %v2491_v11  ;;  %5627 = vrot.lane.b32.xlu0 %v5582_v22, %s13852_s7  ;;  %v1670_v11 = vld [vmem:[%s9899_s8 + $0x2ba8] sm:$0xff]  ;;  %v9489_v22 = vld [vmem:[#allocation8 + $0x98] ss:$24 sps:$4 sm:$0xff]  }
 0x60e   : > { %5510 = vrot.lane.b32.xlu1 %v5482_v29, %s13851_s24  ;;  %4421 = vmatprep.subr.bf16.mxu0 %v2402_v21  ;;  %v5830_v21 = vld [vmem:[#allocation2 + $0x260] sm:$0xf]  ;;  %v2510_v29 = vpack.c.bf16 %v1676_v47, %v1670_v11  ;;  %v1687_v38 = vld [vmem:[%s9899_s8 + $0x2c30] sm:$0xff]  ;;  %v6082_v11 = vld [vmem:[#allocation2 + $0x2f0] sm:$0xf] }
 0x60f   : > { %4670 = vmatprep.subr.bf16.mxu1 %v2498_v52  ;;  %4386 = vmatprep.mubr.bf16.mxu0 %v9486_v43  ;;  %v2503_v52 = vpack.c.bf16 %v1663_v17, %v1657_v33  ;;  %v1495_v33 = vld [vmem:[%s9899_s8 + $0x2630] sm:$0xff]  ;;  %v1681_v17 = vld [vmem:[%s9899_s8 + $0x2c00] sm:$0xff] }
 0x610   : > { %4635 = vmatprep.mubr.bf16.mxu1 %v9486_v43  ;;  %v1496_v43 = vld [vmem:[%s9899_s8 + $0x2638] sm:$0xff] }
 0x611   : > { %5755 = vrot.lane.b32.xlu0 %v5730_v12, %s13853_s14  ;;  %v1675_v12 = vld [vmem:[%s9899_s8 + $0x2bd0] sm:$0xff] }
 0x612   : > { %5757 = vrot.lane.b32.xlu1 %v5731_v27, %s13853_s14  ;;  %v9490_v27 = vld [vmem:[#allocation8 + $0xcc] ss:$24 sps:$4 sm:$0xff]   ;;  %v2509_v39 = vpack.c.bf16 %v1675_v12, %v1669_v1  ;;  %v1507_v12 = vld [vmem:[%s9899_s8 + $0x2690] sm:$0xff] }
 0x613   : > { %4387 = vmatmul.mubr.bf16.gmra.mrb[68].mxu0 %v9487_v3  ;;  %v1501_v1 = vld [vmem:[%s9899_s8 + $0x2660] sm:$0xff] }
 0x614   : > { %4422 = vmatpush1.bf16.xpose.msra.mxu0 %v2401_v6  ;;  %4636 = vmatmul.mubr.bf16.gmra.mrb[68].mxu1 %v9487_v3  ;;  %v2413_v6 = vpack.c.bf16 %v1483_v35, %v1477_v63  ;;  %v9491_v3 = vld [vmem:[#allocation8 + $0xc8] ss:$24 sps:$4 sm:$0xff]   ;;  %v6198_v63 = vld [vmem:[#allocation2 + $0x2e8] sm:$0xf0] }
 0x615   : > { %4671 = vmatpush1.bf16.xpose.msra.mxu1 %v2497_v41  ;;  %5759 = vrot.lane.b32.xlu0 %v5732_v30, %s13853_s14  ;;  %v6081_v41 = vld [vmem:[#allocation2 + $0x2e8] sm:$0xf]  ;;  %v5983_v30 = vrot.slane %v5949_v62, 4  ;;  %v6199_v35 = vld [vmem:[#allocation2 + $0x2f0] sm:$0xf0] }
 0x616   : > { %5761 = vrot.lane.b32.xlu1 %v5733_v14, %s13853_s14  ;;  %4423 = vmatprep.subr.bf16.mxu0 %v2408_v37  ;;  %v2420_v37 = vpack.c.bf16 %v1496_v43, %v1490_v58  ;;  %v1489_v14 = vld [vmem:[%s9899_s8 + $0x2600] sm:$0xff]  ;;  %v1699_v58 = vld [vmem:[%s9899_s8 + $0x2c90] sm:$0xff]  ;;  %v6232_v43 = vrot.slane %v6198_v63, 4  ;;  %v6233_v62 = vrot.slane %v6199_v35, 4 }
 0x617   : > { %4672 = vmatprep.subr.bf16.mxu1 %v2504_v42  ;;  %4396 = vmatprep.mubr.bf16.mxu0 %v9488_v34  ;;  %v2516_v42 = vpack.c.bf16 %v1688_v59, %v1682_v28  ;;  %v2419_v47 = vpack.c.bf16 %v1495_v33, %v1489_v14  ;;  %v2425_v28 = vpack.c.bf16 %v1507_v12, %v1501_v1  ;;  %v6200_v59 = vld [vmem:[#allocation2 + $0x2f8] sm:$0xf0]  ;;  %v1519_v33 = vld [vmem:[%s9899_s8 + $0x26f0] sm:$0xff]  ;;  %v1717_v35 = vld [vmem:[%s9899_s8 + $0x2d20] sm:$0xff] }
 0x618   : > { %4645 = vmatprep.mubr.bf16.mxu1 %v9488_v34  ;;  %v1508_v34 = vld [vmem:[%s9899_s8 + $0x2698] sm:$0xff]  ;;  %v1531_v63 = vld [vmem:[%s9899_s8 + $0x2750] sm:$0xff] }
 0x619   : > { %5874 = vrot.lane.b32.xlu0 %v5831_v56, %s13854_s13  ;;  %v9492_v56 = vld [vmem:[#allocation8 + $0x14] ss:$24 sps:$4 sm:$0xff]  }
 0x61a   : > { %5872 = vrot.lane.b32.xlu1 %v5830_v21, %s13854_s13  ;;  %v1694_v21 = vld [vmem:[%s9899_s8 + $0x2c68] sm:$0xff]  ;;  %v1723_v1 = vld [vmem:[%s9899_s8 + $0x2d50] sm:$0xff] }
 0x61b   : > { %4397 = vmatmul.mubr.bf16.gmra.mrb[72].mxu0 %v9489_v22 }
 0x61c   : > { %4424 = vmatpush1.bf16.xpose.msra.mxu0 %v2407_v5  ;;  %4646 = vmatmul.mubr.bf16.gmra.mrb[72].mxu1 %v9489_v22  ;;  %v5982_v5 = vrot.slane %v5948_v4, 4  ;;  %v2426_v22 = vpack.c.bf16 %v1508_v34, %v1502_v9  ;;  %v1513_v4 = vld [vmem:[%s9899_s8 + $0x26c0] sm:$0xff]  ;;  %v1526_v9 = vld [vmem:[%s9899_s8 + $0x2728] sm:$0xff]  ;;  %v1532_v34 = vld [vmem:[%s9899_s8 + $0x2758] sm:$0xff] }
 0x61d   : > { %4673 = vmatpush1.bf16.xpose.msra.mxu1 %v2503_v52  ;;  %5878 = vrot.lane.b32.xlu0 %v5833_v23, %s13854_s13  ;;  %v1700_v52 = vld [vmem:[%s9899_s8 + $0x2c98] sm:$0xff] }
 0x61e   : > { %5876 = vrot.lane.b32.xlu1 %v5832_v2, %s13854_s13  ;;  %4425 = vmatprep.subr.bf16.mxu0 %v2414_v44  ;;  %v2515_v44 = vpack.c.bf16 %v1687_v38, %v1681_v17  ;;  %v2522_v23 = vpack.c.bf16 %v1700_v52, %v1694_v21  ;;  %v6084_v2 = vld [vmem:[#allocation2 + $0x300] sm:$0xf]  ;;  %v1705_v17 = vld [vmem:[%s9899_s8 + $0x2cc0] sm:$0xff]  ;;  %v1711_v38 = vld [vmem:[%s9899_s8 + $0x2cf0] sm:$0xff] }
 0x61f   : > { %4674 = vmatprep.subr.bf16.mxu1 %v2510_v29  ;;  %4406 = vmatprep.mubr.bf16.mxu0 %v9490_v27  ;;  %v5950_v29 = vld [vmem:[#allocation2 + $0x278] sm:$0xf0]  ;;  %v6332_v21 = vld [vmem:[#allocation2 + $0x370] sm:$0xf]  ;;  %v2527_v52 = vpack.c.bf16 %v1711_v38, %v1705_v17 }
 0x620   : > { %4655 = vmatprep.mubr.bf16.mxu1 %v9490_v27  ;;  %v5984_v55 = vrot.slane %v5950_v29, 4  ;;  %v1514_v27 = vld [vmem:[%s9899_s8 + $0x26c8] sm:$0xff]  ;;  %v1556_v17 = vld [vmem:[%s9899_s8 + $0x2818] sm:$0xff] }
 0x621   : > { %6006 = vrot.lane.b32.xlu0 %v5981_v53, %s13764_s11  ;;  %v1693_v53 = vld [vmem:[%s9899_s8 + $0x2c60] sm:$0xff] }
 0x622   : > { %6123 = vrot.lane.b32.xlu1 %v6081_v41, %s13765_s28  ;;  %v1706_v41 = vld [vmem:[%s9899_s8 + $0x2cc8] sm:$0xff] }
 0x623   : > { %4407 = vmatmul.mubr.bf16.gmra.mrb[76].mxu0 %v9491_v3 }
 0x624   : > { %4426 = vmatpush1.bf16.xpose.msra.mxu0 %v2413_v6  ;;  %4656 = vmatmul.mubr.bf16.gmra.mrb[76].mxu1 %v9491_v3  ;;  %v1520_v6 = vld [vmem:[%s9899_s8 + $0x26f8] sm:$0xff]  ;;  %v6234_v3 = vrot.slane %v6200_v59, 4  ;;  %v2533_v59 = vpack.c.bf16 %v1723_v1, %v1717_v35  ;;  %v1747_v35 = vld [vmem:[%s9899_s8 + $0x2e10] sm:$0xff]  ;;  %v12289_v1 = vpop.permute.xlu0 %7259 }
 0x625   : > { %4675 = vmatpush1.bf16.xpose.msra.mxu1 %v2509_v39  ;;  %6010 = vrot.lane.b32.xlu0 %v5983_v30, %s13764_s11  ;;  %v1712_v39 = vld [vmem:[%s9899_s8 + $0x2cf8] sm:$0xff]  ;;  %v6201_v30 = vld [vmem:[#allocation2 + $0x300] sm:$0xf0]  ;;  %13855 = vst [vmem:[#allocation66_spill] sm:$0xff] %v12289_v1 }
 0x626   : > { %6127 = vrot.lane.b32.xlu1 %v6083_v54, %s13765_s28  ;;  %4427 = vmatprep.subr.bf16.mxu0 %v2420_v37  ;;  %v2521_v37 = vpack.c.bf16 %v1699_v58, %v1693_v53  ;;  %v2528_v14 = vpack.c.bf16 %v1712_v39, %v1706_v41  ;;  %v6235_v54 = vrot.slane %v6201_v30, 4  ;;  %v1538_v53 = vld [vmem:[%s9899_s8 + $0x2788] sm:$0xff]  ;;  %v1544_v58 = vld [vmem:[%s9899_s8 + $0x27b8] sm:$0xff]  ;;  %v1537_v30 = vld [vmem:[%s9899_s8 + $0x2780] sm:$0xff] }
 0x627   : > { %4676 = vmatprep.subr.bf16.mxu1 %v2516_v42  ;;  %4449 = vmatprep.mubr.bf16.mxu0 %v9492_v56  ;;  %v2432_v42 = vpack.c.bf16 %v1520_v6, %v1514_v27  ;;  %v6451_v27 = vld [vmem:[#allocation2 + $0x380] sm:$0xf0]  ;;  %v1730_v6 = vld [vmem:[%s9899_s8 + $0x2d88] sm:$0xff]  ;;  %v2444_v41 = vpack.c.bf16 %v1544_v58, %v1538_v53  ;;  %v1568_v58 = vld [vmem:[%s9899_s8 + $0x2878] sm:$0xff] }
 0x628   : > { %4698 = vmatprep.mubr.bf16.mxu1 %v9492_v56  ;;  %v6333_v56 = vld [vmem:[#allocation2 + $0x378] sm:$0xf]  ;;  %v6485_v39 = vrot.slane %v6451_v27, 4  ;;  %v1562_v53 = vld [vmem:[%s9899_s8 + $0x2848] sm:$0xff] }
 0x629   : > { %6125 = vrot.lane.b32.xlu0 %v6082_v11, %s13765_s28  ;;  %v1718_v11 = vld [vmem:[%s9899_s8 + $0x2d28] sm:$0xff] }
 0x62a   : > { %6008 = vrot.lane.b32.xlu1 %v5982_v5, %s13764_s11  ;;  %v2431_v5 = vpack.c.bf16 %v1519_v33, %v1513_v4  ;;  %v1735_v4 = vld [vmem:[%s9899_s8 + $0x2db0] sm:$0xff]  ;;  %v1550_v33 = vld [vmem:[%s9899_s8 + $0x27e8] sm:$0xff] }
 0x62c   : > { %4428 = vmatpush1.bf16.xpose.msra.mxu0 %v2419_v47  ;;  %v1724_v47 = vld [vmem:[%s9899_s8 + $0x2d58] sm:$0xff] }
 0x62d   : > { %4677 = vmatpush1.bf16.xpose.msra.mxu1 %v2515_v44  ;;  %6129 = vrot.lane.b32.xlu0 %v6084_v2, %s13765_s28  ;;  %v2438_v44 = vpack.c.bf16 %v1532_v34, %v1526_v9  ;;  %v2534_v29 = vpack.c.bf16 %v1724_v47, %v1718_v11  ;;  %v1525_v2 = vld [vmem:[%s9899_s8 + $0x2720] sm:$0xff]  ;;  %v6584_v9 = vld [vmem:[#allocation2 + $0x400] sm:$0xf]  ;;  %v6452_v47 = vld [vmem:[#allocation2 + $0x388] sm:$0xf0] }
 0x62e   : > { %6012 = vrot.lane.b32.xlu1 %v5984_v55, %s13764_s11  ;;  %4429 = vmatprep.subr.bf16.mxu0 %v2426_v22  ;;  %v6335_v22 = vld [vmem:[#allocation2 + $0x388] sm:$0xf]  ;;  %v6334_v55 = vld [vmem:[#allocation2 + $0x380] sm:$0xf] }
 0x62f   : > { %4678 = vmatprep.subr.bf16.mxu1 %v2522_v23  ;;  %v6449_v23 = vld [vmem:[#allocation2 + $0x370] sm:$0xf0] }
 0x630   : > { %v6483_v12 = vrot.slane %v6449_v23, 4  ;;  %v6701_v23 = vld [vmem:[#allocation2 + $0x400] sm:$0xf0] }
 0x631   : > { %6257 = vrot.lane.b32.xlu0 %v6232_v43, %s13766_s10  ;;  %v2437_v43 = vpack.c.bf16 %v1531_v63, %v1525_v2  ;;  %v1555_v2 = vld [vmem:[%s9899_s8 + $0x2810] sm:$0xff]  ;;  %v1741_v63 = vld [vmem:[%s9899_s8 + $0x2de0] sm:$0xff] }
 0x632   : > { %6259 = vrot.lane.b32.xlu1 %v6233_v62, %s13766_s10  ;;  %v1736_v62 = vld [vmem:[%s9899_s8 + $0x2db8] sm:$0xff] }
 0x634   : > { %4430 = vmatpush1.bf16.xpose.msra.mxu0 %v2425_v28  ;;  %v6583_v28 = vld [vmem:[#allocation2 + $0x3f8] sm:$0xf] }
 0x635   : > { %4679 = vmatpush1.bf16.xpose.msra.mxu1 %v2521_v37  ;;  %6261 = vrot.lane.b32.xlu0 %v6234_v3, %s13766_s10  ;;  %v2540_v37 = vpack.c.bf16 %v1736_v62, %v1730_v6  ;;  %v6450_v3 = vld [vmem:[#allocation2 + $0x378] sm:$0xf0]  ;;  %v6702_v6 = vld [vmem:[#allocation2 + $0x408] sm:$0xf0] }
 0x636   : > { %6263 = vrot.lane.b32.xlu1 %v6235_v54, %s13766_s10  ;;  %4431 = vmatprep.subr.bf16.mxu0 %v2432_v42  ;;  %v6585_v42 = vld [vmem:[#allocation2 + $0x408] sm:$0xf]  ;;  %v1729_v54 = vld [vmem:[%s9899_s8 + $0x2d80] sm:$0xff]  ;;  %v6484_v38 = vrot.slane %v6450_v3, 4  ;;  %v1754_v62 = vld [vmem:[%s9899_s8 + $0x2e48] sm:$0xff] }
 0x637   : > { %4680 = vmatprep.subr.bf16.mxu1 %v2528_v14  ;;  %v1543_v14 = vld [vmem:[%s9899_s8 + $0x27b0] sm:$0xff]  ;;  %v2539_v11 = vpack.c.bf16 %v1735_v4, %v1729_v54  ;;  %v1561_v54 = vld [vmem:[%s9899_s8 + $0x2840] sm:$0xff] }
 0x638   : > { %v2443_v34 = vpack.c.bf16 %v1543_v14, %v1537_v30  ;;  %v1567_v4 = vld [vmem:[%s9899_s8 + $0x2870] sm:$0xff] }
 0x639   : > { %6376 = vrot.lane.b32.xlu0 %v6333_v56, %s13732_s27  ;;  %v1742_v56 = vld [vmem:[%s9899_s8 + $0x2de8] sm:$0xff] }
 0x63a   : > { %6374 = vrot.lane.b32.xlu1 %v6332_v21, %s13732_s27  ;;  %v2450_v21 = vpack.c.bf16 %v1556_v17, %v1550_v33  ;;  %v1753_v33 = vld [vmem:[%s9899_s8 + $0x2e40] sm:$0xff]  ;;  %v1759_v17 = vld [vmem:[%s9899_s8 + $0x2e70] sm:$0xff] }
 0x63c   : > { %4432 = vmatpush1.bf16.xpose.msra.mxu0 %v2431_v5  ;;  %v1748_v5 = vld [vmem:[%s9899_s8 + $0x2e18] sm:$0xff] }
 0x63d   : > { %4681 = vmatpush1.bf16.xpose.msra.mxu1 %v2527_v52  ;;  %6380 = vrot.lane.b32.xlu0 %v6335_v22, %s13732_s27  ;;  %v2546_v52 = vpack.c.bf16 %v1748_v5, %v1742_v56  ;;  %v6700_v22 = vld [vmem:[#allocation2 + $0x3f8] sm:$0xf0]  ;;  %v6835_v5 = vld [vmem:[#allocation2 + $0x488] sm:$0xf] }
 0x63e   : > { %6378 = vrot.lane.b32.xlu1 %v6334_v55, %s13732_s27  ;;  %4433 = vmatprep.subr.bf16.mxu0 %v2438_v44  ;;  %v6486_v44 = vrot.slane %v6452_v47, 4  ;;  %v1549_v55 = vld [vmem:[%s9899_s8 + $0x27e0] sm:$0xff]  ;;  %v1766_v47 = vld [vmem:[%s9899_s8 + $0x2ea8] sm:$0xff] }
 0x63f   : > { %4682 = vmatprep.subr.bf16.mxu1 %v2534_v29  ;;  %v6586_v29 = vld [vmem:[#allocation2 + $0x410] sm:$0xf]  ;;  %v2449_v27 = vpack.c.bf16 %v1555_v2, %v1549_v55  ;;  %v6837_v2 = vld [vmem:[#allocation2 + $0x498] sm:$0xf] }
 0x641   : > { %6508 = vrot.lane.b32.xlu0 %v6483_v12, %s13767_s30  ;;  %v6734_v12 = vrot.slane %v6700_v22, 4 }
 0x642   : > { %6625 = vrot.lane.b32.xlu1 %v6583_v28, %s13736_s6  ;;  %v1760_v28 = vld [vmem:[%s9899_s8 + $0x2e78] sm:$0xff] }
 0x643   : > { %v2552_v3 = vpack.c.bf16 %v1760_v28, %v1754_v62  ;;  %v1586_v28 = vld [vmem:[%s9899_s8 + $0x2908] sm:$0xff] }
 0x644   : > { %4434 = vmatpush1.bf16.xpose.msra.mxu0 %v2437_v43  ;;  %v6735_v43 = vrot.slane %v6701_v23, 4 }
 0x645   : > { %4683 = vmatpush1.bf16.xpose.msra.mxu1 %v2533_v59  ;;  %6512 = vrot.lane.b32.xlu0 %v6485_v39, %s13767_s30  ;;  %v2545_v59 = vpack.c.bf16 %v1747_v35, %v1741_v63  ;;  %v2456_v39 = vpack.c.bf16 %v1568_v58, %v1562_v53  ;;  %v6951_v63 = vld [vmem:[#allocation2 + $0x480] sm:$0xf0]  ;;  %v1573_v35 = vld [vmem:[%s9899_s8 + $0x28a0] sm:$0xff]  ;;  %v6952_v53 = vld [vmem:[#allocation2 + $0x488] sm:$0xf0] }
 0x646   : > { %6629 = vrot.lane.b32.xlu1 %v6585_v42, %s13736_s6  ;;  %4435 = vmatprep.subr.bf16.mxu0 %v2444_v41  ;;  %v6703_v41 = vld [vmem:[#allocation2 + $0x410] sm:$0xf0]  ;;  %v6736_v42 = vrot.slane %v6702_v6, 4  ;;  %v1579_v58 = vld [vmem:[%s9899_s8 + $0x28d0] sm:$0xff]  ;;  %v6985_v62 = vrot.slane %v6951_v63, 4  ;;  %v1604_v63 = vld [vmem:[%s9899_s8 + $0x2998] sm:$0xff] }
 0x647   : > { %4684 = vmatprep.subr.bf16.mxu1 %v2540_v37  ;;  %v6737_v14 = vrot.slane %v6703_v41, 4 }
 0x649   : > { %6627 = vrot.lane.b32.xlu0 %v6584_v9, %s13736_s6  ;;  %v1574_v9 = vld [vmem:[%s9899_s8 + $0x28a8] sm:$0xff] }
 0x64a   : > { %6510 = vrot.lane.b32.xlu1 %v6484_v38, %s13767_s30 }
 0x64c   : > { %4436 = vmatpush1.bf16.xpose.msra.mxu0 %v2443_v34  ;;  %v1580_v34 = vld [vmem:[%s9899_s8 + $0x28d8] sm:$0xff] }
 0x64d   : > { %4685 = vmatpush1.bf16.xpose.msra.mxu1 %v2539_v11  ;;  %6631 = vrot.lane.b32.xlu0 %v6586_v29, %s13736_s6  ;;  %v2455_v11 = vpack.c.bf16 %v1567_v4, %v1561_v54  ;;  %v2462_v29 = vpack.c.bf16 %v1580_v34, %v1574_v9  ;;  %v1784_v54 = vld [vmem:[%s9899_s8 + $0x2f38] sm:$0xff] }
 0x64e   : > { %6514 = vrot.lane.b32.xlu1 %v6486_v44, %s13767_s30  ;;  %4437 = vmatprep.subr.bf16.mxu0 %v2450_v21  ;;  %v1772_v21 = vld [vmem:[%s9899_s8 + $0x2ed8] sm:$0xff]  ;;  %v2551_v44 = vpack.c.bf16 %v1759_v17, %v1753_v33  ;;  %v6954_v33 = vld [vmem:[#allocation2 + $0x498] sm:$0xf0] }
 0x64f   : > { %4686 = vmatprep.subr.bf16.mxu1 %v2546_v52  ;;  %v6834_v52 = vld [vmem:[#allocation2 + $0x480] sm:$0xf]  ;;  %v2558_v23 = vpack.c.bf16 %v1772_v21, %v1766_v47  ;;  %v6988_v47 = vrot.slane %v6954_v33, 4  ;;  %v1585_v21 = vld [vmem:[%s9899_s8 + $0x2900] sm:$0xff] }
 0x650   : > { %v1597_v33 = vld [vmem:[%s9899_s8 + $0x2960] sm:$0xff] }
 0x651   : > { %6759 = vrot.lane.b32.xlu0 %v6734_v12, %s13769_s26  ;;  %v6836_v12 = vld [vmem:[#allocation2 + $0x490] sm:$0xf] }
 0x652   : > { %6761 = vrot.lane.b32.xlu1 %v6735_v43, %s13769_s26  ;;  %v1765_v43 = vld [vmem:[%s9899_s8 + $0x2ea0] sm:$0xff] }
 0x653   : > { %v12297_v37 = vpop.permute.xlu0 %5002  ;;  %v12299_v30 = vpop.permute.xlu1 %5119 }
 0x654   : > { %4438 = vmatpush1.bf16.xpose.msra.mxu0 %v2449_v27  ;;  %v1771_v27 = vld [vmem:[%s9899_s8 + $0x2ed0] sm:$0xff] }
 0x655   : > { %4687 = vmatpush1.bf16.xpose.msra.mxu1 %v2545_v59  ;;  %6763 = vrot.lane.b32.xlu0 %v6736_v42, %s13769_s26  ;;  %v1592_v59 = vld [vmem:[%s9899_s8 + $0x2938] sm:$0xff]  ;;  %v2461_v42 = vpack.c.bf16 %v1579_v58, %v1573_v35  ;;  %v2557_v4 = vpack.c.bf16 %v1771_v27, %v1765_v43  ;;  %v1790_v58 = vld [vmem:[%s9899_s8 + $0x2f68] sm:$0xff] }
 0x656   : > { %6765 = vrot.lane.b32.xlu1 %v6737_v14, %s13769_s26  ;;  %4439 = vmatprep.subr.bf16.mxu0 %v2456_v39  ;;  %v6986_v39 = vrot.slane %v6952_v53, 4  ;;  %v1778_v14 = vld [vmem:[%s9899_s8 + $0x2f08] sm:$0xff]  ;;  %v2468_v17 = vpack.c.bf16 %v1592_v59, %v1586_v28  ;;  %v1796_v43 = vld [vmem:[%s9899_s8 + $0x2f98] sm:$0xff] }
 0x657   : > { %v12307_v38 = vpop.permute.xlu0 %5006  ;;  %4688 = vmatprep.subr.bf16.mxu1 %v2552_v3  ;;  %v6953_v3 = vld [vmem:[#allocation2 + $0x490] sm:$0xf0]  ;;  %v7086_v27 = vld [vmem:[#allocation2 + $0x510] sm:$0xf] }
 0x658   : > { %13856 = vst [vmem:[#allocation69_spill] sm:$0xff] %v12307_v38  ;;  %v12311_v56 = vpop.permute.xlu1 %5123  ;;  %v6987_v34 = vrot.slane %v6953_v3, 4  ;;  %v7087_v3 = vld [vmem:[#allocation2 + $0x518] sm:$0xf] }
 0x659   : > { %6878 = vrot.lane.b32.xlu0 %v6835_v5, %s13742_s16  ;;  %v2564_v5 = vpack.c.bf16 %v1784_v54, %v1778_v14  ;;  %v7088_v14 = vld [vmem:[#allocation2 + $0x520] sm:$0xf]  ;;  %v7203_v54 = vld [vmem:[#allocation2 + $0x510] sm:$0xf0] }
 0x65a   : > { %6876 = vrot.lane.b32.xlu1 %v6834_v52, %s13742_s16  ;;  %v1591_v52 = vld [vmem:[%s9899_s8 + $0x2930] sm:$0xff] }
 0x65b   : > { %v12317_v22 = vpop.permute.xlu0 %5121  ;;  %v2467_v53 = vpack.c.bf16 %v1591_v52, %v1585_v21  ;;  %v7237_v21 = vrot.slane %v7203_v54, 4  ;;  %v1610_v52 = vld [vmem:[%s9899_s8 + $0x29c8] sm:$0xff] }
 0x65c   : > { %v12319_v55 = vpop.permute.xlu1 %5004  ;;  %4440 = vmatpush1.bf16.xpose.msra.mxu0 %v2455_v11 }
 0x65d   : > { %4689 = vmatpush1.bf16.xpose.msra.mxu1 %v2551_v44  ;;  %6882 = vrot.lane.b32.xlu0 %v6837_v2, %s13742_s16  ;;  %v1777_v44 = vld [vmem:[%s9899_s8 + $0x2f00] sm:$0xff]  ;;  %v1598_v2 = vld [vmem:[%s9899_s8 + $0x2968] sm:$0xff] }
 0x65e   : > { %6880 = vrot.lane.b32.xlu1 %v6836_v12, %s13742_s16  ;;  %4441 = vmatprep.subr.bf16.mxu0 %v2462_v29  ;;  %v1783_v29 = vld [vmem:[%s9899_s8 + $0x2f30] sm:$0xff]  ;;  %v2474_v28 = vpack.c.bf16 %v1604_v63, %v1598_v2 }
 0x65f   : > { %v12327_v6 = vpop.permute.xlu0 %5125  ;;  %4690 = vmatprep.subr.bf16.mxu1 %v2558_v23  ;;  %v7085_v12 = vld [vmem:[#allocation2 + $0x508] sm:$0xf] }
 0x660   : > { %13857 = vst [vmem:[#allocation70_spill] sm:$0xff] %v12327_v6  ;;  %v12331_v41 = vpop.permute.xlu1 %5008  ;;  %v9501_v6 = vld [vmem:[#allocation8 + $0xd0] ss:$24 sps:$4 sm:$0xff]  }
 0x661   : > { %13858 = vst [vmem:[#allocation73_spill] sm:$0xff] %v12331_v41  ;;  %7010 = vrot.lane.b32.xlu0 %v6985_v62, %s13743_s9  ;;  %v2563_v62 = vpack.c.bf16 %v1783_v29, %v1777_v44  ;;  %v1616_v44 = vld [vmem:[%s9899_s8 + $0x29f8] sm:$0xff] }
 0x662   : > { %7012 = vrot.lane.b32.xlu1 %v6986_v39, %s13743_s9  ;;  %v2570_v39 = vpack.c.bf16 %v1796_v43, %v1790_v58  ;;  %v1808_v58 = vld [vmem:[%s9899_s8 + $0x2ff8] sm:$0xff] }
 0x663   : > { %v12337_v9 = vpop.permute.xlu0 %5253 }
 0x664   : > { %v12339_v11 = vpop.permute.xlu1 %5255  ;;  %4442 = vmatpush1.bf16.xpose.msra.mxu0 %v2461_v42 }
 0x665   : > { %4691 = vmatpush1.bf16.xpose.msra.mxu1 %v2557_v4  ;;  %7014 = vrot.lane.b32.xlu0 %v6987_v34, %s13743_s9  ;;  %v7202_v4 = vld [vmem:[#allocation2 + $0x508] sm:$0xf0]  ;;  %v1789_v34 = vld [vmem:[%s9899_s8 + $0x2f60] sm:$0xff] }
 0x666   : > { %7016 = vrot.lane.b32.xlu1 %v6988_v47, %s13743_s9  ;;  %4443 = vmatprep.subr.bf16.mxu0 %v2468_v17  ;;  %v1603_v17 = vld [vmem:[%s9899_s8 + $0x2990] sm:$0xff]  ;;  %v7236_v2 = vrot.slane %v7202_v4, 4  ;;  %v1609_v4 = vld [vmem:[%s9899_s8 + $0x29c0] sm:$0xff] }
 0x667   : > { %v12347_v23 = vpop.permute.xlu0 %5257  ;;  %4692 = vmatprep.subr.bf16.mxu1 %v2564_v5  ;;  %v1795_v5 = vld [vmem:[%s9899_s8 + $0x2f90] sm:$0xff]  ;;  %v2473_v63 = vpack.c.bf16 %v1603_v17, %v1597_v33  ;;  %v1801_v17 = vld [vmem:[%s9899_s8 + $0x2fc0] sm:$0xff] }
 0x668   : > { %v12351_v35 = vpop.permute.xlu1 %5259  ;;  %v2569_v43 = vpack.c.bf16 %v1795_v5, %v1789_v34  ;;  %v1615_v33 = vld [vmem:[%s9899_s8 + $0x29f0] sm:$0xff] }
 0x669   : > { %13859 = vst [vmem:[#allocation34_spill] sm:$0xff] %v12351_v35  ;;  %7127 = vrot.lane.b32.xlu0 %v7085_v12, %s13860_s0  ;;  %v7205_v12 = vld [vmem:[#allocation2 + $0x520] sm:$0xf0] }
 0x66a   : > { %7129 = vrot.lane.b32.xlu1 %v7086_v27, %s13860_s0  ;;  %v7204_v27 = vld [vmem:[#allocation2 + $0x518] sm:$0xf0]  ;;  %v1807_v34 = vld [vmem:[%s9899_s8 + $0x2ff0] sm:$0xff] }
 0x66b   : > { %v12357_v59 = vpop.permute.xlu0 %5372  ;;  %v7238_v54 = vrot.slane %v7204_v27, 4 }
 0x66c   : > { %v12359_v42 = vpop.permute.xlu1 %5370  ;;  %4444 = vmatpush1.bf16.xpose.msra.mxu0 %v2467_v53  ;;  %v1802_v53 = vld [vmem:[%s9899_s8 + $0x2fc8] sm:$0xff]  ;;  %s13926_s8 = smov 127  }
 0x66d   : > { %4693 = vmatpush1.bf16.xpose.msra.mxu1 %v2563_v62  ;;  %7131 = vrot.lane.b32.xlu0 %v7087_v3, %s13860_s0  ;;  %v2480_v62 = vpack.c.bf16 %v1616_v44, %v1610_v52  ;;  %v2576_v3 = vpack.c.bf16 %v1808_v58, %v1802_v53  ;;  %v2479_v52 = vpack.c.bf16 %v1615_v33, %v1609_v4  ;;  %v9493_v58 = vld [vmem:[#allocation8 + $0x10] ss:$24 sps:$4 sm:$0xff]  }
 0x66e   : > { %7133 = vrot.lane.b32.xlu1 %v7088_v14, %s13860_s0  ;;  %4445 = vmatprep.subr.bf16.mxu0 %v2474_v28  ;;  %v2575_v44 = vpack.c.bf16 %v1807_v34, %v1801_v17  ;;  %v9496_v17 = vld [vmem:[#allocation8 + $0x74] ss:$24 sps:$4 sm:$0xff]  }
 0x66f   : > { %v12367_v47 = vpop.permute.xlu0 %5376  ;;  %4694 = vmatprep.subr.bf16.mxu1 %v2570_v39  ;;  %v7239_v39 = vrot.slane %v7205_v12, 4 }
 0x670   : > { %13861 = vst [vmem:[#allocation47_spill] sm:$0xff] %v12367_v47  ;;  %v12371_v29 = vpop.permute.xlu1 %5374  ;;  %v9500_v47 = vld [vmem:[#allocation8 + $0xd4] ss:$24 sps:$4 sm:$0xff]  }
 0x671   : > { %7263 = vrot.lane.b32.xlu0 %v7237_v21, %s13862_s1 }
 0x672   : > { %7261 = vrot.lane.b32.xlu1 %v7236_v2, %s13862_s1 }
 0x673   : > { %v12377_v28 = vpop.permute.xlu0 %5504 }
 0x674   : > { %v12379_v14 = vpop.permute.xlu1 %5621  ;;  %4446 = vmatpush1.bf16.xpose.msra.mxu0 %v2473_v63 }
 0x675   : > { %4695 = vmatpush1.bf16.xpose.msra.mxu1 %v2569_v43  ;;  %7267 = vrot.lane.b32.xlu0 %v7239_v39, %s13862_s1 }
 0x676   : > { %7265 = vrot.lane.b32.xlu1 %v7238_v54, %s13862_s1  ;;  %4447 = vmatprep.subr.bf16.mxu0 %v2480_v62  ;;  %v9494_v62 = vld [vmem:[#allocation8 + $0x44] ss:$24 sps:$4 sm:$0xff]   ;;  %v9495_v54 = vld [vmem:[#allocation8 + $0x40] ss:$24 sps:$4 sm:$0xff]  }
 0x677   : > { %v12387_v5 = vpop.permute.xlu0 %5508  ;;  %4696 = vmatprep.subr.bf16.mxu1 %v2576_v3 }
 0x678   : > { %v12389_v21 = vpop.permute.xlu1 %5625 }
 0x67b   : > { %v12391_v2 = vpop.permute.xlu0 %5623 }
 0x67c   : > { %v12393_v63 = vpop.permute.xlu1 %5506  ;;  %4448 = vmatpush1.bf16.xpose.msra.mxu0 %v2479_v52 }
 0x67d   : > { %4697 = vmatpush1.bf16.xpose.msra.mxu1 %v2575_v44  ;;  %v9497_v44 = vld [vmem:[#allocation8 + $0x70] ss:$24 sps:$4 sm:$0xff]  }
 0x67f   : > { %v12395_v12 = vpop.permute.xlu0 %5627 }
 0x680   : > { %13863 = vst [vmem:[#allocation48_spill] sm:$0xff] %v12395_v12  ;;  %v12397_v53 = vpop.permute.xlu1 %5510 }
 0x681   : > { %13864 = vst [vmem:[#allocation65_spill] sm:$0xff] %v12397_v53  ;;  %v9499_v53 = vld [vmem:[#allocation8 + $0xa0] ss:$24 sps:$4 sm:$0xff]  }
 0x683   : > { %4450 = vmatmul.mubr.bf16.vlgmr.msra.gmra.mrb[60].mxu0 %v9493_v58  ;;  %v12399_v43 = vpop.permute.xlu0 %5755 }
 0x684   : > { %4699 = vmatmul.mubr.bf16.vlgmr.msra.gmra.mrb[60].mxu1 %v9493_v58  ;;  %v12401_v27 = vpop.permute.xlu1 %5757  ;;  %4459 = vmatprep.mubr.bf16.mxu0 %v9494_v62 }
 0x685   : > { %4708 = vmatprep.mubr.bf16.mxu1 %v9494_v62 }
 0x687   : > { %v12403_v39 = vpop.permute.xlu0 %5759 }
 0x688   : > { %v12405_v3 = vpop.permute.xlu1 %5761 }
 0x689   : > { %13865 = vst [vmem:[#allocation71_spill] sm:$0xff] %v12405_v3  ;;  %v9498_v3 = vld [vmem:[#allocation8 + $0xa4] ss:$24 sps:$4 sm:$0xff]  }
 0x68b   : > { %4460 = vmatmul.mubr.bf16.gmra.mrb[64].mxu0 %v9495_v54  ;;  %v12407_v4 = vpop.permute.xlu0 %5874 }
 0x68c   : > { %4709 = vmatmul.mubr.bf16.gmra.mrb[64].mxu1 %v9495_v54  ;;  %v12409_v33 = vpop.permute.xlu1 %5872  ;;  %4469 = vmatprep.mubr.bf16.mxu0 %v9496_v17 }
 0x68d   : > { %4718 = vmatprep.mubr.bf16.mxu1 %v9496_v17 }
 0x68f   : > { %v12411_v34 = vpop.permute.xlu0 %5878 }
 0x690   : > { %13866 = vst [vmem:[#allocation35_spill] sm:$0xff] %v12411_v34  ;;  %v12413_v52 = vpop.permute.xlu1 %5876 }
 0x693   : > { %4470 = vmatmul.mubr.bf16.gmra.mrb[68].mxu0 %v9497_v44  ;;  %v12415_v58 = vpop.permute.xlu0 %6006 }
 0x694   : > { %4719 = vmatmul.mubr.bf16.gmra.mrb[68].mxu1 %v9497_v44  ;;  %v12417_v62 = vpop.permute.xlu1 %6123  ;;  %4479 = vmatprep.mubr.bf16.mxu0 %v9498_v3 }
 0x695   : > { %4728 = vmatprep.mubr.bf16.mxu1 %v9498_v3 }
 0x697   : > { %v12419_v54 = vpop.permute.xlu0 %6010 }
 0x698   : > { %v12421_v12 = vpop.permute.xlu1 %6127 }
 0x69b   : > { %4480 = vmatmul.mubr.bf16.gmra.mrb[72].mxu0 %v9499_v53  ;;  %v12423_v17 = vpop.permute.xlu0 %6125 }
 0x69c   : > { %4729 = vmatmul.mubr.bf16.gmra.mrb[72].mxu1 %v9499_v53  ;;  %v12425_v34 = vpop.permute.xlu1 %6008  ;;  %4489 = vmatprep.mubr.bf16.mxu0 %v9500_v47 }
 0x69d   : > { %4738 = vmatprep.mubr.bf16.mxu1 %v9500_v47 }
 0x69f   : > { %v12427_v44 = vpop.permute.xlu0 %6129 }
 0x6a0   : > { %13867 = vst [vmem:[#allocation50_spill] sm:$0xff] %v12427_v44  ;;  %v12429_v35 = vpop.permute.xlu1 %6012 }
 0x6a1   : > { %13868 = vst [vmem:[#allocation49_spill] sm:$0xff] %v12429_v35  ;;  %v13873_v35 = vld [vmem:[#allocation56_spill] sm:$0xff] }
 0x6a2   : > { %v5027_v7 = vsel %vm5020_vm0, %v11479_v20, %v13873_v35 }
 0x6a3   : > { %4490 = vmatmul.mubr.bf16.gmra.mrb[76].mxu0 %v9501_v6  ;;  %v12431_v3 = vpop.permute.xlu0 %6257  ;;  %v5059_v46 = vadd.f32 %v5027_v7, %v4925_v15  ;;  %v5278_v15 = vsel %vm5271_vm2, %v11519_v26, %v13880_v10  ;;  %v4926_v7 = vld [vmem:[#allocation2 + $0x38] sm:$0xf] }
 0x6a4   : > { %4739 = vmatmul.mubr.bf16.gmra.mrb[76].mxu1 %v9501_v6  ;;  %v12433_v41 = vpop.permute.xlu1 %6259 }
 0x6a7   : > { %v12435_v48 = vpop.permute.xlu0 %6261 }
 0x6a8   : > { %13869 = vst [vmem:[#allocation74_spill] sm:$0xff] %v12435_v48  ;;  %v12437_v61 = vpop.permute.xlu1 %6263 }
 0x6a9   : > { %13870 = vst [vmem:[#allocation52_spill] sm:$0xff] %v12437_v61  ;;  %v5028_v61 = vsel %vm5020_vm0, %v13873_v35, %v12297_v37 }
 0x6aa   : > { %v5060_v35 = vadd.f32 %v5028_v61, %v4926_v7  ;;  %v4928_v61 = vld [vmem:[#allocation2 + $0x48] sm:$0xf] }
 0x6ab   : > { %v12439_v53 = vpop.permute.xlu0 %6376 }
 0x6ac   : > { %v12441_v1 = vpop.permute.xlu1 %6374 }
 0x6af   : > { %v12443_v47 = vpop.permute.xlu0 %6380 }
 0x6b0   : > { %13871 = vst [vmem:[#allocation51_spill] sm:$0xff] %v12443_v47  ;;  %v12445_v44 = vpop.permute.xlu1 %6378  ;;  %v5029_v47 = vsel %vm5020_vm0, %v12297_v37, %v12319_v55  ;;  %v5395_v37 = vsel %vm5388_vm3, %v11543_v45, %v13881_v51  ;;  %v5146_v45 = vsel %vm13879_vm1, %v12299_v30, %v12317_v22 }
 0x6b1   : > { %13872 = vst [vmem:[#allocation54_spill] sm:$0xff] %v12445_v44  ;;  %v13878_v44 = vld [vmem:[#allocation55_spill] sm:$0xff] }
 0x6b2   : > { %v5144_v20 = vsel %vm13879_vm1, %v11483_v16, %v13878_v44 }
 0x6b3   : > { %v12450_v50 = vpop.permute.xlu0 %6508  ;;  %v5176_v40 = vadd.f32 %v5144_v20, %v5059_v46  ;;  %v5145_v46 = vsel %vm13884_vm8, %v13878_v44, %v12299_v30  ;;  %v5396_v44 = vsel %vm5388_vm3, %v13881_v51, %v12359_v42  ;;  %v5397_v30 = vsel %vm5388_vm3, %v12359_v42, %v12357_v59  ;;  %vm13885_vm8 = vmmov %vm13879_vm1 }
 0x6b4   : > { %13874 = vst [vmem:[#allocation53_spill] sm:$0xff] %v12450_v50  ;;  %v12452_v6 = vpop.permute.xlu1 %6625  ;;  %v13883_v50 = vld [vmem:[#allocation60_spill] sm:$0xff]  ;;  %vm13890_vm1 = vcmask 973824  }
 0x6b5   : > { %13875 = vst [vmem:[#allocation37_spill] sm:$0xff] %v12452_v6  ;;  %v4927_v6 = vld [vmem:[#allocation2 + $0x40] sm:$0xf]  ;;  %v5310_v16 = vadd.f32 %v5278_v15, %v5176_v40  ;;  %v5529_v26 = vsel %vm5522_vm4, %v11561_v19, %v13883_v50  ;;  %v5280_v40 = vsel %vm5271_vm2, %v12337_v9, %v12339_v11  ;;  %v5530_v51 = vsel %vm5522_vm4, %v13883_v50, %v12377_v28 }
 0x6b6   : > { %v5061_v32 = vadd.f32 %v5029_v47, %v4927_v6  ;;  %v5177_v47 = vadd.f32 %v5145_v46, %v5060_v35 }
 0x6b7   : > { %v12460_v57 = vpop.permute.xlu0 %6512  ;;  %v5427_v19 = vadd.f32 %v5395_v37, %v5310_v16  ;;  %v13886_v16 = vld [vmem:[#allocation59_spill] sm:$0xff] }
 0x6b8   : > { %13876 = vst [vmem:[#allocation56_spill] sm:$0xff] %v12460_v57  ;;  %v12462_v25 = vpop.permute.xlu1 %6629  ;;  %v5178_v20 = vadd.f32 %v5146_v45, %v5061_v32  ;;  %v5281_v32 = vsel %vm5271_vm2, %v12339_v11, %v12347_v23  ;;  %v5398_v11 = vsel %vm5388_vm3, %v12357_v59, %v12371_v29 }
 0x6b9   : > { %13877 = vst [vmem:[#allocation75_spill] sm:$0xff] %v12462_v25  ;;  %v5030_v25 = vsel %vm5020_vm0, %v12319_v55, %v12307_v38  ;;  %v5279_v55 = vsel %vm5271_vm2, %v13880_v10, %v12337_v9  ;;  %v5561_v7 = vadd.f32 %v5529_v26, %v5427_v19  ;;  %v5531_v9 = vsel %vm5522_vm4, %v12377_v28, %v12393_v63 }
 0x6ba   : > { %v5062_v6 = vadd.f32 %v5030_v25, %v4928_v61  ;;  %v5311_v10 = vadd.f32 %v5279_v55, %v5177_v47  ;;  %v5312_v38 = vadd.f32 %v5280_v40, %v5178_v20  ;;  %v5147_v25 = vsel %vm13885_vm8, %v12317_v22, %v12311_v56  ;;  %v13887_v22 = vld [vmem:[#allocation61_spill] sm:$0xff]  ;;  %v13889_v47 = vld [vmem:[#allocation68_spill] sm:$0xff]  ;;  %vm13891_vm8 = vmmov %vm13890_vm1 }
 0x6bb   : > { %v12476_v57 = vpop.permute.xlu0 %6627  ;;  %v5646_v26 = vsel %vm5639_vm5, %v11565_v49, %v13886_v16  ;;  %v5780_v46 = vsel %vm13700_vm6, %v11591_v0, %v13887_v22  ;;  %v5532_v0 = vsel %vm5522_vm4, %v12393_v63, %v12387_v5  ;;  %v6031_v59 = vsel %vm13890_vm1, %v13814_v18, %v13889_v47 }
 0x6bc   : > { %13882 = vst [vmem:[#allocation55_spill] sm:$0xff] %v12476_v57  ;;  %v12481_v48 = vpop.permute.xlu1 %6510  ;;  %v5179_v42 = vadd.f32 %v5147_v25, %v5062_v6  ;;  %v5428_v35 = vadd.f32 %v5396_v44, %v5311_v10  ;;  %v5429_v37 = vadd.f32 %v5397_v30, %v5312_v38  ;;  %v5678_v61 = vadd.f32 %v5646_v26, %v5561_v7  ;;  %v13888_v38 = vld [vmem:[#allocation62_spill] sm:$0xff] }
 0x6bd   : > { %v5897_v49 = vsel %vm5890_vm7, %v11611_v13, %v13888_v38  ;;  %v5647_v20 = vsel %vm5639_vm5, %v13886_v16, %v12379_v14  ;;  %v5648_v44 = vsel %vm5639_vm5, %v12379_v14, %v12391_v2  ;;  %v5781_v13 = vsel %vm13700_vm6, %v13887_v22, %v12399_v43 }
 0x6be   : > { %v5313_v45 = vadd.f32 %v5281_v32, %v5179_v42  ;;  %v5562_v28 = vadd.f32 %v5530_v51, %v5428_v35  ;;  %v5563_v55 = vadd.f32 %v5531_v9, %v5429_v37  ;;  %v5812_v19 = vadd.f32 %v5780_v46, %v5678_v61 }
 0x6bf   : > { %v12501_v15 = vpop.permute.xlu0 %6631  ;;  %v5782_v63 = vsel %vm13700_vm6, %v12399_v43, %v12401_v27  ;;  %v5898_v14 = vsel %vm5890_vm7, %v13888_v38, %v12409_v33  ;;  %v5899_v51 = vsel %vm5890_vm7, %v12409_v33, %v12407_v4  ;;  %v5649_v43 = vsel %vm5639_vm5, %v12391_v2, %v12389_v21  ;;  %v13892_v2 = vld [vmem:[#allocation67_spill] sm:$0xff] }
 0x6c0   : > { %v12503_v57 = vpop.permute.xlu1 %6514  ;;  %v5430_v6 = vadd.f32 %v5398_v11, %v5313_v45  ;;  %v5929_v18 = vadd.f32 %v5897_v49, %v5812_v19  ;;  %v5679_v7 = vadd.f32 %v5647_v20, %v5562_v28  ;;  %v5680_v25 = vadd.f32 %v5648_v44, %v5563_v55  ;;  %v13894_v19 = vld [vmem:[#allocation36_spill] sm:$0xff] }
 0x6c1   : > { %v5783_v37 = vsel %vm13700_vm6, %v12401_v27, %v12403_v39  ;;  %v6032_v16 = vsel %vm13891_vm8, %v13889_v47, %v12415_v58  ;;  %v6033_v26 = vsel %vm13890_vm1, %v12415_v58, %v12425_v34  ;;  %v6148_v45 = vsel %vm6141_vm9, %v13827_v8, %v13892_v2  ;;  %v13893_v27 = vld [vmem:[#allocation72_spill] sm:$0xff] }
 0x6c2   : > { %v5564_v10 = vadd.f32 %v5532_v0, %v5430_v6  ;;  %v6063_v9 = vadd.f32 %v6031_v59, %v5929_v18  ;;  %v5813_v42 = vadd.f32 %v5781_v13, %v5679_v7  ;;  %v5814_v35 = vadd.f32 %v5782_v63, %v5680_v25 }
 0x6c3   : > { %v12526_v50 = vpop.permute.xlu0 %6759  ;;  %v6282_v28 = vsel %vm13701_vm10, %v13828_v31, %v13893_v27  ;;  %v5900_v55 = vsel %vm5890_vm7, %v12407_v4, %v12413_v52  ;;  %vm13895_vm8 = vcmask 949248   ;;  %v6034_v8 = vsel %vm13890_vm1, %v12425_v34, %v12419_v54 }
 0x6c4   : > { %v12528_v40 = vpop.permute.xlu1 %6761  ;;  %v5681_v22 = vadd.f32 %v5649_v43, %v5564_v10  ;;  %v5930_v46 = vadd.f32 %v5898_v14, %v5813_v42  ;;  %v5931_v11 = vadd.f32 %v5899_v51, %v5814_v35  ;;  %v6180_v58 = vadd.f32 %v6148_v45, %v6063_v9  ;;  %v13899_v35 = vld [vmem:[#allocation74_spill] sm:$0xff] }
 0x6c5   : > { %v6399_v47 = vsel %vm13895_vm8, %v13834_v36, %v13894_v19  ;;  %vm13896_vm6 = vcmask 941056   ;;  %v6149_v44 = vsel %vm6141_vm9, %v13892_v2, %v12417_v62  ;;  %v6150_v36 = vsel %vm6141_vm9, %v12417_v62, %v12423_v17  ;;  %v13904_v2 = vld [vmem:[#allocation38_spill] sm:$0xff] }
 0x6c6   : > { %v5815_v38 = vadd.f32 %v5783_v37, %v5681_v22  ;;  %v6064_v49 = vadd.f32 %v6032_v16, %v5930_v46  ;;  %v6065_v0 = vadd.f32 %v6033_v26, %v5931_v11  ;;  %v6314_v6 = vadd.f32 %v6282_v28, %v6180_v58  ;;  %v13900_v37 = vld [vmem:[#allocation53_spill] sm:$0xff]  ;;  %v13903_v11 = vld [vmem:[#allocation40_spill] sm:$0xff] }
 0x6c7   : > { %v12551_v30 = vpop.permute.xlu0 %6763  ;;  %v6533_v31 = vsel %vm13896_vm6, %v11722_v60, %v11769_v24  ;;  %v6283_v34 = vsel %vm13701_vm10, %v13893_v27, %v12431_v3  ;;  %v6284_v13 = vsel %vm13701_vm10, %v12431_v3, %v12433_v41  ;;  %vm13897_vm6 = vmmov %vm13895_vm8  ;;  %v6151_v3 = vsel %vm6141_vm9, %v12423_v17, %v12421_v12  ;;  %v13905_v17 = vld [vmem:[#allocation41_spill] sm:$0xff]  ;;  %v13906_v27 = vld [vmem:[#allocation39_spill] sm:$0xff] }
 0x6c8   : > { %v12553_v32 = vpop.permute.xlu1 %6765  ;;  %v5932_v4 = vadd.f32 %v5900_v55, %v5815_v38  ;;  %v6431_v60 = vadd.f32 %v6399_v47, %v6314_v6  ;;  %v6181_v63 = vadd.f32 %v6149_v44, %v6064_v49  ;;  %v6182_v7 = vadd.f32 %v6150_v36, %v6065_v0  ;;  %vm13898_vm8 = vmmov %vm13897_vm6  ;;  %v13910_v47 = vld [vmem:[#allocation42_spill] sm:$0xff] }
 0x6c9   : > { %v6400_v10 = vsel %vm13897_vm6, %v13894_v19, %v12441_v1  ;;  %v6401_v62 = vsel %vm13898_vm8, %v12441_v1, %v12439_v53  ;;  %v6285_v43 = vsel %vm13701_vm10, %v12433_v41, %v13899_v35  ;;  %vm13901_vm1 = vcmask 941056   ;;  %v13908_v41 = vld [vmem:[#allocation54_spill] sm:$0xff] }
 0x6ca   : > { %v6066_v18 = vadd.f32 %v6034_v8, %v5932_v4  ;;  %v6565_v14 = vadd.f32 %v6533_v31, %v6431_v60  ;;  %v6315_v51 = vadd.f32 %v6283_v34, %v6181_v63  ;;  %v6316_v9 = vadd.f32 %v6284_v13, %v6182_v7  ;;  %vm13902_vm6 = vmmov %vm13901_vm1  ;;  %v13911_v8 = vld [vmem:[#allocation44_spill] sm:$0xff]  ;;  %v13913_v36 = vld [vmem:[#allocation46_spill] sm:$0xff] }
 0x6cb   : > { %v12573_v33 = vpop.permute.xlu0 %6878  ;;  %v6534_v16 = vsel %vm13901_vm1, %v11769_v24, %v13900_v37  ;;  %v6535_v1 = vsel %vm13902_vm6, %v13900_v37, %v12481_v48  ;;  %v6650_v45 = vsel %vm6643_vm13, %v13904_v2, %v13903_v11  ;;  %vm13907_vm8 = vcmask 924672   ;;  %v13912_v31 = vld [vmem:[#allocation56_spill] sm:$0xff]  ;;  %v13914_v34 = vld [vmem:[#allocation43_spill] sm:$0xff]  ;;  %v13915_v60 = vld [vmem:[#allocation37_spill] sm:$0xff] }
 0x6cc   : > { %v12575_v61 = vpop.permute.xlu1 %6876  ;;  %v6183_v26 = vadd.f32 %v6151_v3, %v6066_v18  ;;  %v6432_v22 = vadd.f32 %v6400_v10, %v6315_v51  ;;  %v6433_v46 = vadd.f32 %v6401_v62, %v6316_v9  ;;  %v6784_v28 = vsel %vm13907_vm8, %v13906_v27, %v13905_v17  ;;  %v13916_v18 = vld [vmem:[#allocation55_spill] sm:$0xff]  ;;  %vm13918_vm6 = vmmov %vm13907_vm8  ;;  %v13919_v37 = vld [vmem:[#allocation64_spill] sm:$0xff] }
 0x6cd   : > { %vm13909_vm10 = vcmask 949248   ;;  %v6682_v58 = vadd.f32 %v6650_v45, %v6565_v14  ;;  %v6901_v6 = vsel %vm6894_vm15, %v13911_v8, %v13910_v47  ;;  %v6536_v4 = vsel %vm13901_vm1, %v12481_v48, %v13912_v31  ;;  %v13923_v27 = vld [vmem:[#allocation75_spill] sm:$0xff] }
 0x6ce   : > { %v6402_v55 = vsel %vm13909_vm10, %v12439_v53, %v13908_v41  ;;  %v6317_v38 = vadd.f32 %v6285_v43, %v6183_v26  ;;  %v6566_v49 = vadd.f32 %v6534_v16, %v6432_v22  ;;  %v6567_v0 = vadd.f32 %v6535_v1, %v6433_v46  ;;  %vm13917_vm10 = vmmov %vm13907_vm8  ;;  %v13920_v16 = vld [vmem:[#allocation45_spill] sm:$0xff] }
 0x6cf   : > { %v12592_v59 = vpop.permute.xlu0 %6882  ;;  %v6816_v44 = vadd.f32 %v6784_v28, %v6682_v58  ;;  %v7035_v53 = vsel %vm7028_vm12, %v13914_v34, %v13913_v36  ;;  %v6651_v63 = vsel %vm6643_vm13, %v13903_v11, %v13915_v60  ;;  %v6652_v7 = vsel %vm6643_vm13, %v13915_v60, %v13916_v18  ;;  %v13922_v11 = vld [vmem:[#allocation63_spill] sm:$0xff]  ;;  %vm13924_vm8 = vmmov %vm13918_vm6 }
 0x6d0   : > { %v12597_v20 = vpop.permute.xlu1 %6880  ;;  %v6434_v13 = vadd.f32 %v6402_v55, %v6317_v38  ;;  %v6785_v10 = vsel %vm13917_vm10, %v13905_v17, %v12526_v50  ;;  %v6786_v48 = vsel %vm13918_vm6, %v12526_v50, %v12528_v40  ;;  %v6683_v51 = vadd.f32 %v6651_v63, %v6566_v49  ;;  %v13921_v50 = vld [vmem:[#allocation66_spill] sm:$0xff] }
 0x6d1   : > { %v6933_v14 = vadd.f32 %v6901_v6, %v6816_v44  ;;  %v6684_v3 = vadd.f32 %v6652_v7, %v6567_v0  ;;  %v7152_v1 = vsel %vm7145_vm11, %v13920_v16, %v13919_v37  ;;  %v6902_v26 = vsel %vm6894_vm15, %v13910_v47, %v12575_v61 }
 0x6d2   : > { %v6568_v9 = vadd.f32 %v6536_v4, %v6434_v13  ;;  %v6903_v22 = vsel %vm6894_vm15, %v12575_v61, %v12573_v33  ;;  %v7286_v2 = vsel %vm13702_vm14, %v13922_v11, %v13921_v50  ;;  %v6817_v45 = vadd.f32 %v6785_v10, %v6683_v51 }
 0x6d3   : > { %v7011_v25 = vpop.permute.xlu0 %7010  ;;  %v7067_v46 = vadd.f32 %v7035_v53, %v6933_v14  ;;  %v6818_v17 = vadd.f32 %v6786_v48, %v6684_v3  ;;  %v6653_v28 = vsel %vm6643_vm13, %v13916_v18, %v13923_v27  ;;  %v6787_v55 = vsel %vm13924_vm8, %v12528_v40, %v12551_v30  ;;  %v13925_v14 = vld [vmem:[#allocation33_spill] sm:$0xff] }
 0x6d4   : > { %v7013_v42 = vpop.permute.xlu1 %7012  ;;  %v7036_v58 = vsel %vm7028_vm12, %v13913_v36, %v7011_v25  ;;  %v6685_v0 = vadd.f32 %v6653_v28, %v6568_v9  ;;  %v6934_v47 = vadd.f32 %v6902_v26, %v6817_v45  ;;  %v6904_v4 = vsel %vm6894_vm15, %v12573_v33, %v12597_v20 }
 0x6d5   : > { %v7037_v61 = vsel %vm7028_vm12, %v7011_v25, %v7013_v42  ;;  %v7184_v49 = vadd.f32 %v7152_v1, %v7067_v46  ;;  %v6935_v8 = vadd.f32 %v6903_v22, %v6818_v17  ;;  %vm13931_vm1 = vcmask 1031168  }
 0x6d6   : > { %v6819_v34 = vadd.f32 %v6787_v55, %v6685_v0  ;;  %v7068_v25 = vadd.f32 %v7036_v58, %v6934_v47  ;;  %vm13932_vm10 = vmmov %vm13931_vm1 }
 0x6d7   : > { %v12638_v24 = vpop.permute.xlu0 %7014  ;;  %v7318_v36 = vadd.f32 %v7286_v2, %v7184_v49  ;;  %v7069_v53 = vadd.f32 %v7037_v61, %v6935_v8  ;;  %vm13933_vm6 = vmmov %vm13931_vm1 }
 0x6d8   : > { %v12640_v19 = vpop.permute.xlu1 %7016  ;;  %v7038_v13 = vsel %vm7028_vm12, %v7013_v42, %v12638_v24  ;;  %v6936_v63 = vadd.f32 %v6904_v4, %v6819_v34  ;;  %vm13935_vm8 = vmmov %vm13931_vm1 }
 0x6d9   : > { %v7340_v51 = vadd.f32 %v13925_v14, %v7318_v36 }
 0x6da   : > { %v7070_v9 = vadd.f32 %v7038_v13, %v6936_v63 }
 0x6db   : > { %v7128_v62 = vpop.permute.xlu0 %7127  ;;  %v7356_v22 = vmax.f32 %v7340_v51, 0.0 }
 0x6dc   : > { %v7130_v43 = vpop.permute.xlu1 %7129  ;;  %v7153_v40 = vsel %vm7145_vm11, %v13919_v37, %v7128_v62 }
 0x6dd   : > { %v7154_v44 = vsel %vm7145_vm11, %v7128_v62, %v7130_v43  ;;  %v7185_v18 = vadd.f32 %v7153_v40, %v7068_v25 }
 0x6de   : > { %v7186_v7 = vadd.f32 %v7154_v44, %v7069_v53 }
 0x6df   : > { %v12684_v38 = vpop.permute.xlu0 %7131 }
 0x6e0   : > { %v12686_v6 = vpop.permute.xlu1 %7133  ;;  %v7155_v33 = vsel %vm7145_vm11, %v7130_v43, %v12684_v38 }
 0x6e1   : > { %v7187_v16 = vadd.f32 %v7155_v33, %v7070_v9 }
 0x6e3   : > { %v7264_v60 = vpop.permute.xlu0 %7263 }
 0x6e4   : > { %v7262_v10 = vpop.permute.xlu1 %7261 }
 0x6e5   : > { %v7287_v48 = vsel %vm13702_vm14, %v13921_v50, %v7262_v10  ;;  %v7288_v62 = vsel %vm13702_vm14, %v7262_v10, %v7264_v60 }
 0x6e6   : > { %v7319_v3 = vadd.f32 %v7287_v48, %v7185_v18  ;;  %v7320_v37 = vadd.f32 %v7288_v62, %v7186_v7 }
 0x6e8   : > { %v7341_v42 = vadd.f32 %v13925_v14, %v7319_v3  ;;  %v12703_v1 = vpop.permute.xlu1 %7265  ;;  %v7342_v43 = vadd.f32 %v13925_v14, %v7320_v37 }
 0x6e9   : > { %v7289_v26 = vsel %vm13702_vm14, %v7264_v60, %v12703_v1 }
 0x6ea   : > { %v7357_v46 = vmax.f32 %v7341_v42, 0.0  ;;  %v7321_v50 = vadd.f32 %v7289_v26, %v7187_v16  ;;  %v7358_v45 = vmax.f32 %v7342_v43, 0.0 }
 0x6ec   : > { %v12708_v11 = vcombine.low %v7356_v22, %v7357_v46  ;;  %v7343_v2 = vadd.f32 %v13925_v14, %v7321_v50 }
 0x6ee   : > { %7401 = vst [vmem:[#allocation3 + $0x18] sm:$0xff] %v12708_v11  ;;  %v7359_v17 = vmax.f32 %v7343_v2, 0.0 }
 0x6f0   : > { %v12712_v28 = vcombine.low %v7358_v45, %v7359_v17 }
 0x6f2   : > { %7402 = vst [vmem:[#allocation3 + $0x20] sm:$0xff] %v12712_v28 }
 0x756   : > { %v4451_v55 = vpop.f32.mrb[60].mxu0 }
 0x757   : > { %4761 = vst [vmem:[#allocation2 + $0x60] sm:$0xff] %v4451_v55  ;;  %v4700_v58 = vpop.f32.mrb[60].mxu1  ;;  %v4453_v61 = vpop.f32.mrb[61].mxu0 }
 0x758   : > { %4763 = vst [vmem:[#allocation2 + $0x70] sm:$0xff] %v4700_v58  ;;  %4762 = vst [vmem:[#allocation2 + $0x68] sm:$0xff] %v4453_v61  ;;  %v4702_v49 = vpop.f32.mrb[61].mxu1  ;;  %v4455_v0 = vpop.f32.mrb[62].mxu0 }
 0x759   : > { %4764 = vst [vmem:[#allocation2 + $0x78] sm:$0xff] %v4702_v49  ;;  %4777 = vst [vmem:[#allocation2 + $0xe8] sm:$0xff] %v4455_v0  ;;  %v4704_v47 = vpop.f32.mrb[62].mxu1  ;;  %v4457_v8 = vpop.f32.mrb[63].mxu0 }
 0x75a   : > { %4779 = vst [vmem:[#allocation2 + $0xf8] sm:$0xff] %v4704_v47  ;;  %4778 = vst [vmem:[#allocation2 + $0xf0] sm:$0xff] %v4457_v8  ;;  %v4706_v4 = vpop.f32.mrb[63].mxu1 }
 0x75b   : > { %4780 = vst [vmem:[#allocation2 + $0x100] sm:$0xff] %v4706_v4 }
 0x75e   : > { %v4461_v40 = vpop.f32.mrb[64].mxu0  ;;  %v4947_v44 = vld [vmem:[#allocation2 + $0x60] sm:$0xf0] }
 0x75f   : > { %4793 = vst [vmem:[#allocation2 + $0x170] sm:$0xff] %v4461_v40  ;;  %v4710_v36 = vpop.f32.mrb[64].mxu1  ;;  %v4463_v34 = vpop.f32.mrb[65].mxu0  ;;  %v4981_v25 = vrot.slane %v4947_v44, 4  ;;  %v4949_v63 = vld [vmem:[#allocation2 + $0x70] sm:$0xf0] }
 0x760   : > { %4795 = vst [vmem:[#allocation2 + $0x180] sm:$0xff] %v4710_v36  ;;  %4794 = vst [vmem:[#allocation2 + $0x178] sm:$0xff] %v4463_v34  ;;  %v4712_v53 = vpop.f32.mrb[65].mxu1  ;;  %v4465_v13 = vpop.f32.mrb[66].mxu0  ;;  %v5081_v60 = vld [vmem:[#allocation2 + $0xe8] sm:$0xf] }
 0x761   : > { %4796 = vst [vmem:[#allocation2 + $0x188] sm:$0xff] %v4712_v53  ;;  %4809 = vst [vmem:[#allocation2 + $0x1f8] sm:$0xff] %v4465_v13  ;;  %v4714_v18 = vpop.f32.mrb[66].mxu1  ;;  %5010 = vrot.lane.b32.xlu0 %v4981_v25, %s13926_s8  ;;  %5127 = vrot.lane.b32.xlu1 %v5081_v60, %s13927_s2  ;;  %v4467_v7 = vpop.f32.mrb[67].mxu0  ;;  %v4983_v33 = vrot.slane %v4949_v63, 4 }
 0x762   : > { %4811 = vst [vmem:[#allocation2 + $0x208] sm:$0xff] %v4714_v18  ;;  %v4716_v10 = vpop.f32.mrb[67].mxu1  ;;  %4810 = vst [vmem:[#allocation2 + $0x200] sm:$0xff] %v4467_v7  ;;  %v5083_v48 = vld [vmem:[#allocation2 + $0xf8] sm:$0xf] }
 0x763   : > { %4812 = vst [vmem:[#allocation2 + $0x210] sm:$0xff] %v4716_v10  ;;  %v4948_v62 = vld [vmem:[#allocation2 + $0x68] sm:$0xf0]  ;;  %v5082_v26 = vld [vmem:[#allocation2 + $0xf0] sm:$0xf] }
 0x764   : > { %v4982_v37 = vrot.slane %v4948_v62, 4  ;;  %v4950_v22 = vld [vmem:[#allocation2 + $0x78] sm:$0xf0]  ;;  %v5084_v45 = vld [vmem:[#allocation2 + $0x100] sm:$0xf] }
 0x765   : > { %5014 = vrot.lane.b32.xlu0 %v4983_v33, %s13926_s8  ;;  %5131 = vrot.lane.b32.xlu1 %v5083_v48, %s13927_s2  ;;  %v4984_v2 = vrot.slane %v4950_v22, 4  ;;  %v5199_v17 = vld [vmem:[#allocation2 + $0xf0] sm:$0xf0]  ;;  %v5198_v55 = vld [vmem:[#allocation2 + $0xe8] sm:$0xf0] }
 0x766   : > { %v4471_v51 = vpop.f32.mrb[68].mxu0  ;;  %v5233_v0 = vrot.slane %v5199_v17, 4  ;;  %v5232_v47 = vrot.slane %v5198_v55, 4  ;;  %v5201_v40 = vld [vmem:[#allocation2 + $0x100] sm:$0xf0] }
 0x767   : > { %4825 = vst [vmem:[#allocation2 + $0x280] sm:$0xff] %v4471_v51  ;;  %v4720_v9 = vpop.f32.mrb[68].mxu1  ;;  %v4473_v3 = vpop.f32.mrb[69].mxu0  ;;  %v5200_v44 = vld [vmem:[#allocation2 + $0xf8] sm:$0xf0]  ;;  %v5235_v53 = vrot.slane %v5201_v40, 4 }
 0x768   : > { %4827 = vst [vmem:[#allocation2 + $0x290] sm:$0xff] %v4720_v9  ;;  %4826 = vst [vmem:[#allocation2 + $0x288] sm:$0xff] %v4473_v3  ;;  %v4722_v16 = vpop.f32.mrb[69].mxu1  ;;  %v4475_v42 = vpop.f32.mrb[70].mxu0  ;;  %v5234_v13 = vrot.slane %v5200_v44, 4 }
 0x769   : > { %4828 = vst [vmem:[#allocation2 + $0x298] sm:$0xff] %v4722_v16  ;;  %4841 = vst [vmem:[#allocation2 + $0x308] sm:$0xff] %v4475_v42  ;;  %v4724_v43 = vpop.f32.mrb[70].mxu1  ;;  %5012 = vrot.lane.b32.xlu1 %v4982_v37, %s13926_s8  ;;  %5129 = vrot.lane.b32.xlu0 %v5082_v26, %s13927_s2  ;;  %v4477_v46 = vpop.f32.mrb[71].mxu0  ;;  %v5332_v33 = vld [vmem:[#allocation2 + $0x170] sm:$0xf] }
 0x76a   : > { %4843 = vst [vmem:[#allocation2 + $0x318] sm:$0xff] %v4724_v43  ;;  %v4726_v50 = vpop.f32.mrb[71].mxu1  ;;  %4842 = vst [vmem:[#allocation2 + $0x310] sm:$0xff] %v4477_v46  ;;  %v5333_v48 = vld [vmem:[#allocation2 + $0x178] sm:$0xf] }
 0x76b   : > { %4844 = vst [vmem:[#allocation2 + $0x320] sm:$0xff] %v4726_v50  ;;  %v5334_v3 = vld [vmem:[#allocation2 + $0x180] sm:$0xf]  ;;  %v5335_v37 = vld [vmem:[#allocation2 + $0x188] sm:$0xf] }
 0x76c   : > { %v5449_v16 = vld [vmem:[#allocation2 + $0x170] sm:$0xf0]  ;;  %v5583_v26 = vld [vmem:[#allocation2 + $0x1f8] sm:$0xf]  ;;  %v5451_v22 = vld [vmem:[#allocation2 + $0x180] sm:$0xf0] }
 0x76d   : > { %5016 = vrot.lane.b32.xlu1 %v4984_v2, %s13926_s8  ;;  %5133 = vrot.lane.b32.xlu0 %v5084_v45, %s13927_s2  ;;  %v5483_v42 = vrot.slane %v5449_v16, 4  ;;  %v5485_v43 = vrot.slane %v5451_v22, 4  ;;  %v5585_v46 = vld [vmem:[#allocation2 + $0x208] sm:$0xf]  ;;  %v5450_v50 = vld [vmem:[#allocation2 + $0x178] sm:$0xf0] }
 0x76e   : > { %v4481_v58 = vpop.f32.mrb[72].mxu0  ;;  %v5484_v2 = vrot.slane %v5450_v50, 4  ;;  %v5584_v45 = vld [vmem:[#allocation2 + $0x200] sm:$0xf]  ;;  %v5452_v17 = vld [vmem:[#allocation2 + $0x188] sm:$0xf0] }
 0x76f   : > { %4857 = vst [vmem:[#allocation2 + $0x390] sm:$0xff] %v4481_v58  ;;  %v4730_v61 = vpop.f32.mrb[72].mxu1  ;;  %v4483_v49 = vpop.f32.mrb[73].mxu0  ;;  %v5486_v55 = vrot.slane %v5452_v17, 4  ;;  %v5586_v58 = vld [vmem:[#allocation2 + $0x210] sm:$0xf] }
 0x770   : > { %4859 = vst [vmem:[#allocation2 + $0x3a0] sm:$0xff] %v4730_v61  ;;  %4858 = vst [vmem:[#allocation2 + $0x398] sm:$0xff] %v4483_v49  ;;  %v4732_v8 = vpop.f32.mrb[73].mxu1  ;;  %v4485_v4 = vpop.f32.mrb[74].mxu0  ;;  %v5701_v61 = vld [vmem:[#allocation2 + $0x200] sm:$0xf0] }
 0x771   : > { %4860 = vst [vmem:[#allocation2 + $0x3a8] sm:$0xff] %v4732_v8  ;;  %4873 = vst [vmem:[#allocation2 + $0x418] sm:$0xff] %v4485_v4  ;;  %v4734_v36 = vpop.f32.mrb[74].mxu1  ;;  %5263 = vrot.lane.b32.xlu1 %v5233_v0, %s13928_s4  ;;  %5261 = vrot.lane.b32.xlu0 %v5232_v47, %s13928_s4  ;;  %v4487_v34 = vpop.f32.mrb[75].mxu0  ;;  %v5700_v49 = vld [vmem:[#allocation2 + $0x1f8] sm:$0xf0] }
 0x772   : > { %4875 = vst [vmem:[#allocation2 + $0x428] sm:$0xff] %v4734_v36  ;;  %v4736_v25 = vpop.f32.mrb[75].mxu1  ;;  %4874 = vst [vmem:[#allocation2 + $0x420] sm:$0xff] %v4487_v34  ;;  %v5735_v0 = vrot.slane %v5701_v61, 4  ;;  %v5734_v47 = vrot.slane %v5700_v49, 4 }
 0x773   : > { %4876 = vst [vmem:[#allocation2 + $0x430] sm:$0xff] %v4736_v25  ;;  %v5703_v8 = vld [vmem:[#allocation2 + $0x210] sm:$0xf0]  ;;  %v5702_v4 = vld [vmem:[#allocation2 + $0x208] sm:$0xf0] }
 0x774   : > { %v5737_v40 = vrot.slane %v5703_v8, 4  ;;  %v5736_v44 = vrot.slane %v5702_v4, 4  ;;  %v5834_v36 = vld [vmem:[#allocation2 + $0x280] sm:$0xf]  ;;  %v5835_v34 = vld [vmem:[#allocation2 + $0x288] sm:$0xf] }
 0x775   : > { %5267 = vrot.lane.b32.xlu1 %v5235_v53, %s13928_s4  ;;  %5265 = vrot.lane.b32.xlu0 %v5234_v13, %s13928_s4  ;;  %v5836_v25 = vld [vmem:[#allocation2 + $0x290] sm:$0xf]  ;;  %v5837_v53 = vld [vmem:[#allocation2 + $0x298] sm:$0xf]  ;;  %v5951_v13 = vld [vmem:[#allocation2 + $0x280] sm:$0xf0] }
 0x776   : > { %v4491_v60 = vpop.f32.mrb[76].mxu0  ;;  %v6202_v16 = vld [vmem:[#allocation2 + $0x308] sm:$0xf0]  ;;  %v6205_v22 = vld [vmem:[#allocation2 + $0x320] sm:$0xf0] }
 0x777   : > { %4889 = vst [vmem:[#allocation2 + $0x4a0] sm:$0xff] %v4491_v60  ;;  %v4740_v63 = vpop.f32.mrb[76].mxu1  ;;  %v4493_v18 = vpop.f32.mrb[77].mxu0  ;;  %v5985_v60 = vrot.slane %v5951_v13, 4  ;;  %v6338_v17 = vld [vmem:[#allocation2 + $0x3a0] sm:$0xf] }
 0x778   : > { %4891 = vst [vmem:[#allocation2 + $0x4b0] sm:$0xff] %v4740_v63  ;;  %4890 = vst [vmem:[#allocation2 + $0x4a8] sm:$0xff] %v4493_v18  ;;  %v4742_v7 = vpop.f32.mrb[77].mxu1  ;;  %v4495_v10 = vpop.f32.mrb[78].mxu0  ;;  %v6085_v63 = vld [vmem:[#allocation2 + $0x308] sm:$0xf] }
 0x779   : > { %4892 = vst [vmem:[#allocation2 + $0x4b8] sm:$0xff] %v4742_v7  ;;  %4905 = vst [vmem:[#allocation2 + $0x528] sm:$0xff] %v4495_v10  ;;  %v4744_v62 = vpop.f32.mrb[78].mxu1  ;;  %5378 = vrot.lane.b32.xlu1 %v5332_v33, %s13850_s12  ;;  %5380 = vrot.lane.b32.xlu0 %v5333_v48, %s13850_s12  ;;  %v4497_v51 = vpop.f32.mrb[79].mxu0  ;;  %v5953_v18 = vld [vmem:[#allocation2 + $0x290] sm:$0xf0] }
 0x77a   : > { %4907 = vst [vmem:[#allocation2 + $0x538] sm:$0xff] %v4744_v62  ;;  %v4746_v9 = vpop.f32.mrb[79].mxu1  ;;  %4906 = vst [vmem:[#allocation2 + $0x530] sm:$0xff] %v4497_v51  ;;  %v5987_v7 = vrot.slane %v5953_v18, 4  ;;  %v6087_v10 = vld [vmem:[#allocation2 + $0x318] sm:$0xf] }
 0x77b   : > { %4908 = vst [vmem:[#allocation2 + $0x540] sm:$0xff] %v4746_v9  ;;  %v5952_v33 = vld [vmem:[#allocation2 + $0x288] sm:$0xf0]  ;;  %v6086_v62 = vld [vmem:[#allocation2 + $0x310] sm:$0xf] }
 0x77c   : > { %v5986_v48 = vrot.slane %v5952_v33, 4  ;;  %v5954_v51 = vld [vmem:[#allocation2 + $0x298] sm:$0xf0]  ;;  %v6587_v49 = vld [vmem:[#allocation2 + $0x418] sm:$0xf] }
 0x77d   : > { %5382 = vrot.lane.b32.xlu1 %v5334_v3, %s13850_s12  ;;  %5384 = vrot.lane.b32.xlu0 %v5335_v37, %s13850_s12  ;;  %v5988_v9 = vrot.slane %v5954_v51, 4  ;;  %v6088_v3 = vld [vmem:[#allocation2 + $0x320] sm:$0xf]  ;;  %v6203_v37 = vld [vmem:[#allocation2 + $0x310] sm:$0xf0] }
 0x77e   : > { %v6589_v8 = vld [vmem:[#allocation2 + $0x428] sm:$0xf]  ;;  %v6454_v4 = vld [vmem:[#allocation2 + $0x398] sm:$0xf0] }
 0x77f   : > { %v6704_v13 = vld [vmem:[#allocation2 + $0x418] sm:$0xf0] }
 0x780   : > { %v6738_v18 = vrot.slane %v6704_v13, 4  ;;  %v4933_v13 = vld [vmem:[#allocation2 + $0x70] sm:$0xf] }
 0x781   : > { %5512 = vrot.lane.b32.xlu0 %v5483_v42, %s13851_s24  ;;  %5629 = vrot.lane.b32.xlu1 %v5583_v26, %s13852_s7  ;;  %v6237_v42 = vrot.slane %v6203_v37, 4  ;;  %v6236_v26 = vrot.slane %v6202_v16, 4 }
 0x785   : > { %5516 = vrot.lane.b32.xlu0 %v5485_v43, %s13851_s24  ;;  %5633 = vrot.lane.b32.xlu1 %v5585_v46, %s13852_s7  ;;  %v6204_v43 = vld [vmem:[#allocation2 + $0x318] sm:$0xf0]  ;;  %v6239_v46 = vrot.slane %v6205_v22, 4 }
 0x786   : > { %v6238_v50 = vrot.slane %v6204_v43, 4 }
 0x789   : > { %5514 = vrot.lane.b32.xlu1 %v5484_v2, %s13851_s24  ;;  %5631 = vrot.lane.b32.xlu0 %v5584_v45, %s13852_s7  ;;  %v6336_v2 = vld [vmem:[#allocation2 + $0x390] sm:$0xf]  ;;  %v6337_v45 = vld [vmem:[#allocation2 + $0x398] sm:$0xf] }
 0x78d   : > { %5518 = vrot.lane.b32.xlu1 %v5486_v55, %s13851_s24  ;;  %5635 = vrot.lane.b32.xlu0 %v5586_v58, %s13852_s7  ;;  %v6339_v55 = vld [vmem:[#allocation2 + $0x3a8] sm:$0xf]  ;;  %v6453_v58 = vld [vmem:[#allocation2 + $0x390] sm:$0xf0]  ;;  %s9691_s24 = smov [#allocation11]  }
 0x78e   : > { %v6487_v61 = vrot.slane %v6453_v58, 4 }
 0x791   : > { %5765 = vrot.lane.b32.xlu1 %v5735_v0, %s13853_s14  ;;  %5763 = vrot.lane.b32.xlu0 %v5734_v47, %s13853_s14  ;;  %v6455_v0 = vld [vmem:[#allocation2 + $0x3a0] sm:$0xf0] }
 0x792   : > { %v6489_v47 = vrot.slane %v6455_v0, 4 }
 0x795   : > { %5769 = vrot.lane.b32.xlu1 %v5737_v40, %s13853_s14  ;;  %5767 = vrot.lane.b32.xlu0 %v5736_v44, %s13853_s14  ;;  %v6488_v40 = vrot.slane %v6454_v4, 4  ;;  %v6588_v44 = vld [vmem:[#allocation2 + $0x420] sm:$0xf]  ;;  %v6841_v4 = vld [vmem:[#allocation2 + $0x4b8] sm:$0xf] }
 0x799   : > { %5880 = vrot.lane.b32.xlu1 %v5834_v36, %s13854_s13  ;;  %5882 = vrot.lane.b32.xlu0 %v5835_v34, %s13854_s13  ;;  %v6456_v36 = vld [vmem:[#allocation2 + $0x3a8] sm:$0xf0] }
 0x79a   : > { %v6490_v34 = vrot.slane %v6456_v36, 4 }
 0x79d   : > { %5884 = vrot.lane.b32.xlu1 %v5836_v25, %s13854_s13  ;;  %5886 = vrot.lane.b32.xlu0 %v5837_v53, %s13854_s13  ;;  %v6590_v25 = vld [vmem:[#allocation2 + $0x430] sm:$0xf]  ;;  %v6705_v53 = vld [vmem:[#allocation2 + $0x420] sm:$0xf0] }
 0x7a1   : > { %6014 = vrot.lane.b32.xlu0 %v5985_v60, %s13764_s11  ;;  %6131 = vrot.lane.b32.xlu1 %v6085_v63, %s13765_s28  ;;  %v12771_v60 = vpop.permute.xlu0 %7267  ;;  %v6739_v63 = vrot.slane %v6705_v53, 4 }
 0x7a5   : > { %6018 = vrot.lane.b32.xlu0 %v5987_v7, %s13764_s11  ;;  %6135 = vrot.lane.b32.xlu1 %v6087_v10, %s13765_s28  ;;  %v6707_v7 = vld [vmem:[#allocation2 + $0x430] sm:$0xf0]  ;;  %v6706_v10 = vld [vmem:[#allocation2 + $0x428] sm:$0xf0] }
 0x7a6   : > { %v6740_v51 = vrot.slane %v6706_v10, 4 }
 0x7a9   : > { %6016 = vrot.lane.b32.xlu1 %v5986_v48, %s13764_s11  ;;  %6133 = vrot.lane.b32.xlu0 %v6086_v62, %s13765_s28  ;;  %v6741_v62 = vrot.slane %v6707_v7, 4 }
 0x7ad   : > { %6020 = vrot.lane.b32.xlu1 %v5988_v9, %s13764_s11  ;;  %6137 = vrot.lane.b32.xlu0 %v6088_v3, %s13765_s28  ;;  %v4930_v9 = vld [vmem:[#allocation2 + $0x58] sm:$0xf]  ;;  %v13929_v3 = vld [vmem:[#allocation73_spill] sm:$0xff] }
 0x7b1   : > { %6267 = vrot.lane.b32.xlu1 %v6237_v42, %s13766_s10  ;;  %6265 = vrot.lane.b32.xlu0 %v6236_v26, %s13766_s10  ;;  %v13930_v42 = vld [vmem:[#allocation70_spill] sm:$0xff] }
 0x7b5   : > { %6271 = vrot.lane.b32.xlu1 %v6239_v46, %s13766_s10  ;;  %6269 = vrot.lane.b32.xlu0 %v6238_v50, %s13766_s10  ;;  %v6838_v50 = vld [vmem:[#allocation2 + $0x4a0] sm:$0xf] }
 0x7b9   : > { %6382 = vrot.lane.b32.xlu1 %v6336_v2, %s13732_s27  ;;  %6384 = vrot.lane.b32.xlu0 %v6337_v45, %s13732_s27  ;;  %v6839_v2 = vld [vmem:[#allocation2 + $0x4a8] sm:$0xf]  ;;  %v4931_v45 = vld [vmem:[#allocation2 + $0x60] sm:$0xf] }
 0x7bd   : > { %6386 = vrot.lane.b32.xlu1 %v6338_v17, %s13732_s27  ;;  %6388 = vrot.lane.b32.xlu0 %v6339_v55, %s13732_s27  ;;  %v4932_v17 = vld [vmem:[#allocation2 + $0x68] sm:$0xf] }
 0x7c1   : > { %6516 = vrot.lane.b32.xlu0 %v6487_v61, %s13767_s30  ;;  %6633 = vrot.lane.b32.xlu1 %v6587_v49, %s13736_s6  ;;  %v6840_v61 = vld [vmem:[#allocation2 + $0x4b0] sm:$0xf] }
 0x7c5   : > { %6520 = vrot.lane.b32.xlu0 %v6489_v47, %s13767_s30  ;;  %6637 = vrot.lane.b32.xlu1 %v6589_v8, %s13736_s6 }
 0x7c9   : > { %6518 = vrot.lane.b32.xlu1 %v6488_v40, %s13767_s30  ;;  %6635 = vrot.lane.b32.xlu0 %v6588_v44, %s13736_s6  ;;  %v6956_v40 = vld [vmem:[#allocation2 + $0x4a8] sm:$0xf0]  ;;  %v6955_v44 = vld [vmem:[#allocation2 + $0x4a0] sm:$0xf0] }
 0x7ca   : > { %v6990_v7 = vrot.slane %v6956_v40, 4  ;;  %v6989_v10 = vrot.slane %v6955_v44, 4 }
 0x7cd   : > { %6522 = vrot.lane.b32.xlu1 %v6490_v34, %s13767_s30  ;;  %6639 = vrot.lane.b32.xlu0 %v6590_v25, %s13736_s6  ;;  %s8794_s6 = sshll.u32 %s9743_s22, 7  ;;  %s8584_s22 = scalar_lea.sflag [#allocation7], %s9895_s29 }
 0x7ce   : > { %s13524_s2 = scalar_lea.hbm %s13573_s5, %s8794_s6 }
 0x7d1   : > { %6769 = vrot.lane.b32.xlu1 %v6739_v63, %s13769_s26  ;;  %6767 = vrot.lane.b32.xlu0 %v6738_v18, %s13769_s26 }
 0x7d3   : > { %v5011_v33 = vpop.permute.xlu0 %5010  ;;  %v5128_v48 = vpop.permute.xlu1 %5127 }
 0x7d4   : > { %v5032_v37 = vsel %vm5020_vm0, %v13929_v3, %v5011_v33  ;;  %v5149_v26 = vsel %vm13931_vm1, %v13930_v42, %v5128_v48 }
 0x7d5   : > { %v5064_v16 = vadd.f32 %v5032_v37, %v4930_v9  ;;  %6773 = vrot.lane.b32.xlu1 %v6741_v62, %s13769_s26  ;;  %6771 = vrot.lane.b32.xlu0 %v6740_v51, %s13769_s26  ;;  %v13934_v62 = vld [vmem:[#allocation15_spill] sm:$0xff]  ;;  %s9594_s26 = sshll.u32 %s9691_s24, 4  ;;  %s9595_s26 = int_to_ptr.vmem [resolvable:$false] %s9594_s26 }
 0x7d6   : > { %v6958_v37 = vld [vmem:[#allocation2 + $0x4b8] sm:$0xf0]  ;;  %s9596_s7 = scalar_lea.vmem %s9595_s26, 256 }
 0x7d7   : > { %v5181_v22 = vadd.f32 %v5149_v26, %v5064_v16  ;;  %v5015_v43 = vpop.permute.xlu0 %5014  ;;  %v5132_v46 = vpop.permute.xlu1 %5131  ;;  %v6957_v16 = vld [vmem:[#allocation2 + $0x4b0] sm:$0xf0] }
 0x7d9   : > { %6884 = vrot.lane.b32.xlu1 %v6838_v50, %s13742_s16  ;;  %6886 = vrot.lane.b32.xlu0 %v6839_v2, %s13742_s16  ;;  %v13936_v2 = vld [vmem:[#allocation17_spill] sm:$0xff] }
 0x7db   : > { %v5013_v55 = vpop.permute.xlu1 %5012  ;;  %v5130_v58 = vpop.permute.xlu0 %5129 }
 0x7dc   : > { %v5033_v49 = vsel %vm5020_vm0, %v5011_v33, %v5013_v55  ;;  %v5034_v0 = vsel %vm5020_vm0, %v5013_v55, %v5015_v43  ;;  %v5150_v47 = vsel %vm13932_vm10, %v5128_v48, %v5130_v58  ;;  %v5151_v8 = vsel %vm13933_vm6, %v5130_v58, %v5132_v46  ;;  %v4934_v33 = vld [vmem:[#allocation2 + $0x78] sm:$0xf] }
 0x7dd   : > { %v5065_v36 = vadd.f32 %v5033_v49, %v4931_v45  ;;  %v5066_v34 = vadd.f32 %v5034_v0, %v4932_v17  ;;  %6888 = vrot.lane.b32.xlu1 %v6840_v61, %s13742_s16  ;;  %6890 = vrot.lane.b32.xlu0 %v6841_v4, %s13742_s16  ;;  %v6992_v61 = vrot.slane %v6958_v37, 4  ;;  %v6991_v49 = vrot.slane %v6957_v16, 4  ;;  %v13937_v0 = vld [vmem:[#allocation34_spill] sm:$0xff]  ;;  %v7092_v16 = vld [vmem:[#allocation2 + $0x540] sm:$0xf] }
 0x7de   : > { %vm13946_vm10 = vcmask 990208  }
 0x7df   : > { %v5182_v25 = vadd.f32 %v5150_v47, %v5065_v36  ;;  %v5183_v53 = vadd.f32 %v5151_v8, %v5066_v34  ;;  %v5017_v63 = vpop.permute.xlu1 %5016  ;;  %v5134_v18 = vpop.permute.xlu0 %5133  ;;  %v13938_v36 = vld [vmem:[#allocation16_spill] sm:$0xff]  ;;  %vm13947_vm6 = vmmov %vm13946_vm10 }
 0x7e0   : > { %v5035_v48 = vsel %vm5020_vm0, %v5015_v43, %v5017_v63  ;;  %v5036_v51 = vsel %vm5020_vm0, %v5017_v63, %v13934_v62  ;;  %v5152_v9 = vsel %vm13935_vm8, %v5132_v46, %v5134_v18  ;;  %v5153_v45 = vsel %vm13931_vm1, %v5134_v18, %v13936_v2  ;;  %v7089_v18 = vld [vmem:[#allocation2 + $0x528] sm:$0xf]  ;;  %v7091_v62 = vld [vmem:[#allocation2 + $0x538] sm:$0xf]  ;;  %vm13949_vm8 = vmmov %vm13947_vm6 }
 0x7e1   : > { %v5067_v26 = vadd.f32 %v5035_v48, %v4933_v13  ;;  %v5068_v50 = vadd.f32 %v5036_v51, %v4934_v33  ;;  %7020 = vrot.lane.b32.xlu1 %v6990_v7, %s13743_s9  ;;  %7018 = vrot.lane.b32.xlu0 %v6989_v10, %s13743_s9  ;;  %v7090_v7 = vld [vmem:[#allocation2 + $0x530] sm:$0xf]  ;;  %v13939_v51 = vld [vmem:[#allocation47_spill] sm:$0xff]  ;;  %vm13950_vm1 = vmmov %vm13947_vm6 }
 0x7e2   : > { %vm13951_vm14 = vmmov %vm13950_vm1 }
 0x7e3   : > { %v5184_v17 = vadd.f32 %v5152_v9, %v5067_v26  ;;  %v5185_v55 = vadd.f32 %v5153_v45, %v5068_v50  ;;  %v5264_v58 = vpop.permute.xlu1 %5263  ;;  %v5262_v43 = vpop.permute.xlu0 %5261  ;;  %v7207_v26 = vld [vmem:[#allocation2 + $0x530] sm:$0xf0]  ;;  %v7206_v50 = vld [vmem:[#allocation2 + $0x528] sm:$0xf0] }
 0x7e4   : > { %v5283_v46 = vsel %vm5271_vm2, %v13937_v0, %v5262_v43  ;;  %v5284_v47 = vsel %vm5271_vm2, %v5262_v43, %v5264_v58 }
 0x7e5   : > { %v5315_v8 = vadd.f32 %v5283_v46, %v5181_v22  ;;  %v5316_v4 = vadd.f32 %v5284_v47, %v5182_v25  ;;  %7024 = vrot.lane.b32.xlu1 %v6992_v61, %s13743_s9  ;;  %7022 = vrot.lane.b32.xlu0 %v6991_v49, %s13743_s9  ;;  %v13940_v49 = vld [vmem:[#allocation19_spill] sm:$0xff]  ;;  %v7209_v47 = vld [vmem:[#allocation2 + $0x540] sm:$0xf0] }
 0x7e7   : > { %v5268_v40 = vpop.permute.xlu1 %5267  ;;  %v5266_v44 = vpop.permute.xlu0 %5265 }
 0x7e8   : > { %v5287_v34 = vsel %vm5271_vm2, %v5268_v40, %v13938_v36  ;;  %v5285_v13 = vsel %vm5271_vm2, %v5264_v58, %v5266_v44  ;;  %v5286_v63 = vsel %vm5271_vm2, %v5266_v44, %v5268_v40  ;;  %v7240_v58 = vrot.slane %v7206_v50, 4  ;;  %v7208_v40 = vld [vmem:[#allocation2 + $0x538] sm:$0xf0]  ;;  %v7210_v36 = vld [vmem:[#allocation2 + $0x548] sm:$0xf0] }
 0x7e9   : > { %v5319_v10 = vadd.f32 %v5287_v34, %v5185_v55  ;;  %v5317_v33 = vadd.f32 %v5285_v13, %v5183_v53  ;;  %v5318_v48 = vadd.f32 %v5286_v63, %v5184_v17  ;;  %7135 = vrot.lane.b32.xlu0 %v7089_v18, %s13860_s0  ;;  %7137 = vrot.lane.b32.xlu1 %v7090_v7, %s13860_s0  ;;  %v7241_v55 = vrot.slane %v7207_v26, 4  ;;  %v13941_v7 = vld [vmem:[#allocation65_spill] sm:$0xff] }
 0x7ea   : > { %v7243_v63 = vrot.slane %v7209_v47, 4  ;;  %v7242_v18 = vrot.slane %v7208_v40, 4 }
 0x7eb   : > { %v5379_v22 = vpop.permute.xlu1 %5378  ;;  %v5381_v25 = vpop.permute.xlu0 %5380 }
 0x7ec   : > { %v5400_v9 = vsel %vm5388_vm3, %v13939_v51, %v5379_v22  ;;  %v5401_v37 = vsel %vm5388_vm3, %v5379_v22, %v5381_v25 }
 0x7ed   : > { %v5432_v2 = vadd.f32 %v5400_v9, %v5315_v8  ;;  %v5433_v45 = vadd.f32 %v5401_v37, %v5316_v4  ;;  %7139 = vrot.lane.b32.xlu0 %v7091_v62, %s13860_s0  ;;  %7141 = vrot.lane.b32.xlu1 %v7092_v16, %s13860_s0  ;;  %v12825_v16 = vld [vmem:[#allocation3] sm:$0xff] }
 0x7ef   : > { %v5383_v53 = vpop.permute.xlu1 %5382  ;;  %v5385_v17 = vpop.permute.xlu0 %5384 }
 0x7f0   : > { %v5402_v43 = vsel %vm5388_vm3, %v5381_v25, %v5383_v53  ;;  %v5403_v61 = vsel %vm5388_vm3, %v5383_v53, %v5385_v17  ;;  %v5404_v46 = vsel %vm5388_vm3, %v5385_v17, %v13940_v49 }
 0x7f1   : > { %v5434_v44 = vadd.f32 %v5402_v43, %v5317_v33  ;;  %v5435_v8 = vadd.f32 %v5403_v61, %v5318_v48  ;;  %v5436_v4 = vadd.f32 %v5404_v46, %v5319_v10  ;;  %7271 = vrot.lane.b32.xlu0 %v7241_v55, %s13862_s1  ;;  %7269 = vrot.lane.b32.xlu1 %v7240_v58, %s13862_s1  ;;  %v7244_v33 = vrot.slane %v7210_v36, 4  ;;  %v13942_v48 = vld [vmem:[#allocation48_spill] sm:$0xff] }
 0x7f2   : > { %v12834_v58 = vld [vmem:[#allocation3 + $0x10] sm:$0xff]  ;;  %v12836_v43 = vld [vmem:[#allocation3 + $0x8] sm:$0xff] }
 0x7f3   : > { %v5513_v34 = vpop.permute.xlu0 %5512  ;;  %v5630_v13 = vpop.permute.xlu1 %5629 }
 0x7f4   : > { %v5534_v22 = vsel %vm5522_vm4, %v13941_v7, %v5513_v34  ;;  %v5651_v10 = vsel %vm5639_vm5, %v13942_v48, %v5630_v13 }
 0x7f5   : > { %v5566_v25 = vadd.f32 %v5534_v22, %v5432_v2  ;;  %7275 = vrot.lane.b32.xlu0 %v7243_v63, %s13862_s1  ;;  %7273 = vrot.lane.b32.xlu1 %v7242_v18, %s13862_s1 }
 0x7f7   : > { %v5683_v62 = vadd.f32 %v5651_v10, %v5566_v25  ;;  %v5517_v9 = vpop.permute.xlu0 %5516  ;;  %v5634_v37 = vpop.permute.xlu1 %5633 }
 0x7f9   : > { %7425 = vrot.lane.b32.xlu0 %v12825_v16, %s13926_s8  ;;  %7277 = vrot.lane.b32.xlu1 %v7244_v33, %s13862_s1 }
 0x7fb   : > { %v5515_v26 = vpop.permute.xlu1 %5514  ;;  %v5632_v50 = vpop.permute.xlu0 %5631 }
 0x7fc   : > { %v5535_v2 = vsel %vm5522_vm4, %v5513_v34, %v5515_v26  ;;  %v5536_v53 = vsel %vm5522_vm4, %v5515_v26, %v5517_v9  ;;  %v5652_v17 = vsel %vm5639_vm5, %v5630_v13, %v5632_v50  ;;  %v5653_v55 = vsel %vm5639_vm5, %v5632_v50, %v5634_v37  ;;  %v13943_v13 = vld [vmem:[#allocation18_spill] sm:$0xff]  ;;  %v13945_v50 = vld [vmem:[#allocation71_spill] sm:$0xff] }
 0x7fd   : > { %v5567_v61 = vadd.f32 %v5535_v2, %v5433_v45  ;;  %v5568_v49 = vadd.f32 %v5536_v53, %v5434_v44  ;;  %7429 = vrot.lane.b32.xlu0 %v12834_v58, %s13926_s8  ;;  %7427 = vrot.lane.b32.xlu1 %v12836_v43, %s13926_s8  ;;  %v13944_v44 = vld [vmem:[#allocation21_spill] sm:$0xff] }
 0x7ff   : > { %v5684_v46 = vadd.f32 %v5652_v17, %v5567_v61  ;;  %v5685_v47 = vadd.f32 %v5653_v55, %v5568_v49  ;;  %v5519_v40 = vpop.permute.xlu1 %5518  ;;  %v5636_v36 = vpop.permute.xlu0 %5635 }
 0x800   : > { %v5537_v34 = vsel %vm5522_vm4, %v5517_v9, %v5519_v40  ;;  %v5538_v63 = vsel %vm5522_vm4, %v5519_v40, %v13943_v13  ;;  %v5654_v18 = vsel %vm5639_vm5, %v5634_v37, %v5636_v36  ;;  %v5655_v25 = vsel %vm5639_vm5, %v5636_v36, %v13944_v44 }
 0x801   : > { %v5569_v22 = vadd.f32 %v5537_v34, %v5435_v8  ;;  %v5570_v45 = vadd.f32 %v5538_v63, %v5436_v4  ;;  %7433 = vrot.lane.b32.xlu0 %v12712_v28, %s13926_s8  ;;  %7431 = vrot.lane.b32.xlu1 %v12708_v11, %s13926_s8  ;;  %v13948_v28 = vld [vmem:[#allocation20_spill] sm:$0xff]  ;;  %v13952_v63 = vld [vmem:[#allocation35_spill] sm:$0xff] }
 0x803   : > { %v5686_v33 = vadd.f32 %v5654_v18, %v5569_v22  ;;  %v5687_v10 = vadd.f32 %v5655_v25, %v5570_v45  ;;  %v5766_v26 = vpop.permute.xlu1 %5765  ;;  %v5764_v9 = vpop.permute.xlu0 %5763 }
 0x804   : > { %v5785_v2 = vsel %vm13946_vm10, %v13945_v50, %v5764_v9  ;;  %v5786_v37 = vsel %vm13947_vm6, %v5764_v9, %v5766_v26  ;;  %v13953_v9 = vld [vmem:[#allocation23_spill] sm:$0xff]  ;;  %vm13957_vm6 = vcmask 1031168  }
 0x805   : > { %v5817_v8 = vadd.f32 %v5785_v2, %v5683_v62  ;;  %v5818_v4 = vadd.f32 %v5786_v37, %v5684_v46 }
 0x807   : > { %v5770_v53 = vpop.permute.xlu1 %5769  ;;  %v5768_v17 = vpop.permute.xlu0 %5767 }
 0x808   : > { %v5789_v55 = vsel %vm13949_vm8, %v5770_v53, %v13948_v28  ;;  %v5787_v11 = vsel %vm13950_vm1, %v5766_v26, %v5768_v17  ;;  %v5788_v61 = vsel %vm13951_vm14, %v5768_v17, %v5770_v53  ;;  %vm13954_vm14 = vcmask 973824  }
 0x809   : > { %v5821_v49 = vadd.f32 %v5789_v55, %v5687_v10  ;;  %v5819_v40 = vadd.f32 %v5787_v11, %v5685_v47  ;;  %v5820_v36 = vadd.f32 %v5788_v61, %v5686_v33  ;;  %vm13955_vm10 = vmmov %vm13954_vm14  ;;  %vm13967_vm8 = vcmask 924672  }
 0x80b   : > { %v5881_v34 = vpop.permute.xlu1 %5880  ;;  %v5883_v13 = vpop.permute.xlu0 %5882 }
 0x80c   : > { %v5902_v18 = vsel %vm5890_vm7, %v13952_v63, %v5881_v34  ;;  %v5903_v62 = vsel %vm5890_vm7, %v5881_v34, %v5883_v13 }
 0x80d   : > { %v12862_v46 = vadd.f32 %v5902_v18, %v5817_v8  ;;  %v5935_v22 = vadd.f32 %v5903_v62, %v5818_v4  ;;  %v13956_v18 = vld [vmem:[#allocation69_spill] sm:$0xff] }
 0x80e   : > { %v5031_v62 = vsel %vm5020_vm0, %v13956_v18, %v13929_v3  ;;  %v5148_v3 = vsel %vm13957_vm6, %v12311_v56, %v13930_v42  ;;  %vm13972_vm6 = vcmask 891904  }
 0x80f   : > { %v5885_v45 = vpop.permute.xlu1 %5884  ;;  %v5887_v44 = vpop.permute.xlu0 %5886 }
 0x810   : > { %v5904_v25 = vsel %vm5890_vm7, %v5883_v13, %v5885_v45  ;;  %v5905_v26 = vsel %vm5890_vm7, %v5885_v45, %v5887_v44  ;;  %v5906_v47 = vsel %vm5890_vm7, %v5887_v44, %v13953_v9 }
 0x811   : > { %v12868_v33 = vadd.f32 %v5904_v25, %v5819_v40  ;;  %v5937_v10 = vadd.f32 %v5905_v26, %v5820_v36  ;;  %v12870_v2 = vadd.f32 %v5906_v47, %v5821_v49  ;;  %v4929_v26 = vld [vmem:[#allocation2 + $0x50] sm:$0xf] }
 0x812   : > { %v5063_v9 = vadd.f32 %v5031_v62, %v4929_v26  ;;  %v5533_v62 = vsel %vm5522_vm4, %v12387_v5, %v13941_v7  ;;  %v5901_v5 = vsel %vm5890_vm7, %v12413_v52, %v13952_v63  ;;  %vm13963_vm4 = vcmask 957440  }
 0x813   : > { %v12872_v37 = vpop.permute.xlu0 %6014  ;;  %v12874_v53 = vpop.permute.xlu1 %6131  ;;  %vm13966_vm7 = vcmask 941056  }
 0x817   : > { %v12876_v8 = vpop.permute.xlu0 %6018  ;;  %v12878_v4 = vpop.permute.xlu1 %6135 }
 0x81b   : > { %v12880_v17 = vpop.permute.xlu1 %6016  ;;  %v12882_v28 = vpop.permute.xlu0 %6133 }
 0x81c   : > { %v6037_v55 = vsel %vm13954_vm14, %v12872_v37, %v12880_v17  ;;  %v6154_v61 = vsel %vm6141_vm9, %v12874_v53, %v12882_v28 }
 0x81d   : > { %v6069_v11 = vadd.f32 %v6037_v55, %v5935_v22 }
 0x81f   : > { %v12890_v49 = vadd.f32 %v6154_v61, %v6069_v11  ;;  %v6021_v40 = vpop.permute.xlu1 %6020  ;;  %v12892_v36 = vpop.permute.xlu0 %6137  ;;  %v5180_v11 = vadd.f32 %v5148_v3, %v5063_v9  ;;  %v5399_v61 = vsel %vm5388_vm3, %v12371_v29, %v13939_v51  ;;  %v13959_v3 = vld [vmem:[#allocation49_spill] sm:$0xff]  ;;  %vm13960_vm3 = vmmov %vm13955_vm10 }
 0x820   : > { %v6039_v34 = vsel %vm13955_vm10, %v12876_v8, %v6021_v40  ;;  %v6156_v22 = vsel %vm6141_vm9, %v12878_v4, %v12892_v36 }
 0x821   : > { %v6071_v13 = vadd.f32 %v6039_v34, %v5937_v10  ;;  %v5282_v10 = vsel %vm5271_vm2, %v12347_v23, %v13937_v0  ;;  %v5650_v23 = vsel %vm5639_vm5, %v12389_v21, %v13942_v48  ;;  %vm13958_vm2 = vmmov %vm13950_vm1  ;;  %vm13965_vm5 = vcmask 949248  }
 0x822   : > { %v5314_v34 = vadd.f32 %v5282_v10, %v5180_v11  ;;  %v5784_v29 = vsel %vm13958_vm2, %v12403_v39, %v13945_v50  ;;  %v6035_v10 = vsel %vm13960_vm3, %v12419_v54, %v13959_v3  ;;  %vm13968_vm1 = vmmov %vm13960_vm3 }
 0x823   : > { %v12902_v45 = vadd.f32 %v6156_v22, %v6071_v13  ;;  %v12904_v44 = vpop.permute.xlu1 %6267  ;;  %v12906_v25 = vpop.permute.xlu0 %6265  ;;  %vm13969_vm14 = vmmov %vm13968_vm1 }
 0x824   : > { %v5431_v22 = vadd.f32 %v5399_v61, %v5314_v34  ;;  %v13961_v34 = vld [vmem:[#allocation50_spill] sm:$0xff]  ;;  %vm13971_vm10 = vmmov %vm13968_vm1 }
 0x825   : > { %vm13974_vm2 = vmmov %vm13963_vm4 }
 0x826   : > { %v5565_v56 = vadd.f32 %v5533_v62, %v5431_v22  ;;  %v6152_v62 = vsel %vm6141_vm9, %v12421_v12, %v13961_v34  ;;  %v13962_v22 = vld [vmem:[#allocation52_spill] sm:$0xff]  ;;  %vm13975_vm3 = vmmov %vm13974_vm2 }
 0x827   : > { %v12908_v47 = vpop.permute.xlu1 %6271  ;;  %v12910_v55 = vpop.permute.xlu0 %6269  ;;  %v6286_v52 = vsel %vm13963_vm4, %v13899_v35, %v13962_v22  ;;  %v6654_v35 = vsel %vm6643_vm13, %v13923_v27, %v12501_v15  ;;  %v6036_v27 = vsel %vm13968_vm1, %v13959_v3, %v12872_v37  ;;  %vm13976_vm4 = vmmov %vm13974_vm2 }
 0x828   : > { %v5682_v0 = vadd.f32 %v5650_v23, %v5565_v56  ;;  %v13964_v56 = vld [vmem:[#allocation51_spill] sm:$0xff]  ;;  %vm13982_vm1 = vmmov %vm13974_vm2 }
 0x829   : > { %v6403_v54 = vsel %vm13965_vm5, %v13908_v41, %v13964_v56  ;;  %v6788_v41 = vsel %vm13967_vm8, %v12551_v30, %v12553_v32  ;;  %v6038_v30 = vsel %vm13969_vm14, %v12880_v17, %v12876_v8  ;;  %v7290_v8 = vsel %vm13972_vm6, %v12703_v1, %v12771_v60  ;;  %vm13977_vm5 = vmmov %vm13974_vm2 }
 0x82a   : > { %v5816_v7 = vadd.f32 %v5784_v29, %v5682_v0  ;;  %v6070_v37 = vadd.f32 %v6038_v30, %v12868_v33  ;;  %v13973_v33 = vld [vmem:[#allocation25_spill] sm:$0xff]  ;;  %v6287_v1 = vsel %vm13974_vm2, %v13962_v22, %v12906_v25  ;;  %v13981_v30 = vld [vmem:[#allocation24_spill] sm:$0xff] }
 0x82b   : > { %v12921_v13 = vpop.permute.xlu1 %6382  ;;  %v12923_v18 = vpop.permute.xlu0 %6384 }
 0x82c   : > { %v5933_v11 = vadd.f32 %v5901_v5, %v5816_v7  ;;  %v6537_v5 = vsel %vm13966_vm7, %v13912_v31, %v12503_v57  ;;  %v6905_v31 = vsel %vm6894_vm15, %v12597_v20, %v12592_v59 }
 0x82e   : > { %v6067_v39 = vadd.f32 %v6035_v10, %v5933_v11 }
 0x82f   : > { %v12928_v42 = vpop.permute.xlu1 %6386  ;;  %v12930_v26 = vpop.permute.xlu0 %6388 }
 0x830   : > { %v6184_v63 = vadd.f32 %v6152_v62, %v6067_v39 }
 0x832   : > { %v6318_v23 = vadd.f32 %v6286_v52, %v6184_v63 }
 0x833   : > { %v12938_v51 = vpop.permute.xlu0 %6516  ;;  %v12940_v9 = vpop.permute.xlu1 %6633 }
 0x834   : > { %v6435_v7 = vadd.f32 %v6403_v54, %v6318_v23  ;;  %v7039_v54 = vsel %vm7028_vm12, %v12638_v24, %v12640_v19  ;;  %v13970_v23 = vld [vmem:[#allocation22_spill] sm:$0xff]  ;;  %v7156_v24 = vsel %vm7145_vm11, %v12684_v38, %v12686_v6  ;;  %v6155_v38 = vsel %vm6141_vm9, %v12882_v28, %v12878_v4 }
 0x835   : > { %v6289_v4 = vsel %vm13976_vm4, %v12904_v44, %v12910_v55 }
 0x836   : > { %v6569_v12 = vadd.f32 %v6537_v5, %v6435_v7  ;;  %v6040_v5 = vsel %vm13971_vm10, %v6021_v40, %v13970_v23  ;;  %v6153_v40 = vsel %vm6141_vm9, %v13961_v34, %v12874_v53  ;;  %v6288_v53 = vsel %vm13975_vm3, %v12906_v25, %v12904_v44 }
 0x837   : > { %v12948_v21 = vpop.permute.xlu0 %6520  ;;  %v12950_v48 = vpop.permute.xlu1 %6637  ;;  %v6072_v3 = vadd.f32 %v6040_v5, %v12870_v2  ;;  %v6157_v2 = vsel %vm6141_vm9, %v12892_v36, %v13973_v33  ;;  %v6290_v36 = vsel %vm13977_vm5, %v12910_v55, %v12908_v47  ;;  %vm13978_vm9 = vcmask 949248   ;;  %v13990_v33 = vld [vmem:[#allocation26_spill] sm:$0xff] }
 0x838   : > { %v6686_v39 = vadd.f32 %v6654_v35, %v6569_v12  ;;  %v6404_v22 = vsel %vm13978_vm9, %v13964_v56, %v12921_v13  ;;  %vm13979_vm7 = vmmov %vm13978_vm9  ;;  %v6291_v23 = vsel %vm13982_vm1, %v12908_v47, %v13981_v30  ;;  %vm13984_vm10 = vcmask 941056  }
 0x839   : > { %v6405_v25 = vsel %vm13979_vm7, %v12921_v13, %v12923_v18  ;;  %vm13980_vm8 = vmmov %vm13979_vm7  ;;  %v6538_v13 = vsel %vm13984_vm10, %v12503_v57, %v12938_v51  ;;  %v6322_v47 = vadd.f32 %v6290_v36, %v12902_v45  ;;  %vm13992_vm9 = vcmask 924672  }
 0x83a   : > { %v6820_v63 = vadd.f32 %v6788_v41, %v6686_v39  ;;  %v6068_v41 = vadd.f32 %v6036_v27, %v12862_v46  ;;  %v6406_v44 = vsel %vm13980_vm8, %v12923_v18, %v12928_v42  ;;  %v6320_v27 = vadd.f32 %v6288_v53, %v12890_v49  ;;  %vm13983_vm14 = vmmov %vm13979_vm7 }
 0x83b   : > { %v6519_v50 = vpop.permute.xlu1 %6518  ;;  %v12952_v61 = vpop.permute.xlu0 %6635  ;;  %v6407_v56 = vsel %vm13983_vm14, %v12928_v42, %v12930_v26  ;;  %vm13985_vm6 = vmmov %vm13984_vm10  ;;  %vm14001_vm14 = vcmask 891904  }
 0x83c   : > { %v6937_v7 = vadd.f32 %v6905_v31, %v6820_v63  ;;  %v6185_v34 = vadd.f32 %v6153_v40, %v6068_v41  ;;  %v6187_v31 = vadd.f32 %v6155_v38, %v6070_v37  ;;  %v6189_v63 = vadd.f32 %v6157_v2, %v6072_v3  ;;  %vm13986_vm2 = vmmov %vm13985_vm6  ;;  %v13987_v3 = vld [vmem:[#allocation27_spill] sm:$0xff] }
 0x83d   : > { %v6539_v18 = vsel %vm13985_vm6, %v12938_v51, %v6519_v50  ;;  %v6540_v49 = vsel %vm13986_vm2, %v6519_v50, %v12948_v21  ;;  %vm13988_vm3 = vmmov %vm13979_vm7 }
 0x83e   : > { %v7071_v35 = vadd.f32 %v7039_v54, %v6937_v7  ;;  %v6319_v54 = vadd.f32 %v6287_v1, %v6185_v34  ;;  %v6321_v55 = vadd.f32 %v6289_v4, %v6187_v31  ;;  %v6323_v37 = vadd.f32 %v6291_v23, %v6189_v63  ;;  %vm13989_vm4 = vmmov %vm13986_vm2 }
 0x83f   : > { %v12963_v29 = vpop.permute.xlu1 %6522  ;;  %v12965_v0 = vpop.permute.xlu0 %6639  ;;  %v6408_v42 = vsel %vm13988_vm3, %v12930_v26, %v13987_v3  ;;  %vm13991_vm5 = vmmov %vm13986_vm2  ;;  %v6655_v26 = vsel %vm6643_vm13, %v12501_v15, %v12940_v9  ;;  %v6657_v4 = vsel %vm6643_vm13, %v12952_v61, %v12950_v48  ;;  %v13999_v3 = vld [vmem:[#allocation31_spill] sm:$0xff] }
 0x840   : > { %v7188_v17 = vadd.f32 %v7156_v24, %v7071_v35  ;;  %v6436_v24 = vadd.f32 %v6404_v22, %v6319_v54  ;;  %v6437_v35 = vadd.f32 %v6405_v25, %v6320_v27  ;;  %v6438_v41 = vadd.f32 %v6406_v44, %v6321_v55  ;;  %vm13993_vm7 = vmmov %vm13992_vm9  ;;  %v13994_v25 = vld [vmem:[#allocation29_spill] sm:$0xff] }
 0x841   : > { %v6541_v57 = vsel %vm13989_vm4, %v12948_v21, %v12963_v29  ;;  %v6542_v45 = vsel %vm13991_vm5, %v12963_v29, %v13990_v33  ;;  %v6440_v1 = vadd.f32 %v6408_v42, %v6323_v37  ;;  %v6656_v21 = vsel %vm6643_vm13, %v12940_v9, %v12952_v61  ;;  %vm13995_vm8 = vmmov %vm13993_vm7 }
 0x842   : > { %v7322_v28 = vadd.f32 %v7290_v8, %v7188_v17  ;;  %v6439_v8 = vadd.f32 %v6407_v56, %v6322_v47  ;;  %v6570_v17 = vadd.f32 %v6538_v13, %v6436_v24  ;;  %v6571_v51 = vadd.f32 %v6539_v18, %v6437_v35  ;;  %vm13997_vm1 = vmmov %vm13993_vm7 }
 0x843   : > { %v12970_v10 = vpop.permute.xlu1 %6769  ;;  %v12972_v11 = vpop.permute.xlu0 %6767  ;;  %v6572_v40 = vadd.f32 %v6540_v49, %v6438_v41  ;;  %v6574_v63 = vadd.f32 %v6542_v45, %v6440_v1  ;;  %v6658_v9 = vsel %vm6643_vm13, %v12950_v48, %v12965_v0  ;;  %v6659_v61 = vsel %vm6643_vm13, %v12965_v0, %v13994_v25  ;;  %v13996_v48 = vld [vmem:[#allocation28_spill] sm:$0xff]  ;;  %vm13998_vm13 = vmmov %vm13997_vm1 }
 0x844   : > { %v13072_v2 = vadd.f32 %v13925_v14, %v7322_v28  ;;  %v6573_v53 = vadd.f32 %v6541_v57, %v6439_v8  ;;  %v6789_v29 = vsel %vm13992_vm9, %v12553_v32, %v12972_v11  ;;  %v6790_v28 = vsel %vm13993_vm7, %v12972_v11, %v12970_v10  ;;  %v14000_v8 = vld [vmem:[#allocation30_spill] sm:$0xff] }
 0x845   : > { %v6687_v34 = vadd.f32 %v6655_v26, %v6570_v17  ;;  %v6688_v31 = vadd.f32 %v6656_v21, %v6571_v51  ;;  %v6689_v15 = vadd.f32 %v6657_v4, %v6572_v40  ;;  %v6691_v55 = vadd.f32 %v6659_v61, %v6574_v63 }
 0x846   : > { %v6690_v44 = vadd.f32 %v6658_v9, %v6573_v53 }
 0x847   : > { %v12980_v62 = vpop.permute.xlu1 %6773  ;;  %v12982_v52 = vpop.permute.xlu0 %6771  ;;  %v6821_v54 = vadd.f32 %v6789_v29, %v6687_v34  ;;  %v6822_v27 = vadd.f32 %v6790_v28, %v6688_v31 }
 0x848   : > { %v6791_v30 = vsel %vm13995_vm8, %v12970_v10, %v12982_v52  ;;  %v6793_v23 = vsel %vm13997_vm1, %v12980_v62, %v13996_v48  ;;  %v6792_v0 = vsel %vm13998_vm13, %v12982_v52, %v12980_v62 }
 0x849   : > { %v6823_v47 = vadd.f32 %v6791_v30, %v6689_v15  ;;  %v6824_v24 = vadd.f32 %v6792_v0, %v6690_v44 }
 0x84b   : > { %v12998_v12 = vpop.permute.xlu1 %6884  ;;  %v13000_v20 = vpop.permute.xlu0 %6886 }
 0x84c   : > { %v6906_v32 = vsel %vm6894_vm15, %v12592_v59, %v12998_v12  ;;  %v6907_v11 = vsel %vm6894_vm15, %v12998_v12, %v13000_v20 }
 0x84d   : > { %v6938_v56 = vadd.f32 %v6906_v32, %v6821_v54  ;;  %v6939_v13 = vadd.f32 %v6907_v11, %v6822_v27 }
 0x84f   : > { %v13017_v39 = vpop.permute.xlu1 %6888  ;;  %v13019_v46 = vpop.permute.xlu0 %6890 }
 0x850   : > { %v6908_v10 = vsel %vm6894_vm15, %v13000_v20, %v13017_v39  ;;  %v6909_v62 = vsel %vm6894_vm15, %v13017_v39, %v13019_v46  ;;  %v6910_v20 = vsel %vm6894_vm15, %v13019_v46, %v13999_v3  ;;  %vm14002_vm15 = vmmov %vm14001_vm14 }
 0x851   : > { %v6940_v37 = vadd.f32 %v6908_v10, %v6823_v47  ;;  %v6941_v39 = vadd.f32 %v6909_v62, %v6824_v24  ;;  %v13157_v24 = vld [vmem:[#allocation3 + $0x40] sm:$0xf] }
 0x853   : > { %v13049_v5 = vpop.permute.xlu1 %7020  ;;  %v7019_v7 = vpop.permute.xlu0 %7018 }
 0x854   : > { %v7040_v59 = vsel %vm7028_vm12, %v12640_v19, %v7019_v7  ;;  %v7041_v12 = vsel %vm7028_vm12, %v7019_v7, %v13049_v5  ;;  %v6825_v7 = vadd.f32 %v6793_v23, %v6691_v55 }
 0x855   : > { %v7072_v35 = vadd.f32 %v7040_v59, %v6938_v56  ;;  %v7073_v41 = vadd.f32 %v7041_v12, %v6939_v13 }
 0x856   : > { %v6942_v4 = vadd.f32 %v6910_v20, %v6825_v7 }
 0x857   : > { %v7025_v38 = vpop.permute.xlu1 %7024  ;;  %v7023_v50 = vpop.permute.xlu0 %7022 }
 0x858   : > { %v7042_v42 = vsel %vm7028_vm12, %v13049_v5, %v7023_v50  ;;  %v7043_v57 = vsel %vm7028_vm12, %v7023_v50, %v7025_v38 }
 0x859   : > { %v7074_v5 = vadd.f32 %v7042_v42, %v6940_v37  ;;  %v7075_v53 = vadd.f32 %v7043_v57, %v6941_v39 }
 0x85b   : > { %v7136_v36 = vpop.permute.xlu0 %7135  ;;  %v7138_v22 = vpop.permute.xlu1 %7137 }
 0x85c   : > { %v7157_v19 = vsel %vm7145_vm11, %v12686_v6, %v7136_v36  ;;  %v7158_v52 = vsel %vm7145_vm11, %v7136_v36, %v7138_v22  ;;  %v7044_v6 = vsel %vm7028_vm12, %v7025_v38, %v14000_v8  ;;  %v7360_v38 = vmax.f32 %v13072_v2, 0.0  ;;  %v14003_v36 = vld [vmem:[#allocation32_spill] sm:$0xff]  ;;  %vm14004_vm12 = vmmov %vm14001_vm14 }
 0x85d   : > { %v7189_v17 = vadd.f32 %v7157_v19, %v7072_v35  ;;  %v7190_v51 = vadd.f32 %v7158_v52, %v7073_v41  ;;  %v7076_v63 = vadd.f32 %v7044_v6, %v6942_v4  ;;  %vm14005_vm10 = vmmov %vm14004_vm12 }
 0x85e   : > { %vm14006_vm6 = vmmov %vm14005_vm10 }
 0x85f   : > { %v7140_v18 = vpop.permute.xlu0 %7139  ;;  %v7142_v49 = vpop.permute.xlu1 %7141 }
 0x860   : > { %v7159_v45 = vsel %vm7145_vm11, %v7138_v22, %v7140_v18  ;;  %v7160_v1 = vsel %vm7145_vm11, %v7140_v18, %v7142_v49  ;;  %v7161_v22 = vsel %vm7145_vm11, %v7142_v49, %v14003_v36  ;;  %vm7452_vm11 = vcmask 1043456  }
 0x861   : > { %v7191_v29 = vadd.f32 %v7159_v45, %v7074_v5  ;;  %v7192_v28 = vadd.f32 %v7160_v1, %v7075_v53  ;;  %v7193_v2 = vadd.f32 %v7161_v22, %v7076_v63  ;;  %v9348_v1 = vld [vmem:[%s13571_s3 + $0x40] sm:$0xff]   ;;  %v9352_v53 = vld [vmem:[%s13571_s3 + $0x48] sm:$0xff]   ;;  %v9690_v22 = vmov 1966171168  }
 0x862   : > { %v9351_v5 = vld [vmem:[%s13571_s3 + $0x80] sm:$0xff]   ;;  %8797 = vmatprep.subr.bf16.mxu0 %v9348_v1 }
 0x863   : > { %v7272_v40 = vpop.permute.xlu0 %7271  ;;  %v7270_v33 = vpop.permute.xlu1 %7269  ;;  %v9383_v1 = vld [vmem:[%s13571_s3 + $0x180] sm:$0xff]  }
 0x864   : > { %v7291_v46 = vsel %vm14001_vm14, %v12771_v60, %v7270_v33  ;;  %v7292_v26 = vsel %vm14002_vm15, %v7270_v33, %v7272_v40 }
 0x865   : > { %v7323_v50 = vadd.f32 %v7291_v46, %v7189_v17  ;;  %v7324_v21 = vadd.f32 %v7292_v26, %v7190_v51  ;;  %v9349_v46 = vld [vmem:[%s13571_s3] sm:$0xff]  }
 0x866   : > { %v9350_v26 = vld [vmem:[%s13571_s3 + $0xc0] sm:$0xff]   ;;  %8798 = vmatpush3.bf16.msra.mxu0 %v9349_v46 }
 0x867   : > { %v7345_v34 = vadd.f32 %v13925_v14, %v7323_v50  ;;  %v7276_v31 = vpop.permute.xlu0 %7275  ;;  %v7274_v15 = vpop.permute.xlu1 %7273  ;;  %v7346_v25 = vadd.f32 %v13925_v14, %v7324_v21  ;;  %8819 = vmatprep.subr.bf16.mxu1 %v9350_v26  ;;  %v9354_v50 = vld [vmem:[%s13571_s3 + $0xc8] sm:$0xff]   ;;  %8799 = vmatprep.subr.bf16.mxu0 %v9352_v53 }
 0x868   : > { %v7293_v60 = vsel %vm14004_vm12, %v7272_v40, %v7274_v15  ;;  %v7294_v9 = vsel %vm14005_vm10, %v7274_v15, %v7276_v31  ;;  %v13175_v40 = vld [vmem:[#allocation3 + $0x18] sm:$0xff]  ;;  %8820 = vmatpush3.bf16.msra.mxu1 %v9351_v5  ;;  %v13204_v15 = vld [vmem:[#allocation3 + $0x20] sm:$0xff] }
 0x869   : > { %v7361_v61 = vmax.f32 %v7345_v34, 0.0  ;;  %v7325_v32 = vadd.f32 %v7293_v60, %v7191_v29  ;;  %v7326_v11 = vadd.f32 %v7294_v9, %v7192_v28  ;;  %v7362_v23 = vmax.f32 %v7346_v25, 0.0  ;;  %v9353_v21 = vld [vmem:[%s13571_s3 + $0x8] sm:$0xff]   ;;  %8821 = vmatprep.subr.bf16.mxu1 %v9354_v50 }
 0x86a   : > { %8800 = vmatpush3.bf16.msra.mxu0 %v9353_v21  ;;  %v7557_v60 = vunpack.c.l.s4 %v9690_v22  ;;  %v7559_v9 = vlaneseq  ;;  %v9369_v22 = vld [vmem:[%s13571_s3 + $0x28] sm:$0xff]  }
 0x86b   : > { %v13143_v44 = vcombine.low %v7360_v38, %v7361_v61  ;;  %v7347_v54 = vadd.f32 %v13925_v14, %v7325_v32  ;;  %v7426_v27 = vpop.permute.xlu0 %7425  ;;  %v7278_v30 = vpop.permute.xlu1 %7277  ;;  %v7348_v0 = vadd.f32 %v13925_v14, %v7326_v11  ;;  %v9355_v11 = vld [vmem:[%s13571_s3 + $0x88] sm:$0xff]  }
 0x86c   : > { %v7295_v48 = vsel %vm14006_vm6, %v7276_v31, %v7278_v30  ;;  %v7443_v18 = vrot.slane %v7426_v27, 4  ;;  %8822 = vmatpush3.bf16.msra.mxu1 %v9355_v11  ;;  %vm13262_vm2 = vcmp.lt.s32.totalorder %v7559_v9, 256  ;;  %v9372_v11 = vld [vmem:[%s13571_s3 + $0x70] sm:$0xff]  }
 0x86d   : > { %v7363_v59 = vmax.f32 %v7347_v54, 0.0  ;;  %v7327_v12 = vadd.f32 %v7295_v48, %v7193_v2  ;;  %7435 = vrot.lane.b32.xlu1 %v13143_v44, %s13926_s8  ;;  %v7364_v62 = vmax.f32 %v7348_v0, 0.0  ;;  %v9356_v2 = vld [vmem:[%s13571_s3 + $0x50] sm:$0xff]  }
 0x86e   : > { %v9357_v54 = vld [vmem:[%s13571_s3 + $0x10] sm:$0xff]   ;;  %8801 = vmatprep.subr.bf16.mxu0 %v9356_v2 }
 0x86f   : > { %v13150_v55 = vcombine.low %v7362_v23, %v7363_v59  ;;  %v7349_v56 = vadd.f32 %v13925_v14, %v7327_v12  ;;  %v7430_v13 = vpop.permute.xlu0 %7429  ;;  %v7428_v10 = vpop.permute.xlu1 %7427  ;;  %v7558_v59 = vunpack.c.0.s8 %v7557_v60  ;;  %v7560_v12 = vshrl.u32 %v7559_v9, 7  ;;  %8802 = vmatpush3.bf16.msra.mxu0 %v9357_v54  ;;  %v9374_v54 = vld [vmem:[%s13571_s3 + $0xf0] sm:$0xff]  }
 0x870   : > { %v7445_v49 = vrot.slane %v7430_v13, 4  ;;  %v7444_v47 = vrot.slane %v7428_v10, 4 }
 0x871   : > { %v7365_v19 = vmax.f32 %v7349_v56, 0.0  ;;  %7437 = vrot.lane.b32.xlu0 %v13150_v55, %s13926_s8 }
 0x872   : > { %v7453_v52 = vsel %vm7452_vm11, %v7443_v18, %v7444_v47  ;;  %v7455_v7 = vsel %vm7452_vm11, %v7444_v47, %v7445_v49  ;;  %v9359_v47 = vld [vmem:[%s13571_s3 + $0x90] sm:$0xff]  }
 0x873   : > { %v13159_v35 = vcombine.low %v7364_v62, %v7365_v19  ;;  %v7434_v14 = vpop.permute.xlu0 %7433  ;;  %v7432_v41 = vpop.permute.xlu1 %7431  ;;  %v7456_v37 = vsel %vm5020_vm0, %v7428_v10, %v7455_v7  ;;  %v7454_v42 = vsel %vm5020_vm0, %v7426_v27, %v7453_v52  ;;  %v9360_v62 = vld [vmem:[%s13571_s3 + $0x58] sm:$0xff]  }
 0x874   : > { %v7447_v3 = vrot.slane %v7434_v14, 4  ;;  %v7446_v20 = vrot.slane %v7432_v41, 4  ;;  %v7479_v8 = vmax.f32 %v12836_v43, %v7456_v37  ;;  %v7478_v6 = vmax.f32 %v12825_v16, %v7454_v42  ;;  %8803 = vmatprep.subr.bf16.mxu0 %v9360_v62  ;;  %v9382_v62 = vld [vmem:[%s13571_s3 + $0x1c0] sm:$0xff]  }
 0x875   : > { %7441 = vrot.lane.b32.xlu0 %v13157_v24, %s13926_s8  ;;  %7439 = vrot.lane.b32.xlu1 %v13159_v35, %s13926_s8 }
 0x876   : > { %v7457_v57 = vsel %vm7452_vm11, %v7445_v49, %v7446_v20  ;;  %v7459_v39 = vsel %vm7452_vm11, %v7446_v20, %v7447_v3  ;;  %v9358_v49 = vld [vmem:[%s13571_s3 + $0xd0] sm:$0xff]  }
 0x877   : > { %v7460_v17 = vsel %vm5020_vm0, %v7432_v41, %v7459_v39  ;;  %v7458_v51 = vsel %vm5020_vm0, %v7430_v13, %v7457_v57  ;;  %8823 = vmatprep.subr.bf16.mxu1 %v9358_v49  ;;  %v13236_v41 = vsub.s32 %v7558_v59, %v7560_v12  ;;  %v9375_v12 = vld [vmem:[%s13571_s3 + $0xb0] sm:$0xff]   ;;  %v9379_v49 = vld [vmem:[%s13571_s3 + $0xb8] sm:$0xff]  }
 0x878   : > { %v7481_v33 = vmax.f32 %v13175_v40, %v7460_v17  ;;  %v7480_v45 = vmax.f32 %v12834_v58, %v7458_v51  ;;  %8824 = vmatpush3.bf16.msra.mxu1 %v9359_v47  ;;  %v9361_v17 = vld [vmem:[%s13571_s3 + $0x18] sm:$0xff]   ;;  %v9380_v47 = vld [vmem:[%s13571_s3 + $0x140] sm:$0xff]  }
 0x879   : > { %7498 = vrot.lane.b32.xlu0 %v7479_v8, %s13926_s8  ;;  %7496 = vrot.lane.b32.xlu1 %v7478_v6, %s13926_s8  ;;  %v9362_v51 = vld [vmem:[%s13571_s3 + $0xd8] sm:$0xff]  }
 0x87a   : > { %8804 = vmatpush3.bf16.msra.mxu0 %v9361_v17  ;;  %8825 = vmatprep.subr.bf16.mxu1 %v9362_v51 }
 0x87d   : > { %7502 = vrot.lane.b32.xlu0 %v7481_v33, %s13926_s8  ;;  %7500 = vrot.lane.b32.xlu1 %v7480_v45, %s13926_s8  ;;  %v9363_v33 = vld [vmem:[%s13571_s3 + $0x98] sm:$0xff]  }
 0x87e   : > { %8826 = vmatpush3.bf16.msra.mxu1 %v9363_v33 }
 0x8df   : > { %v7436_v4 = vpop.permute.xlu1 %7435 }
 0x8e0   : > { %v7448_v38 = vrot.slane %v7436_v4, 4 }
 0x8e2   : > { %v7461_v29 = vsel %vm7452_vm11, %v7447_v3, %v7448_v38 }
 0x8e3   : > { %v7438_v28 = vpop.permute.xlu0 %7437  ;;  %v7462_v34 = vsel %vm5020_vm0, %v7434_v14, %v7461_v29  ;;  %v9366_v29 = vld [vmem:[%s13571_s3 + $0xe0] sm:$0xff]  }
 0x8e4   : > { %v7449_v31 = vrot.slane %v7438_v28, 4  ;;  %v7482_v63 = vmax.f32 %v13204_v15, %v7462_v34  ;;  %8827 = vmatprep.subr.bf16.mxu1 %v9366_v29 }
 0x8e6   : > { %v7463_v36 = vsel %vm7452_vm11, %v7448_v38, %v7449_v31  ;;  %7504 = vrot.lane.b32.xlu1 %v7482_v63, %s13926_s8  ;;  %v9365_v38 = vld [vmem:[%s13571_s3 + $0x20] sm:$0xff]  }
 0x8e7   : > { %v7442_v25 = vpop.permute.xlu0 %7441  ;;  %v7440_v61 = vpop.permute.xlu1 %7439  ;;  %v7464_v32 = vsel %vm5020_vm0, %v7436_v4, %v7463_v36  ;;  %v9364_v4 = vld [vmem:[%s13571_s3 + $0x60] sm:$0xff]   ;;  %v9370_v36 = vld [vmem:[%s13571_s3 + $0xe8] sm:$0xff]  }
 0x8e8   : > { %v7451_v27 = vrot.slane %v7442_v25, 4  ;;  %v7450_v30 = vrot.slane %v7440_v61, 4  ;;  %v7483_v48 = vmax.f32 %v13143_v44, %v7464_v32  ;;  %v7486_v57 = vmax.f32 %v13157_v24, %v7442_v25  ;;  %8805 = vmatprep.subr.bf16.mxu0 %v9364_v4  ;;  %v9371_v32 = vld [vmem:[%s13571_s3 + $0xa8] sm:$0xff]  }
 0x8e9   : > { %8806 = vmatpush3.bf16.msra.mxu0 %v9365_v38 }
 0x8ea   : > { %v7465_v23 = vsel %vm7452_vm11, %v7449_v31, %v7450_v30  ;;  %v7467_v0 = vsel %vm7452_vm11, %v7450_v30, %v7451_v27  ;;  %7506 = vrot.lane.b32.xlu0 %v7483_v48, %s13926_s8 }
 0x8eb   : > { %v7468_v56 = vsel %vm5020_vm0, %v7440_v61, %v7467_v0  ;;  %v7499_v13 = vpop.permute.xlu0 %7498  ;;  %v7497_v10 = vpop.permute.xlu1 %7496  ;;  %v7466_v18 = vsel %vm5020_vm0, %v7438_v28, %v7465_v23  ;;  %v9367_v28 = vld [vmem:[%s13571_s3 + $0xa0] sm:$0xff]   ;;  %v9373_v0 = vld [vmem:[%s13571_s3 + $0x30] sm:$0xff]  }
 0x8ec   : > { %v7485_v19 = vmax.f32 %v13159_v35, %v7468_v56  ;;  %v7515_v52 = vrot.slane %v7499_v13, 4  ;;  %v7514_v7 = vrot.slane %v7497_v10, 4  ;;  %v7484_v14 = vmax.f32 %v13150_v55, %v7466_v18  ;;  %8828 = vmatpush3.bf16.msra.mxu1 %v9367_v28  ;;  %v9376_v56 = vld [vmem:[%s13571_s3 + $0x78] sm:$0xff]  }
 0x8ed   : > { %8829 = vmatprep.subr.bf16.mxu1 %v9370_v36  ;;  %v9377_v18 = vld [vmem:[%s13571_s3 + $0x38] sm:$0xff]  }
 0x8ee   : > { %v7523_v37 = vsel %vm7452_vm11, %v7514_v7, %v7515_v52  ;;  %7510 = vrot.lane.b32.xlu0 %v7485_v19, %s13926_s8  ;;  %7508 = vrot.lane.b32.xlu1 %v7484_v14, %s13926_s8 }
 0x8ef   : > { %v7524_v3 = vsel %vm5020_vm0, %v7497_v10, %v7523_v37  ;;  %v13242_v20 = vpop.permute.xlu0 %7502  ;;  %v7501_v42 = vpop.permute.xlu1 %7500  ;;  %v9378_v10 = vld [vmem:[%s13571_s3 + $0xf8] sm:$0xff]  }
 0x8f0   : > { %v7547_v39 = vmax.f32 %v12825_v16, %v7524_v3  ;;  %v7517_v8 = vrot.slane %v13242_v20, 4  ;;  %v7516_v6 = vrot.slane %v7501_v42, 4  ;;  %8830 = vmatpush3.bf16.msra.mxu1 %v9371_v32 }
 0x8f1   : > { %8831 = vmatprep.subr.bf16.mxu1 %v9374_v54 }
 0x8f2   : > { %v7562_v45 = vrot.slane %v7547_v39, %v13236_v41  ;;  %v7525_v24 = vsel %vm7452_vm11, %v7515_v52, %v7516_v6  ;;  %v7527_v16 = vsel %vm7452_vm11, %v7516_v6, %v7517_v8  ;;  %7512 = vrot.lane.b32.xlu1 %v7486_v57, %s13926_s8  ;;  %s8697_s8 = sshll.u32 %s9895_s29, 3 }
 0x8f3   : > { %v7526_v46 = vsel %vm5020_vm0, %v7499_v13, %v7525_v24  ;;  %v7528_v26 = vsel %vm5020_vm0, %v7501_v42, %v7527_v16  ;;  %s270_s9 = scalar_lea.vmem [#allocation11], %s8697_s8 }
 0x8f4   : > { %v7569_v5 = vrot.slane %v7562_v45, %v13236_v41  ;;  %v7710_v53 = vcombine.high %v7562_v45, %v7562_v45  ;;  %v7548_v50 = vmax.f32 %v12836_v43, %v7526_v46  ;;  %v7549_v21 = vmax.f32 %v12834_v58, %v7528_v26  ;;  %v9368_v58 = vld [vmem:[%s13571_s3 + $0x68] sm:$0xff]   ;;  %8832 = vmatpush3.bf16.msra.mxu1 %v9375_v12  ;;  %s8597_s13 = sshll.u32 %s270_s9, 4  ;;  %s13526_s13 = int_to_ptr.vmem [resolvable:$true] %s8597_s13 }
 0x8f5   : > { %8807 = vmatprep.subr.bf16.mxu0 %v9368_v58  ;;  %8833 = vmatprep.subr.bf16.mxu1 %v9378_v10  ;;  %s9590_s4 = scalar_lea.vmem %s13526_s13, 128  ;;  %p9597_p7 = scmp.lt.s32.totalorder %s13526_s13, %s9595_s26 }
 0x8f6   : > { %7575 = vst.msk [vmem:[#allocation4] ss:$8 sm:$0x3] %vm13262_vm2, %v7569_v5  ;;  %v7717_v43 = vrot.slane %v7710_v53, %v13236_v41  ;;  %v7806_v34 = vcombine.high %v7569_v5, %v7569_v5  ;;  %v7584_v31 = vrot.slane %v7548_v50, %v13236_v41  ;;  %v7603_v63 = vrot.slane %v7549_v21, %v13236_v41  ;;  %p9591_p11 = scmp.ne.s32.totalorder %s13526_s13, %s9590_s4  ;;  %p9598_p9 = scmp.lt.s32.totalorder %s9596_s7, %s9590_s4 }
 0x8f7   : > { %8808 = vmatpush3.bf16.msra.mxu0 %v9369_v22 }
 0x8f8   : > { %7720 = vst.msk [vmem:[#allocation4 + $0x10] ss:$8 sm:$0x3] %vm13262_vm2, %v7717_v43  ;;  %7809 = vst.msk [vmem:[#allocation4 + $0x20] ss:$8 sm:$0x3] %vm13262_vm2, %v7806_v34  ;;  %v7846_v60 = vcombine.high %v7717_v43, %v7717_v43  ;;  %v7591_v9 = vrot.slane %v7584_v31, %v13236_v41  ;;  %v7610_v25 = vrot.slane %v7603_v63, %v13236_v41  ;;  %8809 = vmatprep.subr.bf16.mxu0 %v9372_v11  ;;  %p9592_p1 = pnand %p9591_p11, %p14009_p0  ;;  %p9599_p12 = por %p9598_p9, %p9597_p7 }
 0x8f9   : > { %v7722_v61 = vcombine.high %v7584_v31, %v7584_v31  ;;  %v7734_v2 = vcombine.high %v7603_v63, %v7603_v63  ;;  %8834 = vmatpush3.bf16.msra.mxu1 %v9379_v49 }
 0x8fa   : > { %7849 = vst.msk [vmem:[#allocation4 + $0x30] ss:$8 sm:$0x3] %vm13262_vm2, %v7846_v60  ;;  %7594 = vst.msk [vmem:[#allocation4 + $0x1] ss:$8 sm:$0x3] %vm13262_vm2, %v7591_v9  ;;  %v7811_v30 = vcombine.high %v7591_v9, %v7591_v9  ;;  %v7816_v48 = vcombine.high %v7610_v25, %v7610_v25  ;;  %8863 = vmatprep.subr.bf16.mxu1 %v9382_v62  ;;  %p9593_p3 = pneg %p9592_p1 }
 0x8fb   : > { %7613 = vst.msk [vmem:[#allocation4 + $0x2] ss:$8 sm:$0x3] %vm13262_vm2, %v7610_v25  ;;  %v7729_v27 = vrot.slane %v7722_v61, %v13236_v41  ;;  %v7741_v23 = vrot.slane %v7734_v2, %v13236_v41  ;;  %8810 = vmatpush3.bf16.msra.mxu0 %v9373_v0 }
 0x8fc   : > { %7814 = vst.msk [vmem:[#allocation4 + $0x21] ss:$8 sm:$0x3] %vm13262_vm2, %v7811_v30  ;;  %7819 = vst.msk [vmem:[#allocation4 + $0x22] ss:$8 sm:$0x3] %vm13262_vm2, %v7816_v48  ;;  %8811 = vmatprep.subr.bf16.mxu0 %v9376_v56  ;;  %p9600_p2 = pnand %p9599_p12, %p9593_p3 }
 0x8fd   : > { %7732 = vst.msk [vmem:[#allocation4 + $0x11] ss:$8 sm:$0x3] %vm13262_vm2, %v7729_v27  ;;  %v7851_v59 = vcombine.high %v7729_v27, %v7729_v27  ;;  %7744 = vst.msk [vmem:[#allocation4 + $0x12] ss:$8 sm:$0x3] %vm13262_vm2, %v7741_v23  ;;  %v7856_v13 = vcombine.high %v7741_v23, %v7741_v23 }
 0x8ff   : > { %7854 = vst.msk [vmem:[#allocation4 + $0x31] ss:$8 sm:$0x3] %vm13262_vm2, %v7851_v59  ;;  %7859 = vst.msk [vmem:[#allocation4 + $0x32] ss:$8 sm:$0x3] %vm13262_vm2, %v7856_v13  ;;  %8812 = vmatpush3.bf16.msra.mxu0 %v9377_v18 }
 0x900   : > { %8841 = vmatprep.subr.bf16.mxu0 %v9380_v47 }
 0x958   : > { %v7505_v19 = vpop.permute.xlu1 %7504 }
 0x959   : > { %v7518_v52 = vrot.slane %v7505_v19, 4 }
 0x95b   : > { %v7529_v7 = vsel %vm7452_vm11, %v7517_v8, %v7518_v52 }
 0x95c   : > { %v7530_v14 = vsel %vm5020_vm0, %v13242_v20, %v7529_v7  ;;  %v7507_v37 = vpop.permute.xlu0 %7506 }
 0x95d   : > { %v7550_v3 = vmax.f32 %v13175_v40, %v7530_v14  ;;  %v7519_v42 = vrot.slane %v7507_v37, 4  ;;  %v9384_v14 = vld [vmem:[%s13571_s3 + $0x148] sm:$0xff]  }
 0x95f   : > { %v7622_v57 = vrot.slane %v7550_v3, %v13236_v41  ;;  %v7531_v39 = vsel %vm7452_vm11, %v7518_v52, %v7519_v42  ;;  %v9386_v3 = vld [vmem:[%s13571_s3 + $0x1c8] sm:$0xff]  }
 0x960   : > { %v7532_v6 = vsel %vm5020_vm0, %v7505_v19, %v7531_v39  ;;  %v7511_v17 = vpop.permute.xlu0 %7510  ;;  %v7509_v51 = vpop.permute.xlu1 %7508  ;;  %v9388_v39 = vld [vmem:[%s13571_s3 + $0x150] sm:$0xff]  }
 0x961   : > { %v7629_v33 = vrot.slane %v7622_v57, %v13236_v41  ;;  %v7746_v45 = vcombine.high %v7622_v57, %v7622_v57  ;;  %v7551_v8 = vmax.f32 %v13204_v15, %v7532_v6  ;;  %v7521_v24 = vrot.slane %v7511_v17, 4  ;;  %v9385_v57 = vld [vmem:[%s13571_s3 + $0x108] sm:$0xff]  }
 0x962   : > { %v7520_v16 = vrot.slane %v7509_v51, 4  ;;  %v9387_v6 = vld [vmem:[%s13571_s3 + $0x188] sm:$0xff]  }
 0x963   : > { %7632 = vst.msk [vmem:[#allocation4 + $0x3] ss:$8 sm:$0x3] %vm13262_vm2, %v7629_v33  ;;  %v7753_v40 = vrot.slane %v7746_v45, %v13236_v41  ;;  %v7821_v20 = vcombine.high %v7629_v33, %v7629_v33  ;;  %v7641_v46 = vrot.slane %v7551_v8, %v13236_v41  ;;  %v9392_v33 = vld [vmem:[%s13571_s3 + $0x158] sm:$0xff]   ;;  %v9391_v45 = vld [vmem:[%s13571_s3 + $0x190] sm:$0xff]  }
 0x964   : > { %v7533_v26 = vsel %vm7452_vm11, %v7519_v42, %v7520_v16  ;;  %v7535_v5 = vsel %vm7452_vm11, %v7520_v16, %v7521_v24  ;;  %v7513_v53 = vpop.permute.xlu1 %7512  ;;  %v9394_v8 = vld [vmem:[%s13571_s3 + $0x1d8] sm:$0xff]   ;;  %v9396_v16 = vld [vmem:[%s13571_s3 + $0x160] sm:$0xff]  }
 0x965   : > { %7756 = vst.msk [vmem:[#allocation4 + $0x13] ss:$8 sm:$0x3] %vm13262_vm2, %v7753_v40  ;;  %7824 = vst.msk [vmem:[#allocation4 + $0x23] ss:$8 sm:$0x3] %vm13262_vm2, %v7821_v20  ;;  %v7861_v15 = vcombine.high %v7753_v40, %v7753_v40  ;;  %v7648_v50 = vrot.slane %v7641_v46, %v13236_v41  ;;  %v7758_v21 = vcombine.high %v7641_v46, %v7641_v46 }
 0x966   : > { %v7534_v4 = vsel %vm5020_vm0, %v7507_v37, %v7533_v26  ;;  %v7536_v38 = vsel %vm5020_vm0, %v7509_v51, %v7535_v5  ;;  %v7522_v28 = vrot.slane %v7513_v53, 4  ;;  %v9389_v51 = vld [vmem:[%s13571_s3 + $0x110] sm:$0xff]   ;;  %v9395_v40 = vld [vmem:[%s13571_s3 + $0x198] sm:$0xff]   ;;  %v9398_v20 = vld [vmem:[%s13571_s3 + $0x1e0] sm:$0xff]  }
 0x967   : > { %v7552_v29 = vmax.f32 %v13143_v44, %v7534_v4  ;;  %7864 = vst.msk [vmem:[#allocation4 + $0x33] ss:$8 sm:$0x3] %vm13262_vm2, %v7861_v15  ;;  %7651 = vst.msk [vmem:[#allocation4 + $0x4] ss:$8 sm:$0x3] %vm13262_vm2, %v7648_v50  ;;  %v7765_v58 = vrot.slane %v7758_v21, %v13236_v41  ;;  %v7826_v43 = vcombine.high %v7648_v50, %v7648_v50 }
 0x968   : > { %v7553_v34 = vmax.f32 %v13150_v55, %v7536_v38  ;;  %v7537_v63 = vsel %vm7452_vm11, %v7521_v24, %v7522_v28  ;;  %v9393_v24 = vld [vmem:[%s13571_s3 + $0x118] sm:$0xff]   ;;  %v9397_v46 = vld [vmem:[%s13571_s3 + $0x120] sm:$0xff]   ;;  %v9400_v26 = vld [vmem:[%s13571_s3 + $0x168] sm:$0xff]  }
 0x969   : > { %v7660_v31 = vrot.slane %v7552_v29, %v13236_v41  ;;  %7768 = vst.msk [vmem:[#allocation4 + $0x14] ss:$8 sm:$0x3] %vm13262_vm2, %v7765_v58  ;;  %7829 = vst.msk [vmem:[#allocation4 + $0x24] ss:$8 sm:$0x3] %vm13262_vm2, %v7826_v43  ;;  %v7866_v44 = vcombine.high %v7765_v58, %v7765_v58  ;;  %v7538_v22 = vsel %vm5020_vm0, %v7511_v17, %v7537_v63 }
 0x96a   : > { %v7679_v36 = vrot.slane %v7553_v34, %v13236_v41  ;;  %v7554_v55 = vmax.f32 %v13159_v35, %v7538_v22  ;;  %v9390_v17 = vld [vmem:[%s13571_s3 + $0x1d0] sm:$0xff]   ;;  %v9399_v5 = vld [vmem:[%s13571_s3 + $0x1a0] sm:$0xff]   ;;  %v9402_v53 = vld [vmem:[%s13571_s3 + $0x1e8] sm:$0xff]   ;;  %vm8581_vm0 = vcmask 818176  }
 0x96b   : > { %v7667_v60 = vrot.slane %v7660_v31, %v13236_v41  ;;  %v7770_v9 = vcombine.high %v7660_v31, %v7660_v31  ;;  %7869 = vst.msk [vmem:[#allocation4 + $0x34] ss:$8 sm:$0x3] %vm13262_vm2, %v7866_v44  ;;  %v9401_v15 = vld [vmem:[%s13571_s3 + $0x128] sm:$0xff]   ;;  %v9404_v50 = vld [vmem:[%s13571_s3 + $0x170] sm:$0xff]   ;;  %v9408_v29 = vld [vmem:[%s13571_s3 + $0x178] sm:$0xff]  }
 0x96c   : > { %v7686_v25 = vrot.slane %v7679_v36, %v13236_v41  ;;  %v7782_v61 = vcombine.high %v7679_v36, %v7679_v36  ;;  %v7698_v2 = vrot.slane %v7554_v55, %v13236_v41  ;;  %v9403_v21 = vld [vmem:[%s13571_s3 + $0x1a8] sm:$0xff]   ;;  %v9406_v4 = vld [vmem:[%s13571_s3 + $0x1f0] sm:$0xff]   ;;  %v9410_v58 = vld [vmem:[%s13571_s3 + $0x1f8] sm:$0xff]  }
 0x96d   : > { %7670 = vst.msk [vmem:[#allocation4 + $0x5] ss:$8 sm:$0x3] %vm13262_vm2, %v7667_v60  ;;  %v7777_v32 = vrot.slane %v7770_v9, %v13236_v41  ;;  %v7831_v11 = vcombine.high %v7667_v60, %v7667_v60  ;;  %v9405_v38 = vld [vmem:[%s13571_s3 + $0x130] sm:$0xff]   ;;  %v9409_v43 = vld [vmem:[%s13571_s3 + $0x138] sm:$0xff]  }
 0x96e   : > { %7689 = vst.msk [vmem:[#allocation4 + $0x6] ss:$8 sm:$0x3] %vm13262_vm2, %v7686_v25  ;;  %v7789_v54 = vrot.slane %v7782_v61, %v13236_v41  ;;  %v7836_v35 = vcombine.high %v7686_v25, %v7686_v25  ;;  %v7705_v30 = vrot.slane %v7698_v2, %v13236_v41  ;;  %v7794_v48 = vcombine.high %v7698_v2, %v7698_v2  ;;  %v9407_v28 = vld [vmem:[%s13571_s3 + $0x1b0] sm:$0xff]   ;;  %v9411_v34 = vld [vmem:[%s13571_s3 + $0x1b8] sm:$0xff]  }
 0x96f   : > { %7780 = vst.msk [vmem:[#allocation4 + $0x15] ss:$8 sm:$0x3] %vm13262_vm2, %v7777_v32  ;;  %7834 = vst.msk [vmem:[#allocation4 + $0x25] ss:$8 sm:$0x3] %vm13262_vm2, %v7831_v11  ;;  %v7871_v27 = vcombine.high %v7777_v32, %v7777_v32 }
 0x970   : > { %7792 = vst.msk [vmem:[#allocation4 + $0x16] ss:$8 sm:$0x3] %vm13262_vm2, %v7789_v54  ;;  %7839 = vst.msk [vmem:[#allocation4 + $0x26] ss:$8 sm:$0x3] %vm13262_vm2, %v7836_v35  ;;  %v7876_v23 = vcombine.high %v7789_v54, %v7789_v54  ;;  %v7801_v0 = vrot.slane %v7794_v48, %v13236_v41  ;;  %v7841_v59 = vcombine.high %v7705_v30, %v7705_v30 }
 0x971   : > { %7874 = vst.msk [vmem:[#allocation4 + $0x35] ss:$8 sm:$0x3] %vm13262_vm2, %v7871_v27  ;;  %7708 = vst.msk [vmem:[#allocation4 + $0x7] ss:$8 sm:$0x3] %vm13262_vm2, %v7705_v30 }
 0x972   : > { %7879 = vst.msk [vmem:[#allocation4 + $0x36] ss:$8 sm:$0x3] %vm13262_vm2, %v7876_v23  ;;  %7804 = vst.msk [vmem:[#allocation4 + $0x17] ss:$8 sm:$0x3] %vm13262_vm2, %v7801_v0  ;;  %v7881_v12 = vcombine.high %v7801_v0, %v7801_v0 }
 0x973   : > { %7844 = vst.msk [vmem:[#allocation4 + $0x27] ss:$8 sm:$0x3] %vm13262_vm2, %v7841_v59  ;;  %v9381_v41 = vld [vmem:[%s13571_s3 + $0x100] sm:$0xff]  }
 0x974   : > { %7884 = vst.msk [vmem:[#allocation4 + $0x37] ss:$8 sm:$0x3] %vm13262_vm2, %v7881_v12  ;;  %v8728_v60 = vld [vmem:[#allocation10] ss:$0 sm:$0xff] }
 0x978   : > { %v7887_v56 = vld [vmem:[#allocation4 + $0x8] sm:$0xff]  ;;  %v7886_v13 = vld [vmem:[#allocation4] sm:$0xff] }
 0x979   : > { %v7895_v10 = vpack.c.bf16 %v7887_v56, %v7887_v56  ;;  %v7894_v18 = vpack.c.bf16 %v7886_v13, %v7886_v13  ;;  %v7889_v49 = vld [vmem:[#allocation4 + $0x18] sm:$0xff]  ;;  %v7888_v62 = vld [vmem:[#allocation4 + $0x10] sm:$0xff] }
 0x97a   : > { %v7891_v47 = vld [vmem:[#allocation4 + $0x28] sm:$0xff]  ;;  %v7897_v19 = vpack.c.bf16 %v7889_v49, %v7889_v49  ;;  %v7896_v7 = vpack.c.bf16 %v7888_v62, %v7888_v62  ;;  %v7890_v31 = vld [vmem:[#allocation4 + $0x20] sm:$0xff] }
 0x97b   : > { %8453 = vmatprep.mubr.bf16.mxu0 %v7895_v10  ;;  %v7899_v52 = vpack.c.bf16 %v7891_v47, %v7891_v47  ;;  %v7893_v37 = vld [vmem:[#allocation4 + $0x38] sm:$0xff]  ;;  %v7892_v63 = vld [vmem:[#allocation4 + $0x30] sm:$0xff]  ;;  %v7898_v44 = vpack.c.bf16 %v7890_v31, %v7890_v31 }
 0x97c   : > { %8454 = vmatmul.mubr.bf16.vlgmr.msra.gmra.mrb[80].mxu0 %v7894_v18  ;;  %8493 = vmatprep.mubr.bf16.mxu1 %v7897_v19  ;;  %v7901_v42 = vpack.c.bf16 %v7893_v37, %v7893_v37  ;;  %v7900_v36 = vpack.c.bf16 %v7892_v63, %v7892_v63 }
 0x97d   : > { %8842 = vmatpush3.bf16.msra.mxu0 %v9381_v41  ;;  %8533 = vmatprep.mubr.bf16.mxu0 %v7899_v52 }
 0x97e   : > { %8494 = vmatmul.mubr.bf16.vlgmr.msra.gmra.mrb[80].mxu1 %v7896_v7  ;;  %8843 = vmatprep.subr.bf16.mxu0 %v9384_v14 }
 0x97f   : > { %8864 = vmatpush3.bf16.msra.mxu1 %v9383_v1  ;;  %8573 = vmatprep.mubr.bf16.mxu1 %v7901_v42 }
 0x980   : > { %8865 = vmatprep.subr.bf16.mxu1 %v9386_v3 }
 0x981   : > { %8844 = vmatpush3.bf16.msra.mxu0 %v9385_v57 }
 0x982   : > { %8845 = vmatprep.subr.bf16.mxu0 %v9388_v39 }
 0x983   : > { %8866 = vmatpush3.bf16.msra.mxu1 %v9387_v6 }
 0x984   : > { %8867 = vmatprep.subr.bf16.mxu1 %v9390_v17 }
 0x985   : > { %8846 = vmatpush3.bf16.msra.mxu0 %v9389_v51 }
 0x986   : > { %8847 = vmatprep.subr.bf16.mxu0 %v9392_v33 }
 0x987   : > { %8868 = vmatpush3.bf16.msra.mxu1 %v9391_v45 }
 0x988   : > { %8869 = vmatprep.subr.bf16.mxu1 %v9394_v8 }
 0x989   : > { %8848 = vmatpush3.bf16.msra.mxu0 %v9393_v24 }
 0x98a   : > { %8849 = vmatprep.subr.bf16.mxu0 %v9396_v16 }
 0x98b   : > { %8870 = vmatpush3.bf16.msra.mxu1 %v9395_v40 }
 0x98c   : > { %8871 = vmatprep.subr.bf16.mxu1 %v9398_v20 }
 0x98d   : > { %8850 = vmatpush3.bf16.msra.mxu0 %v9397_v46 }
 0x98e   : > { %8851 = vmatprep.subr.bf16.mxu0 %v9400_v26 }
 0x98f   : > { %8872 = vmatpush3.bf16.msra.mxu1 %v9399_v5 }
 0x990   : > { %8873 = vmatprep.subr.bf16.mxu1 %v9402_v53 }
 0x991   : > { %8852 = vmatpush3.bf16.msra.mxu0 %v9401_v15 }
 0x992   : > { %8853 = vmatprep.subr.bf16.mxu0 %v9404_v50 }
 0x993   : > { %8874 = vmatpush3.bf16.msra.mxu1 %v9403_v21 }
 0x994   : > { %8875 = vmatprep.subr.bf16.mxu1 %v9406_v4 }
 0x995   : > { %8854 = vmatpush3.bf16.msra.mxu0 %v9405_v38 }
 0x996   : > { %8855 = vmatprep.subr.bf16.mxu0 %v9408_v29 }
 0x997   : > { %8876 = vmatpush3.bf16.msra.mxu1 %v9407_v28 }
 0x998   : > { %8877 = vmatprep.subr.bf16.mxu1 %v9410_v58 }
 0x999   : > { %8856 = vmatpush3.bf16.msra.mxu0 %v9409_v43 }
 0x99b   : > { %8878 = vmatpush3.bf16.msra.mxu1 %v9411_v34 }
 0x99c   : > { %8534 = vmatmul.mubr.bf16.vlgmr.msra.gmra.mrb[84].mxu0 %v7898_v44 }
 0x99e   : > { %8574 = vmatmul.mubr.bf16.vlgmr.msra.gmra.mrb[84].mxu1 %v7900_v36 }
 0xa4f   : > { %v8813_v22 = vpop.f32.mrb[80].mxu0 }
 0xa50   : > { %v8814_v9 = vpop.f32.mrb[81].mxu0 }
 0xa51   : > { %v8815_v55 = vadd.f32 %v8814_v9, %v8813_v22  ;;  %v8816_v25 = vpop.f32.mrb[82].mxu0  ;;  %v8835_v61 = vpop.f32.mrb[80].mxu1 }
 0xa52   : > { %v8817_v32 = vpop.f32.mrb[83].mxu0  ;;  %v8836_v11 = vpop.f32.mrb[81].mxu1 }
 0xa53   : > { %v8456_v2 = vadd.f32 %v8815_v55, %v8728_v60  ;;  %v8837_v54 = vadd.f32 %v8836_v11, %v8835_v61  ;;  %v8838_v35 = vpop.f32.mrb[82].mxu1 }
 0xa54   : > { %v8839_v27 = vpop.f32.mrb[83].mxu1 }
 0xa55   : > { %v8496_v30 = vadd.f32 %v8837_v54, %v8456_v2 }
 0xa6f   : > { %v8857_v48 = vpop.f32.mrb[84].mxu0 }
 0xa70   : > { %v8858_v23 = vpop.f32.mrb[85].mxu0 }
 0xa71   : > { %v8859_v0 = vadd.f32 %v8858_v23, %v8857_v48  ;;  %v8860_v59 = vpop.f32.mrb[86].mxu0  ;;  %v8879_v12 = vpop.f32.mrb[84].mxu1 }
 0xa72   : > { %v8861_v56 = vpop.f32.mrb[87].mxu0  ;;  %v8880_v13 = vpop.f32.mrb[85].mxu1 }
 0xa73   : > { %v8536_v10 = vadd.f32 %v8859_v0, %v8496_v30  ;;  %v8881_v18 = vadd.f32 %v8880_v13, %v8879_v12  ;;  %v8882_v41 = vpop.f32.mrb[86].mxu1 }
 0xa74   : > { %v8883_v49 = vpop.f32.mrb[87].mxu1 }
 0xa75   : > { %v8576_v47 = vadd.f32 %v8881_v18, %v8536_v10 }
 0xa77   : > { %8582 = vst.msk [vmem:[%s270_s9] sm:$0xff] %vm8581_vm0, %v8576_v47 }
 0xa78   : > { %9603 = shalt.err (!%p9600_p2)
}
 0xa79   : > { %s9604_s29 = scalar_lea.hbm %s13524_s2, 128  ;;  %s9608_s12 = scalar_lea.hbm %s13573_s5, 256 }
 0xa7a   : > { %p9605_p13 = scmp.ne.s32.totalorder %s13524_s2, %s9604_s29  ;;  %p9609_p4 = scmp.lt.u32.totalorder %s13524_s2, %s13573_s5 }
 0xa7b   : > { %p9610_p5 = scmp.lt.u32.totalorder %s9608_s12, %s9604_s29  ;;  %p9612_p11 = scmp.lt.u32.totalorder %s9604_s29, %s13524_s2 }
 0xa7c   : > { %p9606_p6 = pnand %p9605_p13, %p14009_p0 }
 0xa7d   : > { %p9611_p8 = por %p9610_p5, %p9609_p4 }
 0xa7e   : > { %p9607_p10 = pneg %p9606_p6 }
 0xa7f   : > { %p9613_p1 = por %p9612_p11, %p9611_p8 }
 0xa81   : > { %p9614_p3 = pnand %p9613_p1, %p9607_p10 }
 0xa83   : > { %9617 = shalt.err (!%p9614_p3)
}
 0xa84   : > { %9218 = dma.vmem_to_hbm [thread:$0]  (%p14009_p0), %s13526_s13, 128, %s13524_s2, %s8584_s22  }
 0xa85 PF: > { %s8609_s11 = sand.u32 1, %s9648_s18   ;;  %p14010_p7 = scmp.ne.s32.totalorder %s13708_s25, 0 }
 0xa86   : > { %p14011_p9 = scmp.ge.s32.totalorder %s9660_s21, 2  ;;  %s8610_s14 = scalar_lea.sflag [#allocation7], %s8609_s11 }
 0xa88   : > { %p9232_p12 = pnand %p14011_p9, %p14010_p7 }
 0xa8a   : > { %9643 = dma.done.wait (!%p9232_p12), %s8610_s14, 128  }
 0xa8b   : > { %9645 = vsyncadd (!%p9232_p12), %s8610_s14, 4294967168  ;;  %p19_p2 = scmp.ge.s32.totalorder %s9833_s15, 4   ;;  %s14012_s18 = smov %s9652_s19 }
 0xa8c   : > { %s14013_s19 = smov %s9656_s20  ;;  %s14014_s20 = smov %s9849_s23 }
 0xa8d   : > { %s14015_s21 = smov %s9833_s15  ;;  %21 = sbr.rel (!%p19_p2) target bundleno = 11 (0xb), region = 124 }
 0xa94   :  { %8615 = vsyncpa [#allocation6], 1 }
 0xa95   :  { %8617 = vsyncpa [#allocation6 + $0x1], 1 }
 0xa96   :  { %8618 = vsyncpa [#allocation9], 1 }
 0xa97   :  { %8619 = vsyncpa [#allocation7], 1 }
 0xa98   :  { %8621 = vsyncpa [#allocation7 + $0x1], 1 }

</bundles_post_ra>
